<compile_context>
chip_gen: v7x
topology: tpu7x:2x2x1
jax: 0.10.0
libtpu: 0.0.40
codegen_flags: <defaults>
</compile_context>

<pallas_src>
import functools

import numpy as np
import jax
import jax.numpy as jnp
from jax import lax
from jax.experimental import pallas as pl
from jax.experimental.pallas import tpu as pltpu


def _pool_matrix_t(H, W):
    """(Q, H*W) matrix PT s.t. PT @ x[b,c].reshape(HW) == AvgPool2d(3,2,1)(x)[b,c] flat."""
    H2 = (H + 2 - 3) // 2 + 1
    W2 = (W + 2 - 3) // 2 + 1
    P = np.zeros((H * W, H2 * W2), dtype=np.float32)
    for oi in range(H2):
        for oj in range(W2):
            for di in range(3):
                for dj in range(3):
                    ii = 2 * oi + di - 1
                    jj = 2 * oj + dj - 1
                    if 0 <= ii < H and 0 <= jj < W:
                        P[ii * W + jj, oi * W2 + oj] = 1.0 / 9.0  # count_include_pad
    return np.ascontiguousarray(P.T), H2, W2


def _pick_nqk(Q, n_hidden, itemsize=2, cap_bytes=4 * 1024 * 1024):
    """Number of 128-channel q-groups per w1 block: the largest divisor of Q whose
    (nqk*128, n_hidden) block fits cap_bytes, preferring >= 2 grid steps so the
    dominant w1 stream double-buffers.  The 4 MiB cap keeps the double buffer at
    8 MiB -> safe under v5e 16 MiB / v6e 32 MiB / v7x 32 MiB scoped-VMEM defaults."""
    divisors = [d for d in range(1, Q + 1) if Q % d == 0]
    fits = [d for d in divisors if d * 128 * n_hidden * itemsize <= cap_bytes]
    if not fits:
        return 1
    multi = [d for d in fits if Q // d >= 2]
    return max(multi) if multi else max(fits)


# --------------------------- fused aux-classifier kernel ---------------------------
def _aux_fused_kernel(xt_ref, ptT_ref, wct_ref, bc_ref, w1_ref, b1_ref,
                      w2_ref, b2_ref, o_ref, flat_sc, acc_sc, *, B, HW, Q, nqk):
    k = pl.program_id(0)

    # -------- prologue (k == 0): 1x1 conv + avg-pool -> lane-dense flat scratch ----
    @pl.when(k == 0)
    def _prologue():
        acc_sc[...] = jnp.zeros_like(acc_sc)
        # 1x1 conv first (no bias) on all B*HW pixels: lane-dense N=128 matmul.
        conv_all = jnp.dot(xt_ref[...], wct_ref[...],
                           preferred_element_type=jnp.float32)            # (B*HW, 128)
        for b in range(B):
            # AvgPool2d(3,2,1) as (Q, HW) @ (HW, 128); bias added after pooling,
            # which equals PyTorch's conv(pool(x)) + bias exactly.
            pc = jnp.dot(ptT_ref[...], conv_all[b * HW:(b + 1) * HW, :],
                         preferred_element_type=jnp.float32) + bc_ref[...]  # (Q, 128)
            # Scatter rows into the lane-dense flat layout flat[b, q*128 + c]
            # (matching the permuted w1 rows prepared on the host).
            for q in range(Q):
                kk, j = divmod(q, nqk)
                flat_sc[kk, b:b + 1, j * 128:(j + 1) * 128] = pc[q:q + 1, :]

    # ------- fc1 partial: (B, Kt) x (Kt, n_hidden) in bf16, f32 accumulation -------
    acc_sc[...] += jnp.dot(flat_sc[k].astype(w1_ref.dtype), w1_ref[...],
                           preferred_element_type=jnp.float32)

    # ---------- epilogue (k == last): fc1 bias + ReLU + fc2 (+ folded BN) ----------
    @pl.when(k == pl.num_programs(0) - 1)
    def _epilogue():
        h = jnp.maximum(acc_sc[...] + b1_ref[...], 0.0)
        # Dropout(p=0.7) is identity in eval mode; BatchNorm1d (eval, running stats)
        # and the fc2 bias are folded into w2_ref / b2_ref on the host.
        y = jnp.dot(h, w2_ref[...], preferred_element_type=jnp.float32) + b2_ref[...]
        o_ref[...] = y.astype(o_ref.dtype)


# ------------------------ one-time host-side weight preparation --------------------
def prepare_params(params, eps=1e-5):
    n_hidden, F = params["fc1_w"].shape
    Q = F // 128
    nc = params["fc2_w"].shape[0]
    ncp = max(128, ((nc + 127) // 128) * 128)

    wct = params["conv_w"].T.astype(jnp.float32)                       # (C, 128)
    bc = params["conv_b"].reshape(1, 128).astype(jnp.float32)

    # fc1 weight with the lane-dense (q, c) flatten order folded in, stored bf16
    # (it is the dominant HBM stream):  w1p[q*128 + c, n] = fc1_w[n, c*Q + q]
    w1p = (params["fc1_w"].reshape(n_hidden, 128, Q)
           .transpose(2, 1, 0).reshape(F, n_hidden).astype(jnp.bfloat16))
    b1 = params["fc1_b"].reshape(1, n_hidden).astype(jnp.float32)

    # Fold BatchNorm1d (eval) + fc2 bias into fc2 (kept f32: only ~0.5 MiB).
    s = params["bn_gamma"] * lax.rsqrt(params["bn_var"] + eps)         # (nc,)
    w2f = (params["fc2_w"].T * s[None, :]).astype(jnp.float32)         # (n_hidden, nc)
    b2f = ((params["fc2_b"] - params["bn_mean"]) * s
           + params["bn_beta"]).astype(jnp.float32)                    # (nc,)
    w2p = jnp.zeros((n_hidden, ncp), jnp.float32).at[:, :nc].set(w2f)
    b2p = jnp.zeros((1, ncp), jnp.float32).at[0, :nc].set(b2f)

    return dict(wct=wct, bc=bc, w1p=w1p, b1=b1, w2p=w2p, b2p=b2p)


# --------------------------------------- forward -----------------------------------
@functools.partial(jax.jit, static_argnames=("num_classes",))
def aux_classifier_forward(x, prep, *, num_classes):
    B, C, H, W = x.shape
    PT, H2, W2 = _pool_matrix_t(H, W)
    Q = H2 * W2
    F = 128 * Q
    HW = H * W
    n_hidden = prep["w1p"].shape[1]
    ncp = prep["w2p"].shape[1]
    assert prep["w1p"].shape[0] == F

    nqk = _pick_nqk(Q, n_hidden, itemsize=prep["w1p"].dtype.itemsize)
    Kt = nqk * 128
    nk = Q // nqk

    # Input layout prep only (tiny, fused by XLA): NCHW -> (B*HW, C).
    xt2 = x.transpose(0, 2, 3, 1).reshape(B * HW, C).astype(jnp.float32)
    ptT = jnp.asarray(PT)                                              # (Q, HW)

    flops = (2 * B * HW * C * 128            # 1x1 conv
             + 2 * B * Q * HW * 128          # avg-pool as matmul
             + 2 * B * F * n_hidden          # fc1
             + 2 * B * n_hidden * ncp)       # fc2
    bytes_accessed = (xt2.size * 4 + ptT.size * 4 + prep["wct"].size * 4
                      + prep["bc"].size * 4 + prep["w1p"].size * 2
                      + prep["b1"].size * 4 + prep["w2p"].size * 4
                      + prep["b2p"].size * 4 + B * ncp * 4)

    out_pad = pl.pallas_call(
        functools.partial(_aux_fused_kernel, B=B, HW=HW, Q=Q, nqk=nqk),
        out_shape=jax.ShapeDtypeStruct((B, ncp), jnp.float32),
        grid_spec=pltpu.PrefetchScalarGridSpec(
            num_scalar_prefetch=0,
            grid=(nk,),
            in_specs=[
                pl.BlockSpec((B * HW, C), lambda k: (0, 0)),        # x, NHWC-flat
                pl.BlockSpec((Q, HW), lambda k: (0, 0)),            # pool matrix
                pl.BlockSpec((C, 128), lambda k: (0, 0)),           # conv weight^T
                pl.BlockSpec((1, 128), lambda k: (0, 0)),           # conv bias
                pl.BlockSpec((Kt, n_hidden), lambda k: (k, 0)),     # fc1 weight (bf16 stream)
                pl.BlockSpec((1, n_hidden), lambda k: (0, 0)),      # fc1 bias
                pl.BlockSpec((n_hidden, ncp), lambda k: (0, 0)),    # fc2 weight (BN folded)
                pl.BlockSpec((1, ncp), lambda k: (0, 0)),           # fc2 bias (BN folded)
            ],
            out_specs=pl.BlockSpec((B, ncp), lambda k: (0, 0)),
            scratch_shapes=[
                pltpu.VMEM((nk, B, Kt), jnp.float32),    # flat activations
                pltpu.VMEM((B, n_hidden), jnp.float32),  # fc1 accumulator
            ],
        ),
        compiler_params=pltpu.CompilerParams(
            dimension_semantics=("arbitrary",),
            vmem_limit_bytes=32 * 1024 * 1024,
        ),
        cost_estimate=pl.CostEstimate(
            flops=flops, transcendentals=0, bytes_accessed=bytes_accessed),
    )(xt2, ptT, prep["wct"], prep["bc"], prep["w1p"], prep["b1"],
      prep["w2p"], prep["b2p"])

    return out_pad[:, :num_classes]


# ------------------------ deterministic parameter initialization -------------------
def init_params(key, in_channel, figure_size, num_classes):
    F = figure_size * figure_size * 128 // 4
    ks = jax.random.split(key, 6)

    def unif(k, shape, fan_in):
        b = 1.0 / np.sqrt(fan_in)
        return jax.random.uniform(k, shape, jnp.float32, -b, b)

    return dict(
        conv_w=unif(ks[0], (128, in_channel), in_channel),   # 1x1 conv weight
        conv_b=unif(ks[1], (128,), in_channel),
        fc1_w=unif(ks[2], (1024, F), F),
        fc1_b=unif(ks[3], (1024,), F),
        fc2_w=unif(ks[4], (num_classes, 1024), 1024),
        fc2_b=unif(ks[5], (num_classes,), 1024),
        bn_gamma=jnp.ones((num_classes,), jnp.float32),
        bn_beta=jnp.zeros((num_classes,), jnp.float32),
        bn_mean=jnp.zeros((num_classes,), jnp.float32),
        bn_var=jnp.ones((num_classes,), jnp.float32),
    )


# --------------------------------- pure-JAX reference ------------------------------
def reference_forward(x, params):
    B, C, H, W = x.shape
    xp = jnp.pad(x, ((0, 0), (0, 0), (1, 1), (1, 1)))
    pooled = lax.reduce_window(xp, 0.0, lax.add, (1, 1, 3, 3),
                               (1, 1, 2, 2), "VALID") / 9.0
    conv = jnp.einsum("oc,bchw->bohw", params["conv_w"], pooled,
                      precision="highest") + params["conv_b"][None, :, None, None]
    flat = conv.reshape(B, -1)
    h = jnp.maximum(jnp.dot(flat, params["fc1_w"].T, precision="highest")
                    + params["fc1_b"], 0.0)
    y = jnp.dot(h, params["fc2_w"].T, precision="highest") + params["fc2_b"]
    y = (y - params["bn_mean"]) / jnp.sqrt(params["bn_var"] + 1e-5) \
        * params["bn_gamma"] + params["bn_beta"]
    return y


if __name__ == "__main__":
    B, C_in, figure_size, num_classes = 2, 4, 16, 10
    key = jax.random.PRNGKey(0)
    kx, kp = jax.random.split(key)
    x = jax.random.normal(kx, (B, C_in, figure_size, figure_size), jnp.float32)
    params = init_params(kp, C_in, figure_size, num_classes)
    prep = prepare_params(params)      # one-time host-side weight prep (bf16 fc1 / BN fold)

    out = jax.block_until_ready(
        aux_classifier_forward(x, prep, num_classes=num_classes))
    ref = reference_forward(x, params)

    assert out.shape == (B, num_classes)
    # Tolerance reflects the bf16-quantized fc1 weight/activation stream (f32 accumulate).
    assert jnp.allclose(out, ref, rtol=5e-3, atol=5e-3), (out, ref)
    print("KERNEL_OK")
</pallas_src>

<mosaic_0001>
module attributes {stable_mosaic.version = 11 : i64} {
  func.func @_aux_fused_kernel(%arg0: i32, %arg1: memref<512x4xf32, #tpu.memory_space<vmem>>, %arg2: memref<64x256xf32, #tpu.memory_space<vmem>>, %arg3: memref<4x128xf32, #tpu.memory_space<vmem>>, %arg4: memref<1x128xf32, #tpu.memory_space<vmem>>, %arg5: memref<2048x1024xbf16, #tpu.memory_space<vmem>>, %arg6: memref<1x1024xf32, #tpu.memory_space<vmem>>, %arg7: memref<1024x128xf32, #tpu.memory_space<vmem>>, %arg8: memref<1x128xf32, #tpu.memory_space<vmem>>, %arg9: memref<2x128xf32, #tpu.memory_space<vmem>>, %arg10: memref<4x2x2048xf32, #tpu.memory_space<vmem>>, %arg11: memref<2x1024xf32, #tpu.memory_space<vmem>>) attributes {dimension_semantics = [#tpu.dimension_semantics<arbitrary>], iteration_bounds = array<i64: 4>, scalar_prefetch = 0 : i64, scratch_operands = 2 : i64, tpu.core_type = #tpu.core_type<tc>, window_params = [{pipeline_mode = #tpu.pipeline_mode<synchronous>, transform_indices = @transform_0, window_bounds = array<i64: 512, 4>}, {pipeline_mode = #tpu.pipeline_mode<synchronous>, transform_indices = @transform_1, window_bounds = array<i64: 64, 256>}, {pipeline_mode = #tpu.pipeline_mode<synchronous>, transform_indices = @transform_2, window_bounds = array<i64: 4, 128>}, {pipeline_mode = #tpu.pipeline_mode<synchronous>, transform_indices = @transform_3, window_bounds = array<i64: 1, 128>}, {transform_indices = @transform_4, window_bounds = array<i64: 2048, 1024>}, {pipeline_mode = #tpu.pipeline_mode<synchronous>, transform_indices = @transform_5, window_bounds = array<i64: 1, 1024>}, {pipeline_mode = #tpu.pipeline_mode<synchronous>, transform_indices = @transform_6, window_bounds = array<i64: 1024, 128>}, {pipeline_mode = #tpu.pipeline_mode<synchronous>, transform_indices = @transform_7, window_bounds = array<i64: 1, 128>}, {pipeline_mode = #tpu.pipeline_mode<synchronous>, transform_indices = @transform_8, window_bounds = array<i64: 2, 128>}]} {
    %c0_i32 = arith.constant 0 : i32
    %0 = arith.cmpi eq, %arg0, %c0_i32 : i32
    %1 = arith.extui %0 : i1 to i32
    %c0_i32_0 = arith.constant 0 : i32
    %2 = arith.cmpi ne, %1, %c0_i32_0 : i32
    scf.if %2 {
      %cst_9 = arith.constant 0.000000e+00 : f32
      %15 = vector.broadcast %cst_9 : f32 to vector<2x1024xf32>
      %c0_10 = arith.constant 0 : index
      %c0_11 = arith.constant 0 : index
      %16 = vector.load %arg11[%c0_10, %c0_11] : memref<2x1024xf32, #tpu.memory_space<vmem>>, vector<2x1024xf32>
      tpu.vector_store %arg11[%c0_10, %c0_11], %15 {strides = array<i32>} : memref<2x1024xf32, #tpu.memory_space<vmem>>, vector<2x1024xf32>,
      %c0_12 = arith.constant 0 : index
      %c0_13 = arith.constant 0 : index
      %17 = vector.load %arg1[%c0_12, %c0_13] : memref<512x4xf32, #tpu.memory_space<vmem>>, vector<512x4xf32>
      %c0_14 = arith.constant 0 : index
      %c0_15 = arith.constant 0 : index
      %18 = vector.load %arg3[%c0_14, %c0_15] : memref<4x128xf32, #tpu.memory_space<vmem>>, vector<4x128xf32>
      %cst_16 = arith.constant dense<0.000000e+00> : vector<512x128xf32>
      %19 = tpu.matmul %17, %18, %cst_16 {dimension_numbers = #tpu.dot_dimension_numbers<[1], [0], [0], [1], [0, 0, 1, 1], [], []>} : vector<512x4xf32>, vector<4x128xf32>, vector<512x128xf32> -> vector<512x128xf32>
      %c0_17 = arith.constant 0 : index
      %c0_18 = arith.constant 0 : index
      %20 = vector.load %arg2[%c0_17, %c0_18] : memref<64x256xf32, #tpu.memory_space<vmem>>, vector<64x256xf32>
      %21 = vector.extract_strided_slice %19 {offsets = [0, 0], sizes = [256, 128], strides = [1, 1]} : vector<512x128xf32> to vector<256x128xf32>
      %cst_19 = arith.constant dense<0.000000e+00> : vector<64x128xf32>
      %22 = tpu.matmul %20, %21, %cst_19 {dimension_numbers = #tpu.dot_dimension_numbers<[1], [0], [0], [1], [0, 0, 1, 1], [], []>} : vector<64x256xf32>, vector<256x128xf32>, vector<64x128xf32> -> vector<64x128xf32>
      %c0_20 = arith.constant 0 : index
      %c0_21 = arith.constant 0 : index
      %23 = vector.load %arg4[%c0_20, %c0_21] : memref<1x128xf32, #tpu.memory_space<vmem>>, vector<1x128xf32>
      %24 = vector.broadcast %23 : vector<1x128xf32> to vector<64x128xf32>
      %25 = arith.addf %22, %24 : vector<64x128xf32>
      %26 = vector.extract_strided_slice %25 {offsets = [0, 0], sizes = [1, 128], strides = [1, 1]} : vector<64x128xf32> to vector<1x128xf32>
      %c0_22 = arith.constant 0 : index
      %c0_23 = arith.constant 0 : index
      %c0_24 = arith.constant 0 : index
      %27 = vector.load %arg10[%c0_22, %c0_23, %c0_24] : memref<4x2x2048xf32, #tpu.memory_space<vmem>>, vector<1x1x128xf32>
      %28 = vector.shape_cast %27 : vector<1x1x128xf32> to vector<1x128xf32>
      %29 = vector.shape_cast %26 : vector<1x128xf32> to vector<1x1x128xf32>
      tpu.vector_store %arg10[%c0_22, %c0_23, %c0_24], %29 {strides = array<i32>} : memref<4x2x2048xf32, #tpu.memory_space<vmem>>, vector<1x1x128xf32>,
      %30 = vector.extract_strided_slice %25 {offsets = [1, 0], sizes = [1, 128], strides = [1, 1]} : vector<64x128xf32> to vector<1x128xf32>
      %c0_25 = arith.constant 0 : index
      %c0_26 = arith.constant 0 : index
      %c128 = arith.constant 128 : index
      %31 = vector.load %arg10[%c0_25, %c0_26, %c128] : memref<4x2x2048xf32, #tpu.memory_space<vmem>>, vector<1x1x128xf32>
      %32 = vector.shape_cast %31 : vector<1x1x128xf32> to vector<1x128xf32>
      %33 = vector.shape_cast %30 : vector<1x128xf32> to vector<1x1x128xf32>
      tpu.vector_store %arg10[%c0_25, %c0_26, %c128], %33 {strides = array<i32>} : memref<4x2x2048xf32, #tpu.memory_space<vmem>>, vector<1x1x128xf32>,
      %34 = vector.extract_strided_slice %25 {offsets = [2, 0], sizes = [1, 128], strides = [1, 1]} : vector<64x128xf32> to vector<1x128xf32>
      %c0_27 = arith.constant 0 : index
      %c0_28 = arith.constant 0 : index
      %c256 = arith.constant 256 : index
      %35 = vector.load %arg10[%c0_27, %c0_28, %c256] : memref<4x2x2048xf32, #tpu.memory_space<vmem>>, vector<1x1x128xf32>
      %36 = vector.shape_cast %35 : vector<1x1x128xf32> to vector<1x128xf32>
      %37 = vector.shape_cast %34 : vector<1x128xf32> to vector<1x1x128xf32>
      tpu.vector_store %arg10[%c0_27, %c0_28, %c256], %37 {strides = array<i32>} : memref<4x2x2048xf32, #tpu.memory_space<vmem>>, vector<1x1x128xf32>,
      %38 = vector.extract_strided_slice %25 {offsets = [3, 0], sizes = [1, 128], strides = [1, 1]} : vector<64x128xf32> to vector<1x128xf32>
      %c0_29 = arith.constant 0 : index
      %c0_30 = arith.constant 0 : index
      %c384 = arith.constant 384 : index
      %39 = vector.load %arg10[%c0_29, %c0_30, %c384] : memref<4x2x2048xf32, #tpu.memory_space<vmem>>, vector<1x1x128xf32>
      %40 = vector.shape_cast %39 : vector<1x1x128xf32> to vector<1x128xf32>
      %41 = vector.shape_cast %38 : vector<1x128xf32> to vector<1x1x128xf32>
      tpu.vector_store %arg10[%c0_29, %c0_30, %c384], %41 {strides = array<i32>} : memref<4x2x2048xf32, #tpu.memory_space<vmem>>, vector<1x1x128xf32>,
      %42 = vector.extract_strided_slice %25 {offsets = [4, 0], sizes = [1, 128], strides = [1, 1]} : vector<64x128xf32> to vector<1x128xf32>
      %c0_31 = arith.constant 0 : index
      %c0_32 = arith.constant 0 : index
      %c512 = arith.constant 512 : index
      %43 = vector.load %arg10[%c0_31, %c0_32, %c512] : memref<4x2x2048xf32, #tpu.memory_space<vmem>>, vector<1x1x128xf32>
      %44 = vector.shape_cast %43 : vector<1x1x128xf32> to vector<1x128xf32>
      %45 = vector.shape_cast %42 : vector<1x128xf32> to vector<1x1x128xf32>
      tpu.vector_store %arg10[%c0_31, %c0_32, %c512], %45 {strides = array<i32>} : memref<4x2x2048xf32, #tpu.memory_space<vmem>>, vector<1x1x128xf32>,
      %46 = vector.extract_strided_slice %25 {offsets = [5, 0], sizes = [1, 128], strides = [1, 1]} : vector<64x128xf32> to vector<1x128xf32>
      %c0_33 = arith.constant 0 : index
      %c0_34 = arith.constant 0 : index
      %c640 = arith.constant 640 : index
      %47 = vector.load %arg10[%c0_33, %c0_34, %c640] : memref<4x2x2048xf32, #tpu.memory_space<vmem>>, vector<1x1x128xf32>
      %48 = vector.shape_cast %47 : vector<1x1x128xf32> to vector<1x128xf32>
      %49 = vector.shape_cast %46 : vector<1x128xf32> to vector<1x1x128xf32>
      tpu.vector_store %arg10[%c0_33, %c0_34, %c640], %49 {strides = array<i32>} : memref<4x2x2048xf32, #tpu.memory_space<vmem>>, vector<1x1x128xf32>,
      %50 = vector.extract_strided_slice %25 {offsets = [6, 0], sizes = [1, 128], strides = [1, 1]} : vector<64x128xf32> to vector<1x128xf32>
      %c0_35 = arith.constant 0 : index
      %c0_36 = arith.constant 0 : index
      %c768 = arith.constant 768 : index
      %51 = vector.load %arg10[%c0_35, %c0_36, %c768] : memref<4x2x2048xf32, #tpu.memory_space<vmem>>, vector<1x1x128xf32>
      %52 = vector.shape_cast %51 : vector<1x1x128xf32> to vector<1x128xf32>
      %53 = vector.shape_cast %50 : vector<1x128xf32> to vector<1x1x128xf32>
      tpu.vector_store %arg10[%c0_35, %c0_36, %c768], %53 {strides = array<i32>} : memref<4x2x2048xf32, #tpu.memory_space<vmem>>, vector<1x1x128xf32>,
      %54 = vector.extract_strided_slice %25 {offsets = [7, 0], sizes = [1, 128], strides = [1, 1]} : vector<64x128xf32> to vector<1x128xf32>
      %c0_37 = arith.constant 0 : index
      %c0_38 = arith.constant 0 : index
      %c896 = arith.constant 896 : index
      %55 = vector.load %arg10[%c0_37, %c0_38, %c896] : memref<4x2x2048xf32, #tpu.memory_space<vmem>>, vector<1x1x128xf32>
      %56 = vector.shape_cast %55 : vector<1x1x128xf32> to vector<1x128xf32>
      %57 = vector.shape_cast %54 : vector<1x128xf32> to vector<1x1x128xf32>
      tpu.vector_store %arg10[%c0_37, %c0_38, %c896], %57 {strides = array<i32>} : memref<4x2x2048xf32, #tpu.memory_space<vmem>>, vector<1x1x128xf32>,
      %58 = vector.extract_strided_slice %25 {offsets = [8, 0], sizes = [1, 128], strides = [1, 1]} : vector<64x128xf32> to vector<1x128xf32>
      %c0_39 = arith.constant 0 : index
      %c0_40 = arith.constant 0 : index
      %c1024 = arith.constant 1024 : index
      %59 = vector.load %arg10[%c0_39, %c0_40, %c1024] : memref<4x2x2048xf32, #tpu.memory_space<vmem>>, vector<1x1x128xf32>
      %60 = vector.shape_cast %59 : vector<1x1x128xf32> to vector<1x128xf32>
      %61 = vector.shape_cast %58 : vector<1x128xf32> to vector<1x1x128xf32>
      tpu.vector_store %arg10[%c0_39, %c0_40, %c1024], %61 {strides = array<i32>} : memref<4x2x2048xf32, #tpu.memory_space<vmem>>, vector<1x1x128xf32>,
      %62 = vector.extract_strided_slice %25 {offsets = [9, 0], sizes = [1, 128], strides = [1, 1]} : vector<64x128xf32> to vector<1x128xf32>
      %c0_41 = arith.constant 0 : index
      %c0_42 = arith.constant 0 : index
      %c1152 = arith.constant 1152 : index
      %63 = vector.load %arg10[%c0_41, %c0_42, %c1152] : memref<4x2x2048xf32, #tpu.memory_space<vmem>>, vector<1x1x128xf32>
      %64 = vector.shape_cast %63 : vector<1x1x128xf32> to vector<1x128xf32>
      %65 = vector.shape_cast %62 : vector<1x128xf32> to vector<1x1x128xf32>
      tpu.vector_store %arg10[%c0_41, %c0_42, %c1152], %65 {strides = array<i32>} : memref<4x2x2048xf32, #tpu.memory_space<vmem>>, vector<1x1x128xf32>,
      %66 = vector.extract_strided_slice %25 {offsets = [10, 0], sizes = [1, 128], strides = [1, 1]} : vector<64x128xf32> to vector<1x128xf32>
      %c0_43 = arith.constant 0 : index
      %c0_44 = arith.constant 0 : index
      %c1280 = arith.constant 1280 : index
      %67 = vector.load %arg10[%c0_43, %c0_44, %c1280] : memref<4x2x2048xf32, #tpu.memory_space<vmem>>, vector<1x1x128xf32>
      %68 = vector.shape_cast %67 : vector<1x1x128xf32> to vector<1x128xf32>
      %69 = vector.shape_cast %66 : vector<1x128xf32> to vector<1x1x128xf32>
      tpu.vector_store %arg10[%c0_43, %c0_44, %c1280], %69 {strides = array<i32>} : memref<4x2x2048xf32, #tpu.memory_space<vmem>>, vector<1x1x128xf32>,
      %70 = vector.extract_strided_slice %25 {offsets = [11, 0], sizes = [1, 128], strides = [1, 1]} : vector<64x128xf32> to vector<1x128xf32>
      %c0_45 = arith.constant 0 : index
      %c0_46 = arith.constant 0 : index
      %c1408 = arith.constant 1408 : index
      %71 = vector.load %arg10[%c0_45, %c0_46, %c1408] : memref<4x2x2048xf32, #tpu.memory_space<vmem>>, vector<1x1x128xf32>
      %72 = vector.shape_cast %71 : vector<1x1x128xf32> to vector<1x128xf32>
      %73 = vector.shape_cast %70 : vector<1x128xf32> to vector<1x1x128xf32>
      tpu.vector_store %arg10[%c0_45, %c0_46, %c1408], %73 {strides = array<i32>} : memref<4x2x2048xf32, #tpu.memory_space<vmem>>, vector<1x1x128xf32>,
      %74 = vector.extract_strided_slice %25 {offsets = [12, 0], sizes = [1, 128], strides = [1, 1]} : vector<64x128xf32> to vector<1x128xf32>
      %c0_47 = arith.constant 0 : index
      %c0_48 = arith.constant 0 : index
      %c1536 = arith.constant 1536 : index
      %75 = vector.load %arg10[%c0_47, %c0_48, %c1536] : memref<4x2x2048xf32, #tpu.memory_space<vmem>>, vector<1x1x128xf32>
      %76 = vector.shape_cast %75 : vector<1x1x128xf32> to vector<1x128xf32>
      %77 = vector.shape_cast %74 : vector<1x128xf32> to vector<1x1x128xf32>
      tpu.vector_store %arg10[%c0_47, %c0_48, %c1536], %77 {strides = array<i32>} : memref<4x2x2048xf32, #tpu.memory_space<vmem>>, vector<1x1x128xf32>,
      %78 = vector.extract_strided_slice %25 {offsets = [13, 0], sizes = [1, 128], strides = [1, 1]} : vector<64x128xf32> to vector<1x128xf32>
      %c0_49 = arith.constant 0 : index
      %c0_50 = arith.constant 0 : index
      %c1664 = arith.constant 1664 : index
      %79 = vector.load %arg10[%c0_49, %c0_50, %c1664] : memref<4x2x2048xf32, #tpu.memory_space<vmem>>, vector<1x1x128xf32>
      %80 = vector.shape_cast %79 : vector<1x1x128xf32> to vector<1x128xf32>
      %81 = vector.shape_cast %78 : vector<1x128xf32> to vector<1x1x128xf32>
      tpu.vector_store %arg10[%c0_49, %c0_50, %c1664], %81 {strides = array<i32>} : memref<4x2x2048xf32, #tpu.memory_space<vmem>>, vector<1x1x128xf32>,
      %82 = vector.extract_strided_slice %25 {offsets = [14, 0], sizes = [1, 128], strides = [1, 1]} : vector<64x128xf32> to vector<1x128xf32>
      %c0_51 = arith.constant 0 : index
      %c0_52 = arith.constant 0 : index
      %c1792 = arith.constant 1792 : index
      %83 = vector.load %arg10[%c0_51, %c0_52, %c1792] : memref<4x2x2048xf32, #tpu.memory_space<vmem>>, vector<1x1x128xf32>
      %84 = vector.shape_cast %83 : vector<1x1x128xf32> to vector<1x128xf32>
      %85 = vector.shape_cast %82 : vector<1x128xf32> to vector<1x1x128xf32>
      tpu.vector_store %arg10[%c0_51, %c0_52, %c1792], %85 {strides = array<i32>} : memref<4x2x2048xf32, #tpu.memory_space<vmem>>, vector<1x1x128xf32>,
      %86 = vector.extract_strided_slice %25 {offsets = [15, 0], sizes = [1, 128], strides = [1, 1]} : vector<64x128xf32> to vector<1x128xf32>
      %c0_53 = arith.constant 0 : index
      %c0_54 = arith.constant 0 : index
      %c1920 = arith.constant 1920 : index
      %87 = vector.load %arg10[%c0_53, %c0_54, %c1920] : memref<4x2x2048xf32, #tpu.memory_space<vmem>>, vector<1x1x128xf32>
      %88 = vector.shape_cast %87 : vector<1x1x128xf32> to vector<1x128xf32>
      %89 = vector.shape_cast %86 : vector<1x128xf32> to vector<1x1x128xf32>
      tpu.vector_store %arg10[%c0_53, %c0_54, %c1920], %89 {strides = array<i32>} : memref<4x2x2048xf32, #tpu.memory_space<vmem>>, vector<1x1x128xf32>,
      %90 = vector.extract_strided_slice %25 {offsets = [16, 0], sizes = [1, 128], strides = [1, 1]} : vector<64x128xf32> to vector<1x128xf32>
      %c1 = arith.constant 1 : index
      %c0_55 = arith.constant 0 : index
      %c0_56 = arith.constant 0 : index
      %91 = vector.load %arg10[%c1, %c0_55, %c0_56] : memref<4x2x2048xf32, #tpu.memory_space<vmem>>, vector<1x1x128xf32>
      %92 = vector.shape_cast %91 : vector<1x1x128xf32> to vector<1x128xf32>
      %93 = vector.shape_cast %90 : vector<1x128xf32> to vector<1x1x128xf32>
      tpu.vector_store %arg10[%c1, %c0_55, %c0_56], %93 {strides = array<i32>} : memref<4x2x2048xf32, #tpu.memory_space<vmem>>, vector<1x1x128xf32>,
      %94 = vector.extract_strided_slice %25 {offsets = [17, 0], sizes = [1, 128], strides = [1, 1]} : vector<64x128xf32> to vector<1x128xf32>
      %c1_57 = arith.constant 1 : index
      %c0_58 = arith.constant 0 : index
      %c128_59 = arith.constant 128 : index
      %95 = vector.load %arg10[%c1_57, %c0_58, %c128_59] : memref<4x2x2048xf32, #tpu.memory_space<vmem>>, vector<1x1x128xf32>
      %96 = vector.shape_cast %95 : vector<1x1x128xf32> to vector<1x128xf32>
      %97 = vector.shape_cast %94 : vector<1x128xf32> to vector<1x1x128xf32>
      tpu.vector_store %arg10[%c1_57, %c0_58, %c128_59], %97 {strides = array<i32>} : memref<4x2x2048xf32, #tpu.memory_space<vmem>>, vector<1x1x128xf32>,
      %98 = vector.extract_strided_slice %25 {offsets = [18, 0], sizes = [1, 128], strides = [1, 1]} : vector<64x128xf32> to vector<1x128xf32>
      %c1_60 = arith.constant 1 : index
      %c0_61 = arith.constant 0 : index
      %c256_62 = arith.constant 256 : index
      %99 = vector.load %arg10[%c1_60, %c0_61, %c256_62] : memref<4x2x2048xf32, #tpu.memory_space<vmem>>, vector<1x1x128xf32>
      %100 = vector.shape_cast %99 : vector<1x1x128xf32> to vector<1x128xf32>
      %101 = vector.shape_cast %98 : vector<1x128xf32> to vector<1x1x128xf32>
      tpu.vector_store %arg10[%c1_60, %c0_61, %c256_62], %101 {strides = array<i32>} : memref<4x2x2048xf32, #tpu.memory_space<vmem>>, vector<1x1x128xf32>,
      %102 = vector.extract_strided_slice %25 {offsets = [19, 0], sizes = [1, 128], strides = [1, 1]} : vector<64x128xf32> to vector<1x128xf32>
      %c1_63 = arith.constant 1 : index
      %c0_64 = arith.constant 0 : index
      %c384_65 = arith.constant 384 : index
      %103 = vector.load %arg10[%c1_63, %c0_64, %c384_65] : memref<4x2x2048xf32, #tpu.memory_space<vmem>>, vector<1x1x128xf32>
      %104 = vector.shape_cast %103 : vector<1x1x128xf32> to vector<1x128xf32>
      %105 = vector.shape_cast %102 : vector<1x128xf32> to vector<1x1x128xf32>
      tpu.vector_store %arg10[%c1_63, %c0_64, %c384_65], %105 {strides = array<i32>} : memref<4x2x2048xf32, #tpu.memory_space<vmem>>, vector<1x1x128xf32>,
      %106 = vector.extract_strided_slice %25 {offsets = [20, 0], sizes = [1, 128], strides = [1, 1]} : vector<64x128xf32> to vector<1x128xf32>
      %c1_66 = arith.constant 1 : index
      %c0_67 = arith.constant 0 : index
      %c512_68 = arith.constant 512 : index
      %107 = vector.load %arg10[%c1_66, %c0_67, %c512_68] : memref<4x2x2048xf32, #tpu.memory_space<vmem>>, vector<1x1x128xf32>
      %108 = vector.shape_cast %107 : vector<1x1x128xf32> to vector<1x128xf32>
      %109 = vector.shape_cast %106 : vector<1x128xf32> to vector<1x1x128xf32>
      tpu.vector_store %arg10[%c1_66, %c0_67, %c512_68], %109 {strides = array<i32>} : memref<4x2x2048xf32, #tpu.memory_space<vmem>>, vector<1x1x128xf32>,
      %110 = vector.extract_strided_slice %25 {offsets = [21, 0], sizes = [1, 128], strides = [1, 1]} : vector<64x128xf32> to vector<1x128xf32>
      %c1_69 = arith.constant 1 : index
      %c0_70 = arith.constant 0 : index
      %c640_71 = arith.constant 640 : index
      %111 = vector.load %arg10[%c1_69, %c0_70, %c640_71] : memref<4x2x2048xf32, #tpu.memory_space<vmem>>, vector<1x1x128xf32>
      %112 = vector.shape_cast %111 : vector<1x1x128xf32> to vector<1x128xf32>
      %113 = vector.shape_cast %110 : vector<1x128xf32> to vector<1x1x128xf32>
      tpu.vector_store %arg10[%c1_69, %c0_70, %c640_71], %113 {strides = array<i32>} : memref<4x2x2048xf32, #tpu.memory_space<vmem>>, vector<1x1x128xf32>,
      %114 = vector.extract_strided_slice %25 {offsets = [22, 0], sizes = [1, 128], strides = [1, 1]} : vector<64x128xf32> to vector<1x128xf32>
      %c1_72 = arith.constant 1 : index
      %c0_73 = arith.constant 0 : index
      %c768_74 = arith.constant 768 : index
      %115 = vector.load %arg10[%c1_72, %c0_73, %c768_74] : memref<4x2x2048xf32, #tpu.memory_space<vmem>>, vector<1x1x128xf32>
      %116 = vector.shape_cast %115 : vector<1x1x128xf32> to vector<1x128xf32>
      %117 = vector.shape_cast %114 : vector<1x128xf32> to vector<1x1x128xf32>
      tpu.vector_store %arg10[%c1_72, %c0_73, %c768_74], %117 {strides = array<i32>} : memref<4x2x2048xf32, #tpu.memory_space<vmem>>, vector<1x1x128xf32>,
      %118 = vector.extract_strided_slice %25 {offsets = [23, 0], sizes = [1, 128], strides = [1, 1]} : vector<64x128xf32> to vector<1x128xf32>
      %c1_75 = arith.constant 1 : index
      %c0_76 = arith.constant 0 : index
      %c896_77 = arith.constant 896 : index
      %119 = vector.load %arg10[%c1_75, %c0_76, %c896_77] : memref<4x2x2048xf32, #tpu.memory_space<vmem>>, vector<1x1x128xf32>
      %120 = vector.shape_cast %119 : vector<1x1x128xf32> to vector<1x128xf32>
      %121 = vector.shape_cast %118 : vector<1x128xf32> to vector<1x1x128xf32>
      tpu.vector_store %arg10[%c1_75, %c0_76, %c896_77], %121 {strides = array<i32>} : memref<4x2x2048xf32, #tpu.memory_space<vmem>>, vector<1x1x128xf32>,
      %122 = vector.extract_strided_slice %25 {offsets = [24, 0], sizes = [1, 128], strides = [1, 1]} : vector<64x128xf32> to vector<1x128xf32>
      %c1_78 = arith.constant 1 : index
      %c0_79 = arith.constant 0 : index
      %c1024_80 = arith.constant 1024 : index
      %123 = vector.load %arg10[%c1_78, %c0_79, %c1024_80] : memref<4x2x2048xf32, #tpu.memory_space<vmem>>, vector<1x1x128xf32>
      %124 = vector.shape_cast %123 : vector<1x1x128xf32> to vector<1x128xf32>
      %125 = vector.shape_cast %122 : vector<1x128xf32> to vector<1x1x128xf32>
      tpu.vector_store %arg10[%c1_78, %c0_79, %c1024_80], %125 {strides = array<i32>} : memref<4x2x2048xf32, #tpu.memory_space<vmem>>, vector<1x1x128xf32>,
      %126 = vector.extract_strided_slice %25 {offsets = [25, 0], sizes = [1, 128], strides = [1, 1]} : vector<64x128xf32> to vector<1x128xf32>
      %c1_81 = arith.constant 1 : index
      %c0_82 = arith.constant 0 : index
      %c1152_83 = arith.constant 1152 : index
      %127 = vector.load %arg10[%c1_81, %c0_82, %c1152_83] : memref<4x2x2048xf32, #tpu.memory_space<vmem>>, vector<1x1x128xf32>
      %128 = vector.shape_cast %127 : vector<1x1x128xf32> to vector<1x128xf32>
      %129 = vector.shape_cast %126 : vector<1x128xf32> to vector<1x1x128xf32>
      tpu.vector_store %arg10[%c1_81, %c0_82, %c1152_83], %129 {strides = array<i32>} : memref<4x2x2048xf32, #tpu.memory_space<vmem>>, vector<1x1x128xf32>,
      %130 = vector.extract_strided_slice %25 {offsets = [26, 0], sizes = [1, 128], strides = [1, 1]} : vector<64x128xf32> to vector<1x128xf32>
      %c1_84 = arith.constant 1 : index
      %c0_85 = arith.constant 0 : index
      %c1280_86 = arith.constant 1280 : index
      %131 = vector.load %arg10[%c1_84, %c0_85, %c1280_86] : memref<4x2x2048xf32, #tpu.memory_space<vmem>>, vector<1x1x128xf32>
      %132 = vector.shape_cast %131 : vector<1x1x128xf32> to vector<1x128xf32>
      %133 = vector.shape_cast %130 : vector<1x128xf32> to vector<1x1x128xf32>
      tpu.vector_store %arg10[%c1_84, %c0_85, %c1280_86], %133 {strides = array<i32>} : memref<4x2x2048xf32, #tpu.memory_space<vmem>>, vector<1x1x128xf32>,
      %134 = vector.extract_strided_slice %25 {offsets = [27, 0], sizes = [1, 128], strides = [1, 1]} : vector<64x128xf32> to vector<1x128xf32>
      %c1_87 = arith.constant 1 : index
      %c0_88 = arith.constant 0 : index
      %c1408_89 = arith.constant 1408 : index
      %135 = vector.load %arg10[%c1_87, %c0_88, %c1408_89] : memref<4x2x2048xf32, #tpu.memory_space<vmem>>, vector<1x1x128xf32>
      %136 = vector.shape_cast %135 : vector<1x1x128xf32> to vector<1x128xf32>
      %137 = vector.shape_cast %134 : vector<1x128xf32> to vector<1x1x128xf32>
      tpu.vector_store %arg10[%c1_87, %c0_88, %c1408_89], %137 {strides = array<i32>} : memref<4x2x2048xf32, #tpu.memory_space<vmem>>, vector<1x1x128xf32>,
      %138 = vector.extract_strided_slice %25 {offsets = [28, 0], sizes = [1, 128], strides = [1, 1]} : vector<64x128xf32> to vector<1x128xf32>
      %c1_90 = arith.constant 1 : index
      %c0_91 = arith.constant 0 : index
      %c1536_92 = arith.constant 1536 : index
      %139 = vector.load %arg10[%c1_90, %c0_91, %c1536_92] : memref<4x2x2048xf32, #tpu.memory_space<vmem>>, vector<1x1x128xf32>
      %140 = vector.shape_cast %139 : vector<1x1x128xf32> to vector<1x128xf32>
      %141 = vector.shape_cast %138 : vector<1x128xf32> to vector<1x1x128xf32>
      tpu.vector_store %arg10[%c1_90, %c0_91, %c1536_92], %141 {strides = array<i32>} : memref<4x2x2048xf32, #tpu.memory_space<vmem>>, vector<1x1x128xf32>,
      %142 = vector.extract_strided_slice %25 {offsets = [29, 0], sizes = [1, 128], strides = [1, 1]} : vector<64x128xf32> to vector<1x128xf32>
      %c1_93 = arith.constant 1 : index
      %c0_94 = arith.constant 0 : index
      %c1664_95 = arith.constant 1664 : index
      %143 = vector.load %arg10[%c1_93, %c0_94, %c1664_95] : memref<4x2x2048xf32, #tpu.memory_space<vmem>>, vector<1x1x128xf32>
      %144 = vector.shape_cast %143 : vector<1x1x128xf32> to vector<1x128xf32>
      %145 = vector.shape_cast %142 : vector<1x128xf32> to vector<1x1x128xf32>
      tpu.vector_store %arg10[%c1_93, %c0_94, %c1664_95], %145 {strides = array<i32>} : memref<4x2x2048xf32, #tpu.memory_space<vmem>>, vector<1x1x128xf32>,
      %146 = vector.extract_strided_slice %25 {offsets = [30, 0], sizes = [1, 128], strides = [1, 1]} : vector<64x128xf32> to vector<1x128xf32>
      %c1_96 = arith.constant 1 : index
      %c0_97 = arith.constant 0 : index
      %c1792_98 = arith.constant 1792 : index
      %147 = vector.load %arg10[%c1_96, %c0_97, %c1792_98] : memref<4x2x2048xf32, #tpu.memory_space<vmem>>, vector<1x1x128xf32>
      %148 = vector.shape_cast %147 : vector<1x1x128xf32> to vector<1x128xf32>
      %149 = vector.shape_cast %146 : vector<1x128xf32> to vector<1x1x128xf32>
      tpu.vector_store %arg10[%c1_96, %c0_97, %c1792_98], %149 {strides = array<i32>} : memref<4x2x2048xf32, #tpu.memory_space<vmem>>, vector<1x1x128xf32>,
      %150 = vector.extract_strided_slice %25 {offsets = [31, 0], sizes = [1, 128], strides = [1, 1]} : vector<64x128xf32> to vector<1x128xf32>
      %c1_99 = arith.constant 1 : index
      %c0_100 = arith.constant 0 : index
      %c1920_101 = arith.constant 1920 : index
      %151 = vector.load %arg10[%c1_99, %c0_100, %c1920_101] : memref<4x2x2048xf32, #tpu.memory_space<vmem>>, vector<1x1x128xf32>
      %152 = vector.shape_cast %151 : vector<1x1x128xf32> to vector<1x128xf32>
      %153 = vector.shape_cast %150 : vector<1x128xf32> to vector<1x1x128xf32>
      tpu.vector_store %arg10[%c1_99, %c0_100, %c1920_101], %153 {strides = array<i32>} : memref<4x2x2048xf32, #tpu.memory_space<vmem>>, vector<1x1x128xf32>,
      %154 = vector.extract_strided_slice %25 {offsets = [32, 0], sizes = [1, 128], strides = [1, 1]} : vector<64x128xf32> to vector<1x128xf32>
      %c2 = arith.constant 2 : index
      %c0_102 = arith.constant 0 : index
      %c0_103 = arith.constant 0 : index
      %155 = vector.load %arg10[%c2, %c0_102, %c0_103] : memref<4x2x2048xf32, #tpu.memory_space<vmem>>, vector<1x1x128xf32>
      %156 = vector.shape_cast %155 : vector<1x1x128xf32> to vector<1x128xf32>
      %157 = vector.shape_cast %154 : vector<1x128xf32> to vector<1x1x128xf32>
      tpu.vector_store %arg10[%c2, %c0_102, %c0_103], %157 {strides = array<i32>} : memref<4x2x2048xf32, #tpu.memory_space<vmem>>, vector<1x1x128xf32>,
      %158 = vector.extract_strided_slice %25 {offsets = [33, 0], sizes = [1, 128], strides = [1, 1]} : vector<64x128xf32> to vector<1x128xf32>
      %c2_104 = arith.constant 2 : index
      %c0_105 = arith.constant 0 : index
      %c128_106 = arith.constant 128 : index
      %159 = vector.load %arg10[%c2_104, %c0_105, %c128_106] : memref<4x2x2048xf32, #tpu.memory_space<vmem>>, vector<1x1x128xf32>
      %160 = vector.shape_cast %159 : vector<1x1x128xf32> to vector<1x128xf32>
      %161 = vector.shape_cast %158 : vector<1x128xf32> to vector<1x1x128xf32>
      tpu.vector_store %arg10[%c2_104, %c0_105, %c128_106], %161 {strides = array<i32>} : memref<4x2x2048xf32, #tpu.memory_space<vmem>>, vector<1x1x128xf32>,
      %162 = vector.extract_strided_slice %25 {offsets = [34, 0], sizes = [1, 128], strides = [1, 1]} : vector<64x128xf32> to vector<1x128xf32>
      %c2_107 = arith.constant 2 : index
      %c0_108 = arith.constant 0 : index
      %c256_109 = arith.constant 256 : index
      %163 = vector.load %arg10[%c2_107, %c0_108, %c256_109] : memref<4x2x2048xf32, #tpu.memory_space<vmem>>, vector<1x1x128xf32>
      %164 = vector.shape_cast %163 : vector<1x1x128xf32> to vector<1x128xf32>
      %165 = vector.shape_cast %162 : vector<1x128xf32> to vector<1x1x128xf32>
      tpu.vector_store %arg10[%c2_107, %c0_108, %c256_109], %165 {strides = array<i32>} : memref<4x2x2048xf32, #tpu.memory_space<vmem>>, vector<1x1x128xf32>,
      %166 = vector.extract_strided_slice %25 {offsets = [35, 0], sizes = [1, 128], strides = [1, 1]} : vector<64x128xf32> to vector<1x128xf32>
      %c2_110 = arith.constant 2 : index
      %c0_111 = arith.constant 0 : index
      %c384_112 = arith.constant 384 : index
      %167 = vector.load %arg10[%c2_110, %c0_111, %c384_112] : memref<4x2x2048xf32, #tpu.memory_space<vmem>>, vector<1x1x128xf32>
      %168 = vector.shape_cast %167 : vector<1x1x128xf32> to vector<1x128xf32>
      %169 = vector.shape_cast %166 : vector<1x128xf32> to vector<1x1x128xf32>
      tpu.vector_store %arg10[%c2_110, %c0_111, %c384_112], %169 {strides = array<i32>} : memref<4x2x2048xf32, #tpu.memory_space<vmem>>, vector<1x1x128xf32>,
      %170 = vector.extract_strided_slice %25 {offsets = [36, 0], sizes = [1, 128], strides = [1, 1]} : vector<64x128xf32> to vector<1x128xf32>
      %c2_113 = arith.constant 2 : index
      %c0_114 = arith.constant 0 : index
      %c512_115 = arith.constant 512 : index
      %171 = vector.load %arg10[%c2_113, %c0_114, %c512_115] : memref<4x2x2048xf32, #tpu.memory_space<vmem>>, vector<1x1x128xf32>
      %172 = vector.shape_cast %171 : vector<1x1x128xf32> to vector<1x128xf32>
      %173 = vector.shape_cast %170 : vector<1x128xf32> to vector<1x1x128xf32>
      tpu.vector_store %arg10[%c2_113, %c0_114, %c512_115], %173 {strides = array<i32>} : memref<4x2x2048xf32, #tpu.memory_space<vmem>>, vector<1x1x128xf32>,
      %174 = vector.extract_strided_slice %25 {offsets = [37, 0], sizes = [1, 128], strides = [1, 1]} : vector<64x128xf32> to vector<1x128xf32>
      %c2_116 = arith.constant 2 : index
      %c0_117 = arith.constant 0 : index
      %c640_118 = arith.constant 640 : index
      %175 = vector.load %arg10[%c2_116, %c0_117, %c640_118] : memref<4x2x2048xf32, #tpu.memory_space<vmem>>, vector<1x1x128xf32>
      %176 = vector.shape_cast %175 : vector<1x1x128xf32> to vector<1x128xf32>
      %177 = vector.shape_cast %174 : vector<1x128xf32> to vector<1x1x128xf32>
      tpu.vector_store %arg10[%c2_116, %c0_117, %c640_118], %177 {strides = array<i32>} : memref<4x2x2048xf32, #tpu.memory_space<vmem>>, vector<1x1x128xf32>,
      %178 = vector.extract_strided_slice %25 {offsets = [38, 0], sizes = [1, 128], strides = [1, 1]} : vector<64x128xf32> to vector<1x128xf32>
      %c2_119 = arith.constant 2 : index
      %c0_120 = arith.constant 0 : index
      %c768_121 = arith.constant 768 : index
      %179 = vector.load %arg10[%c2_119, %c0_120, %c768_121] : memref<4x2x2048xf32, #tpu.memory_space<vmem>>, vector<1x1x128xf32>
      %180 = vector.shape_cast %179 : vector<1x1x128xf32> to vector<1x128xf32>
      %181 = vector.shape_cast %178 : vector<1x128xf32> to vector<1x1x128xf32>
      tpu.vector_store %arg10[%c2_119, %c0_120, %c768_121], %181 {strides = array<i32>} : memref<4x2x2048xf32, #tpu.memory_space<vmem>>, vector<1x1x128xf32>,
      %182 = vector.extract_strided_slice %25 {offsets = [39, 0], sizes = [1, 128], strides = [1, 1]} : vector<64x128xf32> to vector<1x128xf32>
      %c2_122 = arith.constant 2 : index
      %c0_123 = arith.constant 0 : index
      %c896_124 = arith.constant 896 : index
      %183 = vector.load %arg10[%c2_122, %c0_123, %c896_124] : memref<4x2x2048xf32, #tpu.memory_space<vmem>>, vector<1x1x128xf32>
      %184 = vector.shape_cast %183 : vector<1x1x128xf32> to vector<1x128xf32>
      %185 = vector.shape_cast %182 : vector<1x128xf32> to vector<1x1x128xf32>
      tpu.vector_store %arg10[%c2_122, %c0_123, %c896_124], %185 {strides = array<i32>} : memref<4x2x2048xf32, #tpu.memory_space<vmem>>, vector<1x1x128xf32>,
      %186 = vector.extract_strided_slice %25 {offsets = [40, 0], sizes = [1, 128], strides = [1, 1]} : vector<64x128xf32> to vector<1x128xf32>
      %c2_125 = arith.constant 2 : index
      %c0_126 = arith.constant 0 : index
      %c1024_127 = arith.constant 1024 : index
      %187 = vector.load %arg10[%c2_125, %c0_126, %c1024_127] : memref<4x2x2048xf32, #tpu.memory_space<vmem>>, vector<1x1x128xf32>
      %188 = vector.shape_cast %187 : vector<1x1x128xf32> to vector<1x128xf32>
      %189 = vector.shape_cast %186 : vector<1x128xf32> to vector<1x1x128xf32>
      tpu.vector_store %arg10[%c2_125, %c0_126, %c1024_127], %189 {strides = array<i32>} : memref<4x2x2048xf32, #tpu.memory_space<vmem>>, vector<1x1x128xf32>,
      %190 = vector.extract_strided_slice %25 {offsets = [41, 0], sizes = [1, 128], strides = [1, 1]} : vector<64x128xf32> to vector<1x128xf32>
      %c2_128 = arith.constant 2 : index
      %c0_129 = arith.constant 0 : index
      %c1152_130 = arith.constant 1152 : index
      %191 = vector.load %arg10[%c2_128, %c0_129, %c1152_130] : memref<4x2x2048xf32, #tpu.memory_space<vmem>>, vector<1x1x128xf32>
      %192 = vector.shape_cast %191 : vector<1x1x128xf32> to vector<1x128xf32>
      %193 = vector.shape_cast %190 : vector<1x128xf32> to vector<1x1x128xf32>
      tpu.vector_store %arg10[%c2_128, %c0_129, %c1152_130], %193 {strides = array<i32>} : memref<4x2x2048xf32, #tpu.memory_space<vmem>>, vector<1x1x128xf32>,
      %194 = vector.extract_strided_slice %25 {offsets = [42, 0], sizes = [1, 128], strides = [1, 1]} : vector<64x128xf32> to vector<1x128xf32>
      %c2_131 = arith.constant 2 : index
      %c0_132 = arith.constant 0 : index
      %c1280_133 = arith.constant 1280 : index
      %195 = vector.load %arg10[%c2_131, %c0_132, %c1280_133] : memref<4x2x2048xf32, #tpu.memory_space<vmem>>, vector<1x1x128xf32>
      %196 = vector.shape_cast %195 : vector<1x1x128xf32> to vector<1x128xf32>
      %197 = vector.shape_cast %194 : vector<1x128xf32> to vector<1x1x128xf32>
      tpu.vector_store %arg10[%c2_131, %c0_132, %c1280_133], %197 {strides = array<i32>} : memref<4x2x2048xf32, #tpu.memory_space<vmem>>, vector<1x1x128xf32>,
      %198 = vector.extract_strided_slice %25 {offsets = [43, 0], sizes = [1, 128], strides = [1, 1]} : vector<64x128xf32> to vector<1x128xf32>
      %c2_134 = arith.constant 2 : index
      %c0_135 = arith.constant 0 : index
      %c1408_136 = arith.constant 1408 : index
      %199 = vector.load %arg10[%c2_134, %c0_135, %c1408_136] : memref<4x2x2048xf32, #tpu.memory_space<vmem>>, vector<1x1x128xf32>
      %200 = vector.shape_cast %199 : vector<1x1x128xf32> to vector<1x128xf32>
      %201 = vector.shape_cast %198 : vector<1x128xf32> to vector<1x1x128xf32>
      tpu.vector_store %arg10[%c2_134, %c0_135, %c1408_136], %201 {strides = array<i32>} : memref<4x2x2048xf32, #tpu.memory_space<vmem>>, vector<1x1x128xf32>,
      %202 = vector.extract_strided_slice %25 {offsets = [44, 0], sizes = [1, 128], strides = [1, 1]} : vector<64x128xf32> to vector<1x128xf32>
      %c2_137 = arith.constant 2 : index
      %c0_138 = arith.constant 0 : index
      %c1536_139 = arith.constant 1536 : index
      %203 = vector.load %arg10[%c2_137, %c0_138, %c1536_139] : memref<4x2x2048xf32, #tpu.memory_space<vmem>>, vector<1x1x128xf32>
      %204 = vector.shape_cast %203 : vector<1x1x128xf32> to vector<1x128xf32>
      %205 = vector.shape_cast %202 : vector<1x128xf32> to vector<1x1x128xf32>
      tpu.vector_store %arg10[%c2_137, %c0_138, %c1536_139], %205 {strides = array<i32>} : memref<4x2x2048xf32, #tpu.memory_space<vmem>>, vector<1x1x128xf32>,
      %206 = vector.extract_strided_slice %25 {offsets = [45, 0], sizes = [1, 128], strides = [1, 1]} : vector<64x128xf32> to vector<1x128xf32>
      %c2_140 = arith.constant 2 : index
      %c0_141 = arith.constant 0 : index
      %c1664_142 = arith.constant 1664 : index
      %207 = vector.load %arg10[%c2_140, %c0_141, %c1664_142] : memref<4x2x2048xf32, #tpu.memory_space<vmem>>, vector<1x1x128xf32>
      %208 = vector.shape_cast %207 : vector<1x1x128xf32> to vector<1x128xf32>
      %209 = vector.shape_cast %206 : vector<1x128xf32> to vector<1x1x128xf32>
      tpu.vector_store %arg10[%c2_140, %c0_141, %c1664_142], %209 {strides = array<i32>} : memref<4x2x2048xf32, #tpu.memory_space<vmem>>, vector<1x1x128xf32>,
      %210 = vector.extract_strided_slice %25 {offsets = [46, 0], sizes = [1, 128], strides = [1, 1]} : vector<64x128xf32> to vector<1x128xf32>
      %c2_143 = arith.constant 2 : index
      %c0_144 = arith.constant 0 : index
      %c1792_145 = arith.constant 1792 : index
      %211 = vector.load %arg10[%c2_143, %c0_144, %c1792_145] : memref<4x2x2048xf32, #tpu.memory_space<vmem>>, vector<1x1x128xf32>
      %212 = vector.shape_cast %211 : vector<1x1x128xf32> to vector<1x128xf32>
      %213 = vector.shape_cast %210 : vector<1x128xf32> to vector<1x1x128xf32>
      tpu.vector_store %arg10[%c2_143, %c0_144, %c1792_145], %213 {strides = array<i32>} : memref<4x2x2048xf32, #tpu.memory_space<vmem>>, vector<1x1x128xf32>,
      %214 = vector.extract_strided_slice %25 {offsets = [47, 0], sizes = [1, 128], strides = [1, 1]} : vector<64x128xf32> to vector<1x128xf32>
      %c2_146 = arith.constant 2 : index
      %c0_147 = arith.constant 0 : index
      %c1920_148 = arith.constant 1920 : index
      %215 = vector.load %arg10[%c2_146, %c0_147, %c1920_148] : memref<4x2x2048xf32, #tpu.memory_space<vmem>>, vector<1x1x128xf32>
      %216 = vector.shape_cast %215 : vector<1x1x128xf32> to vector<1x128xf32>
      %217 = vector.shape_cast %214 : vector<1x128xf32> to vector<1x1x128xf32>
      tpu.vector_store %arg10[%c2_146, %c0_147, %c1920_148], %217 {strides = array<i32>} : memref<4x2x2048xf32, #tpu.memory_space<vmem>>, vector<1x1x128xf32>,
      %218 = vector.extract_strided_slice %25 {offsets = [48, 0], sizes = [1, 128], strides = [1, 1]} : vector<64x128xf32> to vector<1x128xf32>
      %c3 = arith.constant 3 : index
      %c0_149 = arith.constant 0 : index
      %c0_150 = arith.constant 0 : index
      %219 = vector.load %arg10[%c3, %c0_149, %c0_150] : memref<4x2x2048xf32, #tpu.memory_space<vmem>>, vector<1x1x128xf32>
      %220 = vector.shape_cast %219 : vector<1x1x128xf32> to vector<1x128xf32>
      %221 = vector.shape_cast %218 : vector<1x128xf32> to vector<1x1x128xf32>
      tpu.vector_store %arg10[%c3, %c0_149, %c0_150], %221 {strides = array<i32>} : memref<4x2x2048xf32, #tpu.memory_space<vmem>>, vector<1x1x128xf32>,
      %222 = vector.extract_strided_slice %25 {offsets = [49, 0], sizes = [1, 128], strides = [1, 1]} : vector<64x128xf32> to vector<1x128xf32>
      %c3_151 = arith.constant 3 : index
      %c0_152 = arith.constant 0 : index
      %c128_153 = arith.constant 128 : index
      %223 = vector.load %arg10[%c3_151, %c0_152, %c128_153] : memref<4x2x2048xf32, #tpu.memory_space<vmem>>, vector<1x1x128xf32>
      %224 = vector.shape_cast %223 : vector<1x1x128xf32> to vector<1x128xf32>
      %225 = vector.shape_cast %222 : vector<1x128xf32> to vector<1x1x128xf32>
      tpu.vector_store %arg10[%c3_151, %c0_152, %c128_153], %225 {strides = array<i32>} : memref<4x2x2048xf32, #tpu.memory_space<vmem>>, vector<1x1x128xf32>,
      %226 = vector.extract_strided_slice %25 {offsets = [50, 0], sizes = [1, 128], strides = [1, 1]} : vector<64x128xf32> to vector<1x128xf32>
      %c3_154 = arith.constant 3 : index
      %c0_155 = arith.constant 0 : index
      %c256_156 = arith.constant 256 : index
      %227 = vector.load %arg10[%c3_154, %c0_155, %c256_156] : memref<4x2x2048xf32, #tpu.memory_space<vmem>>, vector<1x1x128xf32>
      %228 = vector.shape_cast %227 : vector<1x1x128xf32> to vector<1x128xf32>
      %229 = vector.shape_cast %226 : vector<1x128xf32> to vector<1x1x128xf32>
      tpu.vector_store %arg10[%c3_154, %c0_155, %c256_156], %229 {strides = array<i32>} : memref<4x2x2048xf32, #tpu.memory_space<vmem>>, vector<1x1x128xf32>,
      %230 = vector.extract_strided_slice %25 {offsets = [51, 0], sizes = [1, 128], strides = [1, 1]} : vector<64x128xf32> to vector<1x128xf32>
      %c3_157 = arith.constant 3 : index
      %c0_158 = arith.constant 0 : index
      %c384_159 = arith.constant 384 : index
      %231 = vector.load %arg10[%c3_157, %c0_158, %c384_159] : memref<4x2x2048xf32, #tpu.memory_space<vmem>>, vector<1x1x128xf32>
      %232 = vector.shape_cast %231 : vector<1x1x128xf32> to vector<1x128xf32>
      %233 = vector.shape_cast %230 : vector<1x128xf32> to vector<1x1x128xf32>
      tpu.vector_store %arg10[%c3_157, %c0_158, %c384_159], %233 {strides = array<i32>} : memref<4x2x2048xf32, #tpu.memory_space<vmem>>, vector<1x1x128xf32>,
      %234 = vector.extract_strided_slice %25 {offsets = [52, 0], sizes = [1, 128], strides = [1, 1]} : vector<64x128xf32> to vector<1x128xf32>
      %c3_160 = arith.constant 3 : index
      %c0_161 = arith.constant 0 : index
      %c512_162 = arith.constant 512 : index
      %235 = vector.load %arg10[%c3_160, %c0_161, %c512_162] : memref<4x2x2048xf32, #tpu.memory_space<vmem>>, vector<1x1x128xf32>
      %236 = vector.shape_cast %235 : vector<1x1x128xf32> to vector<1x128xf32>
      %237 = vector.shape_cast %234 : vector<1x128xf32> to vector<1x1x128xf32>
      tpu.vector_store %arg10[%c3_160, %c0_161, %c512_162], %237 {strides = array<i32>} : memref<4x2x2048xf32, #tpu.memory_space<vmem>>, vector<1x1x128xf32>,
      %238 = vector.extract_strided_slice %25 {offsets = [53, 0], sizes = [1, 128], strides = [1, 1]} : vector<64x128xf32> to vector<1x128xf32>
      %c3_163 = arith.constant 3 : index
      %c0_164 = arith.constant 0 : index
      %c640_165 = arith.constant 640 : index
      %239 = vector.load %arg10[%c3_163, %c0_164, %c640_165] : memref<4x2x2048xf32, #tpu.memory_space<vmem>>, vector<1x1x128xf32>
      %240 = vector.shape_cast %239 : vector<1x1x128xf32> to vector<1x128xf32>
      %241 = vector.shape_cast %238 : vector<1x128xf32> to vector<1x1x128xf32>
      tpu.vector_store %arg10[%c3_163, %c0_164, %c640_165], %241 {strides = array<i32>} : memref<4x2x2048xf32, #tpu.memory_space<vmem>>, vector<1x1x128xf32>,
      %242 = vector.extract_strided_slice %25 {offsets = [54, 0], sizes = [1, 128], strides = [1, 1]} : vector<64x128xf32> to vector<1x128xf32>
      %c3_166 = arith.constant 3 : index
      %c0_167 = arith.constant 0 : index
      %c768_168 = arith.constant 768 : index
      %243 = vector.load %arg10[%c3_166, %c0_167, %c768_168] : memref<4x2x2048xf32, #tpu.memory_space<vmem>>, vector<1x1x128xf32>
      %244 = vector.shape_cast %243 : vector<1x1x128xf32> to vector<1x128xf32>
      %245 = vector.shape_cast %242 : vector<1x128xf32> to vector<1x1x128xf32>
      tpu.vector_store %arg10[%c3_166, %c0_167, %c768_168], %245 {strides = array<i32>} : memref<4x2x2048xf32, #tpu.memory_space<vmem>>, vector<1x1x128xf32>,
      %246 = vector.extract_strided_slice %25 {offsets = [55, 0], sizes = [1, 128], strides = [1, 1]} : vector<64x128xf32> to vector<1x128xf32>
      %c3_169 = arith.constant 3 : index
      %c0_170 = arith.constant 0 : index
      %c896_171 = arith.constant 896 : index
      %247 = vector.load %arg10[%c3_169, %c0_170, %c896_171] : memref<4x2x2048xf32, #tpu.memory_space<vmem>>, vector<1x1x128xf32>
      %248 = vector.shape_cast %247 : vector<1x1x128xf32> to vector<1x128xf32>
      %249 = vector.shape_cast %246 : vector<1x128xf32> to vector<1x1x128xf32>
      tpu.vector_store %arg10[%c3_169, %c0_170, %c896_171], %249 {strides = array<i32>} : memref<4x2x2048xf32, #tpu.memory_space<vmem>>, vector<1x1x128xf32>,
      %250 = vector.extract_strided_slice %25 {offsets = [56, 0], sizes = [1, 128], strides = [1, 1]} : vector<64x128xf32> to vector<1x128xf32>
      %c3_172 = arith.constant 3 : index
      %c0_173 = arith.constant 0 : index
      %c1024_174 = arith.constant 1024 : index
      %251 = vector.load %arg10[%c3_172, %c0_173, %c1024_174] : memref<4x2x2048xf32, #tpu.memory_space<vmem>>, vector<1x1x128xf32>
      %252 = vector.shape_cast %251 : vector<1x1x128xf32> to vector<1x128xf32>
      %253 = vector.shape_cast %250 : vector<1x128xf32> to vector<1x1x128xf32>
      tpu.vector_store %arg10[%c3_172, %c0_173, %c1024_174], %253 {strides = array<i32>} : memref<4x2x2048xf32, #tpu.memory_space<vmem>>, vector<1x1x128xf32>,
      %254 = vector.extract_strided_slice %25 {offsets = [57, 0], sizes = [1, 128], strides = [1, 1]} : vector<64x128xf32> to vector<1x128xf32>
      %c3_175 = arith.constant 3 : index
      %c0_176 = arith.constant 0 : index
      %c1152_177 = arith.constant 1152 : index
      %255 = vector.load %arg10[%c3_175, %c0_176, %c1152_177] : memref<4x2x2048xf32, #tpu.memory_space<vmem>>, vector<1x1x128xf32>
      %256 = vector.shape_cast %255 : vector<1x1x128xf32> to vector<1x128xf32>
      %257 = vector.shape_cast %254 : vector<1x128xf32> to vector<1x1x128xf32>
      tpu.vector_store %arg10[%c3_175, %c0_176, %c1152_177], %257 {strides = array<i32>} : memref<4x2x2048xf32, #tpu.memory_space<vmem>>, vector<1x1x128xf32>,
      %258 = vector.extract_strided_slice %25 {offsets = [58, 0], sizes = [1, 128], strides = [1, 1]} : vector<64x128xf32> to vector<1x128xf32>
      %c3_178 = arith.constant 3 : index
      %c0_179 = arith.constant 0 : index
      %c1280_180 = arith.constant 1280 : index
      %259 = vector.load %arg10[%c3_178, %c0_179, %c1280_180] : memref<4x2x2048xf32, #tpu.memory_space<vmem>>, vector<1x1x128xf32>
      %260 = vector.shape_cast %259 : vector<1x1x128xf32> to vector<1x128xf32>
      %261 = vector.shape_cast %258 : vector<1x128xf32> to vector<1x1x128xf32>
      tpu.vector_store %arg10[%c3_178, %c0_179, %c1280_180], %261 {strides = array<i32>} : memref<4x2x2048xf32, #tpu.memory_space<vmem>>, vector<1x1x128xf32>,
      %262 = vector.extract_strided_slice %25 {offsets = [59, 0], sizes = [1, 128], strides = [1, 1]} : vector<64x128xf32> to vector<1x128xf32>
      %c3_181 = arith.constant 3 : index
      %c0_182 = arith.constant 0 : index
      %c1408_183 = arith.constant 1408 : index
      %263 = vector.load %arg10[%c3_181, %c0_182, %c1408_183] : memref<4x2x2048xf32, #tpu.memory_space<vmem>>, vector<1x1x128xf32>
      %264 = vector.shape_cast %263 : vector<1x1x128xf32> to vector<1x128xf32>
      %265 = vector.shape_cast %262 : vector<1x128xf32> to vector<1x1x128xf32>
      tpu.vector_store %arg10[%c3_181, %c0_182, %c1408_183], %265 {strides = array<i32>} : memref<4x2x2048xf32, #tpu.memory_space<vmem>>, vector<1x1x128xf32>,
      %266 = vector.extract_strided_slice %25 {offsets = [60, 0], sizes = [1, 128], strides = [1, 1]} : vector<64x128xf32> to vector<1x128xf32>
      %c3_184 = arith.constant 3 : index
      %c0_185 = arith.constant 0 : index
      %c1536_186 = arith.constant 1536 : index
      %267 = vector.load %arg10[%c3_184, %c0_185, %c1536_186] : memref<4x2x2048xf32, #tpu.memory_space<vmem>>, vector<1x1x128xf32>
      %268 = vector.shape_cast %267 : vector<1x1x128xf32> to vector<1x128xf32>
      %269 = vector.shape_cast %266 : vector<1x128xf32> to vector<1x1x128xf32>
      tpu.vector_store %arg10[%c3_184, %c0_185, %c1536_186], %269 {strides = array<i32>} : memref<4x2x2048xf32, #tpu.memory_space<vmem>>, vector<1x1x128xf32>,
      %270 = vector.extract_strided_slice %25 {offsets = [61, 0], sizes = [1, 128], strides = [1, 1]} : vector<64x128xf32> to vector<1x128xf32>
      %c3_187 = arith.constant 3 : index
      %c0_188 = arith.constant 0 : index
      %c1664_189 = arith.constant 1664 : index
      %271 = vector.load %arg10[%c3_187, %c0_188, %c1664_189] : memref<4x2x2048xf32, #tpu.memory_space<vmem>>, vector<1x1x128xf32>
      %272 = vector.shape_cast %271 : vector<1x1x128xf32> to vector<1x128xf32>
      %273 = vector.shape_cast %270 : vector<1x128xf32> to vector<1x1x128xf32>
      tpu.vector_store %arg10[%c3_187, %c0_188, %c1664_189], %273 {strides = array<i32>} : memref<4x2x2048xf32, #tpu.memory_space<vmem>>, vector<1x1x128xf32>,
      %274 = vector.extract_strided_slice %25 {offsets = [62, 0], sizes = [1, 128], strides = [1, 1]} : vector<64x128xf32> to vector<1x128xf32>
      %c3_190 = arith.constant 3 : index
      %c0_191 = arith.constant 0 : index
      %c1792_192 = arith.constant 1792 : index
      %275 = vector.load %arg10[%c3_190, %c0_191, %c1792_192] : memref<4x2x2048xf32, #tpu.memory_space<vmem>>, vector<1x1x128xf32>
      %276 = vector.shape_cast %275 : vector<1x1x128xf32> to vector<1x128xf32>
      %277 = vector.shape_cast %274 : vector<1x128xf32> to vector<1x1x128xf32>
      tpu.vector_store %arg10[%c3_190, %c0_191, %c1792_192], %277 {strides = array<i32>} : memref<4x2x2048xf32, #tpu.memory_space<vmem>>, vector<1x1x128xf32>,
      %278 = vector.extract_strided_slice %25 {offsets = [63, 0], sizes = [1, 128], strides = [1, 1]} : vector<64x128xf32> to vector<1x128xf32>
      %c3_193 = arith.constant 3 : index
      %c0_194 = arith.constant 0 : index
      %c1920_195 = arith.constant 1920 : index
      %279 = vector.load %arg10[%c3_193, %c0_194, %c1920_195] : memref<4x2x2048xf32, #tpu.memory_space<vmem>>, vector<1x1x128xf32>
      %280 = vector.shape_cast %279 : vector<1x1x128xf32> to vector<1x128xf32>
      %281 = vector.shape_cast %278 : vector<1x128xf32> to vector<1x1x128xf32>
      tpu.vector_store %arg10[%c3_193, %c0_194, %c1920_195], %281 {strides = array<i32>} : memref<4x2x2048xf32, #tpu.memory_space<vmem>>, vector<1x1x128xf32>,
      %c0_196 = arith.constant 0 : index
      %c0_197 = arith.constant 0 : index
      %282 = vector.load %arg2[%c0_196, %c0_197] : memref<64x256xf32, #tpu.memory_space<vmem>>, vector<64x256xf32>
      %283 = vector.extract_strided_slice %19 {offsets = [256, 0], sizes = [256, 128], strides = [1, 1]} : vector<512x128xf32> to vector<256x128xf32>
      %cst_198 = arith.constant dense<0.000000e+00> : vector<64x128xf32>
      %284 = tpu.matmul %282, %283, %cst_198 {dimension_numbers = #tpu.dot_dimension_numbers<[1], [0], [0], [1], [0, 0, 1, 1], [], []>} : vector<64x256xf32>, vector<256x128xf32>, vector<64x128xf32> -> vector<64x128xf32>
      %c0_199 = arith.constant 0 : index
      %c0_200 = arith.constant 0 : index
      %285 = vector.load %arg4[%c0_199, %c0_200] : memref<1x128xf32, #tpu.memory_space<vmem>>, vector<1x128xf32>
      %286 = vector.broadcast %285 : vector<1x128xf32> to vector<64x128xf32>
      %287 = arith.addf %284, %286 : vector<64x128xf32>
      %288 = vector.extract_strided_slice %287 {offsets = [0, 0], sizes = [1, 128], strides = [1, 1]} : vector<64x128xf32> to vector<1x128xf32>
      %c0_201 = arith.constant 0 : index
      %c1_202 = arith.constant 1 : index
      %c0_203 = arith.constant 0 : index
      %289 = vector.load %arg10[%c0_201, %c1_202, %c0_203] : memref<4x2x2048xf32, #tpu.memory_space<vmem>>, vector<1x1x128xf32>
      %290 = vector.shape_cast %289 : vector<1x1x128xf32> to vector<1x128xf32>
      %291 = vector.shape_cast %288 : vector<1x128xf32> to vector<1x1x128xf32>
      tpu.vector_store %arg10[%c0_201, %c1_202, %c0_203], %291 {strides = array<i32>} : memref<4x2x2048xf32, #tpu.memory_space<vmem>>, vector<1x1x128xf32>,
      %292 = vector.extract_strided_slice %287 {offsets = [1, 0], sizes = [1, 128], strides = [1, 1]} : vector<64x128xf32> to vector<1x128xf32>
      %c0_204 = arith.constant 0 : index
      %c1_205 = arith.constant 1 : index
      %c128_206 = arith.constant 128 : index
      %293 = vector.load %arg10[%c0_204, %c1_205, %c128_206] : memref<4x2x2048xf32, #tpu.memory_space<vmem>>, vector<1x1x128xf32>
      %294 = vector.shape_cast %293 : vector<1x1x128xf32> to vector<1x128xf32>
      %295 = vector.shape_cast %292 : vector<1x128xf32> to vector<1x1x128xf32>
      tpu.vector_store %arg10[%c0_204, %c1_205, %c128_206], %295 {strides = array<i32>} : memref<4x2x2048xf32, #tpu.memory_space<vmem>>, vector<1x1x128xf32>,
      %296 = vector.extract_strided_slice %287 {offsets = [2, 0], sizes = [1, 128], strides = [1, 1]} : vector<64x128xf32> to vector<1x128xf32>
      %c0_207 = arith.constant 0 : index
      %c1_208 = arith.constant 1 : index
      %c256_209 = arith.constant 256 : index
      %297 = vector.load %arg10[%c0_207, %c1_208, %c256_209] : memref<4x2x2048xf32, #tpu.memory_space<vmem>>, vector<1x1x128xf32>
      %298 = vector.shape_cast %297 : vector<1x1x128xf32> to vector<1x128xf32>
      %299 = vector.shape_cast %296 : vector<1x128xf32> to vector<1x1x128xf32>
      tpu.vector_store %arg10[%c0_207, %c1_208, %c256_209], %299 {strides = array<i32>} : memref<4x2x2048xf32, #tpu.memory_space<vmem>>, vector<1x1x128xf32>,
      %300 = vector.extract_strided_slice %287 {offsets = [3, 0], sizes = [1, 128], strides = [1, 1]} : vector<64x128xf32> to vector<1x128xf32>
      %c0_210 = arith.constant 0 : index
      %c1_211 = arith.constant 1 : index
      %c384_212 = arith.constant 384 : index
      %301 = vector.load %arg10[%c0_210, %c1_211, %c384_212] : memref<4x2x2048xf32, #tpu.memory_space<vmem>>, vector<1x1x128xf32>
      %302 = vector.shape_cast %301 : vector<1x1x128xf32> to vector<1x128xf32>
      %303 = vector.shape_cast %300 : vector<1x128xf32> to vector<1x1x128xf32>
      tpu.vector_store %arg10[%c0_210, %c1_211, %c384_212], %303 {strides = array<i32>} : memref<4x2x2048xf32, #tpu.memory_space<vmem>>, vector<1x1x128xf32>,
      %304 = vector.extract_strided_slice %287 {offsets = [4, 0], sizes = [1, 128], strides = [1, 1]} : vector<64x128xf32> to vector<1x128xf32>
      %c0_213 = arith.constant 0 : index
      %c1_214 = arith.constant 1 : index
      %c512_215 = arith.constant 512 : index
      %305 = vector.load %arg10[%c0_213, %c1_214, %c512_215] : memref<4x2x2048xf32, #tpu.memory_space<vmem>>, vector<1x1x128xf32>
      %306 = vector.shape_cast %305 : vector<1x1x128xf32> to vector<1x128xf32>
      %307 = vector.shape_cast %304 : vector<1x128xf32> to vector<1x1x128xf32>
      tpu.vector_store %arg10[%c0_213, %c1_214, %c512_215], %307 {strides = array<i32>} : memref<4x2x2048xf32, #tpu.memory_space<vmem>>, vector<1x1x128xf32>,
      %308 = vector.extract_strided_slice %287 {offsets = [5, 0], sizes = [1, 128], strides = [1, 1]} : vector<64x128xf32> to vector<1x128xf32>
      %c0_216 = arith.constant 0 : index
      %c1_217 = arith.constant 1 : index
      %c640_218 = arith.constant 640 : index
      %309 = vector.load %arg10[%c0_216, %c1_217, %c640_218] : memref<4x2x2048xf32, #tpu.memory_space<vmem>>, vector<1x1x128xf32>
      %310 = vector.shape_cast %309 : vector<1x1x128xf32> to vector<1x128xf32>
      %311 = vector.shape_cast %308 : vector<1x128xf32> to vector<1x1x128xf32>
      tpu.vector_store %arg10[%c0_216, %c1_217, %c640_218], %311 {strides = array<i32>} : memref<4x2x2048xf32, #tpu.memory_space<vmem>>, vector<1x1x128xf32>,
      %312 = vector.extract_strided_slice %287 {offsets = [6, 0], sizes = [1, 128], strides = [1, 1]} : vector<64x128xf32> to vector<1x128xf32>
      %c0_219 = arith.constant 0 : index
      %c1_220 = arith.constant 1 : index
      %c768_221 = arith.constant 768 : index
      %313 = vector.load %arg10[%c0_219, %c1_220, %c768_221] : memref<4x2x2048xf32, #tpu.memory_space<vmem>>, vector<1x1x128xf32>
      %314 = vector.shape_cast %313 : vector<1x1x128xf32> to vector<1x128xf32>
      %315 = vector.shape_cast %312 : vector<1x128xf32> to vector<1x1x128xf32>
      tpu.vector_store %arg10[%c0_219, %c1_220, %c768_221], %315 {strides = array<i32>} : memref<4x2x2048xf32, #tpu.memory_space<vmem>>, vector<1x1x128xf32>,
      %316 = vector.extract_strided_slice %287 {offsets = [7, 0], sizes = [1, 128], strides = [1, 1]} : vector<64x128xf32> to vector<1x128xf32>
      %c0_222 = arith.constant 0 : index
      %c1_223 = arith.constant 1 : index
      %c896_224 = arith.constant 896 : index
      %317 = vector.load %arg10[%c0_222, %c1_223, %c896_224] : memref<4x2x2048xf32, #tpu.memory_space<vmem>>, vector<1x1x128xf32>
      %318 = vector.shape_cast %317 : vector<1x1x128xf32> to vector<1x128xf32>
      %319 = vector.shape_cast %316 : vector<1x128xf32> to vector<1x1x128xf32>
      tpu.vector_store %arg10[%c0_222, %c1_223, %c896_224], %319 {strides = array<i32>} : memref<4x2x2048xf32, #tpu.memory_space<vmem>>, vector<1x1x128xf32>,
      %320 = vector.extract_strided_slice %287 {offsets = [8, 0], sizes = [1, 128], strides = [1, 1]} : vector<64x128xf32> to vector<1x128xf32>
      %c0_225 = arith.constant 0 : index
      %c1_226 = arith.constant 1 : index
      %c1024_227 = arith.constant 1024 : index
      %321 = vector.load %arg10[%c0_225, %c1_226, %c1024_227] : memref<4x2x2048xf32, #tpu.memory_space<vmem>>, vector<1x1x128xf32>
      %322 = vector.shape_cast %321 : vector<1x1x128xf32> to vector<1x128xf32>
      %323 = vector.shape_cast %320 : vector<1x128xf32> to vector<1x1x128xf32>
      tpu.vector_store %arg10[%c0_225, %c1_226, %c1024_227], %323 {strides = array<i32>} : memref<4x2x2048xf32, #tpu.memory_space<vmem>>, vector<1x1x128xf32>,
      %324 = vector.extract_strided_slice %287 {offsets = [9, 0], sizes = [1, 128], strides = [1, 1]} : vector<64x128xf32> to vector<1x128xf32>
      %c0_228 = arith.constant 0 : index
      %c1_229 = arith.constant 1 : index
      %c1152_230 = arith.constant 1152 : index
      %325 = vector.load %arg10[%c0_228, %c1_229, %c1152_230] : memref<4x2x2048xf32, #tpu.memory_space<vmem>>, vector<1x1x128xf32>
      %326 = vector.shape_cast %325 : vector<1x1x128xf32> to vector<1x128xf32>
      %327 = vector.shape_cast %324 : vector<1x128xf32> to vector<1x1x128xf32>
      tpu.vector_store %arg10[%c0_228, %c1_229, %c1152_230], %327 {strides = array<i32>} : memref<4x2x2048xf32, #tpu.memory_space<vmem>>, vector<1x1x128xf32>,
      %328 = vector.extract_strided_slice %287 {offsets = [10, 0], sizes = [1, 128], strides = [1, 1]} : vector<64x128xf32> to vector<1x128xf32>
      %c0_231 = arith.constant 0 : index
      %c1_232 = arith.constant 1 : index
      %c1280_233 = arith.constant 1280 : index
      %329 = vector.load %arg10[%c0_231, %c1_232, %c1280_233] : memref<4x2x2048xf32, #tpu.memory_space<vmem>>, vector<1x1x128xf32>
      %330 = vector.shape_cast %329 : vector<1x1x128xf32> to vector<1x128xf32>
      %331 = vector.shape_cast %328 : vector<1x128xf32> to vector<1x1x128xf32>
      tpu.vector_store %arg10[%c0_231, %c1_232, %c1280_233], %331 {strides = array<i32>} : memref<4x2x2048xf32, #tpu.memory_space<vmem>>, vector<1x1x128xf32>,
      %332 = vector.extract_strided_slice %287 {offsets = [11, 0], sizes = [1, 128], strides = [1, 1]} : vector<64x128xf32> to vector<1x128xf32>
      %c0_234 = arith.constant 0 : index
      %c1_235 = arith.constant 1 : index
      %c1408_236 = arith.constant 1408 : index
      %333 = vector.load %arg10[%c0_234, %c1_235, %c1408_236] : memref<4x2x2048xf32, #tpu.memory_space<vmem>>, vector<1x1x128xf32>
      %334 = vector.shape_cast %333 : vector<1x1x128xf32> to vector<1x128xf32>
      %335 = vector.shape_cast %332 : vector<1x128xf32> to vector<1x1x128xf32>
      tpu.vector_store %arg10[%c0_234, %c1_235, %c1408_236], %335 {strides = array<i32>} : memref<4x2x2048xf32, #tpu.memory_space<vmem>>, vector<1x1x128xf32>,
      %336 = vector.extract_strided_slice %287 {offsets = [12, 0], sizes = [1, 128], strides = [1, 1]} : vector<64x128xf32> to vector<1x128xf32>
      %c0_237 = arith.constant 0 : index
      %c1_238 = arith.constant 1 : index
      %c1536_239 = arith.constant 1536 : index
      %337 = vector.load %arg10[%c0_237, %c1_238, %c1536_239] : memref<4x2x2048xf32, #tpu.memory_space<vmem>>, vector<1x1x128xf32>
      %338 = vector.shape_cast %337 : vector<1x1x128xf32> to vector<1x128xf32>
      %339 = vector.shape_cast %336 : vector<1x128xf32> to vector<1x1x128xf32>
      tpu.vector_store %arg10[%c0_237, %c1_238, %c1536_239], %339 {strides = array<i32>} : memref<4x2x2048xf32, #tpu.memory_space<vmem>>, vector<1x1x128xf32>,
      %340 = vector.extract_strided_slice %287 {offsets = [13, 0], sizes = [1, 128], strides = [1, 1]} : vector<64x128xf32> to vector<1x128xf32>
      %c0_240 = arith.constant 0 : index
      %c1_241 = arith.constant 1 : index
      %c1664_242 = arith.constant 1664 : index
      %341 = vector.load %arg10[%c0_240, %c1_241, %c1664_242] : memref<4x2x2048xf32, #tpu.memory_space<vmem>>, vector<1x1x128xf32>
      %342 = vector.shape_cast %341 : vector<1x1x128xf32> to vector<1x128xf32>
      %343 = vector.shape_cast %340 : vector<1x128xf32> to vector<1x1x128xf32>
      tpu.vector_store %arg10[%c0_240, %c1_241, %c1664_242], %343 {strides = array<i32>} : memref<4x2x2048xf32, #tpu.memory_space<vmem>>, vector<1x1x128xf32>,
      %344 = vector.extract_strided_slice %287 {offsets = [14, 0], sizes = [1, 128], strides = [1, 1]} : vector<64x128xf32> to vector<1x128xf32>
      %c0_243 = arith.constant 0 : index
      %c1_244 = arith.constant 1 : index
      %c1792_245 = arith.constant 1792 : index
      %345 = vector.load %arg10[%c0_243, %c1_244, %c1792_245] : memref<4x2x2048xf32, #tpu.memory_space<vmem>>, vector<1x1x128xf32>
      %346 = vector.shape_cast %345 : vector<1x1x128xf32> to vector<1x128xf32>
      %347 = vector.shape_cast %344 : vector<1x128xf32> to vector<1x1x128xf32>
      tpu.vector_store %arg10[%c0_243, %c1_244, %c1792_245], %347 {strides = array<i32>} : memref<4x2x2048xf32, #tpu.memory_space<vmem>>, vector<1x1x128xf32>,
      %348 = vector.extract_strided_slice %287 {offsets = [15, 0], sizes = [1, 128], strides = [1, 1]} : vector<64x128xf32> to vector<1x128xf32>
      %c0_246 = arith.constant 0 : index
      %c1_247 = arith.constant 1 : index
      %c1920_248 = arith.constant 1920 : index
      %349 = vector.load %arg10[%c0_246, %c1_247, %c1920_248] : memref<4x2x2048xf32, #tpu.memory_space<vmem>>, vector<1x1x128xf32>
      %350 = vector.shape_cast %349 : vector<1x1x128xf32> to vector<1x128xf32>
      %351 = vector.shape_cast %348 : vector<1x128xf32> to vector<1x1x128xf32>
      tpu.vector_store %arg10[%c0_246, %c1_247, %c1920_248], %351 {strides = array<i32>} : memref<4x2x2048xf32, #tpu.memory_space<vmem>>, vector<1x1x128xf32>,
      %352 = vector.extract_strided_slice %287 {offsets = [16, 0], sizes = [1, 128], strides = [1, 1]} : vector<64x128xf32> to vector<1x128xf32>
      %c1_249 = arith.constant 1 : index
      %c1_250 = arith.constant 1 : index
      %c0_251 = arith.constant 0 : index
      %353 = vector.load %arg10[%c1_249, %c1_250, %c0_251] : memref<4x2x2048xf32, #tpu.memory_space<vmem>>, vector<1x1x128xf32>
      %354 = vector.shape_cast %353 : vector<1x1x128xf32> to vector<1x128xf32>
      %355 = vector.shape_cast %352 : vector<1x128xf32> to vector<1x1x128xf32>
      tpu.vector_store %arg10[%c1_249, %c1_250, %c0_251], %355 {strides = array<i32>} : memref<4x2x2048xf32, #tpu.memory_space<vmem>>, vector<1x1x128xf32>,
      %356 = vector.extract_strided_slice %287 {offsets = [17, 0], sizes = [1, 128], strides = [1, 1]} : vector<64x128xf32> to vector<1x128xf32>
      %c1_252 = arith.constant 1 : index
      %c1_253 = arith.constant 1 : index
      %c128_254 = arith.constant 128 : index
      %357 = vector.load %arg10[%c1_252, %c1_253, %c128_254] : memref<4x2x2048xf32, #tpu.memory_space<vmem>>, vector<1x1x128xf32>
      %358 = vector.shape_cast %357 : vector<1x1x128xf32> to vector<1x128xf32>
      %359 = vector.shape_cast %356 : vector<1x128xf32> to vector<1x1x128xf32>
      tpu.vector_store %arg10[%c1_252, %c1_253, %c128_254], %359 {strides = array<i32>} : memref<4x2x2048xf32, #tpu.memory_space<vmem>>, vector<1x1x128xf32>,
      %360 = vector.extract_strided_slice %287 {offsets = [18, 0], sizes = [1, 128], strides = [1, 1]} : vector<64x128xf32> to vector<1x128xf32>
      %c1_255 = arith.constant 1 : index
      %c1_256 = arith.constant 1 : index
      %c256_257 = arith.constant 256 : index
      %361 = vector.load %arg10[%c1_255, %c1_256, %c256_257] : memref<4x2x2048xf32, #tpu.memory_space<vmem>>, vector<1x1x128xf32>
      %362 = vector.shape_cast %361 : vector<1x1x128xf32> to vector<1x128xf32>
      %363 = vector.shape_cast %360 : vector<1x128xf32> to vector<1x1x128xf32>
      tpu.vector_store %arg10[%c1_255, %c1_256, %c256_257], %363 {strides = array<i32>} : memref<4x2x2048xf32, #tpu.memory_space<vmem>>, vector<1x1x128xf32>,
      %364 = vector.extract_strided_slice %287 {offsets = [19, 0], sizes = [1, 128], strides = [1, 1]} : vector<64x128xf32> to vector<1x128xf32>
      %c1_258 = arith.constant 1 : index
      %c1_259 = arith.constant 1 : index
      %c384_260 = arith.constant 384 : index
      %365 = vector.load %arg10[%c1_258, %c1_259, %c384_260] : memref<4x2x2048xf32, #tpu.memory_space<vmem>>, vector<1x1x128xf32>
      %366 = vector.shape_cast %365 : vector<1x1x128xf32> to vector<1x128xf32>
      %367 = vector.shape_cast %364 : vector<1x128xf32> to vector<1x1x128xf32>
      tpu.vector_store %arg10[%c1_258, %c1_259, %c384_260], %367 {strides = array<i32>} : memref<4x2x2048xf32, #tpu.memory_space<vmem>>, vector<1x1x128xf32>,
      %368 = vector.extract_strided_slice %287 {offsets = [20, 0], sizes = [1, 128], strides = [1, 1]} : vector<64x128xf32> to vector<1x128xf32>
      %c1_261 = arith.constant 1 : index
      %c1_262 = arith.constant 1 : index
      %c512_263 = arith.constant 512 : index
      %369 = vector.load %arg10[%c1_261, %c1_262, %c512_263] : memref<4x2x2048xf32, #tpu.memory_space<vmem>>, vector<1x1x128xf32>
      %370 = vector.shape_cast %369 : vector<1x1x128xf32> to vector<1x128xf32>
      %371 = vector.shape_cast %368 : vector<1x128xf32> to vector<1x1x128xf32>
      tpu.vector_store %arg10[%c1_261, %c1_262, %c512_263], %371 {strides = array<i32>} : memref<4x2x2048xf32, #tpu.memory_space<vmem>>, vector<1x1x128xf32>,
      %372 = vector.extract_strided_slice %287 {offsets = [21, 0], sizes = [1, 128], strides = [1, 1]} : vector<64x128xf32> to vector<1x128xf32>
      %c1_264 = arith.constant 1 : index
      %c1_265 = arith.constant 1 : index
      %c640_266 = arith.constant 640 : index
      %373 = vector.load %arg10[%c1_264, %c1_265, %c640_266] : memref<4x2x2048xf32, #tpu.memory_space<vmem>>, vector<1x1x128xf32>
      %374 = vector.shape_cast %373 : vector<1x1x128xf32> to vector<1x128xf32>
      %375 = vector.shape_cast %372 : vector<1x128xf32> to vector<1x1x128xf32>
      tpu.vector_store %arg10[%c1_264, %c1_265, %c640_266], %375 {strides = array<i32>} : memref<4x2x2048xf32, #tpu.memory_space<vmem>>, vector<1x1x128xf32>,
      %376 = vector.extract_strided_slice %287 {offsets = [22, 0], sizes = [1, 128], strides = [1, 1]} : vector<64x128xf32> to vector<1x128xf32>
      %c1_267 = arith.constant 1 : index
      %c1_268 = arith.constant 1 : index
      %c768_269 = arith.constant 768 : index
      %377 = vector.load %arg10[%c1_267, %c1_268, %c768_269] : memref<4x2x2048xf32, #tpu.memory_space<vmem>>, vector<1x1x128xf32>
      %378 = vector.shape_cast %377 : vector<1x1x128xf32> to vector<1x128xf32>
      %379 = vector.shape_cast %376 : vector<1x128xf32> to vector<1x1x128xf32>
      tpu.vector_store %arg10[%c1_267, %c1_268, %c768_269], %379 {strides = array<i32>} : memref<4x2x2048xf32, #tpu.memory_space<vmem>>, vector<1x1x128xf32>,
      %380 = vector.extract_strided_slice %287 {offsets = [23, 0], sizes = [1, 128], strides = [1, 1]} : vector<64x128xf32> to vector<1x128xf32>
      %c1_270 = arith.constant 1 : index
      %c1_271 = arith.constant 1 : index
      %c896_272 = arith.constant 896 : index
      %381 = vector.load %arg10[%c1_270, %c1_271, %c896_272] : memref<4x2x2048xf32, #tpu.memory_space<vmem>>, vector<1x1x128xf32>
      %382 = vector.shape_cast %381 : vector<1x1x128xf32> to vector<1x128xf32>
      %383 = vector.shape_cast %380 : vector<1x128xf32> to vector<1x1x128xf32>
      tpu.vector_store %arg10[%c1_270, %c1_271, %c896_272], %383 {strides = array<i32>} : memref<4x2x2048xf32, #tpu.memory_space<vmem>>, vector<1x1x128xf32>,
      %384 = vector.extract_strided_slice %287 {offsets = [24, 0], sizes = [1, 128], strides = [1, 1]} : vector<64x128xf32> to vector<1x128xf32>
      %c1_273 = arith.constant 1 : index
      %c1_274 = arith.constant 1 : index
      %c1024_275 = arith.constant 1024 : index
      %385 = vector.load %arg10[%c1_273, %c1_274, %c1024_275] : memref<4x2x2048xf32, #tpu.memory_space<vmem>>, vector<1x1x128xf32>
      %386 = vector.shape_cast %385 : vector<1x1x128xf32> to vector<1x128xf32>
      %387 = vector.shape_cast %384 : vector<1x128xf32> to vector<1x1x128xf32>
      tpu.vector_store %arg10[%c1_273, %c1_274, %c1024_275], %387 {strides = array<i32>} : memref<4x2x2048xf32, #tpu.memory_space<vmem>>, vector<1x1x128xf32>,
      %388 = vector.extract_strided_slice %287 {offsets = [25, 0], sizes = [1, 128], strides = [1, 1]} : vector<64x128xf32> to vector<1x128xf32>
      %c1_276 = arith.constant 1 : index
      %c1_277 = arith.constant 1 : index
      %c1152_278 = arith.constant 1152 : index
      %389 = vector.load %arg10[%c1_276, %c1_277, %c1152_278] : memref<4x2x2048xf32, #tpu.memory_space<vmem>>, vector<1x1x128xf32>
      %390 = vector.shape_cast %389 : vector<1x1x128xf32> to vector<1x128xf32>
      %391 = vector.shape_cast %388 : vector<1x128xf32> to vector<1x1x128xf32>
      tpu.vector_store %arg10[%c1_276, %c1_277, %c1152_278], %391 {strides = array<i32>} : memref<4x2x2048xf32, #tpu.memory_space<vmem>>, vector<1x1x128xf32>,
      %392 = vector.extract_strided_slice %287 {offsets = [26, 0], sizes = [1, 128], strides = [1, 1]} : vector<64x128xf32> to vector<1x128xf32>
      %c1_279 = arith.constant 1 : index
      %c1_280 = arith.constant 1 : index
      %c1280_281 = arith.constant 1280 : index
      %393 = vector.load %arg10[%c1_279, %c1_280, %c1280_281] : memref<4x2x2048xf32, #tpu.memory_space<vmem>>, vector<1x1x128xf32>
      %394 = vector.shape_cast %393 : vector<1x1x128xf32> to vector<1x128xf32>
      %395 = vector.shape_cast %392 : vector<1x128xf32> to vector<1x1x128xf32>
      tpu.vector_store %arg10[%c1_279, %c1_280, %c1280_281], %395 {strides = array<i32>} : memref<4x2x2048xf32, #tpu.memory_space<vmem>>, vector<1x1x128xf32>,
      %396 = vector.extract_strided_slice %287 {offsets = [27, 0], sizes = [1, 128], strides = [1, 1]} : vector<64x128xf32> to vector<1x128xf32>
      %c1_282 = arith.constant 1 : index
      %c1_283 = arith.constant 1 : index
      %c1408_284 = arith.constant 1408 : index
      %397 = vector.load %arg10[%c1_282, %c1_283, %c1408_284] : memref<4x2x2048xf32, #tpu.memory_space<vmem>>, vector<1x1x128xf32>
      %398 = vector.shape_cast %397 : vector<1x1x128xf32> to vector<1x128xf32>
      %399 = vector.shape_cast %396 : vector<1x128xf32> to vector<1x1x128xf32>
      tpu.vector_store %arg10[%c1_282, %c1_283, %c1408_284], %399 {strides = array<i32>} : memref<4x2x2048xf32, #tpu.memory_space<vmem>>, vector<1x1x128xf32>,
      %400 = vector.extract_strided_slice %287 {offsets = [28, 0], sizes = [1, 128], strides = [1, 1]} : vector<64x128xf32> to vector<1x128xf32>
      %c1_285 = arith.constant 1 : index
      %c1_286 = arith.constant 1 : index
      %c1536_287 = arith.constant 1536 : index
      %401 = vector.load %arg10[%c1_285, %c1_286, %c1536_287] : memref<4x2x2048xf32, #tpu.memory_space<vmem>>, vector<1x1x128xf32>
      %402 = vector.shape_cast %401 : vector<1x1x128xf32> to vector<1x128xf32>
      %403 = vector.shape_cast %400 : vector<1x128xf32> to vector<1x1x128xf32>
      tpu.vector_store %arg10[%c1_285, %c1_286, %c1536_287], %403 {strides = array<i32>} : memref<4x2x2048xf32, #tpu.memory_space<vmem>>, vector<1x1x128xf32>,
      %404 = vector.extract_strided_slice %287 {offsets = [29, 0], sizes = [1, 128], strides = [1, 1]} : vector<64x128xf32> to vector<1x128xf32>
      %c1_288 = arith.constant 1 : index
      %c1_289 = arith.constant 1 : index
      %c1664_290 = arith.constant 1664 : index
      %405 = vector.load %arg10[%c1_288, %c1_289, %c1664_290] : memref<4x2x2048xf32, #tpu.memory_space<vmem>>, vector<1x1x128xf32>
      %406 = vector.shape_cast %405 : vector<1x1x128xf32> to vector<1x128xf32>
      %407 = vector.shape_cast %404 : vector<1x128xf32> to vector<1x1x128xf32>
      tpu.vector_store %arg10[%c1_288, %c1_289, %c1664_290], %407 {strides = array<i32>} : memref<4x2x2048xf32, #tpu.memory_space<vmem>>, vector<1x1x128xf32>,
      %408 = vector.extract_strided_slice %287 {offsets = [30, 0], sizes = [1, 128], strides = [1, 1]} : vector<64x128xf32> to vector<1x128xf32>
      %c1_291 = arith.constant 1 : index
      %c1_292 = arith.constant 1 : index
      %c1792_293 = arith.constant 1792 : index
      %409 = vector.load %arg10[%c1_291, %c1_292, %c1792_293] : memref<4x2x2048xf32, #tpu.memory_space<vmem>>, vector<1x1x128xf32>
      %410 = vector.shape_cast %409 : vector<1x1x128xf32> to vector<1x128xf32>
      %411 = vector.shape_cast %408 : vector<1x128xf32> to vector<1x1x128xf32>
      tpu.vector_store %arg10[%c1_291, %c1_292, %c1792_293], %411 {strides = array<i32>} : memref<4x2x2048xf32, #tpu.memory_space<vmem>>, vector<1x1x128xf32>,
      %412 = vector.extract_strided_slice %287 {offsets = [31, 0], sizes = [1, 128], strides = [1, 1]} : vector<64x128xf32> to vector<1x128xf32>
      %c1_294 = arith.constant 1 : index
      %c1_295 = arith.constant 1 : index
      %c1920_296 = arith.constant 1920 : index
      %413 = vector.load %arg10[%c1_294, %c1_295, %c1920_296] : memref<4x2x2048xf32, #tpu.memory_space<vmem>>, vector<1x1x128xf32>
      %414 = vector.shape_cast %413 : vector<1x1x128xf32> to vector<1x128xf32>
      %415 = vector.shape_cast %412 : vector<1x128xf32> to vector<1x1x128xf32>
      tpu.vector_store %arg10[%c1_294, %c1_295, %c1920_296], %415 {strides = array<i32>} : memref<4x2x2048xf32, #tpu.memory_space<vmem>>, vector<1x1x128xf32>,
      %416 = vector.extract_strided_slice %287 {offsets = [32, 0], sizes = [1, 128], strides = [1, 1]} : vector<64x128xf32> to vector<1x128xf32>
      %c2_297 = arith.constant 2 : index
      %c1_298 = arith.constant 1 : index
      %c0_299 = arith.constant 0 : index
      %417 = vector.load %arg10[%c2_297, %c1_298, %c0_299] : memref<4x2x2048xf32, #tpu.memory_space<vmem>>, vector<1x1x128xf32>
      %418 = vector.shape_cast %417 : vector<1x1x128xf32> to vector<1x128xf32>
      %419 = vector.shape_cast %416 : vector<1x128xf32> to vector<1x1x128xf32>
      tpu.vector_store %arg10[%c2_297, %c1_298, %c0_299], %419 {strides = array<i32>} : memref<4x2x2048xf32, #tpu.memory_space<vmem>>, vector<1x1x128xf32>,
      %420 = vector.extract_strided_slice %287 {offsets = [33, 0], sizes = [1, 128], strides = [1, 1]} : vector<64x128xf32> to vector<1x128xf32>
      %c2_300 = arith.constant 2 : index
      %c1_301 = arith.constant 1 : index
      %c128_302 = arith.constant 128 : index
      %421 = vector.load %arg10[%c2_300, %c1_301, %c128_302] : memref<4x2x2048xf32, #tpu.memory_space<vmem>>, vector<1x1x128xf32>
      %422 = vector.shape_cast %421 : vector<1x1x128xf32> to vector<1x128xf32>
      %423 = vector.shape_cast %420 : vector<1x128xf32> to vector<1x1x128xf32>
      tpu.vector_store %arg10[%c2_300, %c1_301, %c128_302], %423 {strides = array<i32>} : memref<4x2x2048xf32, #tpu.memory_space<vmem>>, vector<1x1x128xf32>,
      %424 = vector.extract_strided_slice %287 {offsets = [34, 0], sizes = [1, 128], strides = [1, 1]} : vector<64x128xf32> to vector<1x128xf32>
      %c2_303 = arith.constant 2 : index
      %c1_304 = arith.constant 1 : index
      %c256_305 = arith.constant 256 : index
      %425 = vector.load %arg10[%c2_303, %c1_304, %c256_305] : memref<4x2x2048xf32, #tpu.memory_space<vmem>>, vector<1x1x128xf32>
      %426 = vector.shape_cast %425 : vector<1x1x128xf32> to vector<1x128xf32>
      %427 = vector.shape_cast %424 : vector<1x128xf32> to vector<1x1x128xf32>
      tpu.vector_store %arg10[%c2_303, %c1_304, %c256_305], %427 {strides = array<i32>} : memref<4x2x2048xf32, #tpu.memory_space<vmem>>, vector<1x1x128xf32>,
      %428 = vector.extract_strided_slice %287 {offsets = [35, 0], sizes = [1, 128], strides = [1, 1]} : vector<64x128xf32> to vector<1x128xf32>
      %c2_306 = arith.constant 2 : index
      %c1_307 = arith.constant 1 : index
      %c384_308 = arith.constant 384 : index
      %429 = vector.load %arg10[%c2_306, %c1_307, %c384_308] : memref<4x2x2048xf32, #tpu.memory_space<vmem>>, vector<1x1x128xf32>
      %430 = vector.shape_cast %429 : vector<1x1x128xf32> to vector<1x128xf32>
      %431 = vector.shape_cast %428 : vector<1x128xf32> to vector<1x1x128xf32>
      tpu.vector_store %arg10[%c2_306, %c1_307, %c384_308], %431 {strides = array<i32>} : memref<4x2x2048xf32, #tpu.memory_space<vmem>>, vector<1x1x128xf32>,
      %432 = vector.extract_strided_slice %287 {offsets = [36, 0], sizes = [1, 128], strides = [1, 1]} : vector<64x128xf32> to vector<1x128xf32>
      %c2_309 = arith.constant 2 : index
      %c1_310 = arith.constant 1 : index
      %c512_311 = arith.constant 512 : index
      %433 = vector.load %arg10[%c2_309, %c1_310, %c512_311] : memref<4x2x2048xf32, #tpu.memory_space<vmem>>, vector<1x1x128xf32>
      %434 = vector.shape_cast %433 : vector<1x1x128xf32> to vector<1x128xf32>
      %435 = vector.shape_cast %432 : vector<1x128xf32> to vector<1x1x128xf32>
      tpu.vector_store %arg10[%c2_309, %c1_310, %c512_311], %435 {strides = array<i32>} : memref<4x2x2048xf32, #tpu.memory_space<vmem>>, vector<1x1x128xf32>,
      %436 = vector.extract_strided_slice %287 {offsets = [37, 0], sizes = [1, 128], strides = [1, 1]} : vector<64x128xf32> to vector<1x128xf32>
      %c2_312 = arith.constant 2 : index
      %c1_313 = arith.constant 1 : index
      %c640_314 = arith.constant 640 : index
      %437 = vector.load %arg10[%c2_312, %c1_313, %c640_314] : memref<4x2x2048xf32, #tpu.memory_space<vmem>>, vector<1x1x128xf32>
      %438 = vector.shape_cast %437 : vector<1x1x128xf32> to vector<1x128xf32>
      %439 = vector.shape_cast %436 : vector<1x128xf32> to vector<1x1x128xf32>
      tpu.vector_store %arg10[%c2_312, %c1_313, %c640_314], %439 {strides = array<i32>} : memref<4x2x2048xf32, #tpu.memory_space<vmem>>, vector<1x1x128xf32>,
      %440 = vector.extract_strided_slice %287 {offsets = [38, 0], sizes = [1, 128], strides = [1, 1]} : vector<64x128xf32> to vector<1x128xf32>
      %c2_315 = arith.constant 2 : index
      %c1_316 = arith.constant 1 : index
      %c768_317 = arith.constant 768 : index
      %441 = vector.load %arg10[%c2_315, %c1_316, %c768_317] : memref<4x2x2048xf32, #tpu.memory_space<vmem>>, vector<1x1x128xf32>
      %442 = vector.shape_cast %441 : vector<1x1x128xf32> to vector<1x128xf32>
      %443 = vector.shape_cast %440 : vector<1x128xf32> to vector<1x1x128xf32>
      tpu.vector_store %arg10[%c2_315, %c1_316, %c768_317], %443 {strides = array<i32>} : memref<4x2x2048xf32, #tpu.memory_space<vmem>>, vector<1x1x128xf32>,
      %444 = vector.extract_strided_slice %287 {offsets = [39, 0], sizes = [1, 128], strides = [1, 1]} : vector<64x128xf32> to vector<1x128xf32>
      %c2_318 = arith.constant 2 : index
      %c1_319 = arith.constant 1 : index
      %c896_320 = arith.constant 896 : index
      %445 = vector.load %arg10[%c2_318, %c1_319, %c896_320] : memref<4x2x2048xf32, #tpu.memory_space<vmem>>, vector<1x1x128xf32>
      %446 = vector.shape_cast %445 : vector<1x1x128xf32> to vector<1x128xf32>
      %447 = vector.shape_cast %444 : vector<1x128xf32> to vector<1x1x128xf32>
      tpu.vector_store %arg10[%c2_318, %c1_319, %c896_320], %447 {strides = array<i32>} : memref<4x2x2048xf32, #tpu.memory_space<vmem>>, vector<1x1x128xf32>,
      %448 = vector.extract_strided_slice %287 {offsets = [40, 0], sizes = [1, 128], strides = [1, 1]} : vector<64x128xf32> to vector<1x128xf32>
      %c2_321 = arith.constant 2 : index
      %c1_322 = arith.constant 1 : index
      %c1024_323 = arith.constant 1024 : index
      %449 = vector.load %arg10[%c2_321, %c1_322, %c1024_323] : memref<4x2x2048xf32, #tpu.memory_space<vmem>>, vector<1x1x128xf32>
      %450 = vector.shape_cast %449 : vector<1x1x128xf32> to vector<1x128xf32>
      %451 = vector.shape_cast %448 : vector<1x128xf32> to vector<1x1x128xf32>
      tpu.vector_store %arg10[%c2_321, %c1_322, %c1024_323], %451 {strides = array<i32>} : memref<4x2x2048xf32, #tpu.memory_space<vmem>>, vector<1x1x128xf32>,
      %452 = vector.extract_strided_slice %287 {offsets = [41, 0], sizes = [1, 128], strides = [1, 1]} : vector<64x128xf32> to vector<1x128xf32>
      %c2_324 = arith.constant 2 : index
      %c1_325 = arith.constant 1 : index
      %c1152_326 = arith.constant 1152 : index
      %453 = vector.load %arg10[%c2_324, %c1_325, %c1152_326] : memref<4x2x2048xf32, #tpu.memory_space<vmem>>, vector<1x1x128xf32>
      %454 = vector.shape_cast %453 : vector<1x1x128xf32> to vector<1x128xf32>
      %455 = vector.shape_cast %452 : vector<1x128xf32> to vector<1x1x128xf32>
      tpu.vector_store %arg10[%c2_324, %c1_325, %c1152_326], %455 {strides = array<i32>} : memref<4x2x2048xf32, #tpu.memory_space<vmem>>, vector<1x1x128xf32>,
      %456 = vector.extract_strided_slice %287 {offsets = [42, 0], sizes = [1, 128], strides = [1, 1]} : vector<64x128xf32> to vector<1x128xf32>
      %c2_327 = arith.constant 2 : index
      %c1_328 = arith.constant 1 : index
      %c1280_329 = arith.constant 1280 : index
      %457 = vector.load %arg10[%c2_327, %c1_328, %c1280_329] : memref<4x2x2048xf32, #tpu.memory_space<vmem>>, vector<1x1x128xf32>
      %458 = vector.shape_cast %457 : vector<1x1x128xf32> to vector<1x128xf32>
      %459 = vector.shape_cast %456 : vector<1x128xf32> to vector<1x1x128xf32>
      tpu.vector_store %arg10[%c2_327, %c1_328, %c1280_329], %459 {strides = array<i32>} : memref<4x2x2048xf32, #tpu.memory_space<vmem>>, vector<1x1x128xf32>,
      %460 = vector.extract_strided_slice %287 {offsets = [43, 0], sizes = [1, 128], strides = [1, 1]} : vector<64x128xf32> to vector<1x128xf32>
      %c2_330 = arith.constant 2 : index
      %c1_331 = arith.constant 1 : index
      %c1408_332 = arith.constant 1408 : index
      %461 = vector.load %arg10[%c2_330, %c1_331, %c1408_332] : memref<4x2x2048xf32, #tpu.memory_space<vmem>>, vector<1x1x128xf32>
      %462 = vector.shape_cast %461 : vector<1x1x128xf32> to vector<1x128xf32>
      %463 = vector.shape_cast %460 : vector<1x128xf32> to vector<1x1x128xf32>
      tpu.vector_store %arg10[%c2_330, %c1_331, %c1408_332], %463 {strides = array<i32>} : memref<4x2x2048xf32, #tpu.memory_space<vmem>>, vector<1x1x128xf32>,
      %464 = vector.extract_strided_slice %287 {offsets = [44, 0], sizes = [1, 128], strides = [1, 1]} : vector<64x128xf32> to vector<1x128xf32>
      %c2_333 = arith.constant 2 : index
      %c1_334 = arith.constant 1 : index
      %c1536_335 = arith.constant 1536 : index
      %465 = vector.load %arg10[%c2_333, %c1_334, %c1536_335] : memref<4x2x2048xf32, #tpu.memory_space<vmem>>, vector<1x1x128xf32>
      %466 = vector.shape_cast %465 : vector<1x1x128xf32> to vector<1x128xf32>
      %467 = vector.shape_cast %464 : vector<1x128xf32> to vector<1x1x128xf32>
      tpu.vector_store %arg10[%c2_333, %c1_334, %c1536_335], %467 {strides = array<i32>} : memref<4x2x2048xf32, #tpu.memory_space<vmem>>, vector<1x1x128xf32>,
      %468 = vector.extract_strided_slice %287 {offsets = [45, 0], sizes = [1, 128], strides = [1, 1]} : vector<64x128xf32> to vector<1x128xf32>
      %c2_336 = arith.constant 2 : index
      %c1_337 = arith.constant 1 : index
      %c1664_338 = arith.constant 1664 : index
      %469 = vector.load %arg10[%c2_336, %c1_337, %c1664_338] : memref<4x2x2048xf32, #tpu.memory_space<vmem>>, vector<1x1x128xf32>
      %470 = vector.shape_cast %469 : vector<1x1x128xf32> to vector<1x128xf32>
      %471 = vector.shape_cast %468 : vector<1x128xf32> to vector<1x1x128xf32>
      tpu.vector_store %arg10[%c2_336, %c1_337, %c1664_338], %471 {strides = array<i32>} : memref<4x2x2048xf32, #tpu.memory_space<vmem>>, vector<1x1x128xf32>,
      %472 = vector.extract_strided_slice %287 {offsets = [46, 0], sizes = [1, 128], strides = [1, 1]} : vector<64x128xf32> to vector<1x128xf32>
      %c2_339 = arith.constant 2 : index
      %c1_340 = arith.constant 1 : index
      %c1792_341 = arith.constant 1792 : index
      %473 = vector.load %arg10[%c2_339, %c1_340, %c1792_341] : memref<4x2x2048xf32, #tpu.memory_space<vmem>>, vector<1x1x128xf32>
      %474 = vector.shape_cast %473 : vector<1x1x128xf32> to vector<1x128xf32>
      %475 = vector.shape_cast %472 : vector<1x128xf32> to vector<1x1x128xf32>
      tpu.vector_store %arg10[%c2_339, %c1_340, %c1792_341], %475 {strides = array<i32>} : memref<4x2x2048xf32, #tpu.memory_space<vmem>>, vector<1x1x128xf32>,
      %476 = vector.extract_strided_slice %287 {offsets = [47, 0], sizes = [1, 128], strides = [1, 1]} : vector<64x128xf32> to vector<1x128xf32>
      %c2_342 = arith.constant 2 : index
      %c1_343 = arith.constant 1 : index
      %c1920_344 = arith.constant 1920 : index
      %477 = vector.load %arg10[%c2_342, %c1_343, %c1920_344] : memref<4x2x2048xf32, #tpu.memory_space<vmem>>, vector<1x1x128xf32>
      %478 = vector.shape_cast %477 : vector<1x1x128xf32> to vector<1x128xf32>
      %479 = vector.shape_cast %476 : vector<1x128xf32> to vector<1x1x128xf32>
      tpu.vector_store %arg10[%c2_342, %c1_343, %c1920_344], %479 {strides = array<i32>} : memref<4x2x2048xf32, #tpu.memory_space<vmem>>, vector<1x1x128xf32>,
      %480 = vector.extract_strided_slice %287 {offsets = [48, 0], sizes = [1, 128], strides = [1, 1]} : vector<64x128xf32> to vector<1x128xf32>
      %c3_345 = arith.constant 3 : index
      %c1_346 = arith.constant 1 : index
      %c0_347 = arith.constant 0 : index
      %481 = vector.load %arg10[%c3_345, %c1_346, %c0_347] : memref<4x2x2048xf32, #tpu.memory_space<vmem>>, vector<1x1x128xf32>
      %482 = vector.shape_cast %481 : vector<1x1x128xf32> to vector<1x128xf32>
      %483 = vector.shape_cast %480 : vector<1x128xf32> to vector<1x1x128xf32>
      tpu.vector_store %arg10[%c3_345, %c1_346, %c0_347], %483 {strides = array<i32>} : memref<4x2x2048xf32, #tpu.memory_space<vmem>>, vector<1x1x128xf32>,
      %484 = vector.extract_strided_slice %287 {offsets = [49, 0], sizes = [1, 128], strides = [1, 1]} : vector<64x128xf32> to vector<1x128xf32>
      %c3_348 = arith.constant 3 : index
      %c1_349 = arith.constant 1 : index
      %c128_350 = arith.constant 128 : index
      %485 = vector.load %arg10[%c3_348, %c1_349, %c128_350] : memref<4x2x2048xf32, #tpu.memory_space<vmem>>, vector<1x1x128xf32>
      %486 = vector.shape_cast %485 : vector<1x1x128xf32> to vector<1x128xf32>
      %487 = vector.shape_cast %484 : vector<1x128xf32> to vector<1x1x128xf32>
      tpu.vector_store %arg10[%c3_348, %c1_349, %c128_350], %487 {strides = array<i32>} : memref<4x2x2048xf32, #tpu.memory_space<vmem>>, vector<1x1x128xf32>,
      %488 = vector.extract_strided_slice %287 {offsets = [50, 0], sizes = [1, 128], strides = [1, 1]} : vector<64x128xf32> to vector<1x128xf32>
      %c3_351 = arith.constant 3 : index
      %c1_352 = arith.constant 1 : index
      %c256_353 = arith.constant 256 : index
      %489 = vector.load %arg10[%c3_351, %c1_352, %c256_353] : memref<4x2x2048xf32, #tpu.memory_space<vmem>>, vector<1x1x128xf32>
      %490 = vector.shape_cast %489 : vector<1x1x128xf32> to vector<1x128xf32>
      %491 = vector.shape_cast %488 : vector<1x128xf32> to vector<1x1x128xf32>
      tpu.vector_store %arg10[%c3_351, %c1_352, %c256_353], %491 {strides = array<i32>} : memref<4x2x2048xf32, #tpu.memory_space<vmem>>, vector<1x1x128xf32>,
      %492 = vector.extract_strided_slice %287 {offsets = [51, 0], sizes = [1, 128], strides = [1, 1]} : vector<64x128xf32> to vector<1x128xf32>
      %c3_354 = arith.constant 3 : index
      %c1_355 = arith.constant 1 : index
      %c384_356 = arith.constant 384 : index
      %493 = vector.load %arg10[%c3_354, %c1_355, %c384_356] : memref<4x2x2048xf32, #tpu.memory_space<vmem>>, vector<1x1x128xf32>
      %494 = vector.shape_cast %493 : vector<1x1x128xf32> to vector<1x128xf32>
      %495 = vector.shape_cast %492 : vector<1x128xf32> to vector<1x1x128xf32>
      tpu.vector_store %arg10[%c3_354, %c1_355, %c384_356], %495 {strides = array<i32>} : memref<4x2x2048xf32, #tpu.memory_space<vmem>>, vector<1x1x128xf32>,
      %496 = vector.extract_strided_slice %287 {offsets = [52, 0], sizes = [1, 128], strides = [1, 1]} : vector<64x128xf32> to vector<1x128xf32>
      %c3_357 = arith.constant 3 : index
      %c1_358 = arith.constant 1 : index
      %c512_359 = arith.constant 512 : index
      %497 = vector.load %arg10[%c3_357, %c1_358, %c512_359] : memref<4x2x2048xf32, #tpu.memory_space<vmem>>, vector<1x1x128xf32>
      %498 = vector.shape_cast %497 : vector<1x1x128xf32> to vector<1x128xf32>
      %499 = vector.shape_cast %496 : vector<1x128xf32> to vector<1x1x128xf32>
      tpu.vector_store %arg10[%c3_357, %c1_358, %c512_359], %499 {strides = array<i32>} : memref<4x2x2048xf32, #tpu.memory_space<vmem>>, vector<1x1x128xf32>,
      %500 = vector.extract_strided_slice %287 {offsets = [53, 0], sizes = [1, 128], strides = [1, 1]} : vector<64x128xf32> to vector<1x128xf32>
      %c3_360 = arith.constant 3 : index
      %c1_361 = arith.constant 1 : index
      %c640_362 = arith.constant 640 : index
      %501 = vector.load %arg10[%c3_360, %c1_361, %c640_362] : memref<4x2x2048xf32, #tpu.memory_space<vmem>>, vector<1x1x128xf32>
      %502 = vector.shape_cast %501 : vector<1x1x128xf32> to vector<1x128xf32>
      %503 = vector.shape_cast %500 : vector<1x128xf32> to vector<1x1x128xf32>
      tpu.vector_store %arg10[%c3_360, %c1_361, %c640_362], %503 {strides = array<i32>} : memref<4x2x2048xf32, #tpu.memory_space<vmem>>, vector<1x1x128xf32>,
      %504 = vector.extract_strided_slice %287 {offsets = [54, 0], sizes = [1, 128], strides = [1, 1]} : vector<64x128xf32> to vector<1x128xf32>
      %c3_363 = arith.constant 3 : index
      %c1_364 = arith.constant 1 : index
      %c768_365 = arith.constant 768 : index
      %505 = vector.load %arg10[%c3_363, %c1_364, %c768_365] : memref<4x2x2048xf32, #tpu.memory_space<vmem>>, vector<1x1x128xf32>
      %506 = vector.shape_cast %505 : vector<1x1x128xf32> to vector<1x128xf32>
      %507 = vector.shape_cast %504 : vector<1x128xf32> to vector<1x1x128xf32>
      tpu.vector_store %arg10[%c3_363, %c1_364, %c768_365], %507 {strides = array<i32>} : memref<4x2x2048xf32, #tpu.memory_space<vmem>>, vector<1x1x128xf32>,
      %508 = vector.extract_strided_slice %287 {offsets = [55, 0], sizes = [1, 128], strides = [1, 1]} : vector<64x128xf32> to vector<1x128xf32>
      %c3_366 = arith.constant 3 : index
      %c1_367 = arith.constant 1 : index
      %c896_368 = arith.constant 896 : index
      %509 = vector.load %arg10[%c3_366, %c1_367, %c896_368] : memref<4x2x2048xf32, #tpu.memory_space<vmem>>, vector<1x1x128xf32>
      %510 = vector.shape_cast %509 : vector<1x1x128xf32> to vector<1x128xf32>
      %511 = vector.shape_cast %508 : vector<1x128xf32> to vector<1x1x128xf32>
      tpu.vector_store %arg10[%c3_366, %c1_367, %c896_368], %511 {strides = array<i32>} : memref<4x2x2048xf32, #tpu.memory_space<vmem>>, vector<1x1x128xf32>,
      %512 = vector.extract_strided_slice %287 {offsets = [56, 0], sizes = [1, 128], strides = [1, 1]} : vector<64x128xf32> to vector<1x128xf32>
      %c3_369 = arith.constant 3 : index
      %c1_370 = arith.constant 1 : index
      %c1024_371 = arith.constant 1024 : index
      %513 = vector.load %arg10[%c3_369, %c1_370, %c1024_371] : memref<4x2x2048xf32, #tpu.memory_space<vmem>>, vector<1x1x128xf32>
      %514 = vector.shape_cast %513 : vector<1x1x128xf32> to vector<1x128xf32>
      %515 = vector.shape_cast %512 : vector<1x128xf32> to vector<1x1x128xf32>
      tpu.vector_store %arg10[%c3_369, %c1_370, %c1024_371], %515 {strides = array<i32>} : memref<4x2x2048xf32, #tpu.memory_space<vmem>>, vector<1x1x128xf32>,
      %516 = vector.extract_strided_slice %287 {offsets = [57, 0], sizes = [1, 128], strides = [1, 1]} : vector<64x128xf32> to vector<1x128xf32>
      %c3_372 = arith.constant 3 : index
      %c1_373 = arith.constant 1 : index
      %c1152_374 = arith.constant 1152 : index
      %517 = vector.load %arg10[%c3_372, %c1_373, %c1152_374] : memref<4x2x2048xf32, #tpu.memory_space<vmem>>, vector<1x1x128xf32>
      %518 = vector.shape_cast %517 : vector<1x1x128xf32> to vector<1x128xf32>
      %519 = vector.shape_cast %516 : vector<1x128xf32> to vector<1x1x128xf32>
      tpu.vector_store %arg10[%c3_372, %c1_373, %c1152_374], %519 {strides = array<i32>} : memref<4x2x2048xf32, #tpu.memory_space<vmem>>, vector<1x1x128xf32>,
      %520 = vector.extract_strided_slice %287 {offsets = [58, 0], sizes = [1, 128], strides = [1, 1]} : vector<64x128xf32> to vector<1x128xf32>
      %c3_375 = arith.constant 3 : index
      %c1_376 = arith.constant 1 : index
      %c1280_377 = arith.constant 1280 : index
      %521 = vector.load %arg10[%c3_375, %c1_376, %c1280_377] : memref<4x2x2048xf32, #tpu.memory_space<vmem>>, vector<1x1x128xf32>
      %522 = vector.shape_cast %521 : vector<1x1x128xf32> to vector<1x128xf32>
      %523 = vector.shape_cast %520 : vector<1x128xf32> to vector<1x1x128xf32>
      tpu.vector_store %arg10[%c3_375, %c1_376, %c1280_377], %523 {strides = array<i32>} : memref<4x2x2048xf32, #tpu.memory_space<vmem>>, vector<1x1x128xf32>,
      %524 = vector.extract_strided_slice %287 {offsets = [59, 0], sizes = [1, 128], strides = [1, 1]} : vector<64x128xf32> to vector<1x128xf32>
      %c3_378 = arith.constant 3 : index
      %c1_379 = arith.constant 1 : index
      %c1408_380 = arith.constant 1408 : index
      %525 = vector.load %arg10[%c3_378, %c1_379, %c1408_380] : memref<4x2x2048xf32, #tpu.memory_space<vmem>>, vector<1x1x128xf32>
      %526 = vector.shape_cast %525 : vector<1x1x128xf32> to vector<1x128xf32>
      %527 = vector.shape_cast %524 : vector<1x128xf32> to vector<1x1x128xf32>
      tpu.vector_store %arg10[%c3_378, %c1_379, %c1408_380], %527 {strides = array<i32>} : memref<4x2x2048xf32, #tpu.memory_space<vmem>>, vector<1x1x128xf32>,
      %528 = vector.extract_strided_slice %287 {offsets = [60, 0], sizes = [1, 128], strides = [1, 1]} : vector<64x128xf32> to vector<1x128xf32>
      %c3_381 = arith.constant 3 : index
      %c1_382 = arith.constant 1 : index
      %c1536_383 = arith.constant 1536 : index
      %529 = vector.load %arg10[%c3_381, %c1_382, %c1536_383] : memref<4x2x2048xf32, #tpu.memory_space<vmem>>, vector<1x1x128xf32>
      %530 = vector.shape_cast %529 : vector<1x1x128xf32> to vector<1x128xf32>
      %531 = vector.shape_cast %528 : vector<1x128xf32> to vector<1x1x128xf32>
      tpu.vector_store %arg10[%c3_381, %c1_382, %c1536_383], %531 {strides = array<i32>} : memref<4x2x2048xf32, #tpu.memory_space<vmem>>, vector<1x1x128xf32>,
      %532 = vector.extract_strided_slice %287 {offsets = [61, 0], sizes = [1, 128], strides = [1, 1]} : vector<64x128xf32> to vector<1x128xf32>
      %c3_384 = arith.constant 3 : index
      %c1_385 = arith.constant 1 : index
      %c1664_386 = arith.constant 1664 : index
      %533 = vector.load %arg10[%c3_384, %c1_385, %c1664_386] : memref<4x2x2048xf32, #tpu.memory_space<vmem>>, vector<1x1x128xf32>
      %534 = vector.shape_cast %533 : vector<1x1x128xf32> to vector<1x128xf32>
      %535 = vector.shape_cast %532 : vector<1x128xf32> to vector<1x1x128xf32>
      tpu.vector_store %arg10[%c3_384, %c1_385, %c1664_386], %535 {strides = array<i32>} : memref<4x2x2048xf32, #tpu.memory_space<vmem>>, vector<1x1x128xf32>,
      %536 = vector.extract_strided_slice %287 {offsets = [62, 0], sizes = [1, 128], strides = [1, 1]} : vector<64x128xf32> to vector<1x128xf32>
      %c3_387 = arith.constant 3 : index
      %c1_388 = arith.constant 1 : index
      %c1792_389 = arith.constant 1792 : index
      %537 = vector.load %arg10[%c3_387, %c1_388, %c1792_389] : memref<4x2x2048xf32, #tpu.memory_space<vmem>>, vector<1x1x128xf32>
      %538 = vector.shape_cast %537 : vector<1x1x128xf32> to vector<1x128xf32>
      %539 = vector.shape_cast %536 : vector<1x128xf32> to vector<1x1x128xf32>
      tpu.vector_store %arg10[%c3_387, %c1_388, %c1792_389], %539 {strides = array<i32>} : memref<4x2x2048xf32, #tpu.memory_space<vmem>>, vector<1x1x128xf32>,
      %540 = vector.extract_strided_slice %287 {offsets = [63, 0], sizes = [1, 128], strides = [1, 1]} : vector<64x128xf32> to vector<1x128xf32>
      %c3_390 = arith.constant 3 : index
      %c1_391 = arith.constant 1 : index
      %c1920_392 = arith.constant 1920 : index
      %541 = vector.load %arg10[%c3_390, %c1_391, %c1920_392] : memref<4x2x2048xf32, #tpu.memory_space<vmem>>, vector<1x1x128xf32>
      %542 = vector.shape_cast %541 : vector<1x1x128xf32> to vector<1x128xf32>
      %543 = vector.shape_cast %540 : vector<1x128xf32> to vector<1x1x128xf32>
      tpu.vector_store %arg10[%c3_390, %c1_391, %c1920_392], %543 {strides = array<i32>} : memref<4x2x2048xf32, #tpu.memory_space<vmem>>, vector<1x1x128xf32>,
    } else {
    }
    %c0 = arith.constant 0 : index
    %c0_1 = arith.constant 0 : index
    %3 = vector.load %arg11[%c0, %c0_1] : memref<2x1024xf32, #tpu.memory_space<vmem>>, vector<2x1024xf32>
    %4 = arith.index_cast %arg0 : i32 to index
    %c0_2 = arith.constant 0 : index
    %c0_3 = arith.constant 0 : index
    %5 = vector.load %arg10[%4, %c0_2, %c0_3] : memref<4x2x2048xf32, #tpu.memory_space<vmem>>, vector<1x2x2048xf32>
    %6 = vector.shape_cast %5 : vector<1x2x2048xf32> to vector<2x2048xf32>
    %7 = arith.truncf %6 : vector<2x2048xf32> to vector<2x2048xbf16>
    %c0_4 = arith.constant 0 : index
    %c0_5 = arith.constant 0 : index
    %8 = vector.load %arg5[%c0_4, %c0_5] : memref<2048x1024xbf16, #tpu.memory_space<vmem>>, vector<2048x1024xbf16>
    %cst = arith.constant dense<0.000000e+00> : vector<2x1024xf32>
    %9 = tpu.matmul %7, %8, %cst {dimension_numbers = #tpu.dot_dimension_numbers<[1], [0], [0], [1], [0, 0, 1, 1], [], []>} : vector<2x2048xbf16>, vector<2048x1024xbf16>, vector<2x1024xf32> -> vector<2x1024xf32>
    %10 = arith.addf %3, %9 : vector<2x1024xf32>
    %c0_6 = arith.constant 0 : index
    %c0_7 = arith.constant 0 : index
    %11 = vector.load %arg11[%c0_6, %c0_7] : memref<2x1024xf32, #tpu.memory_space<vmem>>, vector<2x1024xf32>
    tpu.vector_store %arg11[%c0_6, %c0_7], %10 {strides = array<i32>} : memref<2x1024xf32, #tpu.memory_space<vmem>>, vector<2x1024xf32>,
    %c3_i32 = arith.constant 3 : i32
    %12 = arith.cmpi eq, %arg0, %c3_i32 : i32
    %13 = arith.extui %12 : i1 to i32
    %c0_i32_8 = arith.constant 0 : i32
    %14 = arith.cmpi ne, %13, %c0_i32_8 : i32
    scf.if %14 {
      %c0_9 = arith.constant 0 : index
      %c0_10 = arith.constant 0 : index
      %15 = vector.load %arg11[%c0_9, %c0_10] : memref<2x1024xf32, #tpu.memory_space<vmem>>, vector<2x1024xf32>
      %c0_11 = arith.constant 0 : index
      %c0_12 = arith.constant 0 : index
      %16 = vector.load %arg6[%c0_11, %c0_12] : memref<1x1024xf32, #tpu.memory_space<vmem>>, vector<1x1024xf32>
      %17 = vector.broadcast %16 : vector<1x1024xf32> to vector<2x1024xf32>
      %18 = arith.addf %15, %17 : vector<2x1024xf32>
      %cst_13 = arith.constant 0.000000e+00 : f32
      %19 = vector.broadcast %cst_13 : f32 to vector<2x1024xf32>
      %20 = arith.maximumf %18, %19 : vector<2x1024xf32>
      %c0_14 = arith.constant 0 : index
      %c0_15 = arith.constant 0 : index
      %21 = vector.load %arg7[%c0_14, %c0_15] : memref<1024x128xf32, #tpu.memory_space<vmem>>, vector<1024x128xf32>
      %cst_16 = arith.constant dense<0.000000e+00> : vector<2x128xf32>
      %22 = tpu.matmul %20, %21, %cst_16 {dimension_numbers = #tpu.dot_dimension_numbers<[1], [0], [0], [1], [0, 0, 1, 1], [], []>} : vector<2x1024xf32>, vector<1024x128xf32>, vector<2x128xf32> -> vector<2x128xf32>
      %c0_17 = arith.constant 0 : index
      %c0_18 = arith.constant 0 : index
      %23 = vector.load %arg8[%c0_17, %c0_18] : memref<1x128xf32, #tpu.memory_space<vmem>>, vector<1x128xf32>
      %24 = vector.broadcast %23 : vector<1x128xf32> to vector<2x128xf32>
      %25 = arith.addf %22, %24 : vector<2x128xf32>
      %c0_19 = arith.constant 0 : index
      %c0_20 = arith.constant 0 : index
      %26 = vector.load %arg9[%c0_19, %c0_20] : memref<2x128xf32, #tpu.memory_space<vmem>>, vector<2x128xf32>
      tpu.vector_store %arg9[%c0_19, %c0_20], %25 {strides = array<i32>} : memref<2x128xf32, #tpu.memory_space<vmem>>, vector<2x128xf32>,
    } else {
    }
    return
  }
  func.func @transform_0(%arg0: i32) -> (i32, i32) {
    %c0_i32 = arith.constant 0 : i32
    %c0_i32_0 = arith.constant 0 : i32
    %c0_i32_1 = arith.constant 0 : i32
    return %c0_i32, %c0_i32_0 : i32, i32
  }
  func.func @transform_1(%arg0: i32) -> (i32, i32) {
    %c0_i32 = arith.constant 0 : i32
    %c0_i32_0 = arith.constant 0 : i32
    %c0_i32_1 = arith.constant 0 : i32
    return %c0_i32, %c0_i32_0 : i32, i32
  }
  func.func @transform_2(%arg0: i32) -> (i32, i32) {
    %c0_i32 = arith.constant 0 : i32
    %c0_i32_0 = arith.constant 0 : i32
    %c0_i32_1 = arith.constant 0 : i32
    return %c0_i32, %c0_i32_0 : i32, i32
  }
  func.func @transform_3(%arg0: i32) -> (i32, i32) {
    %c0_i32 = arith.constant 0 : i32
    %c0_i32_0 = arith.constant 0 : i32
    %c0_i32_1 = arith.constant 0 : i32
    return %c0_i32, %c0_i32_0 : i32, i32
  }
  func.func @transform_4(%arg0: i32) -> (i32, i32) {
    %c0_i32 = arith.constant 0 : i32
    %c0_i32_0 = arith.constant 0 : i32
    return %arg0, %c0_i32 : i32, i32
  }
  func.func @transform_5(%arg0: i32) -> (i32, i32) {
    %c0_i32 = arith.constant 0 : i32
    %c0_i32_0 = arith.constant 0 : i32
    %c0_i32_1 = arith.constant 0 : i32
    return %c0_i32, %c0_i32_0 : i32, i32
  }
  func.func @transform_6(%arg0: i32) -> (i32, i32) {
    %c0_i32 = arith.constant 0 : i32
    %c0_i32_0 = arith.constant 0 : i32
    %c0_i32_1 = arith.constant 0 : i32
    return %c0_i32, %c0_i32_0 : i32, i32
  }
  func.func @transform_7(%arg0: i32) -> (i32, i32) {
    %c0_i32 = arith.constant 0 : i32
    %c0_i32_0 = arith.constant 0 : i32
    %c0_i32_1 = arith.constant 0 : i32
    return %c0_i32, %c0_i32_0 : i32, i32
  }
  func.func @transform_8(%arg0: i32) -> (i32, i32) {
    %c0_i32 = arith.constant 0 : i32
    %c0_i32_0 = arith.constant 0 : i32
    %c0_i32_1 = arith.constant 0 : i32
    return %c0_i32, %c0_i32_0 : i32, i32
  }
}

</mosaic_0001>

<bundles_post_ra>
// kernel: aux_classifier_forward.1
= control target key start
LH: loop header
LB: loop body
LE: loop exit
PB: predicated region body
PF: predicated region fallthrough
CT: control target
= control target key end

     0   :  { %13 = vsyncpa [#allocation5], 0  ;;  %s14556_s0 = inlined_call_operand.vmem [shape: f32[512,4], index: 0, kind: input, shape index: {}]   ;;  %s14557_s1 = inlined_call_operand.hbm [shape: f32[64,256], index: 1, kind: input, shape index: {}]   ;;  %s14558_s2 = inlined_call_operand.hbm [shape: f32[4,128], index: 2, kind: input, shape index: {}]   ;;  %s14559_s3 = inlined_call_operand.hbm [shape: f32[1,128], index: 3, kind: input, shape index: {}]   ;;  %s14560_s4 = inlined_call_operand.hbm [shape: bf16[8192,1024], index: 4, kind: input, shape index: {}]   ;;  %s14561_s5 = inlined_call_operand.hbm [shape: f32[1,1024], index: 5, kind: input, shape index: {}]   ;;  %s14562_s6 = inlined_call_operand.hbm [shape: f32[1024,128], index: 6, kind: input, shape index: {}]   ;;  %s14563_s7 = inlined_call_operand.hbm [shape: f32[1,128], index: 7, kind: input, shape index: {}]   ;;  %s14564_s8 = inlined_call_operand.hbm [shape: f32[2,128], index: 8, kind: output, shape index: {}]  }
   0x1   :  { %14 = vsyncpa [#allocation8], 0 }
   0x2   :  { %15 = vsyncpa [#allocation11], 0 }
   0x3   :  { %17 = vsyncpa [#allocation11 + $0x1], 0 }
   0x4   :  { %18 = vsyncpa [#allocation14], 0 }
   0x5   :  { %19 = vsyncpa [#allocation6], 0  ;;  %s12623_s27 = smov 0   ;;  %s12625_s28 = smov 0  }
   0x6   :  { %s12627_s29 = smov 0   ;;  %s12629_s30 = smov 0  }
   0x7 LB: > { %s12561_s9 = smov [#allocation7]   ;;  %s12644_s11 = sadd.s32 4294967295, %s12559_s30   ;;  %s12559_s30 = sphi %s12629_s30, %s14586_s30   ;;  %s12555_s29 = sphi %s12627_s29, %s14585_s29   ;;  %s12551_s28 = sphi %s12625_s28, %s14584_s28   ;;  %s12547_s27 = sphi %s12623_s27, %s14583_s27  }
   0x8   : > { %s253_s10 = sshll.u32 %s12561_s9, 4  ;;  %p10237_p0 = scmp.ge.s32.totalorder %s12559_s30, 1  ;;  %s254_s10 = int_to_ptr.vmem [resolvable:$true] %s253_s10 }
   0x9   : > { %p14565_p1 = scmp.eq.s32.totalorder %s12644_s11, 0  ;;  %p224_p2 = scmp.lt.s32.totalorder %s12559_s30, 5 }
   0xa   : > { %s12562_s13 = smov [#allocation12]   ;;  %s12563_s15 = smov [#allocation13]  }
   0xb   : > { %p12650_p4 = pnand %p10237_p0, %p224_p2  ;;  %s275_s14 = sshll.u32 %s12562_s13, 4  ;;  %s12656_s14 = int_to_ptr.vmem [resolvable:$true] %s275_s14 }
   0xc   : > { %s285_s16 = sshll.u32 %s12563_s15, 4  ;;  %s12281_s20 = scalar_lea.hbm %s14558_s2, 64  ;;  %s12664_s16 = int_to_ptr.vmem [resolvable:$true] %s285_s16 }
   0xd   : > { %s14567_s12 = scalar_select %p12650_p4, 1, 0 }
   0xe   : > { %p12191_p5 = pneg %p12650_p4  ;;  %p12282_p7 = scmp.ne.s32.totalorder %s14558_s2, %s12281_s20 }
   0xf   : > { %p12288_p11 = scmp.lt.u32.totalorder %s12281_s20, %s14558_s2 }
  0x10   : > { %p12660_p6 = pnand %p12191_p5, %p14565_p1 }
  0x12   : > { %p12674_p8 = pneg %p12660_p6 }
  0x14   : > { %p12284_p9 = pnand %p12674_p8, %p12282_p7 }
  0x16   : > { %p12285_p10 = pneg %p12284_p9 }
  0x18   : > { %p12290_p12 = pnand %p12288_p11, %p12285_p10 }
  0x1a   : > { %12293 = shalt.err (!%p12290_p12)
}
  0x1b   : > { %s12294_s26 = scalar_lea.vmem %s254_s10, 64  ;;  %p12302_p5 = scmp.lt.s32.totalorder %s254_s10, %s254_s10 }
  0x1c   : > { %p12295_p13 = scmp.ne.s32.totalorder %s254_s10, %s12294_s26  ;;  %p12303_p3 = scmp.lt.s32.totalorder %s12294_s26, %s12294_s26 }
  0x1e   : > { %p12297_p0 = pnand %p12295_p13, %p12674_p8  ;;  %p12304_p1 = por %p12303_p3, %p12302_p5 }
  0x20   : > { %p12298_p2 = pneg %p12297_p0 }
  0x22   : > { %p12305_p4 = pnand %p12304_p1, %p12298_p2 }
  0x24   : > { %12308 = shalt.err (!%p12305_p4)
}
  0x25   : > { %12197 = dma.hbm_to_vmem [thread:$0]  (!%p12660_p6), %s14558_s2, 64, %s254_s10, [#allocation8]  }
  0x26   : > { %s12309_s19 = scalar_lea.hbm %s14561_s5, 128 }
  0x27   : > { %p12310_p7 = scmp.ne.s32.totalorder %s14561_s5, %s12309_s19  ;;  %p12316_p1 = scmp.lt.u32.totalorder %s12309_s19, %s14561_s5 }
  0x29   : > { %p12312_p9 = pnand %p12310_p7, %p12674_p8 }
  0x2b   : > { %p12313_p3 = pneg %p12312_p9 }
  0x2d   : > { %p12318_p4 = pnand %p12316_p1, %p12313_p3 }
  0x2f   : > { %12321 = shalt.err (!%p12318_p4)
}
  0x30   : > { %s12322_s10 = scalar_lea.vmem %s12656_s14, 128  ;;  %p12330_p13 = scmp.lt.s32.totalorder %s12656_s14, %s12656_s14 }
  0x31   : > { %p12323_p10 = scmp.ne.s32.totalorder %s12656_s14, %s12322_s10  ;;  %p12331_p0 = scmp.lt.s32.totalorder %s12322_s10, %s12322_s10 }
  0x33   : > { %p12325_p11 = pnand %p12323_p10, %p12674_p8  ;;  %p12332_p2 = por %p12331_p0, %p12330_p13 }
  0x35   : > { %p12326_p12 = pneg %p12325_p11 }
  0x37   : > { %p12333_p5 = pnand %p12332_p2, %p12326_p12 }
  0x39   : > { %12336 = shalt.err (!%p12333_p5)
}
  0x3a   : > { %12203 = dma.hbm_to_vmem [thread:$0]  (!%p12660_p6), %s14561_s5, 128, %s12656_s14, [#allocation11]  }
  0x3b   : > { %s12337_s15 = scalar_lea.hbm %s14562_s6, 16384 }
  0x3c   : > { %p12338_p7 = scmp.ne.s32.totalorder %s14562_s6, %s12337_s15  ;;  %p12344_p1 = scmp.lt.u32.totalorder %s12337_s15, %s14562_s6 }
  0x3e   : > { %p12340_p9 = pnand %p12338_p7, %p12674_p8 }
  0x40   : > { %p12341_p3 = pneg %p12340_p9 }
  0x42   : > { %p12346_p4 = pnand %p12344_p1, %p12341_p3 }
  0x44   : > { %12349 = shalt.err (!%p12346_p4)
}
  0x45   : > { %s12350_s14 = scalar_lea.vmem %s12664_s16, 16384  ;;  %p12358_p13 = scmp.lt.s32.totalorder %s12664_s16, %s12664_s16 }
  0x46   : > { %p12351_p10 = scmp.ne.s32.totalorder %s12664_s16, %s12350_s14  ;;  %p12359_p0 = scmp.lt.s32.totalorder %s12350_s14, %s12350_s14 }
  0x48   : > { %p12353_p11 = pnand %p12351_p10, %p12674_p8  ;;  %p12360_p2 = por %p12359_p0, %p12358_p13 }
  0x4a   : > { %p12354_p12 = pneg %p12353_p11 }
  0x4c   : > { %p12361_p5 = pnand %p12360_p2, %p12354_p12 }
  0x4e   : > { %12364 = shalt.err (!%p12361_p5)
}
  0x4f   : > { %s12564_s22 = smov 128   ;;  %s12565_s24 = smov 8  }
  0x50   : > { %12206 = dma.hbm_to_vmem [thread:$0]  (!%p12660_p6), %s14562_s6, 16384, %s12664_s16, [#allocation14], %s12564_s22, %s12564_s22, %s12565_s24  }
  0x51   : > { %s12566_s26 = smov [#allocation4]   ;;  %s12365_s18 = scalar_lea.hbm %s14557_s1, 2048 }
  0x52   : > { %s239_s9 = sshll.u32 %s12566_s26, 4  ;;  %p12366_p7 = scmp.ne.s32.totalorder %s14557_s1, %s12365_s18  ;;  %s240_s9 = int_to_ptr.vmem [resolvable:$true] %s239_s9 }
  0x53   : > { %p12372_p1 = scmp.lt.u32.totalorder %s12365_s18, %s14557_s1 }
  0x54   : > { %p12368_p9 = pnand %p12366_p7, %p12674_p8 }
  0x56   : > { %p12369_p3 = pneg %p12368_p9 }
  0x58   : > { %p12374_p4 = pnand %p12372_p1, %p12369_p3 }
  0x5a   : > { %12377 = shalt.err (!%p12374_p4)
}
  0x5b   : > { %s12378_s16 = scalar_lea.vmem %s240_s9, 2048  ;;  %p12386_p13 = scmp.lt.s32.totalorder %s240_s9, %s240_s9 }
  0x5c   : > { %p12379_p10 = scmp.ne.s32.totalorder %s240_s9, %s12378_s16  ;;  %p12387_p0 = scmp.lt.s32.totalorder %s12378_s16, %s12378_s16 }
  0x5e   : > { %p12381_p11 = pnand %p12379_p10, %p12674_p8  ;;  %p12388_p2 = por %p12387_p0, %p12386_p13 }
  0x60   : > { %p12382_p12 = pneg %p12381_p11 }
  0x62   : > { %p12389_p5 = pnand %p12388_p2, %p12382_p12 }
  0x64   : > { %12392 = shalt.err (!%p12389_p5)
}
  0x65   : > { %s12567_s22 = smov 256   ;;  %s12568_s24 = smov 16  }
  0x66   : > { %12194 = dma.hbm_to_vmem [thread:$0]  (!%p12660_p6), %s14557_s1, 2048, %s240_s9, [#allocation5], %s12567_s22, %s12567_s22, %s12568_s24  }
  0x67   : > { %s12569_s26 = smov [#allocation9]   ;;  %s12570_s15 = smov [#allocation15]  }
  0x68   : > { %s264_s13 = sshll.u32 %s12569_s26, 4  ;;  %s299_s18 = sshll.u32 %s12570_s15, 4  ;;  %s265_s13 = int_to_ptr.vmem [resolvable:$true] %s264_s13  ;;  %s12754_s18 = int_to_ptr.vmem [resolvable:$true] %s299_s18 }
  0x69   : > { %s12393_s21 = scalar_lea.hbm %s14559_s3, 16 }
  0x6a   : > { %p12394_p7 = scmp.ne.s32.totalorder %s14559_s3, %s12393_s21  ;;  %p12400_p1 = scmp.lt.u32.totalorder %s12393_s21, %s14559_s3 }
  0x6c   : > { %p12396_p9 = pnand %p12394_p7, %p12674_p8 }
  0x6e   : > { %p12397_p3 = pneg %p12396_p9 }
  0x70   : > { %p12402_p4 = pnand %p12400_p1, %p12397_p3 }
  0x72   : > { %12405 = shalt.err (!%p12402_p4)
}
  0x73   : > { %s12406_s22 = scalar_lea.vmem %s265_s13, 16  ;;  %s12413_s24 = scalar_lea.vmem %s265_s13, 32 }
  0x74   : > { %p12407_p10 = scmp.ne.s32.totalorder %s265_s13, %s12406_s22  ;;  %p12414_p13 = scmp.lt.s32.totalorder %s265_s13, %s265_s13 }
  0x75   : > { %p12415_p0 = scmp.lt.s32.totalorder %s12413_s24, %s12406_s22 }
  0x76   : > { %p12409_p11 = pnand %p12407_p10, %p12674_p8 }
  0x77   : > { %p12416_p2 = por %p12415_p0, %p12414_p13 }
  0x78   : > { %p12410_p12 = pneg %p12409_p11 }
  0x7a   : > { %p12417_p5 = pnand %p12416_p2, %p12410_p12 }
  0x7c   : > { %12420 = shalt.err (!%p12417_p5)
}
  0x7d   : > { %12200 = dma.hbm_to_vmem [thread:$0]  (!%p12660_p6), %s14559_s3, 16, %s265_s13, [#allocation8]  }
  0x7e   : > { %s12421_s20 = scalar_lea.hbm %s14563_s7, 16 }
  0x7f   : > { %p12422_p7 = scmp.ne.s32.totalorder %s14563_s7, %s12421_s20  ;;  %p12428_p1 = scmp.lt.u32.totalorder %s12421_s20, %s14563_s7 }
  0x81   : > { %p12424_p9 = pnand %p12422_p7, %p12674_p8 }
  0x83   : > { %p12425_p3 = pneg %p12424_p9 }
  0x85   : > { %p12430_p4 = pnand %p12428_p1, %p12425_p3 }
  0x87   : > { %12433 = shalt.err (!%p12430_p4)
}
  0x88   : > { %s12434_s13 = scalar_lea.vmem %s12754_s18, 16  ;;  %s12441_s9 = scalar_lea.vmem %s12754_s18, 32 }
  0x89   : > { %p12435_p10 = scmp.ne.s32.totalorder %s12754_s18, %s12434_s13  ;;  %p12442_p13 = scmp.lt.s32.totalorder %s12754_s18, %s12754_s18 }
  0x8a   : > { %p12443_p0 = scmp.lt.s32.totalorder %s12441_s9, %s12434_s13 }
  0x8b   : > { %p12437_p11 = pnand %p12435_p10, %p12674_p8 }
  0x8c   : > { %p12444_p2 = por %p12443_p0, %p12442_p13 }
  0x8d   : > { %p12438_p12 = pneg %p12437_p11 }
  0x8f   : > { %p12445_p5 = pnand %p12444_p2, %p12438_p12 }
  0x91   : > { %12448 = shalt.err (!%p12445_p5)
}
  0x92   : > { %12209 = dma.hbm_to_vmem [thread:$0]  (!%p12660_p6), %s14563_s7, 16, %s12754_s18, [#allocation14]  }
  0x93   : > { %s12799_s17 = sadd.s32 1, %s12559_s30   ;;  %s116_s23 = sadd.s32 1, %s12555_s29 }
  0x94   : > { %s113_s25 = ssub.s32 %s12559_s30, %s12799_s17  ;;  %p123_p8 = scmp.ne.s32.totalorder %s12555_s29, %s12551_s28 }
  0x95   : > { %p114_p7 = scmp.eq.s32.totalorder %s113_s25, 0  ;;  %p124_p9 = scmp.eq.s32.totalorder %s12559_s30, 0 }
  0x96   : > { %p129_p3 = scmp.ne.s32.totalorder %s12551_s28, %s12547_s27  ;;  %p12220_p1 = scmp.lt.s32.totalorder %s12559_s30, 4 }
  0x97   : > { %s12811_s26 = scalar_select %p114_p7, %s12555_s29, %s116_s23  }
  0x98   : > { %p125_p4 = por %p124_p9, %p123_p8  ;;  %p14570_p10 = scmp.eq.s32.totalorder %s12644_s11, 0 }
  0x99   : > { %s310_s19 = sand.u32 1, %s12559_s30   ;;  %s312_s18 = sand.u32 1, %s12555_s29  }
  0x9a   : > { %p12815_p11 = por %p14570_p10, %p129_p3  ;;  %s10245_s20 = sshll.u32 %s312_s18, 13 }
  0x9b   : > { %s11438_s21 = sshll.u32 %s12559_s30, 17  ;;  %s314_s27 = scalar_lea.vmem [#allocation10], %s10245_s20 }
  0x9c   : > { %s12825_s10 = scalar_lea.hbm %s14560_s4, %s11438_s21  ;;  %s322_s13 = sshll.u32 %s314_s27, 4  ;;  %s12827_s13 = int_to_ptr.vmem [resolvable:$true] %s322_s13 }
  0x9d   : > { %p12829_p6 = pnand %p12220_p1, %p125_p4  ;;  %s12833_s30 = scalar_lea.sflag [#allocation11], %s310_s19 }
  0x9e   : > { %s12449_s22 = scalar_lea.hbm %s12825_s10, 131072  ;;  %s12454_s25 = scalar_lea.hbm %s14560_s4, 524288 }
  0x9f   : > { %p12450_p12 = scmp.ne.s32.totalorder %s12825_s10, %s12449_s22  ;;  %p12451_p13 = pneg %p12829_p6 }
  0xa0   : > { %p12455_p5 = scmp.lt.u32.totalorder %s12825_s10, %s14560_s4  ;;  %p12456_p8 = scmp.lt.u32.totalorder %s12454_s25, %s12449_s22 }
  0xa1   : > { %p12452_p0 = pnand %p12451_p13, %p12450_p12  ;;  %p12458_p9 = scmp.lt.u32.totalorder %s12449_s22, %s12825_s10 }
  0xa2   : > { %p12457_p7 = por %p12456_p8, %p12455_p5 }
  0xa3   : > { %p12453_p2 = pneg %p12452_p0 }
  0xa4   : > { %p12459_p3 = por %p12458_p9, %p12457_p7 }
  0xa6   : > { %p12460_p1 = pnand %p12459_p3, %p12453_p2 }
  0xa8   : > { %12463 = shalt.err (!%p12460_p1)
}
  0xa9   : > { %s12464_s19 = scalar_lea.vmem %s12827_s13, 131072  ;;  %s12571_s21 = smov [#allocation10]  }
  0xaa   : > { %p12465_p4 = scmp.ne.s32.totalorder %s12827_s13, %s12464_s19  ;;  %s12469_s14 = sshll.u32 %s12571_s21, 4  ;;  %s12470_s14 = int_to_ptr.vmem [resolvable:$false] %s12469_s14 }
  0xab   : > { %s12471_s16 = scalar_lea.vmem %s12470_s14, 262144  ;;  %p12472_p0 = scmp.lt.s32.totalorder %s12827_s13, %s12470_s14 }
  0xac   : > { %p12467_p10 = pnand %p12465_p4, %p12451_p13  ;;  %p12473_p5 = scmp.lt.s32.totalorder %s12471_s16, %s12464_s19 }
  0xae   : > { %p12468_p12 = pneg %p12467_p10  ;;  %p12474_p8 = por %p12473_p5, %p12472_p0 }
  0xb0   : > { %p12475_p7 = pnand %p12474_p8, %p12468_p12 }
  0xb2   : > { %12478 = shalt.err (!%p12475_p7)
}
  0xb3   : > { %s12572_s27 = smov 512   ;;  %s12573_s22 = smov 32  }
  0xb4   : > { %12213 = dma.hbm_to_vmem [thread:$0]  (!%p12829_p6), %s12825_s10, 131072, %s12827_s13, %s12833_s30, %s12572_s27, %s12572_s27, %s12573_s22  }
  0xb5   : > { %p14573_p13 = scmp.ne.s32.totalorder %s14567_s12, 0 }
  0xb6   : > { %p14574_p2 = scmp.eq.s32.totalorder (!%p14573_p13), %s12644_s11, 0 }
  0xb7   : > { %334 = sbr.rel (%p14573_p13) target bundleno = 2315 (0x90b), region = 52 }
  0xbe   : > { %12522 = dma.done.wait (%p14574_p2), [#allocation5], 2048   ;;  %p14575_p9 = pmov %p14574_p2 }
  0xbf   : > { %p14576_p3 = pmov %p14574_p2 }
  0xc0   : > { %12524 = vsyncadd (%p14575_p9), [#allocation5], 4294965248 }
  0xc1   : > { %12526 = dma.done.wait (%p14576_p3), [#allocation8], 80   ;;  %p14577_p1 = pmov %p14574_p2 }
  0xc2   : > { %s348_s9 = sand.u32 1, %s12644_s11   ;;  %s350_s10 = sand.u32 1, %s12551_s28  }
  0xc3   : > { %12528 = vsyncadd (%p14577_p1), [#allocation8], 4294967216  ;;  %s10253_s13 = sshll.u32 %s350_s10, 13  ;;  %s349_s12 = scalar_lea.sflag [#allocation11], %s348_s9 }
  0xc4   : > { %s12873_s30 = scalar_lea.vmem [#allocation10], %s10253_s13 }
  0xc5   : > { %12530 = dma.done.wait (%p12815_p11), %s349_s12, 131072  }
  0xc6   : > { %12532 = vsyncadd (%p12815_p11), %s349_s12, 4294836224  ;;  %p14578_p6 = pmov %p14577_p1 }
  0xc7   : > { %p14579_p4 = pmov %p14577_p1 }
  0xc8   : > { %12534 = dma.done.wait (%p14578_p6), [#allocation11], 128  }
  0xc9   : > { %12536 = vsyncadd (%p14579_p4), [#allocation11], 4294967168  ;;  %p14580_p10 = pmov %p14577_p1 }
  0xca   : > { %p14581_p12 = pmov %p14577_p1 }
  0xcb   : > { %12538 = dma.done.wait (%p14580_p10), [#allocation14], 16400  }
  0xcc   : > { %12540 = vsyncadd (%p14581_p12), [#allocation14], 4294950896  ;;  %p14582_p0 = scmp.ne.s32.totalorder %s12644_s11, 0 }
  0xcd   : > { %v463_v0 = vld [vmem:[#allocation7] sm:$0xf] (!%p14582_p0)  ;;  %vm657_vm0 = vcmask (!%p14582_p0), 1043456   ;;  %v399_v1 = vld [vmem:[%s14556_s0] sm:$0xff] (!%p14582_p0)  ;;  %vm464_vm1 = vcmask (!%p14582_p0), 31744   ;;  %v12574_v2 = vmov (!%p14582_p0), 0.0  }
  0xce   : > { %396 = sbr.rel (%p14582_p0) target bundleno = 776 (0x308), region = 84  ;;  %397 = vst [vmem:[#allocation3] sm:$0xff] (!%p14582_p0), %v12574_v2  ;;  %398 = vst [vmem:[#allocation3 + $0x8] sm:$0xff] (!%p14582_p0), %v12574_v2  ;;  %11757 = vmatprep.subr.msk.mxu0 (!%p14582_p0), %vm657_vm0, %v463_v0  ;;  %11759 = vmatprep.mubr.msk.f32.mxu0 (!%p14582_p0), %vm464_vm1, %v399_v1  ;;  %v400_v3 = vld [vmem:[%s14556_s0 + $0x8] sm:$0xff] (!%p14582_p0)  ;;  %v401_v4 = vld [vmem:[%s14556_s0 + $0x10] sm:$0xff] (!%p14582_p0) }
  0xcf   : > { %11758 = vmatpush3.msk.msra.mxu0 (!%p14582_p0), %vm657_vm0, %v463_v0  ;;  %12047 = vmatprep.subr.msk.mxu1 (!%p14582_p0), %vm657_vm0, %v463_v0  ;;  %v402_v5 = vld [vmem:[%s14556_s0 + $0x18] sm:$0xff] (!%p14582_p0)  ;;  %v403_v6 = vld [vmem:[%s14556_s0 + $0x20] sm:$0xff] (!%p14582_p0)  ;;  %v404_v7 = vld [vmem:[%s14556_s0 + $0x28] sm:$0xff] (!%p14582_p0) }
  0xd0   : > { %11760 = vmatmul.mubr.msk.f32.vlgmr.msra.gmra.mrb[0].mxu0 (!%p14582_p0), %vm464_vm1, %v400_v3  ;;  %12048 = vmatpush3.msk.msra.mxu1 (!%p14582_p0), %vm657_vm0, %v463_v0  ;;  %v405_v8 = vld [vmem:[%s14556_s0 + $0x30] sm:$0xff] (!%p14582_p0)  ;;  %v447_v9 = vld [vmem:[%s14556_s0 + $0x180] sm:$0xff] (!%p14582_p0)  ;;  %v406_v10 = vld [vmem:[%s14556_s0 + $0x38] sm:$0xff] (!%p14582_p0) }
  0xd1   : > { %11762 = vmatprep.mubr.msk.f32.mxu0 (!%p14582_p0), %vm464_vm1, %v401_v4  ;;  %11831 = vmatprep.mubr.msk.f32.mxu1 (!%p14582_p0), %vm464_vm1, %v447_v9  ;;  %v448_v11 = vld [vmem:[%s14556_s0 + $0x188] sm:$0xff] (!%p14582_p0)  ;;  %v449_v12 = vld [vmem:[%s14556_s0 + $0x190] sm:$0xff] (!%p14582_p0)  ;;  %v407_v13 = vld [vmem:[%s14556_s0 + $0x40] sm:$0xff] (!%p14582_p0) }
  0xd2   : > { %11832 = vmatmul.mubr.msk.f32.vlgmr.msra.gmra.mrb[0].mxu1 (!%p14582_p0), %vm464_vm1, %v448_v11  ;;  %v450_v14 = vld [vmem:[%s14556_s0 + $0x198] sm:$0xff] (!%p14582_p0)  ;;  %v451_v15 = vld [vmem:[%s14556_s0 + $0x1a0] sm:$0xff] (!%p14582_p0)  ;;  %v408_v16 = vld [vmem:[%s14556_s0 + $0x48] sm:$0xff] (!%p14582_p0) }
  0xd3   : > { %11834 = vmatprep.mubr.msk.f32.mxu1 (!%p14582_p0), %vm464_vm1, %v449_v12  ;;  %v409_v17 = vld [vmem:[%s14556_s0 + $0x50] sm:$0xff] (!%p14582_p0)  ;;  %v452_v18 = vld [vmem:[%s14556_s0 + $0x1a8] sm:$0xff] (!%p14582_p0)  ;;  %v410_v20 = vld [vmem:[%s14556_s0 + $0x58] sm:$0xff] (!%p14582_p0) }
  0xd4   : > { %11763 = vmatmul.mubr.msk.f32.gmra.mrb[2].mxu0 (!%p14582_p0), %vm464_vm1, %v402_v5  ;;  %v453_v19 = vld [vmem:[%s14556_s0 + $0x1b0] sm:$0xff] (!%p14582_p0)  ;;  %v411_v21 = vld [vmem:[%s14556_s0 + $0x60] sm:$0xff] (!%p14582_p0)  ;;  %v454_v22 = vld [vmem:[%s14556_s0 + $0x1b8] sm:$0xff] (!%p14582_p0) }
  0xd5   : > { %11765 = vmatprep.mubr.msk.f32.mxu0 %vm464_vm1, %v403_v6  ;;  %v455_v23 = vld [vmem:[%s14556_s0 + $0x1c0] sm:$0xff]  ;;  %v412_v24 = vld [vmem:[%s14556_s0 + $0x68] sm:$0xff]  ;;  %v413_v25 = vld [vmem:[%s14556_s0 + $0x70] sm:$0xff] }
  0xd6   : > { %11835 = vmatmul.mubr.msk.f32.gmra.mrb[2].mxu1 %vm464_vm1, %v450_v14  ;;  %v456_v26 = vld [vmem:[%s14556_s0 + $0x1c8] sm:$0xff]  ;;  %v457_v27 = vld [vmem:[%s14556_s0 + $0x1d0] sm:$0xff]  ;;  %v414_v28 = vld [vmem:[%s14556_s0 + $0x78] sm:$0xff] }
  0xd7   : > { %11837 = vmatprep.mubr.msk.f32.mxu1 %vm464_vm1, %v451_v15  ;;  %v415_v29 = vld [vmem:[%s14556_s0 + $0x80] sm:$0xff]  ;;  %v458_v30 = vld [vmem:[%s14556_s0 + $0x1d8] sm:$0xff]  ;;  %v416_v32 = vld [vmem:[%s14556_s0 + $0x88] sm:$0xff] }
  0xd8   : > { %11766 = vmatmul.mubr.msk.f32.gmra.mrb[4].mxu0 %vm464_vm1, %v404_v7  ;;  %v459_v31 = vld [vmem:[%s14556_s0 + $0x1e0] sm:$0xff]  ;;  %v417_v33 = vld [vmem:[%s14556_s0 + $0x90] sm:$0xff]  ;;  %v460_v34 = vld [vmem:[%s14556_s0 + $0x1e8] sm:$0xff] }
  0xd9   : > { %11768 = vmatprep.mubr.msk.f32.mxu0 %vm464_vm1, %v405_v8  ;;  %v461_v35 = vld [vmem:[%s14556_s0 + $0x1f0] sm:$0xff]  ;;  %v418_v36 = vld [vmem:[%s14556_s0 + $0x98] sm:$0xff]  ;;  %v419_v37 = vld [vmem:[%s14556_s0 + $0xa0] sm:$0xff] }
  0xda   : > { %11838 = vmatmul.mubr.msk.f32.gmra.mrb[4].mxu1 %vm464_vm1, %v452_v18  ;;  %v462_v38 = vld [vmem:[%s14556_s0 + $0x1f8] sm:$0xff]  ;;  %v420_v39 = vld [vmem:[%s14556_s0 + $0xa8] sm:$0xff]  ;;  %v421_v40 = vld [vmem:[%s14556_s0 + $0xb0] sm:$0xff] }
  0xdb   : > { %11840 = vmatprep.mubr.msk.f32.mxu1 %vm464_vm1, %v453_v19  ;;  %v422_v41 = vld [vmem:[%s14556_s0 + $0xb8] sm:$0xff]  ;;  %v423_v42 = vld [vmem:[%s14556_s0 + $0xc0] sm:$0xff]  ;;  %v424_v43 = vld [vmem:[%s14556_s0 + $0xc8] sm:$0xff] }
  0xdc   : > { %11769 = vmatmul.mubr.msk.f32.gmra.mrb[6].mxu0 %vm464_vm1, %v406_v10  ;;  %v425_v44 = vld [vmem:[%s14556_s0 + $0xd0] sm:$0xff]  ;;  %v426_v45 = vld [vmem:[%s14556_s0 + $0xd8] sm:$0xff]  ;;  %v427_v46 = vld [vmem:[%s14556_s0 + $0xe0] sm:$0xff] }
  0xdd   : > { %11771 = vmatprep.mubr.msk.f32.mxu0 %vm464_vm1, %v407_v13  ;;  %v428_v47 = vld [vmem:[%s14556_s0 + $0xe8] sm:$0xff]  ;;  %v429_v48 = vld [vmem:[%s14556_s0 + $0xf0] sm:$0xff]  ;;  %v430_v49 = vld [vmem:[%s14556_s0 + $0xf8] sm:$0xff] }
  0xde   : > { %11841 = vmatmul.mubr.msk.f32.gmra.mrb[6].mxu1 %vm464_vm1, %v454_v22  ;;  %v431_v50 = vld [vmem:[%s14556_s0 + $0x100] sm:$0xff]  ;;  %v432_v51 = vld [vmem:[%s14556_s0 + $0x108] sm:$0xff]  ;;  %v433_v52 = vld [vmem:[%s14556_s0 + $0x110] sm:$0xff] }
  0xdf   : > { %11843 = vmatprep.mubr.msk.f32.mxu1 %vm464_vm1, %v455_v23  ;;  %v434_v53 = vld [vmem:[%s14556_s0 + $0x118] sm:$0xff]  ;;  %v435_v54 = vld [vmem:[%s14556_s0 + $0x120] sm:$0xff]  ;;  %v436_v55 = vld [vmem:[%s14556_s0 + $0x128] sm:$0xff] }
  0xe0   : > { %11772 = vmatmul.mubr.msk.f32.gmra.mrb[8].mxu0 %vm464_vm1, %v408_v16  ;;  %v437_v56 = vld [vmem:[%s14556_s0 + $0x130] sm:$0xff]  ;;  %v438_v57 = vld [vmem:[%s14556_s0 + $0x138] sm:$0xff]  ;;  %v439_v58 = vld [vmem:[%s14556_s0 + $0x140] sm:$0xff] }
  0xe1   : > { %11774 = vmatprep.mubr.msk.f32.mxu0 %vm464_vm1, %v409_v17  ;;  %v440_v59 = vld [vmem:[%s14556_s0 + $0x148] sm:$0xff]  ;;  %v441_v60 = vld [vmem:[%s14556_s0 + $0x150] sm:$0xff]  ;;  %v442_v61 = vld [vmem:[%s14556_s0 + $0x158] sm:$0xff] }
  0xe2   : > { %11844 = vmatmul.mubr.msk.f32.gmra.mrb[8].mxu1 %vm464_vm1, %v456_v26  ;;  %v443_v62 = vld [vmem:[%s14556_s0 + $0x160] sm:$0xff]  ;;  %v444_v63 = vld [vmem:[%s14556_s0 + $0x168] sm:$0xff]  ;;  %v445_v0 = vld [vmem:[%s14556_s0 + $0x170] sm:$0xff] }
  0xe3   : > { %11846 = vmatprep.mubr.msk.f32.mxu1 %vm464_vm1, %v457_v27  ;;  %v446_v1 = vld [vmem:[%s14556_s0 + $0x178] sm:$0xff] }
  0xe4   : > { %11775 = vmatmul.mubr.msk.f32.gmra.mrb[10].mxu0 %vm464_vm1, %v410_v20  ;;  %v13145_v2 = vld [vmem:[#allocation4 + $0x8] sm:$0xff] }
  0xe5   : > { %11777 = vmatprep.mubr.msk.f32.mxu0 %vm464_vm1, %v411_v21 }
  0xe6   : > { %11847 = vmatmul.mubr.msk.f32.gmra.mrb[10].mxu1 %vm464_vm1, %v458_v30 }
  0xe7   : > { %11849 = vmatprep.mubr.msk.f32.mxu1 %vm464_vm1, %v459_v31 }
  0xe8   : > { %11778 = vmatmul.mubr.msk.f32.gmra.mrb[12].mxu0 %vm464_vm1, %v412_v24 }
  0xe9   : > { %11780 = vmatprep.mubr.msk.f32.mxu0 %vm464_vm1, %v413_v25 }
  0xea   : > { %11850 = vmatmul.mubr.msk.f32.gmra.mrb[12].mxu1 %vm464_vm1, %v460_v34 }
  0xeb   : > { %11852 = vmatprep.mubr.msk.f32.mxu1 %vm464_vm1, %v461_v35 }
  0xec   : > { %11781 = vmatmul.mubr.msk.f32.gmra.mrb[14].mxu0 %vm464_vm1, %v414_v28 }
  0xed   : > { %11783 = vmatprep.mubr.msk.f32.mxu0 %vm464_vm1, %v415_v29 }
  0xee   : > { %11853 = vmatmul.mubr.msk.f32.gmra.mrb[14].mxu1 %vm464_vm1, %v462_v38 }
  0xef   : > { %1133 = vmatprep.mubr.f32.mxu1 %v13145_v2 }
  0xf0   : > { %11784 = vmatmul.mubr.msk.f32.gmra.mrb[16].mxu0 %vm464_vm1, %v416_v32 }
  0xf1   : > { %11786 = vmatprep.mubr.msk.f32.mxu0 %vm464_vm1, %v417_v33 }
  0xf4   : > { %11787 = vmatmul.mubr.msk.f32.gmra.mrb[18].mxu0 %vm464_vm1, %v418_v36 }
  0xf5   : > { %11789 = vmatprep.mubr.msk.f32.mxu0 %vm464_vm1, %v419_v37 }
  0xf8   : > { %11790 = vmatmul.mubr.msk.f32.gmra.mrb[20].mxu0 %vm464_vm1, %v420_v39 }
  0xf9   : > { %11792 = vmatprep.mubr.msk.f32.mxu0 %vm464_vm1, %v421_v40 }
  0xfc   : > { %11793 = vmatmul.mubr.msk.f32.gmra.mrb[22].mxu0 %vm464_vm1, %v422_v41 }
  0xfd   : > { %11795 = vmatprep.mubr.msk.f32.mxu0 %vm464_vm1, %v423_v42 }
 0x100   : > { %11796 = vmatmul.mubr.msk.f32.gmra.mrb[24].mxu0 %vm464_vm1, %v424_v43 }
 0x101   : > { %11798 = vmatprep.mubr.msk.f32.mxu0 %vm464_vm1, %v425_v44 }
 0x104   : > { %11799 = vmatmul.mubr.msk.f32.gmra.mrb[26].mxu0 %vm464_vm1, %v426_v45 }
 0x105   : > { %11801 = vmatprep.mubr.msk.f32.mxu0 %vm464_vm1, %v427_v46 }
 0x108   : > { %11802 = vmatmul.mubr.msk.f32.gmra.mrb[28].mxu0 %vm464_vm1, %v428_v47 }
 0x109   : > { %11804 = vmatprep.mubr.msk.f32.mxu0 %vm464_vm1, %v429_v48 }
 0x10c   : > { %11805 = vmatmul.mubr.msk.f32.gmra.mrb[30].mxu0 %vm464_vm1, %v430_v49 }
 0x10d   : > { %11807 = vmatprep.mubr.msk.f32.mxu0 %vm464_vm1, %v431_v50 }
 0x110   : > { %11808 = vmatmul.mubr.msk.f32.gmra.mrb[32].mxu0 %vm464_vm1, %v432_v51 }
 0x111   : > { %11810 = vmatprep.mubr.msk.f32.mxu0 %vm464_vm1, %v433_v52 }
 0x114   : > { %11811 = vmatmul.mubr.msk.f32.gmra.mrb[34].mxu0 %vm464_vm1, %v434_v53 }
 0x115   : > { %11813 = vmatprep.mubr.msk.f32.mxu0 %vm464_vm1, %v435_v54 }
 0x118   : > { %11814 = vmatmul.mubr.msk.f32.gmra.mrb[36].mxu0 %vm464_vm1, %v436_v55 }
 0x119   : > { %11816 = vmatprep.mubr.msk.f32.mxu0 %vm464_vm1, %v437_v56 }
 0x11c   : > { %11817 = vmatmul.mubr.msk.f32.gmra.mrb[38].mxu0 %vm464_vm1, %v438_v57 }
 0x11d   : > { %11819 = vmatprep.mubr.msk.f32.mxu0 %vm464_vm1, %v439_v58 }
 0x120   : > { %11820 = vmatmul.mubr.msk.f32.gmra.mrb[40].mxu0 %vm464_vm1, %v440_v59 }
 0x121   : > { %11822 = vmatprep.mubr.msk.f32.mxu0 %vm464_vm1, %v441_v60 }
 0x124   : > { %11823 = vmatmul.mubr.msk.f32.gmra.mrb[42].mxu0 %vm464_vm1, %v442_v61 }
 0x125   : > { %11825 = vmatprep.mubr.msk.f32.mxu0 %vm464_vm1, %v443_v62 }
 0x128   : > { %11826 = vmatmul.mubr.msk.f32.gmra.mrb[44].mxu0 %vm464_vm1, %v444_v63 }
 0x129   : > { %11828 = vmatprep.mubr.msk.f32.mxu0 %vm464_vm1, %v445_v0 }
 0x12c   : > { %11829 = vmatmul.mubr.msk.f32.gmra.mrb[46].mxu0 %vm464_vm1, %v446_v1 }
 0x1a3   : > { %v11761_v3 = vpop.f32.mrb[0].mxu0 }
 0x1a4   : > { %v727_v4 = vpop.f32.mrb[1].mxu0 }
 0x1a5   : > { %v11857_v5 = vpack.c.bf16 %v11761_v3, %v727_v4  ;;  %v13148_v12 = vpop.f32.mrb[0].mxu1 }
 0x1a6   : > { %v13150_v13 = vpop.f32.mrb[1].mxu1 }
 0x1a7   : > { %v11764_v6 = vpop.f32.mrb[2].mxu0  ;;  %v11887_v15 = vpack.c.bf16 %v13148_v12, %v13150_v13  ;;  %v1050_v13 = vld [vmem:[#allocation4 + $0x20] sm:$0xff] }
 0x1a8   : > { %v737_v7 = vpop.f32.mrb[3].mxu0 }
 0x1a9   : > { %v11861_v8 = vpack.c.bf16 %v11764_v6, %v737_v7  ;;  %v13154_v18 = vpop.f32.mrb[2].mxu1 }
 0x1aa   : > { %v13156_v19 = vpop.f32.mrb[3].mxu1 }
 0x1ab   : > { %v11767_v9 = vpop.f32.mrb[4].mxu0  ;;  %v11891_v21 = vpack.c.bf16 %v13154_v18, %v13156_v19  ;;  %v1052_v18 = vld [vmem:[#allocation4 + $0x30] sm:$0xff] }
 0x1ac   : > { %v747_v10 = vpop.f32.mrb[5].mxu0 }
 0x1ad   : > { %v11865_v11 = vpack.c.bf16 %v11767_v9, %v747_v10  ;;  %v13160_v24 = vpop.f32.mrb[4].mxu1 }
 0x1ae   : > { %v13162_v25 = vpop.f32.mrb[5].mxu1 }
 0x1af   : > { %v11770_v14 = vpop.f32.mrb[6].mxu0  ;;  %v11895_v27 = vpack.c.bf16 %v13160_v24, %v13162_v25  ;;  %v1054_v24 = vld [vmem:[#allocation4 + $0x40] sm:$0xff] }
 0x1b0   : > { %v757_v16 = vpop.f32.mrb[7].mxu0 }
 0x1b1   : > { %v11869_v17 = vpack.c.bf16 %v11770_v14, %v757_v16  ;;  %v13166_v30 = vpop.f32.mrb[6].mxu1 }
 0x1b2   : > { %v13168_v31 = vpop.f32.mrb[7].mxu1 }
 0x1b3   : > { %v11773_v20 = vpop.f32.mrb[8].mxu0  ;;  %v11899_v33 = vpack.c.bf16 %v13166_v30, %v13168_v31  ;;  %v1056_v30 = vld [vmem:[#allocation4 + $0x50] sm:$0xff] }
 0x1b4   : > { %v767_v22 = vpop.f32.mrb[9].mxu0 }
 0x1b5   : > { %v11873_v23 = vpack.c.bf16 %v11773_v20, %v767_v22  ;;  %v13172_v36 = vpop.f32.mrb[8].mxu1  ;;  %v13201_v22 = vld [vmem:[#allocation4 + $0x18] sm:$0xff] }
 0x1b6   : > { %v13174_v37 = vpop.f32.mrb[9].mxu1 }
 0x1b7   : > { %v11776_v26 = vpop.f32.mrb[10].mxu0  ;;  %v11903_v39 = vpack.c.bf16 %v13172_v36, %v13174_v37  ;;  %v1058_v36 = vld [vmem:[#allocation4 + $0x60] sm:$0xff] }
 0x1b8   : > { %v777_v28 = vpop.f32.mrb[11].mxu0 }
 0x1b9   : > { %v11877_v29 = vpack.c.bf16 %v11776_v26, %v777_v28  ;;  %v13178_v42 = vpop.f32.mrb[10].mxu1  ;;  %v1048_v28 = vld [vmem:[#allocation4 + $0x10] sm:$0xff] }
 0x1ba   : > { %v13180_v43 = vpop.f32.mrb[11].mxu1 }
 0x1bb   : > { %v11779_v32 = vpop.f32.mrb[12].mxu0  ;;  %v11907_v45 = vpack.c.bf16 %v13178_v42, %v13180_v43  ;;  %v1060_v42 = vld [vmem:[#allocation4 + $0x70] sm:$0xff] }
 0x1bc   : > { %v787_v34 = vpop.f32.mrb[13].mxu0 }
 0x1bd   : > { %v11881_v35 = vpack.c.bf16 %v11779_v32, %v787_v34  ;;  %v13184_v48 = vpop.f32.mrb[12].mxu1  ;;  %v1051_v32 = vld [vmem:[#allocation4 + $0x28] sm:$0xff] }
 0x1be   : > { %v13186_v49 = vpop.f32.mrb[13].mxu1 }
 0x1bf   : > { %v11782_v38 = vpop.f32.mrb[14].mxu0  ;;  %v11911_v51 = vpack.c.bf16 %v13184_v48, %v13186_v49 }
 0x1c0   : > { %v797_v40 = vpop.f32.mrb[15].mxu0 }
 0x1c1   : > { %v11885_v41 = vpack.c.bf16 %v11782_v38, %v797_v40  ;;  %v13190_v54 = vpop.f32.mrb[14].mxu1 }
 0x1c2   : > { %v13192_v55 = vpop.f32.mrb[15].mxu1 }
 0x1c3   : > { %v11785_v44 = vpop.f32.mrb[16].mxu0  ;;  %v11915_v57 = vpack.c.bf16 %v13190_v54, %v13192_v55  ;;  %v13229_v55 = vld [vmem:[#allocation9] ss:$0 sm:$0xff] }
 0x1c4   : > { %v807_v46 = vpop.f32.mrb[17].mxu0 }
 0x1c5   : > { %v11855_v47 = vpack.c.bf16 %v11785_v44, %v807_v46 }
 0x1c7   : > { %v11788_v50 = vpop.f32.mrb[18].mxu0  ;;  %11856 = vmatprep.subr.bf16.mxu1 %v11855_v47 }
 0x1c8   : > { %v817_v52 = vpop.f32.mrb[19].mxu0  ;;  %11858 = vmatpush3.bf16.msra.mxu1 %v11857_v5 }
 0x1c9   : > { %v11859_v53 = vpack.c.bf16 %v11788_v50, %v817_v52 }
 0x1cb   : > { %v11791_v56 = vpop.f32.mrb[20].mxu0  ;;  %11860 = vmatprep.subr.bf16.mxu1 %v11859_v53 }
 0x1cc   : > { %v827_v58 = vpop.f32.mrb[21].mxu0  ;;  %11862 = vmatpush3.bf16.msra.mxu1 %v11861_v8 }
 0x1cd   : > { %v11863_v59 = vpack.c.bf16 %v11791_v56, %v827_v58 }
 0x1cf   : > { %v11794_v60 = vpop.f32.mrb[22].mxu0  ;;  %11864 = vmatprep.subr.bf16.mxu1 %v11863_v59 }
 0x1d0   : > { %v837_v61 = vpop.f32.mrb[23].mxu0  ;;  %11866 = vmatpush3.bf16.msra.mxu1 %v11865_v11 }
 0x1d1   : > { %v11867_v62 = vpack.c.bf16 %v11794_v60, %v837_v61 }
 0x1d3   : > { %v11797_v63 = vpop.f32.mrb[24].mxu0  ;;  %11868 = vmatprep.subr.bf16.mxu1 %v11867_v62 }
 0x1d4   : > { %v847_v0 = vpop.f32.mrb[25].mxu0  ;;  %11870 = vmatpush3.bf16.msra.mxu1 %v11869_v17  ;;  %v13196_v17 = vld [vmem:[#allocation4] sm:$0xff] }
 0x1d5   : > { %v11871_v1 = vpack.c.bf16 %v11797_v63, %v847_v0 }
 0x1d7   : > { %v11800_v3 = vpop.f32.mrb[26].mxu0  ;;  %11872 = vmatprep.subr.bf16.mxu1 %v11871_v1 }
 0x1d8   : > { %v857_v4 = vpop.f32.mrb[27].mxu0  ;;  %11874 = vmatpush3.bf16.msra.mxu1 %v11873_v23 }
 0x1d9   : > { %v11875_v5 = vpack.c.bf16 %v11800_v3, %v857_v4 }
 0x1db   : > { %v11803_v6 = vpop.f32.mrb[28].mxu0  ;;  %11876 = vmatprep.subr.bf16.mxu1 %v11875_v5 }
 0x1dc   : > { %v867_v7 = vpop.f32.mrb[29].mxu0  ;;  %11878 = vmatpush3.bf16.msra.mxu1 %v11877_v29 }
 0x1dd   : > { %v11879_v8 = vpack.c.bf16 %v11803_v6, %v867_v7 }
 0x1df   : > { %v11806_v9 = vpop.f32.mrb[30].mxu0  ;;  %11880 = vmatprep.subr.bf16.mxu1 %v11879_v8 }
 0x1e0   : > { %v877_v10 = vpop.f32.mrb[31].mxu0  ;;  %11882 = vmatpush3.bf16.msra.mxu1 %v11881_v35  ;;  %v1053_v35 = vld [vmem:[#allocation4 + $0x38] sm:$0xff] }
 0x1e1   : > { %v11883_v11 = vpack.c.bf16 %v11806_v9, %v877_v10 }
 0x1e3   : > { %v11809_v14 = vpop.f32.mrb[32].mxu0  ;;  %11884 = vmatprep.subr.bf16.mxu1 %v11883_v11 }
 0x1e4   : > { %v887_v16 = vpop.f32.mrb[33].mxu0  ;;  %11886 = vmatpush3.bf16.msra.mxu1 %v11885_v41 }
 0x1e5   : > { %v11889_v20 = vpack.c.bf16 %v11809_v14, %v887_v16  ;;  %11888 = vmatprep.subr.bf16.mxu1 %v11887_v15 }
 0x1e7   : > { %v11812_v23 = vpop.f32.mrb[34].mxu0  ;;  %1134 = vmatmul.mubr.f32.vlgmr.msra.gmra.mrb[16].mxu1 %v13196_v17 }
 0x1e8   : > { %v897_v26 = vpop.f32.mrb[35].mxu0  ;;  %11890 = vmatpush3.bf16.msra.mxu1 %v11889_v20  ;;  %1138 = vmatprep.mubr.f32.mxu1 %v13201_v22 }
 0x1e9   : > { %v11893_v29 = vpack.c.bf16 %v11812_v23, %v897_v26  ;;  %11892 = vmatprep.subr.bf16.mxu1 %v11891_v21  ;;  %v1055_v21 = vld [vmem:[#allocation4 + $0x48] sm:$0xff] }
 0x1eb   : > { %v11815_v34 = vpop.f32.mrb[36].mxu0  ;;  %1139 = vmatmul.mubr.f32.gmra.mrb[18].mxu1 %v1048_v28 }
 0x1ec   : > { %v907_v12 = vpop.f32.mrb[37].mxu0  ;;  %11894 = vmatpush3.bf16.msra.mxu1 %v11893_v29  ;;  %1143 = vmatprep.mubr.f32.mxu1 %v1051_v32 }
 0x1ed   : > { %v11897_v15 = vpack.c.bf16 %v11815_v34, %v907_v12  ;;  %11896 = vmatprep.subr.bf16.mxu1 %v11895_v27  ;;  %v1057_v27 = vld [vmem:[#allocation4 + $0x58] sm:$0xff] }
 0x1ef   : > { %v11818_v38 = vpop.f32.mrb[38].mxu0  ;;  %1144 = vmatmul.mubr.f32.gmra.mrb[20].mxu1 %v1050_v13 }
 0x1f0   : > { %v917_v40 = vpop.f32.mrb[39].mxu0  ;;  %11898 = vmatpush3.bf16.msra.mxu1 %v11897_v15  ;;  %1148 = vmatprep.mubr.f32.mxu1 %v1053_v35 }
 0x1f1   : > { %v11901_v19 = vpack.c.bf16 %v11818_v38, %v917_v40  ;;  %11900 = vmatprep.subr.bf16.mxu1 %v11899_v33  ;;  %v1059_v33 = vld [vmem:[#allocation4 + $0x68] sm:$0xff] }
 0x1f3   : > { %v11821_v41 = vpop.f32.mrb[40].mxu0  ;;  %1149 = vmatmul.mubr.f32.gmra.mrb[22].mxu1 %v1052_v18 }
 0x1f4   : > { %v927_v44 = vpop.f32.mrb[41].mxu0  ;;  %11902 = vmatpush3.bf16.msra.mxu1 %v11901_v19  ;;  %1153 = vmatprep.mubr.f32.mxu1 %v1055_v21 }
 0x1f5   : > { %v11905_v25 = vpack.c.bf16 %v11821_v41, %v927_v44  ;;  %11904 = vmatprep.subr.bf16.mxu1 %v11903_v39  ;;  %v1061_v39 = vld [vmem:[#allocation4 + $0x78] sm:$0xff] }
 0x1f7   : > { %v11824_v46 = vpop.f32.mrb[42].mxu0  ;;  %1154 = vmatmul.mubr.f32.gmra.mrb[24].mxu1 %v1054_v24 }
 0x1f8   : > { %v937_v47 = vpop.f32.mrb[43].mxu0  ;;  %11906 = vmatpush3.bf16.msra.mxu1 %v11905_v25  ;;  %1158 = vmatprep.mubr.f32.mxu1 %v1057_v27 }
 0x1f9   : > { %v11909_v31 = vpack.c.bf16 %v11824_v46, %v937_v47  ;;  %11908 = vmatprep.subr.bf16.mxu1 %v11907_v45  ;;  %v12575_v45 = vmov 1983009808  }
 0x1fa   : > { %v1177_v48 = vunpack.c.l.s4 %v12575_v45 }
 0x1fb   : > { %v11827_v50 = vpop.f32.mrb[44].mxu0  ;;  %1159 = vmatmul.mubr.f32.gmra.mrb[26].mxu1 %v1056_v30 }
 0x1fc   : > { %v947_v52 = vpop.f32.mrb[45].mxu0  ;;  %11910 = vmatpush3.bf16.msra.mxu1 %v11909_v31  ;;  %1163 = vmatprep.mubr.f32.mxu1 %v1059_v33  ;;  %v1178_v49 = vunpack.c.0.s8 %v1177_v48 }
 0x1fd   : > { %v11913_v37 = vpack.c.bf16 %v11827_v50, %v947_v52  ;;  %11912 = vmatprep.subr.bf16.mxu1 %v11911_v51 }
 0x1ff   : > { %v11830_v53 = vpop.f32.mrb[46].mxu0  ;;  %1164 = vmatmul.mubr.f32.gmra.mrb[28].mxu1 %v1058_v36 }
 0x200   : > { %v957_v56 = vpop.f32.mrb[47].mxu0  ;;  %11914 = vmatpush3.bf16.msra.mxu1 %v11913_v37  ;;  %1168 = vmatprep.mubr.f32.mxu1 %v1061_v39 }
 0x201   : > { %v11917_v43 = vpack.c.bf16 %v11830_v53, %v957_v56  ;;  %11916 = vmatprep.subr.bf16.mxu1 %v11915_v57 }
 0x203   : > { %1169 = vmatmul.mubr.f32.gmra.mrb[30].mxu1 %v1060_v42 }
 0x204   : > { %11918 = vmatpush3.bf16.msra.mxu1 %v11917_v43  ;;  %1592 = vmatprep.mubr.f32.mxu1 %v13145_v2  ;;  %v1179_v2 = vlaneseq }
 0x206   : > { %v1180_v51 = vshrl.u32 %v1179_v2, 7 }
 0x207   : > { %1593 = vmatmul.mubr.f32.vlgmr.msra.gmra.mrb[32].mxu1 %v13196_v17 }
 0x208   : > { %1597 = vmatprep.mubr.f32.mxu1 %v13201_v22  ;;  %v13231_v59 = vsub.s32 %v1178_v49, %v1180_v51 }
 0x20b   : > { %1598 = vmatmul.mubr.f32.gmra.mrb[34].mxu1 %v1048_v28 }
 0x20c   : > { %1602 = vmatprep.mubr.f32.mxu1 %v1051_v32 }
 0x20f   : > { %1603 = vmatmul.mubr.f32.gmra.mrb[36].mxu1 %v1050_v13 }
 0x210   : > { %1607 = vmatprep.mubr.f32.mxu1 %v1053_v35 }
 0x213   : > { %1608 = vmatmul.mubr.f32.gmra.mrb[38].mxu1 %v1052_v18 }
 0x214   : > { %1612 = vmatprep.mubr.f32.mxu1 %v1055_v21 }
 0x217   : > { %1613 = vmatmul.mubr.f32.gmra.mrb[40].mxu1 %v1054_v24 }
 0x218   : > { %1617 = vmatprep.mubr.f32.mxu1 %v1057_v27 }
 0x21b   : > { %1618 = vmatmul.mubr.f32.gmra.mrb[42].mxu1 %v1056_v30 }
 0x21c   : > { %1622 = vmatprep.mubr.f32.mxu1 %v1059_v33 }
 0x21f   : > { %1623 = vmatmul.mubr.f32.gmra.mrb[44].mxu1 %v1058_v36 }
 0x220   : > { %1627 = vmatprep.mubr.f32.mxu1 %v1061_v39 }
 0x223   : > { %1628 = vmatmul.mubr.f32.gmra.mrb[46].mxu1 %v1060_v42 }
 0x2ba   : > { %v11537_v54 = vpop.f32.mrb[16].mxu1 }
 0x2bb   : > { %v11538_v57 = vpop.f32.mrb[17].mxu1 }
 0x2bc   : > { %v11539_v58 = vadd.f32 %v11538_v57, %v11537_v54 }
 0x2be   : > { %v1136_v60 = vadd.f32 %v11539_v58, %v13229_v55  ;;  %v11540_v61 = vpop.f32.mrb[18].mxu1 }
 0x2bf   : > { %v11541_v62 = vpop.f32.mrb[19].mxu1 }
 0x2c0   : > { %1174 = vst [vmem:[#allocation2] sm:$0x1] %v1136_v60  ;;  %v1182_v63 = vrot.slane %v1136_v60, %v13231_v59  ;;  %v1194_v0 = vcombine.high %v1136_v60, %v1136_v60  ;;  %v11542_v1 = vadd.f32 %v11541_v62, %v11540_v61 }
 0x2c2   : > { %v10324_v3 = vrot.slane %v1182_v63, 9  ;;  %v1187_v4 = vcombine.high %v1182_v63, %v1182_v63  ;;  %v1201_v5 = vrot.slane %v1194_v0, %v13231_v59  ;;  %10326 = vst.sshfl [vmem:[#allocation2 + $0x8] sm:$0x1 pattern:$0x76325410] %v1194_v0  ;;  %v1141_v6 = vadd.f32 %v11542_v1, %v13229_v55  ;;  %v11543_v7 = vpop.f32.mrb[20].mxu1 }
 0x2c3   : > { %v11544_v8 = vpop.f32.mrb[21].mxu1 }
 0x2c4   : > { %1186 = vst [vmem:[#allocation2 + $0x2] sm:$0x1] %v10324_v3  ;;  %1189 = vst [vmem:[#allocation2 + $0x4] sm:$0x1] %v1187_v4  ;;  %v10325_v9 = vrot.slane %v1187_v4, 9  ;;  %v10327_v10 = vrot.slane %v1201_v5, 9  ;;  %v1208_v11 = vcombine.high %v1201_v5, %v1201_v5  ;;  %v1223_v14 = vrot.slane %v1141_v6, %v13231_v59 }
 0x2c5   : > { %1215 = vst [vmem:[#allocation2 + $0x10] sm:$0x1] %v1141_v6  ;;  %v1235_v16 = vcombine.high %v1141_v6, %v1141_v6  ;;  %v11545_v17 = vadd.f32 %v11544_v8, %v11543_v7 }
 0x2c6   : > { %1193 = vst [vmem:[#allocation2 + $0x6] sm:$0x1] %v10325_v9  ;;  %1207 = vst [vmem:[#allocation2 + $0xa] sm:$0x1] %v10327_v10  ;;  %v10328_v20 = vrot.slane %v1208_v11, 9  ;;  %v10329_v22 = vrot.slane %v1223_v14, 9  ;;  %v1228_v23 = vcombine.high %v1223_v14, %v1223_v14 }
 0x2c7   : > { %1210 = vst [vmem:[#allocation2 + $0xc] sm:$0x1] %v1208_v11  ;;  %v11546_v26 = vpop.f32.mrb[22].mxu1  ;;  %v1242_v28 = vrot.slane %v1235_v16, %v13231_v59  ;;  %v1146_v29 = vadd.f32 %v11545_v17, %v13229_v55 }
 0x2c8   : > { %10331 = vst.sshfl [vmem:[#allocation2 + $0x18] sm:$0x1 pattern:$0x76325410] %v1235_v16  ;;  %v11547_v32 = vpop.f32.mrb[23].mxu1  ;;  %v10330_v34 = vrot.slane %v1228_v23, 9 }
 0x2c9   : > { %1214 = vst [vmem:[#allocation2 + $0xe] sm:$0x1] %v10328_v20  ;;  %1227 = vst [vmem:[#allocation2 + $0x12] sm:$0x1] %v10329_v22  ;;  %v11548_v12 = vadd.f32 %v11547_v32, %v11546_v26  ;;  %v10332_v13 = vrot.slane %v1242_v28, 9  ;;  %v1249_v15 = vcombine.high %v1242_v28, %v1242_v28  ;;  %v1265_v35 = vrot.slane %v1146_v29, %v13231_v59 }
 0x2ca   : > { %1230 = vst [vmem:[#allocation2 + $0x14] sm:$0x1] %v1228_v23  ;;  %1257 = vst [vmem:[#allocation2 + $0x20] sm:$0x1] %v1146_v29  ;;  %v1277_v38 = vcombine.high %v1146_v29, %v1146_v29  ;;  %v11549_v18 = vpop.f32.mrb[24].mxu1 }
 0x2cb   : > { %1234 = vst [vmem:[#allocation2 + $0x16] sm:$0x1] %v10330_v34  ;;  %v1151_v40 = vadd.f32 %v11548_v12, %v13229_v55  ;;  %1248 = vst [vmem:[#allocation2 + $0x1a] sm:$0x1] %v10332_v13  ;;  %v10333_v19 = vrot.slane %v1249_v15, 9  ;;  %v10334_v21 = vrot.slane %v1265_v35, 9  ;;  %v1270_v41 = vcombine.high %v1265_v35, %v1265_v35 }
 0x2cc   : > { %1251 = vst [vmem:[#allocation2 + $0x1c] sm:$0x1] %v1249_v15  ;;  %v1284_v44 = vrot.slane %v1277_v38, %v13231_v59  ;;  %10336 = vst.sshfl [vmem:[#allocation2 + $0x28] sm:$0x1 pattern:$0x76325410] %v1277_v38 }
 0x2cd   : > { %v11550_v24 = vpop.f32.mrb[25].mxu1  ;;  %1298 = vst [vmem:[#allocation2 + $0x30] sm:$0x1] %v1151_v40  ;;  %v1306_v25 = vrot.slane %v1151_v40, %v13231_v59  ;;  %v1318_v27 = vcombine.high %v1151_v40, %v1151_v40  ;;  %1255 = vst [vmem:[#allocation2 + $0x1e] sm:$0x1] %v10333_v19  ;;  %v10335_v47 = vrot.slane %v1270_v41, 9 }
 0x2ce   : > { %v11551_v46 = vadd.f32 %v11550_v24, %v11549_v18  ;;  %1269 = vst [vmem:[#allocation2 + $0x22] sm:$0x1] %v10334_v21  ;;  %1272 = vst [vmem:[#allocation2 + $0x24] sm:$0x1] %v1270_v41  ;;  %v10337_v30 = vrot.slane %v1284_v44, 9  ;;  %v1291_v31 = vcombine.high %v1284_v44, %v1284_v44  ;;  %v11552_v37 = vpop.f32.mrb[26].mxu1 }
 0x2cf   : > { %v10339_v33 = vrot.slane %v1306_v25, 9  ;;  %v1311_v50 = vcombine.high %v1306_v25, %v1306_v25  ;;  %v1325_v52 = vrot.slane %v1318_v27, %v13231_v59  ;;  %10341 = vst.sshfl [vmem:[#allocation2 + $0x38] sm:$0x1 pattern:$0x76325410] %v1318_v27  ;;  %v11553_v53 = vpop.f32.mrb[27].mxu1 }
 0x2d0   : > { %v1156_v36 = vadd.f32 %v11551_v46, %v13229_v55  ;;  %1276 = vst [vmem:[#allocation2 + $0x26] sm:$0x1] %v10335_v47  ;;  %1290 = vst [vmem:[#allocation2 + $0x2a] sm:$0x1] %v10337_v30  ;;  %v10338_v39 = vrot.slane %v1291_v31, 9  ;;  %v11554_v2 = vadd.f32 %v11553_v53, %v11552_v37 }
 0x2d1   : > { %1293 = vst [vmem:[#allocation2 + $0x2c] sm:$0x1] %v1291_v31  ;;  %1310 = vst [vmem:[#allocation2 + $0x32] sm:$0x1] %v10339_v33  ;;  %v10340_v56 = vrot.slane %v1311_v50, 9  ;;  %v10342_v42 = vrot.slane %v1325_v52, 9  ;;  %v1332_v43 = vcombine.high %v1325_v52, %v1325_v52 }
 0x2d2   : > { %1313 = vst [vmem:[#allocation2 + $0x34] sm:$0x1] %v1311_v50  ;;  %1340 = vst [vmem:[#allocation2 + $0x40] sm:$0x1] %v1156_v36  ;;  %v1348_v45 = vrot.slane %v1156_v36, %v13231_v59  ;;  %v1360_v48 = vcombine.high %v1156_v36, %v1156_v36  ;;  %v11555_v57 = vpop.f32.mrb[28].mxu1  ;;  %v1161_v60 = vadd.f32 %v11554_v2, %v13229_v55 }
 0x2d3   : > { %1297 = vst [vmem:[#allocation2 + $0x2e] sm:$0x1] %v10338_v39  ;;  %1317 = vst [vmem:[#allocation2 + $0x36] sm:$0x1] %v10340_v56  ;;  %v10343_v49 = vrot.slane %v1332_v43, 9  ;;  %v11556_v61 = vpop.f32.mrb[29].mxu1 }
 0x2d4   : > { %1331 = vst [vmem:[#allocation2 + $0x3a] sm:$0x1] %v10342_v42  ;;  %1334 = vst [vmem:[#allocation2 + $0x3c] sm:$0x1] %v1332_v43  ;;  %v10344_v51 = vrot.slane %v1348_v45, 9  ;;  %v1353_v54 = vcombine.high %v1348_v45, %v1348_v45  ;;  %v1367_v58 = vrot.slane %v1360_v48, %v13231_v59  ;;  %v11557_v63 = vadd.f32 %v11556_v61, %v11555_v57 }
 0x2d5   : > { %10346 = vst.sshfl [vmem:[#allocation2 + $0x48] sm:$0x1 pattern:$0x76325410] %v1360_v48  ;;  %1338 = vst [vmem:[#allocation2 + $0x3e] sm:$0x1] %v10343_v49  ;;  %v1389_v3 = vrot.slane %v1161_v60, %v13231_v59  ;;  %v1401_v4 = vcombine.high %v1161_v60, %v1161_v60 }
 0x2d6   : > { %1352 = vst [vmem:[#allocation2 + $0x42] sm:$0x1] %v10344_v51  ;;  %1355 = vst [vmem:[#allocation2 + $0x44] sm:$0x1] %v1353_v54  ;;  %v10345_v62 = vrot.slane %v1353_v54, 9  ;;  %v10347_v0 = vrot.slane %v1367_v58, 9  ;;  %v1374_v1 = vcombine.high %v1367_v58, %v1367_v58  ;;  %v1166_v5 = vadd.f32 %v11557_v63, %v13229_v55 }
 0x2d7   : > { %1381 = vst [vmem:[#allocation2 + $0x50] sm:$0x1] %v1161_v60  ;;  %v11558_v6 = vpop.f32.mrb[30].mxu1  ;;  %v10349_v8 = vrot.slane %v1389_v3, 9  ;;  %v1394_v9 = vcombine.high %v1389_v3, %v1389_v3  ;;  %v1408_v10 = vrot.slane %v1401_v4, %v13231_v59 }
 0x2d8   : > { %1359 = vst [vmem:[#allocation2 + $0x46] sm:$0x1] %v10345_v62  ;;  %1373 = vst [vmem:[#allocation2 + $0x4a] sm:$0x1] %v10347_v0  ;;  %v10348_v7 = vrot.slane %v1374_v1, 9  ;;  %v11559_v11 = vpop.f32.mrb[31].mxu1  ;;  %v1431_v14 = vrot.slane %v1166_v5, %v13231_v59  ;;  %v1443_v16 = vcombine.high %v1166_v5, %v1166_v5 }
 0x2d9   : > { %1376 = vst [vmem:[#allocation2 + $0x4c] sm:$0x1] %v1374_v1  ;;  %10351 = vst.sshfl [vmem:[#allocation2 + $0x58] sm:$0x1 pattern:$0x76325410] %v1401_v4  ;;  %v11560_v17 = vadd.f32 %v11559_v11, %v11558_v6  ;;  %v1415_v23 = vcombine.high %v1408_v10, %v1408_v10 }
 0x2da   : > { %1423 = vst [vmem:[#allocation2 + $0x60] sm:$0x1] %v1166_v5  ;;  %1380 = vst [vmem:[#allocation2 + $0x4e] sm:$0x1] %v10348_v7  ;;  %v10350_v20 = vrot.slane %v1394_v9, 9  ;;  %v10352_v22 = vrot.slane %v1408_v10, 9  ;;  %v1436_v28 = vcombine.high %v1431_v14, %v1431_v14  ;;  %v1450_v29 = vrot.slane %v1443_v16, %v13231_v59 }
 0x2db   : > { %1393 = vst [vmem:[#allocation2 + $0x52] sm:$0x1] %v10349_v8  ;;  %1396 = vst [vmem:[#allocation2 + $0x54] sm:$0x1] %v1394_v9  ;;  %v10354_v26 = vrot.slane %v1431_v14, 9  ;;  %v1171_v32 = vadd.f32 %v11560_v17, %v13229_v55  ;;  %v11593_v34 = vpop.f32.mrb[32].mxu1 }
 0x2dc   : > { %10356 = vst.sshfl [vmem:[#allocation2 + $0x68] sm:$0x1 pattern:$0x76325410] %v1443_v16  ;;  %1400 = vst [vmem:[#allocation2 + $0x56] sm:$0x1] %v10350_v20  ;;  %v1457_v38 = vcombine.high %v1450_v29, %v1450_v29 }
 0x2dd   : > { %1414 = vst [vmem:[#allocation2 + $0x5a] sm:$0x1] %v10352_v22  ;;  %1417 = vst [vmem:[#allocation2 + $0x5c] sm:$0x1] %v1415_v23  ;;  %v10353_v12 = vrot.slane %v1415_v23, 9  ;;  %v11594_v13 = vpop.f32.mrb[33].mxu1  ;;  %v1472_v40 = vrot.slane %v1171_v32, %v13231_v59  ;;  %v1484_v18 = vcombine.high %v1171_v32, %v1171_v32 }
 0x2de   : > { %1435 = vst [vmem:[#allocation2 + $0x62] sm:$0x1] %v10354_v26  ;;  %1438 = vst [vmem:[#allocation2 + $0x64] sm:$0x1] %v1436_v28  ;;  %v10355_v15 = vrot.slane %v1436_v28, 9  ;;  %v10357_v35 = vrot.slane %v1450_v29, 9  ;;  %v11595_v19 = vadd.f32 %v11594_v13, %v11593_v34 }
 0x2df   : > { %1464 = vst [vmem:[#allocation2 + $0x70] sm:$0x1] %v1171_v32  ;;  %1421 = vst [vmem:[#allocation2 + $0x5e] sm:$0x1] %v10353_v12  ;;  %v10358_v21 = vrot.slane %v1457_v38, 9  ;;  %v10359_v41 = vrot.slane %v1472_v40, 9  ;;  %v1477_v44 = vcombine.high %v1472_v40, %v1472_v40  ;;  %v1491_v25 = vrot.slane %v1484_v18, %v13231_v59 }
 0x2e0   : > { %1442 = vst [vmem:[#allocation2 + $0x66] sm:$0x1] %v10355_v15  ;;  %1456 = vst [vmem:[#allocation2 + $0x6a] sm:$0x1] %v10357_v35  ;;  %v11596_v24 = vpop.f32.mrb[34].mxu1  ;;  %v1595_v27 = vadd.f32 %v11595_v19, %v13229_v55 }
 0x2e1   : > { %1459 = vst [vmem:[#allocation2 + $0x6c] sm:$0x1] %v1457_v38  ;;  %10361 = vst.sshfl [vmem:[#allocation2 + $0x78] sm:$0x1 pattern:$0x76325410] %v1484_v18  ;;  %v1498_v33 = vcombine.high %v1491_v25, %v1491_v25 }
 0x2e2   : > { %v11597_v46 = vpop.f32.mrb[35].mxu1  ;;  %1463 = vst [vmem:[#allocation2 + $0x6e] sm:$0x1] %v10358_v21  ;;  %1476 = vst [vmem:[#allocation2 + $0x72] sm:$0x1] %v10359_v41  ;;  %v10360_v47 = vrot.slane %v1477_v44, 9  ;;  %v1641_v50 = vrot.slane %v1595_v27, %v13231_v59  ;;  %v1653_v52 = vcombine.high %v1595_v27, %v1595_v27 }
 0x2e3   : > { %1479 = vst [vmem:[#allocation2 + $0x74] sm:$0x1] %v1477_v44  ;;  %v11598_v30 = vadd.f32 %v11597_v46, %v11596_v24  ;;  %v10362_v31 = vrot.slane %v1491_v25, 9  ;;  %1633 = vst [vmem:[#allocation2 + $0x1] sm:$0x1] %v1595_v27  ;;  %v11599_v37 = vpop.f32.mrb[36].mxu1 }
 0x2e4   : > { %1483 = vst [vmem:[#allocation2 + $0x76] sm:$0x1] %v10360_v47  ;;  %1500 = vst [vmem:[#allocation2 + $0x7c] sm:$0x1] %v1498_v33  ;;  %v10363_v39 = vrot.slane %v1498_v33, 9  ;;  %v10365_v53 = vrot.slane %v1641_v50, 9  ;;  %v1646_v56 = vcombine.high %v1641_v50, %v1641_v50  ;;  %v1660_v42 = vrot.slane %v1653_v52, %v13231_v59 }
 0x2e5   : > { %v1600_v36 = vadd.f32 %v11598_v30, %v13229_v55  ;;  %1497 = vst [vmem:[#allocation2 + $0x7a] sm:$0x1] %v10362_v31  ;;  %10367 = vst.sshfl [vmem:[#allocation2 + $0x9] sm:$0x1 pattern:$0x76325410] %v1653_v52 }
 0x2e6   : > { %v11600_v43 = vpop.f32.mrb[37].mxu1  ;;  %1504 = vst [vmem:[#allocation2 + $0x7e] sm:$0x1] %v10363_v39  ;;  %1645 = vst [vmem:[#allocation2 + $0x3] sm:$0x1] %v10365_v53  ;;  %v10366_v49 = vrot.slane %v1646_v56, 9  ;;  %v1667_v54 = vcombine.high %v1660_v42, %v1660_v42 }
 0x2e7   : > { %1674 = vst [vmem:[#allocation2 + $0x11] sm:$0x1] %v1600_v36  ;;  %v1682_v45 = vrot.slane %v1600_v36, %v13231_v59  ;;  %v1694_v48 = vcombine.high %v1600_v36, %v1600_v36  ;;  %v11601_v2 = vadd.f32 %v11600_v43, %v11599_v37  ;;  %1648 = vst [vmem:[#allocation2 + $0x5] sm:$0x1] %v1646_v56  ;;  %v10368_v51 = vrot.slane %v1660_v42, 9  ;;  %v11602_v62 = vpop.f32.mrb[38].mxu1 }
 0x2e8   : > { %1652 = vst [vmem:[#allocation2 + $0x7] sm:$0x1] %v10366_v49  ;;  %1669 = vst [vmem:[#allocation2 + $0xd] sm:$0x1] %v1667_v54  ;;  %v10369_v63 = vrot.slane %v1667_v54, 9  ;;  %v11603_v0 = vpop.f32.mrb[39].mxu1 }
 0x2e9   : > { %v10370_v57 = vrot.slane %v1682_v45, 9  ;;  %v1687_v58 = vcombine.high %v1682_v45, %v1682_v45  ;;  %v1701_v60 = vrot.slane %v1694_v48, %v13231_v59  ;;  %10372 = vst.sshfl [vmem:[#allocation2 + $0x19] sm:$0x1 pattern:$0x76325410] %v1694_v48  ;;  %v1605_v61 = vadd.f32 %v11601_v2, %v13229_v55 }
 0x2ea   : > { %1666 = vst [vmem:[#allocation2 + $0xb] sm:$0x1] %v10368_v51  ;;  %1673 = vst [vmem:[#allocation2 + $0xf] sm:$0x1] %v10369_v63  ;;  %v11604_v7 = vadd.f32 %v11603_v0, %v11602_v62  ;;  %v11605_v11 = vpop.f32.mrb[40].mxu1 }
 0x2eb   : > { %1686 = vst [vmem:[#allocation2 + $0x13] sm:$0x1] %v10370_v57  ;;  %1689 = vst [vmem:[#allocation2 + $0x15] sm:$0x1] %v1687_v58  ;;  %v10371_v1 = vrot.slane %v1687_v58, 9  ;;  %v10373_v3 = vrot.slane %v1701_v60, 9  ;;  %v1708_v4 = vcombine.high %v1701_v60, %v1701_v60  ;;  %v1723_v5 = vrot.slane %v1605_v61, %v13231_v59 }
 0x2ec   : > { %1715 = vst [vmem:[#allocation2 + $0x21] sm:$0x1] %v1605_v61  ;;  %v1735_v6 = vcombine.high %v1605_v61, %v1605_v61  ;;  %v1610_v16 = vadd.f32 %v11604_v7, %v13229_v55  ;;  %v11606_v17 = vpop.f32.mrb[41].mxu1 }
 0x2ed   : > { %1693 = vst [vmem:[#allocation2 + $0x17] sm:$0x1] %v10371_v1  ;;  %1707 = vst [vmem:[#allocation2 + $0x1b] sm:$0x1] %v10373_v3  ;;  %v10374_v8 = vrot.slane %v1708_v4, 9  ;;  %v10375_v9 = vrot.slane %v1723_v5, 9  ;;  %v1728_v10 = vcombine.high %v1723_v5, %v1723_v5  ;;  %v11607_v22 = vadd.f32 %v11606_v17, %v11605_v11 }
 0x2ee   : > { %1710 = vst [vmem:[#allocation2 + $0x1d] sm:$0x1] %v1708_v4  ;;  %v1742_v14 = vrot.slane %v1735_v6, %v13231_v59  ;;  %10377 = vst.sshfl [vmem:[#allocation2 + $0x29] sm:$0x1 pattern:$0x76325410] %v1735_v6  ;;  %v1764_v28 = vrot.slane %v1610_v16, %v13231_v59  ;;  %v1776_v29 = vcombine.high %v1610_v16, %v1610_v16 }
 0x2ef   : > { %1714 = vst [vmem:[#allocation2 + $0x1f] sm:$0x1] %v10374_v8  ;;  %1727 = vst [vmem:[#allocation2 + $0x23] sm:$0x1] %v10375_v9  ;;  %v10376_v20 = vrot.slane %v1728_v10, 9  ;;  %v1615_v32 = vadd.f32 %v11607_v22, %v13229_v55  ;;  %v11608_v34 = vpop.f32.mrb[42].mxu1 }
 0x2f0   : > { %1730 = vst [vmem:[#allocation2 + $0x25] sm:$0x1] %v1728_v10  ;;  %v10378_v23 = vrot.slane %v1742_v14, 9  ;;  %v1749_v26 = vcombine.high %v1742_v14, %v1742_v14  ;;  %1756 = vst [vmem:[#allocation2 + $0x31] sm:$0x1] %v1610_v16  ;;  %v10380_v13 = vrot.slane %v1764_v28, 9  ;;  %v1769_v15 = vcombine.high %v1764_v28, %v1764_v28 }
 0x2f1   : > { %1734 = vst [vmem:[#allocation2 + $0x27] sm:$0x1] %v10376_v20  ;;  %v1783_v35 = vrot.slane %v1776_v29, %v13231_v59  ;;  %10382 = vst.sshfl [vmem:[#allocation2 + $0x39] sm:$0x1 pattern:$0x76325410] %v1776_v29  ;;  %v1805_v40 = vrot.slane %v1615_v32, %v13231_v59  ;;  %v1817_v18 = vcombine.high %v1615_v32, %v1615_v32 }
 0x2f2   : > { %1748 = vst [vmem:[#allocation2 + $0x2b] sm:$0x1] %v10378_v23  ;;  %1751 = vst [vmem:[#allocation2 + $0x2d] sm:$0x1] %v1749_v26  ;;  %v10379_v12 = vrot.slane %v1749_v26, 9  ;;  %v11609_v38 = vpop.f32.mrb[43].mxu1 }
 0x2f3   : > { %1797 = vst [vmem:[#allocation2 + $0x41] sm:$0x1] %v1615_v32  ;;  %v11610_v19 = vadd.f32 %v11609_v38, %v11608_v34  ;;  %1768 = vst [vmem:[#allocation2 + $0x33] sm:$0x1] %v10380_v13  ;;  %v10381_v21 = vrot.slane %v1769_v15, 9  ;;  %v10383_v41 = vrot.slane %v1783_v35, 9  ;;  %v1790_v44 = vcombine.high %v1783_v35, %v1783_v35 }
 0x2f4   : > { %1755 = vst [vmem:[#allocation2 + $0x2f] sm:$0x1] %v10379_v12  ;;  %1771 = vst [vmem:[#allocation2 + $0x35] sm:$0x1] %v1769_v15  ;;  %v10385_v24 = vrot.slane %v1805_v40, 9  ;;  %v1810_v25 = vcombine.high %v1805_v40, %v1805_v40  ;;  %v1824_v27 = vrot.slane %v1817_v18, %v13231_v59  ;;  %v11611_v47 = vpop.f32.mrb[44].mxu1 }
 0x2f5   : > { %10387 = vst.sshfl [vmem:[#allocation2 + $0x49] sm:$0x1 pattern:$0x76325410] %v1817_v18  ;;  %v1620_v46 = vadd.f32 %v11610_v19, %v13229_v55  ;;  %1775 = vst [vmem:[#allocation2 + $0x37] sm:$0x1] %v10381_v21 }
 0x2f6   : > { %1789 = vst [vmem:[#allocation2 + $0x3b] sm:$0x1] %v10383_v41  ;;  %1792 = vst [vmem:[#allocation2 + $0x3d] sm:$0x1] %v1790_v44  ;;  %v10384_v30 = vrot.slane %v1790_v44, 9  ;;  %v11612_v31 = vpop.f32.mrb[45].mxu1  ;;  %v1831_v52 = vcombine.high %v1824_v27, %v1824_v27 }
 0x2f7   : > { %1809 = vst [vmem:[#allocation2 + $0x43] sm:$0x1] %v10385_v24  ;;  %1812 = vst [vmem:[#allocation2 + $0x45] sm:$0x1] %v1810_v25  ;;  %v10386_v33 = vrot.slane %v1810_v25, 9  ;;  %v10388_v50 = vrot.slane %v1824_v27, 9  ;;  %v1846_v36 = vrot.slane %v1620_v46, %v13231_v59  ;;  %v1858_v37 = vcombine.high %v1620_v46, %v1620_v46 }
 0x2f8   : > { %1838 = vst [vmem:[#allocation2 + $0x51] sm:$0x1] %v1620_v46  ;;  %1796 = vst [vmem:[#allocation2 + $0x3f] sm:$0x1] %v10384_v30  ;;  %v11613_v39 = vadd.f32 %v11612_v31, %v11611_v47  ;;  %v10389_v53 = vrot.slane %v1831_v52, 9  ;;  %v11614_v43 = vpop.f32.mrb[46].mxu1 }
 0x2f9   : > { %1816 = vst [vmem:[#allocation2 + $0x47] sm:$0x1] %v10386_v33  ;;  %1830 = vst [vmem:[#allocation2 + $0x4b] sm:$0x1] %v10388_v50  ;;  %v10390_v56 = vrot.slane %v1846_v36, 9  ;;  %v1851_v42 = vcombine.high %v1846_v36, %v1846_v36  ;;  %v1865_v45 = vrot.slane %v1858_v37, %v13231_v59  ;;  %v11615_v2 = vpop.f32.mrb[47].mxu1 }
 0x2fa   : > { %1833 = vst [vmem:[#allocation2 + $0x4d] sm:$0x1] %v1831_v52  ;;  %10392 = vst.sshfl [vmem:[#allocation2 + $0x59] sm:$0x1 pattern:$0x76325410] %v1858_v37  ;;  %v1625_v48 = vadd.f32 %v11613_v39, %v13229_v55  ;;  %v11616_v51 = vadd.f32 %v11615_v2, %v11614_v43 }
 0x2fb   : > { %1837 = vst [vmem:[#allocation2 + $0x4f] sm:$0x1] %v10389_v53  ;;  %1850 = vst [vmem:[#allocation2 + $0x53] sm:$0x1] %v10390_v56  ;;  %v10391_v49 = vrot.slane %v1851_v42, 9  ;;  %v10393_v54 = vrot.slane %v1865_v45, 9  ;;  %v1872_v57 = vcombine.high %v1865_v45, %v1865_v45 }
 0x2fc   : > { %1853 = vst [vmem:[#allocation2 + $0x55] sm:$0x1] %v1851_v42  ;;  %1879 = vst [vmem:[#allocation2 + $0x61] sm:$0x1] %v1625_v48  ;;  %v1887_v58 = vrot.slane %v1625_v48, %v13231_v59  ;;  %v1899_v60 = vcombine.high %v1625_v48, %v1625_v48  ;;  %v1630_v61 = vadd.f32 %v11616_v51, %v13229_v55 }
 0x2fd   : > { %1857 = vst [vmem:[#allocation2 + $0x57] sm:$0x1] %v10391_v49  ;;  %1871 = vst [vmem:[#allocation2 + $0x5b] sm:$0x1] %v10393_v54  ;;  %v10394_v62 = vrot.slane %v1872_v57, 9 }
 0x2fe   : > { %1874 = vst [vmem:[#allocation2 + $0x5d] sm:$0x1] %v1872_v57  ;;  %v10395_v63 = vrot.slane %v1887_v58, 9  ;;  %v1892_v0 = vcombine.high %v1887_v58, %v1887_v58  ;;  %v1906_v1 = vrot.slane %v1899_v60, %v13231_v59  ;;  %1920 = vst [vmem:[#allocation2 + $0x71] sm:$0x1] %v1630_v61  ;;  %v1928_v3 = vrot.slane %v1630_v61, %v13231_v59 }
 0x2ff   : > { %10397 = vst.sshfl [vmem:[#allocation2 + $0x69] sm:$0x1 pattern:$0x76325410] %v1899_v60  ;;  %v1940_v4 = vcombine.high %v1630_v61, %v1630_v61  ;;  %1878 = vst [vmem:[#allocation2 + $0x5f] sm:$0x1] %v10394_v62 }
 0x300   : > { %1891 = vst [vmem:[#allocation2 + $0x63] sm:$0x1] %v10395_v63  ;;  %1894 = vst [vmem:[#allocation2 + $0x65] sm:$0x1] %v1892_v0  ;;  %v10396_v5 = vrot.slane %v1892_v0, 9  ;;  %v10398_v6 = vrot.slane %v1906_v1, 9  ;;  %v1913_v7 = vcombine.high %v1906_v1, %v1906_v1  ;;  %v1933_v55 = vcombine.high %v1928_v3, %v1928_v3 }
 0x301   : > { %v10400_v8 = vrot.slane %v1928_v3, 9  ;;  %v1947_v9 = vrot.slane %v1940_v4, %v13231_v59  ;;  %10402 = vst.sshfl [vmem:[#allocation2 + $0x79] sm:$0x1 pattern:$0x76325410] %v1940_v4 }
 0x302   : > { %1898 = vst [vmem:[#allocation2 + $0x67] sm:$0x1] %v10396_v5  ;;  %1912 = vst [vmem:[#allocation2 + $0x6b] sm:$0x1] %v10398_v6  ;;  %v10399_v10 = vrot.slane %v1913_v7, 9  ;;  %v10401_v11 = vrot.slane %v1933_v55, 9 }
 0x303   : > { %1915 = vst [vmem:[#allocation2 + $0x6d] sm:$0x1] %v1913_v7  ;;  %1932 = vst [vmem:[#allocation2 + $0x73] sm:$0x1] %v10400_v8  ;;  %v10403_v14 = vrot.slane %v1947_v9, 9  ;;  %v1954_v16 = vcombine.high %v1947_v9, %v1947_v9 }
 0x304   : > { %1935 = vst [vmem:[#allocation2 + $0x75] sm:$0x1] %v1933_v55  ;;  %1919 = vst [vmem:[#allocation2 + $0x6f] sm:$0x1] %v10399_v10 }
 0x305   : > { %1939 = vst [vmem:[#allocation2 + $0x77] sm:$0x1] %v10401_v11  ;;  %1953 = vst [vmem:[#allocation2 + $0x7b] sm:$0x1] %v10403_v14  ;;  %v10404_v17 = vrot.slane %v1954_v16, 9 }
 0x306   : > { %1956 = vst [vmem:[#allocation2 + $0x7d] sm:$0x1] %v1954_v16 }
 0x307   : > { %1960 = vst [vmem:[#allocation2 + $0x7f] sm:$0x1] %v10404_v17 }
 0x308 PF: > { %v2074_v59 = vld [vmem:[%s12873_s30] sm:$0xff]  ;;  %v2075_v22 = vld [vmem:[%s12873_s30 + $0x8] sm:$0xff]  ;;  %v12576_v39 = vmov 1983009808   ;;  %v1978_v56 = vlaneseq  ;;  %s11439_s24 = sshll.u32 %s12644_s11, 5  ;;  %p11431_p11 = scmp.ne.s32.totalorder %s12644_s11, 3 }
 0x309   : > { %v2078_v20 = vld [vmem:[%s12873_s30 + $0x20] sm:$0xff]  ;;  %v2079_v26 = vld [vmem:[%s12873_s30 + $0x28] sm:$0xff]  ;;  %v1976_v53 = vunpack.c.l.s4 %v12576_v39  ;;  %s13315_s15 = scalar_lea.vmem [#allocation2], %s11439_s24 }
 0x30a   : > { %v10408_v23 = vcombine.high %v2074_v59, %v2078_v20  ;;  %v10407_v28 = vcombine.low %v2074_v59, %v2078_v20  ;;  %v2082_v29 = vld [vmem:[%s12873_s30 + $0x40] sm:$0xff]  ;;  %v10410_v34 = vcombine.high %v2075_v22, %v2079_v26  ;;  %v10409_v12 = vcombine.low %v2075_v22, %v2079_v26  ;;  %v2083_v15 = vld [vmem:[%s12873_s30 + $0x48] sm:$0xff] }
 0x30b   : > { %v2086_v32 = vld [vmem:[%s12873_s30 + $0x60] sm:$0xff]  ;;  %v2087_v35 = vld [vmem:[%s12873_s30 + $0x68] sm:$0xff]  ;;  %v1977_v57 = vunpack.c.0.s8 %v1976_v53  ;;  %v13303_v58 = vshrl.u32 %v1978_v56, 7 }
 0x30c   : > { %v10416_v13 = vcombine.high %v2082_v29, %v2086_v32  ;;  %v2090_v38 = vld [vmem:[%s12873_s30 + $0x80] sm:$0xff]  ;;  %8218 = vmatprep.subr.bf16.mxu0 %v10408_v23  ;;  %v10418_v40 = vcombine.high %v2083_v15, %v2087_v35  ;;  %v2091_v19 = vld [vmem:[%s12873_s30 + $0x88] sm:$0xff]  ;;  %8546 = vmatprep.subr.bf16.mxu1 %v10410_v34  ;;  %v10415_v41 = vcombine.low %v2082_v29, %v2086_v32 }
 0x30d   : > { %v2094_v18 = vld [vmem:[%s12873_s30 + $0xa0] sm:$0xff]  ;;  %v2095_v21 = vld [vmem:[%s12873_s30 + $0xa8] sm:$0xff]  ;;  %8219 = vmatpush1.bf16.msra.mxu0 %v10407_v28  ;;  %8547 = vmatpush1.bf16.msra.mxu1 %v10409_v12  ;;  %v10417_v44 = vcombine.low %v2083_v15, %v2087_v35  ;;  %v13311_v5 = vsub.s32 %v1977_v57, %v13303_v58 }
 0x30e   : > { %8220 = vmatprep.subr.bf16.mxu0 %v10416_v13  ;;  %v10424_v24 = vcombine.high %v2090_v38, %v2094_v18  ;;  %8548 = vmatprep.subr.bf16.mxu1 %v10418_v40  ;;  %v10426_v25 = vcombine.high %v2091_v19, %v2095_v21  ;;  %v2098_v27 = vld [vmem:[%s12873_s30 + $0xc0] sm:$0xff]  ;;  %v2099_v47 = vld [vmem:[%s12873_s30 + $0xc8] sm:$0xff]  ;;  %v10423_v31 = vcombine.low %v2090_v38, %v2094_v18 }
 0x30f   : > { %v2102_v46 = vld [vmem:[%s12873_s30 + $0xe0] sm:$0xff]  ;;  %v2103_v30 = vld [vmem:[%s12873_s30 + $0xe8] sm:$0xff]  ;;  %v10425_v33 = vcombine.low %v2091_v19, %v2095_v21 }
 0x310   : > { %v10432_v50 = vcombine.high %v2098_v27, %v2102_v46  ;;  %v10434_v52 = vcombine.high %v2099_v47, %v2103_v30  ;;  %v2106_v36 = vld [vmem:[%s12873_s30 + $0x100] sm:$0xff]  ;;  %v2107_v42 = vld [vmem:[%s12873_s30 + $0x108] sm:$0xff]  ;;  %v10431_v45 = vcombine.low %v2098_v27, %v2102_v46  ;;  %v10433_v48 = vcombine.low %v2099_v47, %v2103_v30 }
 0x311   : > { %8221 = vmatpush1.bf16.msra.mxu0 %v10415_v41  ;;  %8549 = vmatpush1.bf16.msra.mxu1 %v10417_v44  ;;  %v2110_v37 = vld [vmem:[%s12873_s30 + $0x120] sm:$0xff]  ;;  %v2111_v43 = vld [vmem:[%s12873_s30 + $0x128] sm:$0xff] }
 0x312   : > { %8222 = vmatprep.subr.bf16.mxu0 %v10424_v24  ;;  %8550 = vmatprep.subr.bf16.mxu1 %v10426_v25  ;;  %v10440_v2 = vcombine.high %v2106_v36, %v2110_v37  ;;  %v10442_v49 = vcombine.high %v2107_v42, %v2111_v43  ;;  %v2114_v51 = vld [vmem:[%s12873_s30 + $0x140] sm:$0xff]  ;;  %v2115_v60 = vld [vmem:[%s12873_s30 + $0x148] sm:$0xff]  ;;  %v10439_v62 = vcombine.low %v2106_v36, %v2110_v37 }
 0x313   : > { %v2118_v54 = vld [vmem:[%s12873_s30 + $0x160] sm:$0xff]  ;;  %v2119_v61 = vld [vmem:[%s12873_s30 + $0x168] sm:$0xff]  ;;  %v10441_v63 = vcombine.low %v2107_v42, %v2111_v43 }
 0x314   : > { %v10448_v0 = vcombine.high %v2114_v51, %v2118_v54  ;;  %v10450_v1 = vcombine.high %v2115_v60, %v2119_v61  ;;  %v2122_v3 = vld [vmem:[%s12873_s30 + $0x180] sm:$0xff]  ;;  %v2123_v6 = vld [vmem:[%s12873_s30 + $0x188] sm:$0xff]  ;;  %v10447_v8 = vcombine.low %v2114_v51, %v2118_v54  ;;  %v10449_v55 = vcombine.low %v2115_v60, %v2119_v61 }
 0x315   : > { %8223 = vmatpush1.bf16.msra.mxu0 %v10423_v31  ;;  %8551 = vmatpush1.bf16.msra.mxu1 %v10425_v33  ;;  %v2126_v4 = vld [vmem:[%s12873_s30 + $0x1a0] sm:$0xff]  ;;  %v2127_v7 = vld [vmem:[%s12873_s30 + $0x1a8] sm:$0xff] }
 0x316   : > { %8224 = vmatprep.subr.bf16.mxu0 %v10432_v50  ;;  %8552 = vmatprep.subr.bf16.mxu1 %v10434_v52  ;;  %v10456_v9 = vcombine.high %v2122_v3, %v2126_v4  ;;  %v13318_v10 = vld [vmem:[%s13315_s15] sm:$0xff]  ;;  %v10458_v11 = vcombine.high %v2123_v6, %v2127_v7  ;;  %v2130_v14 = vld [vmem:[%s12873_s30 + $0x1c0] sm:$0xff]  ;;  %v10455_v22 = vcombine.low %v2122_v3, %v2126_v4 }
 0x317   : > { %v2134_v16 = vld [vmem:[%s12873_s30 + $0x1e0] sm:$0xff]  ;;  %v13324_v17 = vrot.slane %v13318_v10, %v13311_v5  ;;  %v2131_v59 = vld [vmem:[%s12873_s30 + $0x1c8] sm:$0xff]  ;;  %v10457_v26 = vcombine.low %v2123_v6, %v2127_v7 }
 0x318   : > { %v2135_v20 = vld [vmem:[%s12873_s30 + $0x1e8] sm:$0xff]  ;;  %v10464_v28 = vcombine.high %v2130_v14, %v2134_v16  ;;  %v2138_v32 = vld [vmem:[%s12873_s30 + $0x200] sm:$0xff]  ;;  %v10463_v35 = vcombine.low %v2130_v14, %v2134_v16 }
 0x319   : > { %8225 = vmatpush1.bf16.msra.mxu0 %v10431_v45  ;;  %8553 = vmatpush1.bf16.msra.mxu1 %v10433_v48  ;;  %v1989_v23 = vcombine.high %v13324_v17, %v13324_v17  ;;  %v10466_v29 = vcombine.high %v2131_v59, %v2135_v20  ;;  %v2142_v34 = vld [vmem:[%s12873_s30 + $0x220] sm:$0xff]  ;;  %v2139_v13 = vld [vmem:[%s12873_s30 + $0x208] sm:$0xff]  ;;  %v10465_v38 = vcombine.low %v2131_v59, %v2135_v20 }
 0x31a   : > { %8226 = vmatprep.subr.bf16.mxu0 %v10440_v2  ;;  %8554 = vmatprep.subr.bf16.mxu1 %v10442_v49  ;;  %v2143_v15 = vld [vmem:[%s12873_s30 + $0x228] sm:$0xff]  ;;  %v10472_v40 = vcombine.high %v2138_v32, %v2142_v34  ;;  %v2146_v19 = vld [vmem:[%s12873_s30 + $0x240] sm:$0xff]  ;;  %v10471_v24 = vcombine.low %v2138_v32, %v2142_v34 }
 0x31b   : > { %v13332_v12 = vpack.c.bf16 %v1989_v23, %v1989_v23  ;;  %v10474_v18 = vcombine.high %v2139_v13, %v2143_v15  ;;  %v2150_v21 = vld [vmem:[%s12873_s30 + $0x260] sm:$0xff]  ;;  %v2147_v41 = vld [vmem:[%s12873_s30 + $0x248] sm:$0xff]  ;;  %v10473_v25 = vcombine.low %v2139_v13, %v2143_v15 }
 0x31c   : > { %v2151_v44 = vld [vmem:[%s12873_s30 + $0x268] sm:$0xff]  ;;  %v10480_v27 = vcombine.high %v2146_v19, %v2150_v21  ;;  %v2154_v47 = vld [vmem:[%s12873_s30 + $0x280] sm:$0xff]  ;;  %v10479_v50 = vcombine.low %v2146_v19, %v2150_v21 }
 0x31d   : > { %8227 = vmatpush1.bf16.msra.mxu0 %v10439_v62  ;;  %8555 = vmatpush1.bf16.msra.mxu1 %v10441_v63  ;;  %v10482_v46 = vcombine.high %v2147_v41, %v2151_v44  ;;  %v2158_v30 = vld [vmem:[%s12873_s30 + $0x2a0] sm:$0xff]  ;;  %v2155_v31 = vld [vmem:[%s12873_s30 + $0x288] sm:$0xff]  ;;  %v10481_v52 = vcombine.low %v2147_v41, %v2151_v44 }
 0x31e   : > { %8228 = vmatprep.subr.bf16.mxu0 %v10448_v0  ;;  %8556 = vmatprep.subr.bf16.mxu1 %v10450_v1  ;;  %v2159_v33 = vld [vmem:[%s12873_s30 + $0x2a8] sm:$0xff]  ;;  %v10488_v36 = vcombine.high %v2154_v47, %v2158_v30  ;;  %v2162_v39 = vld [vmem:[%s12873_s30 + $0x2c0] sm:$0xff]  ;;  %v10487_v43 = vcombine.low %v2154_v47, %v2158_v30  ;;  %v13381_v30 = vpack.c.bf16 %v13324_v17, %v13324_v17 }
 0x31f   : > { %8250 = vmatprep.mubr.bf16.mxu0 %v13332_v12  ;;  %8578 = vmatprep.mubr.bf16.mxu1 %v13332_v12  ;;  %v10490_v37 = vcombine.high %v2155_v31, %v2159_v33  ;;  %v2166_v53 = vld [vmem:[%s12873_s30 + $0x2e0] sm:$0xff]  ;;  %v2163_v56 = vld [vmem:[%s12873_s30 + $0x2c8] sm:$0xff]  ;;  %v10489_v45 = vcombine.low %v2155_v31, %v2159_v33 }
 0x320   : > { %v2167_v42 = vld [vmem:[%s12873_s30 + $0x2e8] sm:$0xff]  ;;  %v10496_v48 = vcombine.high %v2162_v39, %v2166_v53  ;;  %v2170_v49 = vld [vmem:[%s12873_s30 + $0x300] sm:$0xff]  ;;  %v10495_v60 = vcombine.low %v2162_v39, %v2166_v53 }
 0x321   : > { %8229 = vmatpush1.bf16.msra.mxu0 %v10447_v8  ;;  %8557 = vmatpush1.bf16.msra.mxu1 %v10449_v55  ;;  %v10498_v2 = vcombine.high %v2163_v56, %v2167_v42  ;;  %v2174_v51 = vld [vmem:[%s12873_s30 + $0x320] sm:$0xff]  ;;  %v2171_v54 = vld [vmem:[%s12873_s30 + $0x308] sm:$0xff]  ;;  %v10497_v61 = vcombine.low %v2163_v56, %v2167_v42 }
 0x322   : > { %8230 = vmatprep.subr.bf16.mxu0 %v10456_v9  ;;  %8558 = vmatprep.subr.bf16.mxu1 %v10458_v11  ;;  %v2175_v57 = vld [vmem:[%s12873_s30 + $0x328] sm:$0xff]  ;;  %v10504_v62 = vcombine.high %v2170_v49, %v2174_v51  ;;  %v2178_v0 = vld [vmem:[%s12873_s30 + $0x340] sm:$0xff]  ;;  %v10503_v6 = vcombine.low %v2170_v49, %v2174_v51 }
 0x323   : > { %v10506_v63 = vcombine.high %v2171_v54, %v2175_v57  ;;  %v2182_v1 = vld [vmem:[%s12873_s30 + $0x360] sm:$0xff]  ;;  %v2179_v3 = vld [vmem:[%s12873_s30 + $0x348] sm:$0xff]  ;;  %v10505_v7 = vcombine.low %v2171_v54, %v2175_v57 }
 0x324   : > { %v2183_v4 = vld [vmem:[%s12873_s30 + $0x368] sm:$0xff]  ;;  %v10512_v8 = vcombine.high %v2178_v0, %v2182_v1  ;;  %v2186_v9 = vld [vmem:[%s12873_s30 + $0x380] sm:$0xff]  ;;  %v10511_v59 = vcombine.low %v2178_v0, %v2182_v1 }
 0x325   : > { %8231 = vmatpush1.bf16.msra.mxu0 %v10455_v22  ;;  %8559 = vmatpush1.bf16.msra.mxu1 %v10457_v26  ;;  %v10514_v55 = vcombine.high %v2179_v3, %v2183_v4  ;;  %v2190_v11 = vld [vmem:[%s12873_s30 + $0x3a0] sm:$0xff]  ;;  %v2187_v14 = vld [vmem:[%s12873_s30 + $0x388] sm:$0xff]  ;;  %v10513_v20 = vcombine.low %v2179_v3, %v2183_v4 }
 0x326   : > { %8232 = vmatprep.subr.bf16.mxu0 %v10464_v28  ;;  %8560 = vmatprep.subr.bf16.mxu1 %v10466_v29  ;;  %v2191_v16 = vld [vmem:[%s12873_s30 + $0x3a8] sm:$0xff]  ;;  %v10520_v22 = vcombine.high %v2186_v9, %v2190_v11  ;;  %v2194_v26 = vld [vmem:[%s12873_s30 + $0x3c0] sm:$0xff]  ;;  %v1974_v29 = vcombine.high %v13318_v10, %v13318_v10  ;;  %v10519_v13 = vcombine.low %v2186_v9, %v2190_v11 }
 0x327   : > { %v10522_v23 = vcombine.high %v2187_v14, %v2191_v16  ;;  %v2198_v28 = vld [vmem:[%s12873_s30 + $0x3e0] sm:$0xff]  ;;  %v2195_v32 = vld [vmem:[%s12873_s30 + $0x3c8] sm:$0xff]  ;;  %v10521_v15 = vcombine.low %v2187_v14, %v2191_v16 }
 0x328   : > { %v2199_v34 = vld [vmem:[%s12873_s30 + $0x3e8] sm:$0xff]  ;;  %v13371_v19 = vrot.slane %v1974_v29, %v13311_v5  ;;  %v10527_v41 = vcombine.low %v2194_v26, %v2198_v28  ;;  %v2218_v39 = vld [vmem:[%s12873_s30 + $0x480] sm:$0xff] }
 0x329   : > { %8233 = vmatpush1.bf16.msra.mxu0 %v10463_v35  ;;  %8561 = vmatpush1.bf16.msra.mxu1 %v10465_v38  ;;  %v10528_v35 = vcombine.high %v2194_v26, %v2198_v28  ;;  %v10530_v38 = vcombine.high %v2195_v32, %v2199_v34  ;;  %v2203_v10 = vld [vmem:[%s12873_s30 + $0x408] sm:$0xff]  ;;  %v10529_v44 = vcombine.low %v2195_v32, %v2199_v34  ;;  %v2222_v53 = vld [vmem:[%s12873_s30 + $0x4a0] sm:$0xff] }
 0x32a   : > { %8234 = vmatprep.subr.bf16.mxu0 %v10472_v40  ;;  %8562 = vmatprep.subr.bf16.mxu1 %v10474_v18  ;;  %v2202_v40 = vld [vmem:[%s12873_s30 + $0x400] sm:$0xff]  ;;  %v2207_v21 = vld [vmem:[%s12873_s30 + $0x428] sm:$0xff]  ;;  %v1990_v47 = vcombine.high %v13371_v19, %v13371_v19 }
 0x32b   : > { %v2206_v18 = vld [vmem:[%s12873_s30 + $0x420] sm:$0xff]  ;;  %v2211_v31 = vld [vmem:[%s12873_s30 + $0x448] sm:$0xff] }
 0x32c   : > { %v2215_v33 = vld [vmem:[%s12873_s30 + $0x468] sm:$0xff]  ;;  %v13387_v56 = vpack.c.bf16 %v1990_v47, %v1990_v47  ;;  %v2226_v49 = vld [vmem:[%s12873_s30 + $0x4c0] sm:$0xff] }
 0x32d   : > { %8235 = vmatpush1.bf16.msra.mxu0 %v10471_v24  ;;  %8563 = vmatpush1.bf16.msra.mxu1 %v10473_v25  ;;  %v10536_v24 = vcombine.high %v2202_v40, %v2206_v18  ;;  %v10538_v25 = vcombine.high %v2203_v10, %v2207_v21  ;;  %v2219_v17 = vld [vmem:[%s12873_s30 + $0x488] sm:$0xff]  ;;  %v2230_v51 = vld [vmem:[%s12873_s30 + $0x4e0] sm:$0xff] }
 0x32e   : > { %8236 = vmatprep.subr.bf16.mxu0 %v10480_v27  ;;  %8564 = vmatprep.subr.bf16.mxu1 %v10482_v46  ;;  %v2210_v27 = vld [vmem:[%s12873_s30 + $0x440] sm:$0xff]  ;;  %v2223_v42 = vld [vmem:[%s12873_s30 + $0x4a8] sm:$0xff] }
 0x32f   : > { %v2214_v46 = vld [vmem:[%s12873_s30 + $0x460] sm:$0xff]  ;;  %v2227_v54 = vld [vmem:[%s12873_s30 + $0x4c8] sm:$0xff] }
 0x330   : > { %v2231_v57 = vld [vmem:[%s12873_s30 + $0x4e8] sm:$0xff]  ;;  %v2234_v0 = vld [vmem:[%s12873_s30 + $0x500] sm:$0xff] }
 0x331   : > { %8237 = vmatpush1.bf16.msra.mxu0 %v10479_v50  ;;  %8565 = vmatpush1.bf16.msra.mxu1 %v10481_v52  ;;  %v10535_v50 = vcombine.low %v2202_v40, %v2206_v18  ;;  %v10537_v52 = vcombine.low %v2203_v10, %v2207_v21  ;;  %v2238_v1 = vld [vmem:[%s12873_s30 + $0x520] sm:$0xff]  ;;  %v2235_v3 = vld [vmem:[%s12873_s30 + $0x508] sm:$0xff] }
 0x332   : > { %8238 = vmatprep.subr.bf16.mxu0 %v10488_v36  ;;  %8566 = vmatprep.subr.bf16.mxu1 %v10490_v37  ;;  %v10544_v36 = vcombine.high %v2210_v27, %v2214_v46  ;;  %v10546_v37 = vcombine.high %v2211_v31, %v2215_v33  ;;  %v2239_v4 = vld [vmem:[%s12873_s30 + $0x528] sm:$0xff]  ;;  %v2242_v9 = vld [vmem:[%s12873_s30 + $0x540] sm:$0xff] }
 0x333   : > { %v2246_v11 = vld [vmem:[%s12873_s30 + $0x560] sm:$0xff]  ;;  %v2243_v14 = vld [vmem:[%s12873_s30 + $0x548] sm:$0xff] }
 0x334   : > { %v2247_v16 = vld [vmem:[%s12873_s30 + $0x568] sm:$0xff]  ;;  %v2250_v26 = vld [vmem:[%s12873_s30 + $0x580] sm:$0xff]  ;;  %v10575_v34 = vcombine.low %v2242_v9, %v2246_v11 }
 0x335   : > { %8239 = vmatpush1.bf16.msra.mxu0 %v10487_v43  ;;  %8567 = vmatpush1.bf16.msra.mxu1 %v10489_v45  ;;  %v10543_v43 = vcombine.low %v2210_v27, %v2214_v46  ;;  %v10545_v45 = vcombine.low %v2211_v31, %v2215_v33  ;;  %v2254_v28 = vld [vmem:[%s12873_s30 + $0x5a0] sm:$0xff]  ;;  %v2251_v29 = vld [vmem:[%s12873_s30 + $0x588] sm:$0xff] }
 0x336   : > { %8240 = vmatprep.subr.bf16.mxu0 %v10496_v48  ;;  %8568 = vmatprep.subr.bf16.mxu1 %v10498_v2  ;;  %v10552_v48 = vcombine.high %v2218_v39, %v2222_v53  ;;  %v10554_v2 = vcombine.high %v2219_v17, %v2223_v42  ;;  %v2255_v32 = vld [vmem:[%s12873_s30 + $0x5a8] sm:$0xff]  ;;  %v2262_v40 = vld [vmem:[%s12873_s30 + $0x5e0] sm:$0xff]  ;;  %v10583_v21 = vcombine.low %v2250_v26, %v2254_v28 }
 0x337   : > { %v2259_v18 = vld [vmem:[%s12873_s30 + $0x5c8] sm:$0xff]  ;;  %v2270_v27 = vld [vmem:[%s12873_s30 + $0x620] sm:$0xff] }
 0x338   : > { %v2263_v10 = vld [vmem:[%s12873_s30 + $0x5e8] sm:$0xff] }
 0x339   : > { %8241 = vmatpush1.bf16.msra.mxu0 %v10495_v60  ;;  %8569 = vmatpush1.bf16.msra.mxu1 %v10497_v61  ;;  %v10551_v60 = vcombine.low %v2218_v39, %v2222_v53  ;;  %v10553_v61 = vcombine.low %v2219_v17, %v2223_v42  ;;  %v2267_v46 = vld [vmem:[%s12873_s30 + $0x608] sm:$0xff]  ;;  %v10593_v33 = vcombine.low %v2259_v18, %v2263_v10 }
 0x33a   : > { %8242 = vmatprep.subr.bf16.mxu0 %v10504_v62  ;;  %8570 = vmatprep.subr.bf16.mxu1 %v10506_v63  ;;  %v10560_v62 = vcombine.high %v2226_v49, %v2230_v51  ;;  %v10562_v63 = vcombine.high %v2227_v54, %v2231_v57  ;;  %v2271_v47 = vld [vmem:[%s12873_s30 + $0x628] sm:$0xff] }
 0x33b   : > { %v2275_v39 = vld [vmem:[%s12873_s30 + $0x648] sm:$0xff]  ;;  %v10601_v42 = vcombine.low %v2267_v46, %v2271_v47 }
 0x33c   : > { %v2279_v53 = vld [vmem:[%s12873_s30 + $0x668] sm:$0xff] }
 0x33d   : > { %8243 = vmatpush1.bf16.msra.mxu0 %v10503_v6  ;;  %8571 = vmatpush1.bf16.msra.mxu1 %v10505_v7  ;;  %v10559_v6 = vcombine.low %v2226_v49, %v2230_v51  ;;  %v10561_v7 = vcombine.low %v2227_v54, %v2231_v57  ;;  %v2283_v49 = vld [vmem:[%s12873_s30 + $0x688] sm:$0xff]  ;;  %v10609_v57 = vcombine.low %v2275_v39, %v2279_v53 }
 0x33e   : > { %8244 = vmatprep.subr.bf16.mxu0 %v10512_v8  ;;  %8572 = vmatprep.subr.bf16.mxu1 %v10514_v55  ;;  %v10568_v8 = vcombine.high %v2234_v0, %v2238_v1  ;;  %v10570_v55 = vcombine.high %v2235_v3, %v2239_v4  ;;  %v2287_v51 = vld [vmem:[%s12873_s30 + $0x6a8] sm:$0xff] }
 0x341   : > { %8245 = vmatpush1.bf16.msra.mxu0 %v10511_v59  ;;  %8573 = vmatpush1.bf16.msra.mxu1 %v10513_v20  ;;  %v10567_v59 = vcombine.low %v2234_v0, %v2238_v1  ;;  %v10569_v20 = vcombine.low %v2235_v3, %v2239_v4  ;;  %v2291_v0 = vld [vmem:[%s12873_s30 + $0x6c8] sm:$0xff]  ;;  %v10617_v4 = vcombine.low %v2283_v49, %v2287_v51 }
 0x342   : > { %8246 = vmatprep.subr.bf16.mxu0 %v10520_v22  ;;  %8574 = vmatprep.subr.bf16.mxu1 %v10522_v23  ;;  %v10576_v22 = vcombine.high %v2242_v9, %v2246_v11  ;;  %v10578_v23 = vcombine.high %v2243_v14, %v2247_v16  ;;  %v2295_v1 = vld [vmem:[%s12873_s30 + $0x6e8] sm:$0xff] }
 0x343   : > { %v2299_v9 = vld [vmem:[%s12873_s30 + $0x708] sm:$0xff] }
 0x344   : > { %v2303_v11 = vld [vmem:[%s12873_s30 + $0x728] sm:$0xff] }
 0x345   : > { %8247 = vmatpush1.bf16.msra.mxu0 %v10519_v13  ;;  %8575 = vmatpush1.bf16.msra.mxu1 %v10521_v15  ;;  %v10577_v13 = vcombine.low %v2243_v14, %v2247_v16  ;;  %v10584_v15 = vcombine.high %v2250_v26, %v2254_v28  ;;  %v10625_v16 = vcombine.low %v2291_v0, %v2295_v1  ;;  %v2307_v26 = vld [vmem:[%s12873_s30 + $0x748] sm:$0xff] }
 0x346   : > { %8248 = vmatprep.subr.bf16.mxu0 %v10528_v35  ;;  %8576 = vmatprep.subr.bf16.mxu1 %v10530_v38  ;;  %v10586_v35 = vcombine.high %v2251_v29, %v2255_v32  ;;  %v2258_v38 = vld [vmem:[%s12873_s30 + $0x5c0] sm:$0xff]  ;;  %v2311_v28 = vld [vmem:[%s12873_s30 + $0x768] sm:$0xff] }
 0x347   : > { %v10591_v31 = vcombine.low %v2258_v38, %v2262_v40 }
 0x349   : > { %8249 = vmatpush1.bf16.msra.mxu0 %v10527_v41  ;;  %8577 = vmatpush1.bf16.msra.mxu1 %v10529_v44  ;;  %v10585_v41 = vcombine.low %v2251_v29, %v2255_v32  ;;  %v10592_v44 = vcombine.high %v2258_v38, %v2262_v40  ;;  %v10633_v32 = vcombine.low %v2299_v9, %v2303_v11  ;;  %v2315_v38 = vld [vmem:[%s12873_s30 + $0x788] sm:$0xff] }
 0x34a   : > { %8259 = vmatprep.subr.bf16.mxu0 %v10536_v24  ;;  %8587 = vmatprep.subr.bf16.mxu1 %v10538_v25  ;;  %v10594_v24 = vcombine.high %v2259_v18, %v2263_v10  ;;  %v2266_v25 = vld [vmem:[%s12873_s30 + $0x600] sm:$0xff]  ;;  %v2319_v40 = vld [vmem:[%s12873_s30 + $0x7a8] sm:$0xff]  ;;  %v10641_v10 = vcombine.low %v2307_v26, %v2311_v28 }
 0x34b   : > { %v10599_v17 = vcombine.low %v2266_v25, %v2270_v27 }
 0x34c   : > { %8251 = vmatmul.mubr.bf16.vlgmr.msra.gmra.mrb[0].mxu0 %v13381_v30  ;;  %8579 = vmatmul.mubr.bf16.vlgmr.msra.gmra.mrb[0].mxu1 %v13381_v30 }
 0x34d   : > { %8260 = vmatpush1.bf16.msra.mxu0 %v10535_v50  ;;  %8588 = vmatpush1.bf16.msra.mxu1 %v10537_v52  ;;  %v10600_v50 = vcombine.high %v2266_v25, %v2270_v27  ;;  %v10602_v52 = vcombine.high %v2267_v46, %v2271_v47  ;;  %v2323_v25 = vld [vmem:[%s12873_s30 + $0x7c8] sm:$0xff]  ;;  %v13448_v46 = vld [vmem:[%s13315_s15 + $0x8] sm:$0xff] }
 0x34e   : > { %8261 = vmatprep.subr.bf16.mxu0 %v10544_v36  ;;  %8589 = vmatprep.subr.bf16.mxu1 %v10546_v37  ;;  %v2274_v36 = vld [vmem:[%s12873_s30 + $0x640] sm:$0xff]  ;;  %v2327_v27 = vld [vmem:[%s12873_s30 + $0x7e8] sm:$0xff] }
 0x34f   : > { %8291 = vmatprep.mubr.bf16.mxu0 %v13387_v56  ;;  %8619 = vmatprep.mubr.bf16.mxu1 %v13387_v56  ;;  %v2278_v37 = vld [vmem:[%s12873_s30 + $0x660] sm:$0xff] }
 0x350   : > { %v10607_v54 = vcombine.low %v2274_v36, %v2278_v37 }
 0x351   : > { %8262 = vmatpush1.bf16.msra.mxu0 %v10543_v43  ;;  %8590 = vmatpush1.bf16.msra.mxu1 %v10545_v45  ;;  %v10608_v43 = vcombine.high %v2274_v36, %v2278_v37  ;;  %v10610_v45 = vcombine.high %v2275_v39, %v2279_v53  ;;  %v2334_v36 = vld [vmem:[%s12873_s30 + $0x820] sm:$0xff]  ;;  %v13454_v37 = vrot.slane %v13448_v46, %v13311_v5  ;;  %v2331_v39 = vld [vmem:[%s12873_s30 + $0x808] sm:$0xff] }
 0x352   : > { %8263 = vmatprep.subr.bf16.mxu0 %v10552_v48  ;;  %8591 = vmatprep.subr.bf16.mxu1 %v10554_v2  ;;  %v2282_v48 = vld [vmem:[%s12873_s30 + $0x680] sm:$0xff]  ;;  %v2335_v53 = vld [vmem:[%s12873_s30 + $0x828] sm:$0xff] }
 0x353   : > { %v2286_v2 = vld [vmem:[%s12873_s30 + $0x6a0] sm:$0xff] }
 0x354   : > { %v10615_v3 = vcombine.low %v2282_v48, %v2286_v2 }
 0x355   : > { %8264 = vmatpush1.bf16.msra.mxu0 %v10551_v60  ;;  %8592 = vmatpush1.bf16.msra.mxu1 %v10553_v61  ;;  %v10616_v60 = vcombine.high %v2282_v48, %v2286_v2  ;;  %v10618_v61 = vcombine.high %v2283_v49, %v2287_v51  ;;  %v2338_v48 = vld [vmem:[%s12873_s30 + $0x840] sm:$0xff]  ;;  %v2006_v49 = vcombine.high %v13454_v37, %v13454_v37 }
 0x356   : > { %8265 = vmatprep.subr.bf16.mxu0 %v10560_v62  ;;  %8593 = vmatprep.subr.bf16.mxu1 %v10562_v63  ;;  %v2290_v62 = vld [vmem:[%s12873_s30 + $0x6c0] sm:$0xff]  ;;  %v13464_v51 = vpack.c.bf16 %v13371_v19, %v13371_v19  ;;  %v2347_v19 = vld [vmem:[%s12873_s30 + $0x888] sm:$0xff] }
 0x357   : > { %v2294_v63 = vld [vmem:[%s12873_s30 + $0x6e0] sm:$0xff] }
 0x358   : > { %v10623_v14 = vcombine.low %v2290_v62, %v2294_v63  ;;  %v2342_v2 = vld [vmem:[%s12873_s30 + $0x860] sm:$0xff] }
 0x359   : > { %8266 = vmatpush1.bf16.msra.mxu0 %v10559_v6  ;;  %8594 = vmatpush1.bf16.msra.mxu1 %v10561_v7  ;;  %v10624_v6 = vcombine.high %v2290_v62, %v2294_v63  ;;  %v10626_v7 = vcombine.high %v2291_v0, %v2295_v1  ;;  %v10672_v62 = vcombine.high %v2338_v48, %v2342_v2  ;;  %v2346_v0 = vld [vmem:[%s12873_s30 + $0x880] sm:$0xff] }
 0x35a   : > { %8267 = vmatprep.subr.bf16.mxu0 %v10568_v8  ;;  %8595 = vmatprep.subr.bf16.mxu1 %v10570_v55  ;;  %v2298_v8 = vld [vmem:[%s12873_s30 + $0x700] sm:$0xff] }
 0x35b   : > { %v2302_v55 = vld [vmem:[%s12873_s30 + $0x720] sm:$0xff] }
 0x35c   : > { %v10631_v29 = vcombine.low %v2298_v8, %v2302_v55  ;;  %v2350_v1 = vld [vmem:[%s12873_s30 + $0x8a0] sm:$0xff] }
 0x35d   : > { %8268 = vmatpush1.bf16.msra.mxu0 %v10567_v59  ;;  %8596 = vmatpush1.bf16.msra.mxu1 %v10569_v20  ;;  %v10632_v59 = vcombine.high %v2298_v8, %v2302_v55  ;;  %v10634_v20 = vcombine.high %v2299_v9, %v2303_v11  ;;  %v10680_v8 = vcombine.high %v2346_v0, %v2350_v1  ;;  %v2354_v9 = vld [vmem:[%s12873_s30 + $0x8c0] sm:$0xff] }
 0x35e   : > { %8269 = vmatprep.subr.bf16.mxu0 %v10576_v22  ;;  %8597 = vmatprep.subr.bf16.mxu1 %v10578_v23  ;;  %v2306_v22 = vld [vmem:[%s12873_s30 + $0x740] sm:$0xff] }
 0x35f   : > { %v2310_v23 = vld [vmem:[%s12873_s30 + $0x760] sm:$0xff] }
 0x360   : > { %v10639_v18 = vcombine.low %v2306_v22, %v2310_v23  ;;  %v2358_v11 = vld [vmem:[%s12873_s30 + $0x8e0] sm:$0xff] }
 0x361   : > { %8270 = vmatpush1.bf16.msra.mxu0 %v10575_v34  ;;  %8598 = vmatpush1.bf16.msra.mxu1 %v10577_v13  ;;  %v10640_v34 = vcombine.high %v2306_v22, %v2310_v23  ;;  %v10642_v13 = vcombine.high %v2307_v26, %v2311_v28  ;;  %v10688_v22 = vcombine.high %v2354_v9, %v2358_v11  ;;  %v2362_v26 = vld [vmem:[%s12873_s30 + $0x900] sm:$0xff] }
 0x362   : > { %8271 = vmatprep.subr.bf16.mxu0 %v10584_v15  ;;  %8599 = vmatprep.subr.bf16.mxu1 %v10586_v35  ;;  %v2314_v15 = vld [vmem:[%s12873_s30 + $0x780] sm:$0xff] }
 0x363   : > { %v2318_v35 = vld [vmem:[%s12873_s30 + $0x7a0] sm:$0xff] }
 0x364   : > { %v10647_v47 = vcombine.low %v2314_v15, %v2318_v35  ;;  %v2366_v28 = vld [vmem:[%s12873_s30 + $0x920] sm:$0xff] }
 0x365   : > { %8272 = vmatpush1.bf16.msra.mxu0 %v10583_v21  ;;  %8600 = vmatpush1.bf16.msra.mxu1 %v10585_v41  ;;  %v10648_v21 = vcombine.high %v2314_v15, %v2318_v35  ;;  %v10650_v41 = vcombine.high %v2315_v38, %v2319_v40  ;;  %v10696_v15 = vcombine.high %v2362_v26, %v2366_v28 }
 0x366   : > { %8273 = vmatprep.subr.bf16.mxu0 %v10592_v44  ;;  %8601 = vmatprep.subr.bf16.mxu1 %v10594_v24  ;;  %v2322_v44 = vld [vmem:[%s12873_s30 + $0x7c0] sm:$0xff] }
 0x367   : > { %v2326_v24 = vld [vmem:[%s12873_s30 + $0x7e0] sm:$0xff] }
 0x369   : > { %8274 = vmatpush1.bf16.msra.mxu0 %v10591_v31  ;;  %8602 = vmatpush1.bf16.msra.mxu1 %v10593_v33  ;;  %v10649_v31 = vcombine.low %v2315_v38, %v2319_v40  ;;  %v10656_v33 = vcombine.high %v2322_v44, %v2326_v24  ;;  %v2370_v38 = vld [vmem:[%s12873_s30 + $0x940] sm:$0xff] }
 0x36a   : > { %8275 = vmatprep.subr.bf16.mxu0 %v10600_v50  ;;  %8603 = vmatprep.subr.bf16.mxu1 %v10602_v52  ;;  %v10658_v50 = vcombine.high %v2323_v25, %v2327_v27  ;;  %v2330_v52 = vld [vmem:[%s12873_s30 + $0x800] sm:$0xff] }
 0x36b   : > { %v2374_v40 = vld [vmem:[%s12873_s30 + $0x960] sm:$0xff] }
 0x36d   : > { %8276 = vmatpush1.bf16.msra.mxu0 %v10599_v17  ;;  %8604 = vmatpush1.bf16.msra.mxu1 %v10601_v42  ;;  %v10655_v17 = vcombine.low %v2322_v44, %v2326_v24  ;;  %v10657_v42 = vcombine.low %v2323_v25, %v2327_v27  ;;  %v10704_v44 = vcombine.high %v2370_v38, %v2374_v40  ;;  %v2378_v25 = vld [vmem:[%s12873_s30 + $0x980] sm:$0xff] }
 0x36e   : > { %8277 = vmatprep.subr.bf16.mxu0 %v10608_v43  ;;  %8605 = vmatprep.subr.bf16.mxu1 %v10610_v45  ;;  %v10664_v43 = vcombine.high %v2330_v52, %v2334_v36  ;;  %v10666_v45 = vcombine.high %v2331_v39, %v2335_v53  ;;  %v2382_v27 = vld [vmem:[%s12873_s30 + $0x9a0] sm:$0xff] }
 0x371   : > { %8278 = vmatpush1.bf16.msra.mxu0 %v10607_v54  ;;  %8606 = vmatpush1.bf16.msra.mxu1 %v10609_v57  ;;  %v2339_v54 = vld [vmem:[%s12873_s30 + $0x848] sm:$0xff] }
 0x372   : > { %8279 = vmatprep.subr.bf16.mxu0 %v10616_v60  ;;  %8607 = vmatprep.subr.bf16.mxu1 %v10618_v61  ;;  %v2343_v57 = vld [vmem:[%s12873_s30 + $0x868] sm:$0xff]  ;;  %v10663_v60 = vcombine.low %v2330_v52, %v2334_v36  ;;  %v10665_v61 = vcombine.low %v2331_v39, %v2335_v53  ;;  %v10712_v52 = vcombine.high %v2378_v25, %v2382_v27  ;;  %v2386_v39 = vld [vmem:[%s12873_s30 + $0x9c0] sm:$0xff] }
 0x373   : > { %v10674_v63 = vcombine.high %v2339_v54, %v2343_v57  ;;  %v2390_v53 = vld [vmem:[%s12873_s30 + $0x9e0] sm:$0xff] }
 0x375   : > { %8280 = vmatpush1.bf16.msra.mxu0 %v10615_v3  ;;  %8608 = vmatpush1.bf16.msra.mxu1 %v10617_v4  ;;  %v13470_v3 = vpack.c.bf16 %v2006_v49, %v2006_v49  ;;  %v2351_v4 = vld [vmem:[%s12873_s30 + $0x8a8] sm:$0xff]  ;;  %v2394_v49 = vld [vmem:[%s12873_s30 + $0xa00] sm:$0xff] }
 0x376   : > { %8281 = vmatprep.subr.bf16.mxu0 %v10624_v6  ;;  %8609 = vmatprep.subr.bf16.mxu1 %v10626_v7  ;;  %v10671_v6 = vcombine.low %v2338_v48, %v2342_v2  ;;  %v10673_v7 = vcombine.low %v2339_v54, %v2343_v57  ;;  %v10682_v55 = vcombine.high %v2347_v19, %v2351_v4  ;;  %v2398_v54 = vld [vmem:[%s12873_s30 + $0xa20] sm:$0xff]  ;;  %v2395_v57 = vld [vmem:[%s12873_s30 + $0xa08] sm:$0xff] }
 0x377   : > { %v10720_v48 = vcombine.high %v2386_v39, %v2390_v53 }
 0x379   : > { %8282 = vmatpush1.bf16.msra.mxu0 %v10623_v14  ;;  %8610 = vmatpush1.bf16.msra.mxu1 %v10625_v16  ;;  %v2355_v14 = vld [vmem:[%s12873_s30 + $0x8c8] sm:$0xff] }
 0x37a   : > { %8283 = vmatprep.subr.bf16.mxu0 %v10632_v59  ;;  %8611 = vmatprep.subr.bf16.mxu1 %v10634_v20  ;;  %v2359_v16 = vld [vmem:[%s12873_s30 + $0x8e8] sm:$0xff]  ;;  %v10679_v59 = vcombine.low %v2346_v0, %v2350_v1  ;;  %v10681_v20 = vcombine.low %v2347_v19, %v2351_v4  ;;  %v2402_v1 = vld [vmem:[%s12873_s30 + $0xa40] sm:$0xff] }
 0x37b   : > { %v10690_v23 = vcombine.high %v2355_v14, %v2359_v16  ;;  %v2406_v19 = vld [vmem:[%s12873_s30 + $0xa60] sm:$0xff]  ;;  %v2403_v4 = vld [vmem:[%s12873_s30 + $0xa48] sm:$0xff] }
 0x37d   : > { %8284 = vmatpush1.bf16.msra.mxu0 %v10631_v29  ;;  %8612 = vmatpush1.bf16.msra.mxu1 %v10633_v32  ;;  %v2363_v29 = vld [vmem:[%s12873_s30 + $0x908] sm:$0xff] }
 0x37e   : > { %8285 = vmatprep.subr.bf16.mxu0 %v10640_v34  ;;  %8613 = vmatprep.subr.bf16.mxu1 %v10642_v13  ;;  %v2367_v32 = vld [vmem:[%s12873_s30 + $0x928] sm:$0xff]  ;;  %v10687_v34 = vcombine.low %v2354_v9, %v2358_v11  ;;  %v10689_v13 = vcombine.low %v2355_v14, %v2359_v16  ;;  %v2410_v11 = vld [vmem:[%s12873_s30 + $0xa80] sm:$0xff] }
 0x37f   : > { %v10698_v35 = vcombine.high %v2363_v29, %v2367_v32  ;;  %v2414_v14 = vld [vmem:[%s12873_s30 + $0xaa0] sm:$0xff]  ;;  %v2411_v16 = vld [vmem:[%s12873_s30 + $0xa88] sm:$0xff] }
 0x381   : > { %8286 = vmatpush1.bf16.msra.mxu0 %v10639_v18  ;;  %8614 = vmatpush1.bf16.msra.mxu1 %v10641_v10  ;;  %v2371_v18 = vld [vmem:[%s12873_s30 + $0x948] sm:$0xff] }
 0x382   : > { %8287 = vmatprep.subr.bf16.mxu0 %v10648_v21  ;;  %8615 = vmatprep.subr.bf16.mxu1 %v10650_v41  ;;  %v2375_v10 = vld [vmem:[%s12873_s30 + $0x968] sm:$0xff]  ;;  %v10695_v21 = vcombine.low %v2362_v26, %v2366_v28  ;;  %v10697_v41 = vcombine.low %v2363_v29, %v2367_v32  ;;  %v2418_v28 = vld [vmem:[%s12873_s30 + $0xac0] sm:$0xff] }
 0x383   : > { %v10706_v24 = vcombine.high %v2371_v18, %v2375_v10  ;;  %v2422_v29 = vld [vmem:[%s12873_s30 + $0xae0] sm:$0xff]  ;;  %v2419_v32 = vld [vmem:[%s12873_s30 + $0xac8] sm:$0xff] }
 0x385   : > { %8288 = vmatpush1.bf16.msra.mxu0 %v10647_v47  ;;  %8616 = vmatpush1.bf16.msra.mxu1 %v10649_v31  ;;  %v2379_v47 = vld [vmem:[%s12873_s30 + $0x988] sm:$0xff] }
 0x386   : > { %8289 = vmatprep.subr.bf16.mxu0 %v10656_v33  ;;  %8617 = vmatprep.subr.bf16.mxu1 %v10658_v50  ;;  %v2383_v31 = vld [vmem:[%s12873_s30 + $0x9a8] sm:$0xff]  ;;  %v10703_v33 = vcombine.low %v2370_v38, %v2374_v40  ;;  %v10705_v50 = vcombine.low %v2371_v18, %v2375_v10  ;;  %v2426_v40 = vld [vmem:[%s12873_s30 + $0xb00] sm:$0xff] }
 0x387   : > { %v10714_v36 = vcombine.high %v2379_v47, %v2383_v31  ;;  %v2430_v18 = vld [vmem:[%s12873_s30 + $0xb20] sm:$0xff]  ;;  %v2427_v10 = vld [vmem:[%s12873_s30 + $0xb08] sm:$0xff] }
 0x389   : > { %8290 = vmatpush1.bf16.msra.mxu0 %v10655_v17  ;;  %8618 = vmatpush1.bf16.msra.mxu1 %v10657_v42  ;;  %v2387_v17 = vld [vmem:[%s12873_s30 + $0x9c8] sm:$0xff] }
 0x38a   : > { %8300 = vmatprep.subr.bf16.mxu0 %v10664_v43  ;;  %8628 = vmatprep.subr.bf16.mxu1 %v10666_v45  ;;  %v2391_v42 = vld [vmem:[%s12873_s30 + $0x9e8] sm:$0xff]  ;;  %v10711_v43 = vcombine.low %v2378_v25, %v2382_v27  ;;  %v10713_v45 = vcombine.low %v2379_v47, %v2383_v31  ;;  %v2434_v27 = vld [vmem:[%s12873_s30 + $0xb40] sm:$0xff] }
 0x38b   : > { %v10722_v2 = vcombine.high %v2387_v17, %v2391_v42  ;;  %v2438_v47 = vld [vmem:[%s12873_s30 + $0xb60] sm:$0xff]  ;;  %v2435_v31 = vld [vmem:[%s12873_s30 + $0xb48] sm:$0xff] }
 0x38c   : > { %8292 = vmatmul.mubr.bf16.vlgmr.msra.gmra.mrb[0].mxu0 %v13464_v51  ;;  %8620 = vmatmul.mubr.bf16.vlgmr.msra.gmra.mrb[0].mxu1 %v13464_v51 }
 0x38d   : > { %8301 = vmatpush1.bf16.msra.mxu0 %v10663_v60  ;;  %8629 = vmatpush1.bf16.msra.mxu1 %v10665_v61  ;;  %v2399_v60 = vld [vmem:[%s12873_s30 + $0xa28] sm:$0xff]  ;;  %v10719_v61 = vcombine.low %v2386_v39, %v2390_v53  ;;  %v2442_v53 = vld [vmem:[%s12873_s30 + $0xb80] sm:$0xff] }
 0x38e   : > { %8302 = vmatprep.subr.bf16.mxu0 %v10672_v62  ;;  %8630 = vmatprep.subr.bf16.mxu1 %v10674_v63  ;;  %v10721_v62 = vcombine.low %v2387_v17, %v2391_v42  ;;  %v10728_v63 = vcombine.high %v2394_v49, %v2398_v54  ;;  %v10730_v0 = vcombine.high %v2395_v57, %v2399_v60  ;;  %v2446_v17 = vld [vmem:[%s12873_s30 + $0xba0] sm:$0xff]  ;;  %v2443_v42 = vld [vmem:[%s12873_s30 + $0xb88] sm:$0xff] }
 0x38f   : > { %8332 = vmatprep.mubr.bf16.mxu0 %v13470_v3  ;;  %8660 = vmatprep.mubr.bf16.mxu1 %v13470_v3 }
 0x391   : > { %8303 = vmatpush1.bf16.msra.mxu0 %v10671_v6  ;;  %8631 = vmatpush1.bf16.msra.mxu1 %v10673_v7  ;;  %v2407_v6 = vld [vmem:[%s12873_s30 + $0xa68] sm:$0xff]  ;;  %v10727_v7 = vcombine.low %v2394_v49, %v2398_v54  ;;  %v2450_v54 = vld [vmem:[%s12873_s30 + $0xbc0] sm:$0xff] }
 0x392   : > { %8304 = vmatprep.subr.bf16.mxu0 %v10680_v8  ;;  %8632 = vmatprep.subr.bf16.mxu1 %v10682_v55  ;;  %v10729_v8 = vcombine.low %v2395_v57, %v2399_v60  ;;  %v10736_v55 = vcombine.high %v2402_v1, %v2406_v19  ;;  %v10738_v9 = vcombine.high %v2403_v4, %v2407_v6  ;;  %v2454_v57 = vld [vmem:[%s12873_s30 + $0xbe0] sm:$0xff] }
 0x393   : > { %v1991_v60 = vcombine.high %v13448_v46, %v13448_v46  ;;  %v2459_v46 = vld [vmem:[%s12873_s30 + $0xc08] sm:$0xff] }
 0x395   : > { %8305 = vmatpush1.bf16.msra.mxu0 %v10679_v59  ;;  %8633 = vmatpush1.bf16.msra.mxu1 %v10681_v20  ;;  %v2415_v59 = vld [vmem:[%s12873_s30 + $0xaa8] sm:$0xff]  ;;  %v10735_v20 = vcombine.low %v2402_v1, %v2406_v19  ;;  %v10784_v1 = vcombine.high %v2450_v54, %v2454_v57 }
 0x396   : > { %8306 = vmatprep.subr.bf16.mxu0 %v10688_v22  ;;  %8634 = vmatprep.subr.bf16.mxu1 %v10690_v23  ;;  %v10737_v22 = vcombine.low %v2403_v4, %v2407_v6  ;;  %v10744_v23 = vcombine.high %v2410_v11, %v2414_v14  ;;  %v10746_v26 = vcombine.high %v2411_v16, %v2415_v59  ;;  %v2458_v4 = vld [vmem:[%s12873_s30 + $0xc00] sm:$0xff] }
 0x397   : > { %v2462_v6 = vld [vmem:[%s12873_s30 + $0xc20] sm:$0xff] }
 0x399   : > { %8307 = vmatpush1.bf16.msra.mxu0 %v10687_v34  ;;  %8635 = vmatpush1.bf16.msra.mxu1 %v10689_v13  ;;  %v2423_v34 = vld [vmem:[%s12873_s30 + $0xae8] sm:$0xff]  ;;  %v10743_v13 = vcombine.low %v2410_v11, %v2414_v14  ;;  %v10792_v11 = vcombine.high %v2458_v4, %v2462_v6 }
 0x39a   : > { %8308 = vmatprep.subr.bf16.mxu0 %v10696_v15  ;;  %8636 = vmatprep.subr.bf16.mxu1 %v10698_v35  ;;  %v10745_v15 = vcombine.low %v2411_v16, %v2415_v59  ;;  %v10752_v35 = vcombine.high %v2418_v28, %v2422_v29  ;;  %v10754_v38 = vcombine.high %v2419_v32, %v2423_v34  ;;  %v2466_v16 = vld [vmem:[%s12873_s30 + $0xc40] sm:$0xff] }
 0x39b   : > { %v2470_v59 = vld [vmem:[%s12873_s30 + $0xc60] sm:$0xff] }
 0x39d   : > { %8309 = vmatpush1.bf16.msra.mxu0 %v10695_v21  ;;  %8637 = vmatpush1.bf16.msra.mxu1 %v10697_v41  ;;  %v2431_v21 = vld [vmem:[%s12873_s30 + $0xb28] sm:$0xff]  ;;  %v10751_v41 = vcombine.low %v2418_v28, %v2422_v29  ;;  %v10791_v28 = vcombine.low %v2458_v4, %v2462_v6 }
 0x39e   : > { %8310 = vmatprep.subr.bf16.mxu0 %v10704_v44  ;;  %8638 = vmatprep.subr.bf16.mxu1 %v10706_v24  ;;  %v10753_v44 = vcombine.low %v2419_v32, %v2423_v34  ;;  %v10760_v24 = vcombine.high %v2426_v40, %v2430_v18  ;;  %v10762_v25 = vcombine.high %v2427_v10, %v2431_v21 }
 0x39f   : > { %v10800_v32 = vcombine.high %v2466_v16, %v2470_v59 }
 0x3a1   : > { %8311 = vmatpush1.bf16.msra.mxu0 %v10703_v33  ;;  %8639 = vmatpush1.bf16.msra.mxu1 %v10705_v50  ;;  %v2439_v33 = vld [vmem:[%s12873_s30 + $0xb68] sm:$0xff]  ;;  %v10759_v50 = vcombine.low %v2426_v40, %v2430_v18  ;;  %v10799_v40 = vcombine.low %v2466_v16, %v2470_v59 }
 0x3a2   : > { %8312 = vmatprep.subr.bf16.mxu0 %v10712_v52  ;;  %8640 = vmatprep.subr.bf16.mxu1 %v10714_v36  ;;  %v10761_v52 = vcombine.low %v2427_v10, %v2431_v21  ;;  %v10768_v36 = vcombine.high %v2434_v27, %v2438_v47  ;;  %v10770_v39 = vcombine.high %v2435_v31, %v2439_v33 }
 0x3a5   : > { %8313 = vmatpush1.bf16.msra.mxu0 %v10711_v43  ;;  %8641 = vmatpush1.bf16.msra.mxu1 %v10713_v45  ;;  %v2447_v43 = vld [vmem:[%s12873_s30 + $0xba8] sm:$0xff]  ;;  %v10767_v45 = vcombine.low %v2434_v27, %v2438_v47 }
 0x3a6   : > { %8314 = vmatprep.subr.bf16.mxu0 %v10720_v48  ;;  %8642 = vmatprep.subr.bf16.mxu1 %v10722_v2  ;;  %v10769_v48 = vcombine.low %v2435_v31, %v2439_v33  ;;  %v10776_v2 = vcombine.high %v2442_v53, %v2446_v17  ;;  %v10778_v49 = vcombine.high %v2443_v42, %v2447_v43 }
 0x3a9   : > { %8315 = vmatpush1.bf16.msra.mxu0 %v10719_v61  ;;  %8643 = vmatpush1.bf16.msra.mxu1 %v10721_v62  ;;  %v2451_v61 = vld [vmem:[%s12873_s30 + $0xbc8] sm:$0xff] }
 0x3aa   : > { %8316 = vmatprep.subr.bf16.mxu0 %v10728_v63  ;;  %8644 = vmatprep.subr.bf16.mxu1 %v10730_v0  ;;  %v2455_v62 = vld [vmem:[%s12873_s30 + $0xbe8] sm:$0xff]  ;;  %v10775_v63 = vcombine.low %v2442_v53, %v2446_v17  ;;  %v10777_v0 = vcombine.low %v2443_v42, %v2447_v43 }
 0x3ab   : > { %v10786_v19 = vcombine.high %v2451_v61, %v2455_v62 }
 0x3ad   : > { %8317 = vmatpush1.bf16.msra.mxu0 %v10727_v7  ;;  %8645 = vmatpush1.bf16.msra.mxu1 %v10729_v8  ;;  %v13535_v7 = vrot.slane %v1991_v60, %v13311_v5  ;;  %v2463_v8 = vld [vmem:[%s12873_s30 + $0xc28] sm:$0xff] }
 0x3ae   : > { %8318 = vmatprep.subr.bf16.mxu0 %v10736_v55  ;;  %8646 = vmatprep.subr.bf16.mxu1 %v10738_v9  ;;  %v10783_v55 = vcombine.low %v2450_v54, %v2454_v57  ;;  %v10785_v9 = vcombine.low %v2451_v61, %v2455_v62  ;;  %v10794_v14 = vcombine.high %v2459_v46, %v2463_v8  ;;  %v2506_v62 = vld [vmem:[%s12873_s30 + $0xd80] sm:$0xff] }
 0x3af   : > { %v10793_v29 = vcombine.low %v2459_v46, %v2463_v8  ;;  %v2514_v8 = vld [vmem:[%s12873_s30 + $0xdc0] sm:$0xff] }
 0x3b1   : > { %8319 = vmatpush1.bf16.msra.mxu0 %v10735_v20  ;;  %8647 = vmatpush1.bf16.msra.mxu1 %v10737_v22  ;;  %v2007_v20 = vcombine.high %v13535_v7, %v13535_v7  ;;  %v13545_v22 = vpack.c.bf16 %v13454_v37, %v13454_v37  ;;  %v2475_v37 = vld [vmem:[%s12873_s30 + $0xc88] sm:$0xff] }
 0x3b2   : > { %8320 = vmatprep.subr.bf16.mxu0 %v10744_v23  ;;  %8648 = vmatprep.subr.bf16.mxu1 %v10746_v26  ;;  %v2467_v23 = vld [vmem:[%s12873_s30 + $0xc48] sm:$0xff] }
 0x3b3   : > { %v2471_v26 = vld [vmem:[%s12873_s30 + $0xc68] sm:$0xff] }
 0x3b4   : > { %v10802_v34 = vcombine.high %v2467_v23, %v2471_v26  ;;  %v10801_v18 = vcombine.low %v2467_v23, %v2471_v26  ;;  %v2522_v23 = vld [vmem:[%s12873_s30 + $0xe00] sm:$0xff] }
 0x3b5   : > { %8321 = vmatpush1.bf16.msra.mxu0 %v10743_v13  ;;  %8649 = vmatpush1.bf16.msra.mxu1 %v10745_v15  ;;  %v2474_v13 = vld [vmem:[%s12873_s30 + $0xc80] sm:$0xff] }
 0x3b6   : > { %8322 = vmatprep.subr.bf16.mxu0 %v10752_v35  ;;  %8650 = vmatprep.subr.bf16.mxu1 %v10754_v38  ;;  %v2478_v15 = vld [vmem:[%s12873_s30 + $0xca0] sm:$0xff]  ;;  %v13551_v35 = vpack.c.bf16 %v2007_v20, %v2007_v20  ;;  %v2479_v38 = vld [vmem:[%s12873_s30 + $0xca8] sm:$0xff] }
 0x3b7   : > { %v10808_v10 = vcombine.high %v2474_v13, %v2478_v15  ;;  %v10810_v21 = vcombine.high %v2475_v37, %v2479_v38  ;;  %v10807_v27 = vcombine.low %v2474_v13, %v2478_v15  ;;  %v10809_v47 = vcombine.low %v2475_v37, %v2479_v38  ;;  %v2526_v26 = vld [vmem:[%s12873_s30 + $0xe20] sm:$0xff] }
 0x3b8   : > { %v10856_v13 = vcombine.high %v2522_v23, %v2526_v26  ;;  %v2530_v37 = vld [vmem:[%s12873_s30 + $0xe40] sm:$0xff] }
 0x3b9   : > { %8323 = vmatpush1.bf16.msra.mxu0 %v10751_v41  ;;  %8651 = vmatpush1.bf16.msra.mxu1 %v10753_v44  ;;  %v2482_v41 = vld [vmem:[%s12873_s30 + $0xcc0] sm:$0xff] }
 0x3ba   : > { %8324 = vmatprep.subr.bf16.mxu0 %v10760_v24  ;;  %8652 = vmatprep.subr.bf16.mxu1 %v10762_v25  ;;  %v2486_v44 = vld [vmem:[%s12873_s30 + $0xce0] sm:$0xff]  ;;  %v2483_v24 = vld [vmem:[%s12873_s30 + $0xcc8] sm:$0xff] }
 0x3bb   : > { %v2487_v25 = vld [vmem:[%s12873_s30 + $0xce8] sm:$0xff]  ;;  %v10816_v31 = vcombine.high %v2482_v41, %v2486_v44  ;;  %v10815_v53 = vcombine.low %v2482_v41, %v2486_v44  ;;  %v2534_v38 = vld [vmem:[%s12873_s30 + $0xe60] sm:$0xff] }
 0x3bc   : > { %v10818_v33 = vcombine.high %v2483_v24, %v2487_v25  ;;  %v10817_v17 = vcombine.low %v2483_v24, %v2487_v25  ;;  %v10864_v41 = vcombine.high %v2530_v37, %v2534_v38  ;;  %v2538_v24 = vld [vmem:[%s12873_s30 + $0xe80] sm:$0xff] }
 0x3bd   : > { %8325 = vmatpush1.bf16.msra.mxu0 %v10759_v50  ;;  %8653 = vmatpush1.bf16.msra.mxu1 %v10761_v52  ;;  %v2490_v50 = vld [vmem:[%s12873_s30 + $0xd00] sm:$0xff] }
 0x3be   : > { %8326 = vmatprep.subr.bf16.mxu0 %v10768_v36  ;;  %8654 = vmatprep.subr.bf16.mxu1 %v10770_v39  ;;  %v2494_v52 = vld [vmem:[%s12873_s30 + $0xd20] sm:$0xff]  ;;  %v2491_v36 = vld [vmem:[%s12873_s30 + $0xd08] sm:$0xff] }
 0x3bf   : > { %v2495_v39 = vld [vmem:[%s12873_s30 + $0xd28] sm:$0xff]  ;;  %v10824_v42 = vcombine.high %v2490_v50, %v2494_v52  ;;  %v10823_v54 = vcombine.low %v2490_v50, %v2494_v52  ;;  %v2542_v25 = vld [vmem:[%s12873_s30 + $0xea0] sm:$0xff] }
 0x3c0   : > { %v10826_v43 = vcombine.high %v2491_v36, %v2495_v39  ;;  %v10825_v57 = vcombine.low %v2491_v36, %v2495_v39  ;;  %v10872_v50 = vcombine.high %v2538_v24, %v2542_v25  ;;  %v2546_v36 = vld [vmem:[%s12873_s30 + $0xec0] sm:$0xff] }
 0x3c1   : > { %8327 = vmatpush1.bf16.msra.mxu0 %v10767_v45  ;;  %8655 = vmatpush1.bf16.msra.mxu1 %v10769_v48  ;;  %v2498_v45 = vld [vmem:[%s12873_s30 + $0xd40] sm:$0xff] }
 0x3c2   : > { %8328 = vmatprep.subr.bf16.mxu0 %v10776_v2  ;;  %8656 = vmatprep.subr.bf16.mxu1 %v10778_v49  ;;  %v2502_v48 = vld [vmem:[%s12873_s30 + $0xd60] sm:$0xff]  ;;  %v2499_v2 = vld [vmem:[%s12873_s30 + $0xd48] sm:$0xff] }
 0x3c3   : > { %v2503_v49 = vld [vmem:[%s12873_s30 + $0xd68] sm:$0xff]  ;;  %v10832_v60 = vcombine.high %v2498_v45, %v2502_v48  ;;  %v2550_v39 = vld [vmem:[%s12873_s30 + $0xee0] sm:$0xff] }
 0x3c4   : > { %v10834_v61 = vcombine.high %v2499_v2, %v2503_v49  ;;  %v10833_v4 = vcombine.low %v2499_v2, %v2503_v49  ;;  %v2554_v2 = vld [vmem:[%s12873_s30 + $0xf00] sm:$0xff] }
 0x3c5   : > { %8329 = vmatpush1.bf16.msra.mxu0 %v10775_v63  ;;  %8657 = vmatpush1.bf16.msra.mxu1 %v10777_v0  ;;  %v2510_v63 = vld [vmem:[%s12873_s30 + $0xda0] sm:$0xff]  ;;  %v2507_v0 = vld [vmem:[%s12873_s30 + $0xd88] sm:$0xff] }
 0x3c6   : > { %8330 = vmatprep.subr.bf16.mxu0 %v10784_v1  ;;  %8658 = vmatprep.subr.bf16.mxu1 %v10786_v19  ;;  %v2511_v1 = vld [vmem:[%s12873_s30 + $0xda8] sm:$0xff]  ;;  %v10831_v19 = vcombine.low %v2498_v45, %v2502_v48  ;;  %v10840_v6 = vcombine.high %v2506_v62, %v2510_v63  ;;  %v10880_v45 = vcombine.high %v2546_v36, %v2550_v39  ;;  %v2558_v49 = vld [vmem:[%s12873_s30 + $0xf20] sm:$0xff] }
 0x3c7   : > { %v10842_v46 = vcombine.high %v2507_v0, %v2511_v1  ;;  %v10841_v16 = vcombine.low %v2507_v0, %v2511_v1  ;;  %v2562_v0 = vld [vmem:[%s12873_s30 + $0xf40] sm:$0xff] }
 0x3c8   : > { %v2566_v1 = vld [vmem:[%s12873_s30 + $0xf60] sm:$0xff] }
 0x3c9   : > { %8331 = vmatpush1.bf16.msra.mxu0 %v10783_v55  ;;  %8659 = vmatpush1.bf16.msra.mxu1 %v10785_v9  ;;  %v2518_v55 = vld [vmem:[%s12873_s30 + $0xde0] sm:$0xff]  ;;  %v2515_v9 = vld [vmem:[%s12873_s30 + $0xdc8] sm:$0xff] }
 0x3ca   : > { %8341 = vmatprep.subr.bf16.mxu0 %v10792_v11  ;;  %8669 = vmatprep.subr.bf16.mxu1 %v10794_v14  ;;  %v2519_v11 = vld [vmem:[%s12873_s30 + $0xde8] sm:$0xff]  ;;  %v10839_v14 = vcombine.low %v2506_v62, %v2510_v63  ;;  %v10848_v59 = vcombine.high %v2514_v8, %v2518_v55  ;;  %v10888_v62 = vcombine.high %v2554_v2, %v2558_v49 }
 0x3cb   : > { %v10850_v20 = vcombine.high %v2515_v9, %v2519_v11 }
 0x3cc   : > { %8333 = vmatmul.mubr.bf16.vlgmr.msra.gmra.mrb[0].mxu0 %v13545_v22  ;;  %8661 = vmatmul.mubr.bf16.vlgmr.msra.gmra.mrb[0].mxu1 %v13545_v22 }
 0x3cd   : > { %8342 = vmatpush1.bf16.msra.mxu0 %v10791_v28  ;;  %8670 = vmatpush1.bf16.msra.mxu1 %v10793_v29  ;;  %v2523_v28 = vld [vmem:[%s12873_s30 + $0xe08] sm:$0xff] }
 0x3ce   : > { %8343 = vmatprep.subr.bf16.mxu0 %v10800_v32  ;;  %8671 = vmatprep.subr.bf16.mxu1 %v10802_v34  ;;  %v2527_v29 = vld [vmem:[%s12873_s30 + $0xe28] sm:$0xff]  ;;  %v10847_v32 = vcombine.low %v2514_v8, %v2518_v55  ;;  %v10849_v34 = vcombine.low %v2515_v9, %v2519_v11  ;;  %v10896_v8 = vcombine.high %v2562_v0, %v2566_v1  ;;  %v2570_v9 = vld [vmem:[%s12873_s30 + $0xf80] sm:$0xff] }
 0x3cf   : > { %8373 = vmatprep.mubr.bf16.mxu0 %v13551_v35  ;;  %8701 = vmatprep.mubr.bf16.mxu1 %v13551_v35  ;;  %v10858_v15 = vcombine.high %v2523_v28, %v2527_v29  ;;  %v2574_v11 = vld [vmem:[%s12873_s30 + $0xfa0] sm:$0xff] }
 0x3d1   : > { %8344 = vmatpush1.bf16.msra.mxu0 %v10799_v40  ;;  %8672 = vmatpush1.bf16.msra.mxu1 %v10801_v18  ;;  %v2531_v40 = vld [vmem:[%s12873_s30 + $0xe48] sm:$0xff] }
 0x3d2   : > { %8345 = vmatprep.subr.bf16.mxu0 %v10808_v10  ;;  %8673 = vmatprep.subr.bf16.mxu1 %v10810_v21  ;;  %v2535_v18 = vld [vmem:[%s12873_s30 + $0xe68] sm:$0xff]  ;;  %v10855_v10 = vcombine.low %v2522_v23, %v2526_v26  ;;  %v10857_v21 = vcombine.low %v2523_v28, %v2527_v29  ;;  %v10904_v23 = vcombine.high %v2570_v9, %v2574_v11  ;;  %v2578_v28 = vld [vmem:[%s12873_s30 + $0xfc0] sm:$0xff] }
 0x3d3   : > { %v10866_v44 = vcombine.high %v2531_v40, %v2535_v18  ;;  %v2582_v29 = vld [vmem:[%s12873_s30 + $0xfe0] sm:$0xff] }
 0x3d5   : > { %8346 = vmatpush1.bf16.msra.mxu0 %v10807_v27  ;;  %8674 = vmatpush1.bf16.msra.mxu1 %v10809_v47  ;;  %v2539_v27 = vld [vmem:[%s12873_s30 + $0xe88] sm:$0xff] }
 0x3d6   : > { %8347 = vmatprep.subr.bf16.mxu0 %v10816_v31  ;;  %8675 = vmatprep.subr.bf16.mxu1 %v10818_v33  ;;  %v2543_v47 = vld [vmem:[%s12873_s30 + $0xea8] sm:$0xff]  ;;  %v10863_v31 = vcombine.low %v2530_v37, %v2534_v38  ;;  %v10865_v33 = vcombine.low %v2531_v40, %v2535_v18  ;;  %v10912_v38 = vcombine.high %v2578_v28, %v2582_v29  ;;  %v2586_v18 = vld [vmem:[%s12873_s30 + $0x1000] sm:$0xff] }
 0x3d7   : > { %v10874_v52 = vcombine.high %v2539_v27, %v2543_v47 }
 0x3d9   : > { %8348 = vmatpush1.bf16.msra.mxu0 %v10815_v53  ;;  %8676 = vmatpush1.bf16.msra.mxu1 %v10817_v17  ;;  %v2547_v53 = vld [vmem:[%s12873_s30 + $0xec8] sm:$0xff] }
 0x3da   : > { %8349 = vmatprep.subr.bf16.mxu0 %v10824_v42  ;;  %8677 = vmatprep.subr.bf16.mxu1 %v10826_v43  ;;  %v2551_v17 = vld [vmem:[%s12873_s30 + $0xee8] sm:$0xff]  ;;  %v10871_v42 = vcombine.low %v2538_v24, %v2542_v25  ;;  %v10873_v43 = vcombine.low %v2539_v27, %v2543_v47  ;;  %v10911_v24 = vcombine.low %v2578_v28, %v2582_v29 }
 0x3db   : > { %v10882_v48 = vcombine.high %v2547_v53, %v2551_v17  ;;  %v2627_v28 = vld [vmem:[%s12873_s30 + $0x1148] sm:$0xff] }
 0x3dc   : > { %v2631_v29 = vld [vmem:[%s12873_s30 + $0x1168] sm:$0xff] }
 0x3dd   : > { %8350 = vmatpush1.bf16.msra.mxu0 %v10823_v54  ;;  %8678 = vmatpush1.bf16.msra.mxu1 %v10825_v57  ;;  %v2555_v54 = vld [vmem:[%s12873_s30 + $0xf08] sm:$0xff] }
 0x3de   : > { %8351 = vmatprep.subr.bf16.mxu0 %v10832_v60  ;;  %8679 = vmatprep.subr.bf16.mxu1 %v10834_v61  ;;  %v2559_v57 = vld [vmem:[%s12873_s30 + $0xf28] sm:$0xff]  ;;  %v10879_v60 = vcombine.low %v2546_v36, %v2550_v39  ;;  %v10881_v61 = vcombine.low %v2547_v53, %v2551_v17 }
 0x3df   : > { %v10890_v63 = vcombine.high %v2555_v54, %v2559_v57  ;;  %v2595_v36 = vld [vmem:[%s12873_s30 + $0x1048] sm:$0xff] }
 0x3e0   : > { %v2599_v39 = vld [vmem:[%s12873_s30 + $0x1068] sm:$0xff] }
 0x3e1   : > { %8352 = vmatpush1.bf16.msra.mxu0 %v10831_v19  ;;  %8680 = vmatpush1.bf16.msra.mxu1 %v10833_v4  ;;  %v2563_v19 = vld [vmem:[%s12873_s30 + $0xf48] sm:$0xff] }
 0x3e2   : > { %8353 = vmatprep.subr.bf16.mxu0 %v10840_v6  ;;  %8681 = vmatprep.subr.bf16.mxu1 %v10842_v46  ;;  %v2567_v4 = vld [vmem:[%s12873_s30 + $0xf68] sm:$0xff]  ;;  %v10887_v6 = vcombine.low %v2554_v2, %v2558_v49  ;;  %v10889_v46 = vcombine.low %v2555_v54, %v2559_v57  ;;  %v10929_v57 = vcombine.low %v2595_v36, %v2599_v39 }
 0x3e3   : > { %v10898_v55 = vcombine.high %v2563_v19, %v2567_v4  ;;  %v2607_v49 = vld [vmem:[%s12873_s30 + $0x10a8] sm:$0xff] }
 0x3e5   : > { %8354 = vmatpush1.bf16.msra.mxu0 %v10839_v14  ;;  %8682 = vmatpush1.bf16.msra.mxu1 %v10841_v16  ;;  %v2571_v14 = vld [vmem:[%s12873_s30 + $0xf88] sm:$0xff] }
 0x3e6   : > { %8355 = vmatprep.subr.bf16.mxu0 %v10848_v59  ;;  %8683 = vmatprep.subr.bf16.mxu1 %v10850_v20  ;;  %v2575_v16 = vld [vmem:[%s12873_s30 + $0xfa8] sm:$0xff]  ;;  %v10895_v59 = vcombine.low %v2562_v0, %v2566_v1  ;;  %v10897_v20 = vcombine.low %v2563_v19, %v2567_v4 }
 0x3e7   : > { %v10906_v26 = vcombine.high %v2571_v14, %v2575_v16  ;;  %v10905_v37 = vcombine.low %v2571_v14, %v2575_v16  ;;  %v2611_v0 = vld [vmem:[%s12873_s30 + $0x10c8] sm:$0xff] }
 0x3e8   : > { %v2615_v1 = vld [vmem:[%s12873_s30 + $0x10e8] sm:$0xff] }
 0x3e9   : > { %8356 = vmatpush1.bf16.msra.mxu0 %v10847_v32  ;;  %8684 = vmatpush1.bf16.msra.mxu1 %v10849_v34  ;;  %v2579_v32 = vld [vmem:[%s12873_s30 + $0xfc8] sm:$0xff]  ;;  %v10945_v16 = vcombine.low %v2611_v0, %v2615_v1 }
 0x3ea   : > { %8357 = vmatprep.subr.bf16.mxu0 %v10856_v13  ;;  %8685 = vmatprep.subr.bf16.mxu1 %v10858_v15  ;;  %v2583_v34 = vld [vmem:[%s12873_s30 + $0xfe8] sm:$0xff]  ;;  %v13612_v13 = vld [vmem:[%s13315_s15 + $0x10] sm:$0xff]  ;;  %v10903_v15 = vcombine.low %v2570_v9, %v2574_v11 }
 0x3eb   : > { %v10914_v40 = vcombine.high %v2579_v32, %v2583_v34  ;;  %v10913_v25 = vcombine.low %v2579_v32, %v2583_v34  ;;  %v2619_v9 = vld [vmem:[%s12873_s30 + $0x1108] sm:$0xff] }
 0x3ec   : > { %v2623_v11 = vld [vmem:[%s12873_s30 + $0x1128] sm:$0xff] }
 0x3ed   : > { %8358 = vmatpush1.bf16.msra.mxu0 %v10855_v10  ;;  %8686 = vmatpush1.bf16.msra.mxu1 %v10857_v21  ;;  %v2590_v10 = vld [vmem:[%s12873_s30 + $0x1020] sm:$0xff]  ;;  %v13618_v21 = vrot.slane %v13612_v13, %v13311_v5  ;;  %v10953_v34 = vcombine.low %v2619_v9, %v2623_v11 }
 0x3ee   : > { %8359 = vmatprep.subr.bf16.mxu0 %v10864_v41  ;;  %8687 = vmatprep.subr.bf16.mxu1 %v10866_v44  ;;  %v2587_v41 = vld [vmem:[%s12873_s30 + $0x1008] sm:$0xff]  ;;  %v10920_v27 = vcombine.high %v2586_v18, %v2590_v10  ;;  %v10919_v53 = vcombine.low %v2586_v18, %v2590_v10 }
 0x3ef   : > { %v2591_v44 = vld [vmem:[%s12873_s30 + $0x1028] sm:$0xff] }
 0x3f0   : > { %v10922_v47 = vcombine.high %v2587_v41, %v2591_v44  ;;  %v10921_v17 = vcombine.low %v2587_v41, %v2591_v44  ;;  %v2635_v18 = vld [vmem:[%s12873_s30 + $0x1188] sm:$0xff]  ;;  %v10961_v44 = vcombine.low %v2627_v28, %v2631_v29 }
 0x3f1   : > { %8360 = vmatpush1.bf16.msra.mxu0 %v10863_v31  ;;  %8688 = vmatpush1.bf16.msra.mxu1 %v10865_v33  ;;  %v2594_v31 = vld [vmem:[%s12873_s30 + $0x1040] sm:$0xff]  ;;  %v2639_v10 = vld [vmem:[%s12873_s30 + $0x11a8] sm:$0xff] }
 0x3f2   : > { %8361 = vmatprep.subr.bf16.mxu0 %v10872_v50  ;;  %8689 = vmatprep.subr.bf16.mxu1 %v10874_v52  ;;  %v2598_v33 = vld [vmem:[%s12873_s30 + $0x1060] sm:$0xff]  ;;  %v2023_v50 = vcombine.high %v13618_v21, %v13618_v21  ;;  %v13628_v52 = vpack.c.bf16 %v13535_v7, %v13535_v7  ;;  %v2603_v7 = vld [vmem:[%s12873_s30 + $0x1088] sm:$0xff] }
 0x3f3   : > { %v10927_v54 = vcombine.low %v2594_v31, %v2598_v33  ;;  %v10937_v4 = vcombine.low %v2603_v7, %v2607_v49 }
 0x3f4   : > { %v13634_v2 = vpack.c.bf16 %v2023_v50, %v2023_v50 }
 0x3f5   : > { %8362 = vmatpush1.bf16.msra.mxu0 %v10871_v42  ;;  %8690 = vmatpush1.bf16.msra.mxu1 %v10873_v43  ;;  %v10928_v42 = vcombine.high %v2594_v31, %v2598_v33  ;;  %v10930_v43 = vcombine.high %v2595_v36, %v2599_v39  ;;  %v2643_v31 = vld [vmem:[%s12873_s30 + $0x11c8] sm:$0xff]  ;;  %v10969_v36 = vcombine.low %v2635_v18, %v2639_v10 }
 0x3f6   : > { %8363 = vmatprep.subr.bf16.mxu0 %v10880_v45  ;;  %8691 = vmatprep.subr.bf16.mxu1 %v10882_v48  ;;  %v2602_v45 = vld [vmem:[%s12873_s30 + $0x1080] sm:$0xff]  ;;  %v2647_v33 = vld [vmem:[%s12873_s30 + $0x11e8] sm:$0xff] }
 0x3f7   : > { %v2606_v48 = vld [vmem:[%s12873_s30 + $0x10a0] sm:$0xff] }
 0x3f8   : > { %v10935_v19 = vcombine.low %v2602_v45, %v2606_v48 }
 0x3f9   : > { %8364 = vmatpush1.bf16.msra.mxu0 %v10879_v60  ;;  %8692 = vmatpush1.bf16.msra.mxu1 %v10881_v61  ;;  %v10936_v60 = vcombine.high %v2602_v45, %v2606_v48  ;;  %v10938_v61 = vcombine.high %v2603_v7, %v2607_v49  ;;  %v2655_v45 = vld [vmem:[%s12873_s30 + $0x1228] sm:$0xff]  ;;  %v10977_v7 = vcombine.low %v2643_v31, %v2647_v33 }
 0x3fa   : > { %8365 = vmatprep.subr.bf16.mxu0 %v10888_v62  ;;  %8693 = vmatprep.subr.bf16.mxu1 %v10890_v63  ;;  %v2610_v62 = vld [vmem:[%s12873_s30 + $0x10c0] sm:$0xff] }
 0x3fb   : > { %v2614_v63 = vld [vmem:[%s12873_s30 + $0x10e0] sm:$0xff] }
 0x3fc   : > { %v10943_v14 = vcombine.low %v2610_v62, %v2614_v63 }
 0x3fd   : > { %8366 = vmatpush1.bf16.msra.mxu0 %v10887_v6  ;;  %8694 = vmatpush1.bf16.msra.mxu1 %v10889_v46  ;;  %v10944_v6 = vcombine.high %v2610_v62, %v2614_v63  ;;  %v10946_v46 = vcombine.high %v2611_v0, %v2615_v1  ;;  %v2663_v62 = vld [vmem:[%s12873_s30 + $0x1268] sm:$0xff] }
 0x3fe   : > { %8367 = vmatprep.subr.bf16.mxu0 %v10896_v8  ;;  %8695 = vmatprep.subr.bf16.mxu1 %v10898_v55  ;;  %v2618_v8 = vld [vmem:[%s12873_s30 + $0x1100] sm:$0xff] }
 0x3ff   : > { %v2622_v55 = vld [vmem:[%s12873_s30 + $0x1120] sm:$0xff] }
 0x400   : > { %v10951_v32 = vcombine.low %v2618_v8, %v2622_v55 }
 0x401   : > { %8368 = vmatpush1.bf16.msra.mxu0 %v10895_v59  ;;  %8696 = vmatpush1.bf16.msra.mxu1 %v10897_v20  ;;  %v10952_v59 = vcombine.high %v2618_v8, %v2622_v55  ;;  %v10954_v20 = vcombine.high %v2619_v9, %v2623_v11  ;;  %v2671_v8 = vld [vmem:[%s12873_s30 + $0x12a8] sm:$0xff] }
 0x402   : > { %8369 = vmatprep.subr.bf16.mxu0 %v10904_v23  ;;  %8697 = vmatprep.subr.bf16.mxu1 %v10906_v26  ;;  %v2626_v23 = vld [vmem:[%s12873_s30 + $0x1140] sm:$0xff] }
 0x403   : > { %v2630_v26 = vld [vmem:[%s12873_s30 + $0x1160] sm:$0xff] }
 0x404   : > { %v10959_v41 = vcombine.low %v2626_v23, %v2630_v26 }
 0x405   : > { %8370 = vmatpush1.bf16.msra.mxu0 %v10903_v15  ;;  %8698 = vmatpush1.bf16.msra.mxu1 %v10905_v37  ;;  %v10960_v15 = vcombine.high %v2626_v23, %v2630_v26  ;;  %v10962_v37 = vcombine.high %v2627_v28, %v2631_v29  ;;  %v2679_v23 = vld [vmem:[%s12873_s30 + $0x12e8] sm:$0xff] }
 0x406   : > { %8371 = vmatprep.subr.bf16.mxu0 %v10912_v38  ;;  %8699 = vmatprep.subr.bf16.mxu1 %v10914_v40  ;;  %v2634_v38 = vld [vmem:[%s12873_s30 + $0x1180] sm:$0xff] }
 0x407   : > { %v2638_v40 = vld [vmem:[%s12873_s30 + $0x11a0] sm:$0xff] }
 0x408   : > { %v10967_v50 = vcombine.low %v2634_v38, %v2638_v40 }
 0x409   : > { %8372 = vmatpush1.bf16.msra.mxu0 %v10911_v24  ;;  %8700 = vmatpush1.bf16.msra.mxu1 %v10913_v25  ;;  %v10968_v24 = vcombine.high %v2634_v38, %v2638_v40  ;;  %v10970_v25 = vcombine.high %v2635_v18, %v2639_v10  ;;  %v2687_v38 = vld [vmem:[%s12873_s30 + $0x1328] sm:$0xff] }
 0x40a   : > { %8382 = vmatprep.subr.bf16.mxu0 %v10920_v27  ;;  %8710 = vmatprep.subr.bf16.mxu1 %v10922_v47  ;;  %v2642_v27 = vld [vmem:[%s12873_s30 + $0x11c0] sm:$0xff] }
 0x40b   : > { %v2646_v47 = vld [vmem:[%s12873_s30 + $0x11e0] sm:$0xff] }
 0x40c   : > { %8374 = vmatmul.mubr.bf16.vlgmr.msra.gmra.mrb[0].mxu0 %v13628_v52  ;;  %8702 = vmatmul.mubr.bf16.vlgmr.msra.gmra.mrb[0].mxu1 %v13628_v52  ;;  %v10976_v39 = vcombine.high %v2642_v27, %v2646_v47  ;;  %v10975_v48 = vcombine.low %v2642_v27, %v2646_v47  ;;  %v2695_v27 = vld [vmem:[%s12873_s30 + $0x1368] sm:$0xff] }
 0x40d   : > { %8383 = vmatpush1.bf16.msra.mxu0 %v10919_v53  ;;  %8711 = vmatpush1.bf16.msra.mxu1 %v10921_v17  ;;  %v10978_v53 = vcombine.high %v2643_v31, %v2647_v33  ;;  %v2650_v17 = vld [vmem:[%s12873_s30 + $0x1200] sm:$0xff] }
 0x40e   : > { %8384 = vmatprep.subr.bf16.mxu0 %v10928_v42  ;;  %8712 = vmatprep.subr.bf16.mxu1 %v10930_v43  ;;  %v2654_v42 = vld [vmem:[%s12873_s30 + $0x1220] sm:$0xff]  ;;  %v2651_v43 = vld [vmem:[%s12873_s30 + $0x1208] sm:$0xff] }
 0x40f   : > { %8414 = vmatprep.mubr.bf16.mxu0 %v13634_v2  ;;  %8742 = vmatprep.mubr.bf16.mxu1 %v13634_v2  ;;  %v10984_v49 = vcombine.high %v2650_v17, %v2654_v42  ;;  %v10983_v63 = vcombine.low %v2650_v17, %v2654_v42  ;;  %v10985_v0 = vcombine.low %v2651_v43, %v2655_v45  ;;  %v2703_v17 = vld [vmem:[%s12873_s30 + $0x13a8] sm:$0xff] }
 0x411   : > { %8385 = vmatpush1.bf16.msra.mxu0 %v10927_v54  ;;  %8713 = vmatpush1.bf16.msra.mxu1 %v10929_v57  ;;  %v10986_v54 = vcombine.high %v2651_v43, %v2655_v45  ;;  %v2658_v57 = vld [vmem:[%s12873_s30 + $0x1240] sm:$0xff] }
 0x412   : > { %8386 = vmatprep.subr.bf16.mxu0 %v10936_v60  ;;  %8714 = vmatprep.subr.bf16.mxu1 %v10938_v61  ;;  %v2662_v60 = vld [vmem:[%s12873_s30 + $0x1260] sm:$0xff]  ;;  %v2659_v61 = vld [vmem:[%s12873_s30 + $0x1248] sm:$0xff] }
 0x413   : > { %v10992_v1 = vcombine.high %v2658_v57, %v2662_v60  ;;  %v10991_v55 = vcombine.low %v2658_v57, %v2662_v60  ;;  %v10993_v9 = vcombine.low %v2659_v61, %v2663_v62  ;;  %v2707_v57 = vld [vmem:[%s12873_s30 + $0x13c8] sm:$0xff] }
 0x414   : > { %v2711_v60 = vld [vmem:[%s12873_s30 + $0x13e8] sm:$0xff] }
 0x415   : > { %8387 = vmatpush1.bf16.msra.mxu0 %v10935_v19  ;;  %8715 = vmatpush1.bf16.msra.mxu1 %v10937_v4  ;;  %v10994_v19 = vcombine.high %v2659_v61, %v2663_v62  ;;  %v2666_v4 = vld [vmem:[%s12873_s30 + $0x1280] sm:$0xff] }
 0x416   : > { %8388 = vmatprep.subr.bf16.mxu0 %v10944_v6  ;;  %8716 = vmatprep.subr.bf16.mxu1 %v10946_v46  ;;  %v2670_v6 = vld [vmem:[%s12873_s30 + $0x12a0] sm:$0xff]  ;;  %v2667_v46 = vld [vmem:[%s12873_s30 + $0x1288] sm:$0xff] }
 0x417   : > { %v11000_v11 = vcombine.high %v2666_v4, %v2670_v6  ;;  %v10999_v26 = vcombine.low %v2666_v4, %v2670_v6  ;;  %v11001_v28 = vcombine.low %v2667_v46, %v2671_v8  ;;  %v2719_v6 = vld [vmem:[%s12873_s30 + $0x1428] sm:$0xff] }
 0x419   : > { %8389 = vmatpush1.bf16.msra.mxu0 %v10943_v14  ;;  %8717 = vmatpush1.bf16.msra.mxu1 %v10945_v16  ;;  %v11002_v14 = vcombine.high %v2667_v46, %v2671_v8  ;;  %v2674_v16 = vld [vmem:[%s12873_s30 + $0x12c0] sm:$0xff]  ;;  %v11041_v8 = vcombine.low %v2707_v57, %v2711_v60 }
 0x41a   : > { %8390 = vmatprep.subr.bf16.mxu0 %v10952_v59  ;;  %8718 = vmatprep.subr.bf16.mxu1 %v10954_v20  ;;  %v2678_v59 = vld [vmem:[%s12873_s30 + $0x12e0] sm:$0xff]  ;;  %v2675_v20 = vld [vmem:[%s12873_s30 + $0x12c8] sm:$0xff] }
 0x41b   : > { %v11008_v29 = vcombine.high %v2674_v16, %v2678_v59  ;;  %v11007_v40 = vcombine.low %v2674_v16, %v2678_v59  ;;  %v11009_v18 = vcombine.low %v2675_v20, %v2679_v23  ;;  %v13709_v59 = vpack.c.bf16 %v13618_v21, %v13618_v21  ;;  %v2731_v21 = vld [vmem:[%s12873_s30 + $0x1488] sm:$0xff] }
 0x41d   : > { %8391 = vmatpush1.bf16.msra.mxu0 %v10951_v32  ;;  %8719 = vmatpush1.bf16.msra.mxu1 %v10953_v34  ;;  %v11010_v32 = vcombine.high %v2675_v20, %v2679_v23  ;;  %v2682_v34 = vld [vmem:[%s12873_s30 + $0x1300] sm:$0xff]  ;;  %v2723_v20 = vld [vmem:[%s12873_s30 + $0x1448] sm:$0xff] }
 0x41e   : > { %8392 = vmatprep.subr.bf16.mxu0 %v10960_v15  ;;  %8720 = vmatprep.subr.bf16.mxu1 %v10962_v37  ;;  %v2686_v15 = vld [vmem:[%s12873_s30 + $0x1320] sm:$0xff]  ;;  %v2683_v37 = vld [vmem:[%s12873_s30 + $0x1308] sm:$0xff] }
 0x41f   : > { %v11016_v10 = vcombine.high %v2682_v34, %v2686_v15  ;;  %v11015_v47 = vcombine.low %v2682_v34, %v2686_v15  ;;  %v11017_v31 = vcombine.low %v2683_v37, %v2687_v38  ;;  %v2727_v23 = vld [vmem:[%s12873_s30 + $0x1468] sm:$0xff]  ;;  %v2730_v34 = vld [vmem:[%s12873_s30 + $0x1480] sm:$0xff] }
 0x420   : > { %v2734_v15 = vld [vmem:[%s12873_s30 + $0x14a0] sm:$0xff] }
 0x421   : > { %8393 = vmatpush1.bf16.msra.mxu0 %v10959_v41  ;;  %8721 = vmatpush1.bf16.msra.mxu1 %v10961_v44  ;;  %v11018_v41 = vcombine.high %v2683_v37, %v2687_v38  ;;  %v2690_v44 = vld [vmem:[%s12873_s30 + $0x1340] sm:$0xff]  ;;  %v2735_v38 = vld [vmem:[%s12873_s30 + $0x14a8] sm:$0xff] }
 0x422   : > { %8394 = vmatprep.subr.bf16.mxu0 %v10968_v24  ;;  %8722 = vmatprep.subr.bf16.mxu1 %v10970_v25  ;;  %v2694_v24 = vld [vmem:[%s12873_s30 + $0x1360] sm:$0xff]  ;;  %v2691_v25 = vld [vmem:[%s12873_s30 + $0x1348] sm:$0xff] }
 0x423   : > { %v11024_v33 = vcombine.high %v2690_v44, %v2694_v24  ;;  %v11023_v42 = vcombine.low %v2690_v44, %v2694_v24  ;;  %v11025_v43 = vcombine.low %v2691_v25, %v2695_v27  ;;  %v2738_v44 = vld [vmem:[%s12873_s30 + $0x14c0] sm:$0xff] }
 0x424   : > { %v2742_v24 = vld [vmem:[%s12873_s30 + $0x14e0] sm:$0xff] }
 0x425   : > { %8395 = vmatpush1.bf16.msra.mxu0 %v10967_v50  ;;  %8723 = vmatpush1.bf16.msra.mxu1 %v10969_v36  ;;  %v11026_v50 = vcombine.high %v2691_v25, %v2695_v27  ;;  %v2698_v36 = vld [vmem:[%s12873_s30 + $0x1380] sm:$0xff]  ;;  %v2739_v25 = vld [vmem:[%s12873_s30 + $0x14c8] sm:$0xff] }
 0x426   : > { %8396 = vmatprep.subr.bf16.mxu0 %v10976_v39  ;;  %8724 = vmatprep.subr.bf16.mxu1 %v10978_v53  ;;  %v2702_v39 = vld [vmem:[%s12873_s30 + $0x13a0] sm:$0xff]  ;;  %v2699_v53 = vld [vmem:[%s12873_s30 + $0x1388] sm:$0xff] }
 0x427   : > { %v11032_v45 = vcombine.high %v2698_v36, %v2702_v39  ;;  %v11031_v61 = vcombine.low %v2698_v36, %v2702_v39  ;;  %v11033_v62 = vcombine.low %v2699_v53, %v2703_v17  ;;  %v2743_v27 = vld [vmem:[%s12873_s30 + $0x14e8] sm:$0xff]  ;;  %v2746_v36 = vld [vmem:[%s12873_s30 + $0x1500] sm:$0xff] }
 0x428   : > { %v2750_v39 = vld [vmem:[%s12873_s30 + $0x1520] sm:$0xff] }
 0x429   : > { %8397 = vmatpush1.bf16.msra.mxu0 %v10975_v48  ;;  %8725 = vmatpush1.bf16.msra.mxu1 %v10977_v7  ;;  %v11034_v48 = vcombine.high %v2699_v53, %v2703_v17  ;;  %v2706_v7 = vld [vmem:[%s12873_s30 + $0x13c0] sm:$0xff]  ;;  %v2747_v53 = vld [vmem:[%s12873_s30 + $0x1508] sm:$0xff] }
 0x42a   : > { %8398 = vmatprep.subr.bf16.mxu0 %v10984_v49  ;;  %8726 = vmatprep.subr.bf16.mxu1 %v10986_v54  ;;  %v2710_v49 = vld [vmem:[%s12873_s30 + $0x13e0] sm:$0xff]  ;;  %v2008_v54 = vcombine.high %v13612_v13, %v13612_v13  ;;  %v2715_v13 = vld [vmem:[%s12873_s30 + $0x1408] sm:$0xff] }
 0x42b   : > { %v11039_v46 = vcombine.low %v2706_v7, %v2710_v49  ;;  %v2751_v17 = vld [vmem:[%s12873_s30 + $0x1528] sm:$0xff] }
 0x42c   : > { %v13699_v4 = vrot.slane %v2008_v54, %v13311_v5  ;;  %v2755_v54 = vld [vmem:[%s12873_s30 + $0x1548] sm:$0xff] }
 0x42d   : > { %8399 = vmatpush1.bf16.msra.mxu0 %v10983_v63  ;;  %8727 = vmatpush1.bf16.msra.mxu1 %v10985_v0  ;;  %v11040_v63 = vcombine.high %v2706_v7, %v2710_v49  ;;  %v11042_v0 = vcombine.high %v2707_v57, %v2711_v60  ;;  %v2754_v7 = vld [vmem:[%s12873_s30 + $0x1540] sm:$0xff]  ;;  %v2759_v57 = vld [vmem:[%s12873_s30 + $0x1568] sm:$0xff]  ;;  %v11079_v60 = vcombine.low %v2746_v36, %v2750_v39 }
 0x42e   : > { %8400 = vmatprep.subr.bf16.mxu0 %v10992_v1  ;;  %8728 = vmatprep.subr.bf16.mxu1 %v10994_v19  ;;  %v2714_v1 = vld [vmem:[%s12873_s30 + $0x1400] sm:$0xff]  ;;  %v2024_v16 = vcombine.high %v13699_v4, %v13699_v4 }
 0x42f   : > { %v2718_v19 = vld [vmem:[%s12873_s30 + $0x1420] sm:$0xff] }
 0x430   : > { %v13715_v37 = vpack.c.bf16 %v2024_v16, %v2024_v16  ;;  %v2758_v49 = vld [vmem:[%s12873_s30 + $0x1560] sm:$0xff]  ;;  %v2775_v16 = vld [vmem:[%s12873_s30 + $0x15e8] sm:$0xff] }
 0x431   : > { %8401 = vmatpush1.bf16.msra.mxu0 %v10991_v55  ;;  %8729 = vmatpush1.bf16.msra.mxu1 %v10993_v9  ;;  %v11048_v55 = vcombine.high %v2714_v1, %v2718_v19  ;;  %v11050_v9 = vcombine.high %v2715_v13, %v2719_v6 }
 0x432   : > { %8402 = vmatprep.subr.bf16.mxu0 %v11000_v11  ;;  %8730 = vmatprep.subr.bf16.mxu1 %v11002_v14  ;;  %v2722_v11 = vld [vmem:[%s12873_s30 + $0x1440] sm:$0xff] }
 0x433   : > { %v2726_v14 = vld [vmem:[%s12873_s30 + $0x1460] sm:$0xff] }
 0x435   : > { %8403 = vmatpush1.bf16.msra.mxu0 %v10999_v26  ;;  %8731 = vmatpush1.bf16.msra.mxu1 %v11001_v28  ;;  %v11047_v26 = vcombine.low %v2714_v1, %v2718_v19  ;;  %v11049_v28 = vcombine.low %v2715_v13, %v2719_v6  ;;  %v2766_v1 = vld [vmem:[%s12873_s30 + $0x15a0] sm:$0xff]  ;;  %v2763_v19 = vld [vmem:[%s12873_s30 + $0x1588] sm:$0xff]  ;;  %v11087_v6 = vcombine.low %v2754_v7, %v2758_v49 }
 0x436   : > { %8404 = vmatprep.subr.bf16.mxu0 %v11008_v29  ;;  %8732 = vmatprep.subr.bf16.mxu1 %v11010_v32  ;;  %v11056_v29 = vcombine.high %v2722_v11, %v2726_v14  ;;  %v11058_v32 = vcombine.high %v2723_v20, %v2727_v23  ;;  %v2767_v13 = vld [vmem:[%s12873_s30 + $0x15a8] sm:$0xff] }
 0x439   : > { %8405 = vmatpush1.bf16.msra.mxu0 %v11007_v40  ;;  %8733 = vmatpush1.bf16.msra.mxu1 %v11009_v18  ;;  %v11055_v40 = vcombine.low %v2722_v11, %v2726_v14  ;;  %v11057_v18 = vcombine.low %v2723_v20, %v2727_v23  ;;  %v2774_v11 = vld [vmem:[%s12873_s30 + $0x15e0] sm:$0xff]  ;;  %v2771_v14 = vld [vmem:[%s12873_s30 + $0x15c8] sm:$0xff]  ;;  %v11097_v23 = vcombine.low %v2763_v19, %v2767_v13 }
 0x43a   : > { %8406 = vmatprep.subr.bf16.mxu0 %v11016_v10  ;;  %8734 = vmatprep.subr.bf16.mxu1 %v11018_v41  ;;  %v11064_v10 = vcombine.high %v2730_v34, %v2734_v15  ;;  %v11066_v41 = vcombine.high %v2731_v21, %v2735_v38 }
 0x43d   : > { %8407 = vmatpush1.bf16.msra.mxu0 %v11015_v47  ;;  %8735 = vmatpush1.bf16.msra.mxu1 %v11017_v31  ;;  %v11063_v47 = vcombine.low %v2730_v34, %v2734_v15  ;;  %v11065_v31 = vcombine.low %v2731_v21, %v2735_v38  ;;  %v2779_v34 = vld [vmem:[%s12873_s30 + $0x1608] sm:$0xff]  ;;  %v11105_v38 = vcombine.low %v2771_v14, %v2775_v16 }
 0x43e   : > { %8408 = vmatprep.subr.bf16.mxu0 %v11024_v33  ;;  %8736 = vmatprep.subr.bf16.mxu1 %v11026_v50  ;;  %v11072_v33 = vcombine.high %v2738_v44, %v2742_v24  ;;  %v11074_v50 = vcombine.high %v2739_v25, %v2743_v27  ;;  %v2783_v15 = vld [vmem:[%s12873_s30 + $0x1628] sm:$0xff] }
 0x441   : > { %8409 = vmatpush1.bf16.msra.mxu0 %v11023_v42  ;;  %8737 = vmatpush1.bf16.msra.mxu1 %v11025_v43  ;;  %v11071_v42 = vcombine.low %v2738_v44, %v2742_v24  ;;  %v11073_v43 = vcombine.low %v2739_v25, %v2743_v27  ;;  %v2787_v44 = vld [vmem:[%s12873_s30 + $0x1648] sm:$0xff]  ;;  %v11113_v27 = vcombine.low %v2779_v34, %v2783_v15 }
 0x442   : > { %8410 = vmatprep.subr.bf16.mxu0 %v11032_v45  ;;  %8738 = vmatprep.subr.bf16.mxu1 %v11034_v48  ;;  %v11080_v45 = vcombine.high %v2746_v36, %v2750_v39  ;;  %v11082_v48 = vcombine.high %v2747_v53, %v2751_v17  ;;  %v2791_v24 = vld [vmem:[%s12873_s30 + $0x1668] sm:$0xff] }
 0x443   : > { %v2795_v36 = vld [vmem:[%s12873_s30 + $0x1688] sm:$0xff] }
 0x444   : > { %v2799_v39 = vld [vmem:[%s12873_s30 + $0x16a8] sm:$0xff] }
 0x445   : > { %8411 = vmatpush1.bf16.msra.mxu0 %v11031_v61  ;;  %8739 = vmatpush1.bf16.msra.mxu1 %v11033_v62  ;;  %v11081_v61 = vcombine.low %v2747_v53, %v2751_v17  ;;  %v11088_v62 = vcombine.high %v2754_v7, %v2758_v49  ;;  %v11121_v17 = vcombine.low %v2787_v44, %v2791_v24  ;;  %v2803_v7 = vld [vmem:[%s12873_s30 + $0x16c8] sm:$0xff] }
 0x446   : > { %8412 = vmatprep.subr.bf16.mxu0 %v11040_v63  ;;  %8740 = vmatprep.subr.bf16.mxu1 %v11042_v0  ;;  %v11090_v63 = vcombine.high %v2755_v54, %v2759_v57  ;;  %v2762_v0 = vld [vmem:[%s12873_s30 + $0x1580] sm:$0xff]  ;;  %v2807_v49 = vld [vmem:[%s12873_s30 + $0x16e8] sm:$0xff] }
 0x447   : > { %v11095_v20 = vcombine.low %v2762_v0, %v2766_v1 }
 0x449   : > { %8413 = vmatpush1.bf16.msra.mxu0 %v11039_v46  ;;  %8741 = vmatpush1.bf16.msra.mxu1 %v11041_v8  ;;  %v11089_v46 = vcombine.low %v2755_v54, %v2759_v57  ;;  %v11096_v8 = vcombine.high %v2762_v0, %v2766_v1  ;;  %v11129_v57 = vcombine.low %v2795_v36, %v2799_v39  ;;  %v2811_v0 = vld [vmem:[%s12873_s30 + $0x1708] sm:$0xff] }
 0x44a   : > { %8423 = vmatprep.subr.bf16.mxu0 %v11048_v55  ;;  %8751 = vmatprep.subr.bf16.mxu1 %v11050_v9  ;;  %v11098_v55 = vcombine.high %v2763_v19, %v2767_v13  ;;  %v2770_v9 = vld [vmem:[%s12873_s30 + $0x15c0] sm:$0xff]  ;;  %v2815_v1 = vld [vmem:[%s12873_s30 + $0x1728] sm:$0xff]  ;;  %v11137_v13 = vcombine.low %v2803_v7, %v2807_v49 }
 0x44b   : > { %v11103_v21 = vcombine.low %v2770_v9, %v2774_v11 }
 0x44c   : > { %8415 = vmatmul.mubr.bf16.vlgmr.msra.gmra.mrb[0].mxu0 %v13709_v59  ;;  %8743 = vmatmul.mubr.bf16.vlgmr.msra.gmra.mrb[0].mxu1 %v13709_v59 }
 0x44d   : > { %8424 = vmatpush1.bf16.msra.mxu0 %v11047_v26  ;;  %8752 = vmatpush1.bf16.msra.mxu1 %v11049_v28  ;;  %v11104_v26 = vcombine.high %v2770_v9, %v2774_v11  ;;  %v11106_v28 = vcombine.high %v2771_v14, %v2775_v16  ;;  %v2819_v9 = vld [vmem:[%s12873_s30 + $0x1748] sm:$0xff]  ;;  %v11145_v16 = vcombine.low %v2811_v0, %v2815_v1 }
 0x44e   : > { %8425 = vmatprep.subr.bf16.mxu0 %v11056_v29  ;;  %8753 = vmatprep.subr.bf16.mxu1 %v11058_v32  ;;  %v2778_v29 = vld [vmem:[%s12873_s30 + $0x1600] sm:$0xff]  ;;  %v2823_v11 = vld [vmem:[%s12873_s30 + $0x1768] sm:$0xff] }
 0x44f   : > { %8455 = vmatprep.mubr.bf16.mxu0 %v13715_v37  ;;  %8783 = vmatprep.mubr.bf16.mxu1 %v13715_v37  ;;  %v2782_v32 = vld [vmem:[%s12873_s30 + $0x1620] sm:$0xff] }
 0x450   : > { %v11111_v25 = vcombine.low %v2778_v29, %v2782_v32 }
 0x451   : > { %8426 = vmatpush1.bf16.msra.mxu0 %v11055_v40  ;;  %8754 = vmatpush1.bf16.msra.mxu1 %v11057_v18  ;;  %v11112_v40 = vcombine.high %v2778_v29, %v2782_v32  ;;  %v11114_v18 = vcombine.high %v2779_v34, %v2783_v15  ;;  %v2827_v29 = vld [vmem:[%s12873_s30 + $0x1788] sm:$0xff]  ;;  %v11153_v15 = vcombine.low %v2819_v9, %v2823_v11 }
 0x452   : > { %8427 = vmatprep.subr.bf16.mxu0 %v11064_v10  ;;  %8755 = vmatprep.subr.bf16.mxu1 %v11066_v41  ;;  %v2786_v10 = vld [vmem:[%s12873_s30 + $0x1640] sm:$0xff]  ;;  %v2831_v32 = vld [vmem:[%s12873_s30 + $0x17a8] sm:$0xff] }
 0x453   : > { %v2790_v41 = vld [vmem:[%s12873_s30 + $0x1660] sm:$0xff] }
 0x454   : > { %v11119_v53 = vcombine.low %v2786_v10, %v2790_v41 }
 0x455   : > { %8428 = vmatpush1.bf16.msra.mxu0 %v11063_v47  ;;  %8756 = vmatpush1.bf16.msra.mxu1 %v11065_v31  ;;  %v11120_v47 = vcombine.high %v2786_v10, %v2790_v41  ;;  %v11122_v31 = vcombine.high %v2787_v44, %v2791_v24  ;;  %v2835_v10 = vld [vmem:[%s12873_s30 + $0x17c8] sm:$0xff] }
 0x456   : > { %8429 = vmatprep.subr.bf16.mxu0 %v11072_v33  ;;  %8757 = vmatprep.subr.bf16.mxu1 %v11074_v50  ;;  %v2794_v33 = vld [vmem:[%s12873_s30 + $0x1680] sm:$0xff]  ;;  %v2839_v41 = vld [vmem:[%s12873_s30 + $0x17e8] sm:$0xff] }
 0x457   : > { %v2798_v50 = vld [vmem:[%s12873_s30 + $0x16a0] sm:$0xff] }
 0x458   : > { %v11127_v54 = vcombine.low %v2794_v33, %v2798_v50  ;;  %v13776_v44 = vld [vmem:[%s13315_s15 + $0x18] sm:$0xff] }
 0x459   : > { %8430 = vmatpush1.bf16.msra.mxu0 %v11071_v42  ;;  %8758 = vmatpush1.bf16.msra.mxu1 %v11073_v43  ;;  %v11128_v42 = vcombine.high %v2794_v33, %v2798_v50  ;;  %v11130_v43 = vcombine.high %v2795_v36, %v2799_v39  ;;  %v2846_v33 = vld [vmem:[%s12873_s30 + $0x1820] sm:$0xff]  ;;  %v13782_v50 = vrot.slane %v13776_v44, %v13311_v5  ;;  %v2843_v36 = vld [vmem:[%s12873_s30 + $0x1808] sm:$0xff] }
 0x45a   : > { %8431 = vmatprep.subr.bf16.mxu0 %v11080_v45  ;;  %8759 = vmatprep.subr.bf16.mxu1 %v11082_v48  ;;  %v2802_v45 = vld [vmem:[%s12873_s30 + $0x16c0] sm:$0xff]  ;;  %v2847_v39 = vld [vmem:[%s12873_s30 + $0x1828] sm:$0xff] }
 0x45b   : > { %v2806_v48 = vld [vmem:[%s12873_s30 + $0x16e0] sm:$0xff] }
 0x45c   : > { %v11135_v19 = vcombine.low %v2802_v45, %v2806_v48 }
 0x45d   : > { %8432 = vmatpush1.bf16.msra.mxu0 %v11079_v60  ;;  %8760 = vmatpush1.bf16.msra.mxu1 %v11081_v61  ;;  %v11136_v60 = vcombine.high %v2802_v45, %v2806_v48  ;;  %v11138_v61 = vcombine.high %v2803_v7, %v2807_v49  ;;  %v2850_v45 = vld [vmem:[%s12873_s30 + $0x1840] sm:$0xff]  ;;  %v2040_v7 = vcombine.high %v13782_v50, %v13782_v50 }
 0x45e   : > { %8433 = vmatprep.subr.bf16.mxu0 %v11088_v62  ;;  %8761 = vmatprep.subr.bf16.mxu1 %v11090_v63  ;;  %v2810_v62 = vld [vmem:[%s12873_s30 + $0x1700] sm:$0xff]  ;;  %v13792_v49 = vpack.c.bf16 %v13699_v4, %v13699_v4  ;;  %v2859_v4 = vld [vmem:[%s12873_s30 + $0x1888] sm:$0xff] }
 0x45f   : > { %v2814_v63 = vld [vmem:[%s12873_s30 + $0x1720] sm:$0xff] }
 0x460   : > { %v11143_v14 = vcombine.low %v2810_v62, %v2814_v63  ;;  %v2854_v48 = vld [vmem:[%s12873_s30 + $0x1860] sm:$0xff] }
 0x461   : > { %8434 = vmatpush1.bf16.msra.mxu0 %v11087_v6  ;;  %8762 = vmatpush1.bf16.msra.mxu1 %v11089_v46  ;;  %v11144_v6 = vcombine.high %v2810_v62, %v2814_v63  ;;  %v11146_v46 = vcombine.high %v2811_v0, %v2815_v1  ;;  %v11184_v62 = vcombine.high %v2850_v45, %v2854_v48  ;;  %v2858_v0 = vld [vmem:[%s12873_s30 + $0x1880] sm:$0xff] }
 0x462   : > { %8435 = vmatprep.subr.bf16.mxu0 %v11096_v8  ;;  %8763 = vmatprep.subr.bf16.mxu1 %v11098_v55  ;;  %v2818_v8 = vld [vmem:[%s12873_s30 + $0x1740] sm:$0xff] }
 0x463   : > { %v2822_v55 = vld [vmem:[%s12873_s30 + $0x1760] sm:$0xff] }
 0x464   : > { %v11151_v34 = vcombine.low %v2818_v8, %v2822_v55  ;;  %v2862_v1 = vld [vmem:[%s12873_s30 + $0x18a0] sm:$0xff] }
 0x465   : > { %8436 = vmatpush1.bf16.msra.mxu0 %v11095_v20  ;;  %8764 = vmatpush1.bf16.msra.mxu1 %v11097_v23  ;;  %v11152_v20 = vcombine.high %v2818_v8, %v2822_v55  ;;  %v11154_v23 = vcombine.high %v2819_v9, %v2823_v11  ;;  %v11192_v8 = vcombine.high %v2858_v0, %v2862_v1  ;;  %v2866_v9 = vld [vmem:[%s12873_s30 + $0x18c0] sm:$0xff] }
 0x466   : > { %8437 = vmatprep.subr.bf16.mxu0 %v11104_v26  ;;  %8765 = vmatprep.subr.bf16.mxu1 %v11106_v28  ;;  %v2826_v26 = vld [vmem:[%s12873_s30 + $0x1780] sm:$0xff] }
 0x467   : > { %v2830_v28 = vld [vmem:[%s12873_s30 + $0x17a0] sm:$0xff] }
 0x468   : > { %v11159_v24 = vcombine.low %v2826_v26, %v2830_v28  ;;  %v2870_v11 = vld [vmem:[%s12873_s30 + $0x18e0] sm:$0xff] }
 0x469   : > { %8438 = vmatpush1.bf16.msra.mxu0 %v11103_v21  ;;  %8766 = vmatpush1.bf16.msra.mxu1 %v11105_v38  ;;  %v11160_v21 = vcombine.high %v2826_v26, %v2830_v28  ;;  %v11162_v38 = vcombine.high %v2827_v29, %v2831_v32  ;;  %v11200_v26 = vcombine.high %v2866_v9, %v2870_v11 }
 0x46a   : > { %8439 = vmatprep.subr.bf16.mxu0 %v11112_v40  ;;  %8767 = vmatprep.subr.bf16.mxu1 %v11114_v18  ;;  %v2834_v40 = vld [vmem:[%s12873_s30 + $0x17c0] sm:$0xff] }
 0x46b   : > { %v2838_v18 = vld [vmem:[%s12873_s30 + $0x17e0] sm:$0xff] }
 0x46d   : > { %8440 = vmatpush1.bf16.msra.mxu0 %v11111_v25  ;;  %8768 = vmatpush1.bf16.msra.mxu1 %v11113_v27  ;;  %v11161_v25 = vcombine.low %v2827_v29, %v2831_v32  ;;  %v11168_v27 = vcombine.high %v2834_v40, %v2838_v18  ;;  %v2874_v29 = vld [vmem:[%s12873_s30 + $0x1900] sm:$0xff] }
 0x46e   : > { %8441 = vmatprep.subr.bf16.mxu0 %v11120_v47  ;;  %8769 = vmatprep.subr.bf16.mxu1 %v11122_v31  ;;  %v11170_v47 = vcombine.high %v2835_v10, %v2839_v41  ;;  %v2842_v31 = vld [vmem:[%s12873_s30 + $0x1800] sm:$0xff] }
 0x46f   : > { %v2878_v32 = vld [vmem:[%s12873_s30 + $0x1920] sm:$0xff] }
 0x471   : > { %8442 = vmatpush1.bf16.msra.mxu0 %v11119_v53  ;;  %8770 = vmatpush1.bf16.msra.mxu1 %v11121_v17  ;;  %v11167_v53 = vcombine.low %v2834_v40, %v2838_v18  ;;  %v11169_v17 = vcombine.low %v2835_v10, %v2839_v41  ;;  %v11208_v40 = vcombine.high %v2874_v29, %v2878_v32  ;;  %v2882_v10 = vld [vmem:[%s12873_s30 + $0x1940] sm:$0xff] }
 0x472   : > { %8443 = vmatprep.subr.bf16.mxu0 %v11128_v42  ;;  %8771 = vmatprep.subr.bf16.mxu1 %v11130_v43  ;;  %v11176_v42 = vcombine.high %v2842_v31, %v2846_v33  ;;  %v11178_v43 = vcombine.high %v2843_v36, %v2847_v39  ;;  %v2886_v41 = vld [vmem:[%s12873_s30 + $0x1960] sm:$0xff] }
 0x475   : > { %8444 = vmatpush1.bf16.msra.mxu0 %v11127_v54  ;;  %8772 = vmatpush1.bf16.msra.mxu1 %v11129_v57  ;;  %v2851_v54 = vld [vmem:[%s12873_s30 + $0x1848] sm:$0xff] }
 0x476   : > { %8445 = vmatprep.subr.bf16.mxu0 %v11136_v60  ;;  %8773 = vmatprep.subr.bf16.mxu1 %v11138_v61  ;;  %v2855_v57 = vld [vmem:[%s12873_s30 + $0x1868] sm:$0xff]  ;;  %v11175_v60 = vcombine.low %v2842_v31, %v2846_v33  ;;  %v11177_v61 = vcombine.low %v2843_v36, %v2847_v39  ;;  %v11216_v31 = vcombine.high %v2882_v10, %v2886_v41  ;;  %v2890_v36 = vld [vmem:[%s12873_s30 + $0x1980] sm:$0xff] }
 0x477   : > { %v11186_v63 = vcombine.high %v2851_v54, %v2855_v57  ;;  %v2894_v39 = vld [vmem:[%s12873_s30 + $0x19a0] sm:$0xff] }
 0x479   : > { %8446 = vmatpush1.bf16.msra.mxu0 %v11135_v19  ;;  %8774 = vmatpush1.bf16.msra.mxu1 %v11137_v13  ;;  %v13798_v19 = vpack.c.bf16 %v2040_v7, %v2040_v7  ;;  %v2863_v13 = vld [vmem:[%s12873_s30 + $0x18a8] sm:$0xff]  ;;  %v2898_v7 = vld [vmem:[%s12873_s30 + $0x19c0] sm:$0xff] }
 0x47a   : > { %8447 = vmatprep.subr.bf16.mxu0 %v11144_v6  ;;  %8775 = vmatprep.subr.bf16.mxu1 %v11146_v46  ;;  %v11183_v6 = vcombine.low %v2850_v45, %v2854_v48  ;;  %v11185_v46 = vcombine.low %v2851_v54, %v2855_v57  ;;  %v11194_v55 = vcombine.high %v2859_v4, %v2863_v13  ;;  %v2902_v54 = vld [vmem:[%s12873_s30 + $0x19e0] sm:$0xff]  ;;  %v2899_v57 = vld [vmem:[%s12873_s30 + $0x19c8] sm:$0xff] }
 0x47b   : > { %v11224_v45 = vcombine.high %v2890_v36, %v2894_v39 }
 0x47d   : > { %8448 = vmatpush1.bf16.msra.mxu0 %v11143_v14  ;;  %8776 = vmatpush1.bf16.msra.mxu1 %v11145_v16  ;;  %v2867_v14 = vld [vmem:[%s12873_s30 + $0x18c8] sm:$0xff] }
 0x47e   : > { %8449 = vmatprep.subr.bf16.mxu0 %v11152_v20  ;;  %8777 = vmatprep.subr.bf16.mxu1 %v11154_v23  ;;  %v2871_v16 = vld [vmem:[%s12873_s30 + $0x18e8] sm:$0xff]  ;;  %v11191_v20 = vcombine.low %v2858_v0, %v2862_v1  ;;  %v11193_v23 = vcombine.low %v2859_v4, %v2863_v13  ;;  %v2906_v1 = vld [vmem:[%s12873_s30 + $0x1a00] sm:$0xff] }
 0x47f   : > { %v11202_v28 = vcombine.high %v2867_v14, %v2871_v16  ;;  %v2910_v4 = vld [vmem:[%s12873_s30 + $0x1a20] sm:$0xff]  ;;  %v2907_v13 = vld [vmem:[%s12873_s30 + $0x1a08] sm:$0xff] }
 0x481   : > { %8450 = vmatpush1.bf16.msra.mxu0 %v11151_v34  ;;  %8778 = vmatpush1.bf16.msra.mxu1 %v11153_v15  ;;  %v2875_v34 = vld [vmem:[%s12873_s30 + $0x1908] sm:$0xff] }
 0x482   : > { %8451 = vmatprep.subr.bf16.mxu0 %v11160_v21  ;;  %8779 = vmatprep.subr.bf16.mxu1 %v11162_v38  ;;  %v2879_v15 = vld [vmem:[%s12873_s30 + $0x1928] sm:$0xff]  ;;  %v11199_v21 = vcombine.low %v2866_v9, %v2870_v11  ;;  %v11201_v38 = vcombine.low %v2867_v14, %v2871_v16  ;;  %v2914_v11 = vld [vmem:[%s12873_s30 + $0x1a40] sm:$0xff] }
 0x483   : > { %v11210_v18 = vcombine.high %v2875_v34, %v2879_v15  ;;  %v2918_v14 = vld [vmem:[%s12873_s30 + $0x1a60] sm:$0xff]  ;;  %v2915_v16 = vld [vmem:[%s12873_s30 + $0x1a48] sm:$0xff] }
 0x485   : > { %8452 = vmatpush1.bf16.msra.mxu0 %v11159_v24  ;;  %8780 = vmatpush1.bf16.msra.mxu1 %v11161_v25  ;;  %v2883_v24 = vld [vmem:[%s12873_s30 + $0x1948] sm:$0xff] }
 0x486   : > { %8453 = vmatprep.subr.bf16.mxu0 %v11168_v27  ;;  %8781 = vmatprep.subr.bf16.mxu1 %v11170_v47  ;;  %v2887_v25 = vld [vmem:[%s12873_s30 + $0x1968] sm:$0xff]  ;;  %v11207_v27 = vcombine.low %v2874_v29, %v2878_v32  ;;  %v11209_v47 = vcombine.low %v2875_v34, %v2879_v15  ;;  %v2922_v32 = vld [vmem:[%s12873_s30 + $0x1a80] sm:$0xff] }
 0x487   : > { %v11218_v33 = vcombine.high %v2883_v24, %v2887_v25  ;;  %v2926_v34 = vld [vmem:[%s12873_s30 + $0x1aa0] sm:$0xff]  ;;  %v2923_v15 = vld [vmem:[%s12873_s30 + $0x1a88] sm:$0xff] }
 0x489   : > { %8454 = vmatpush1.bf16.msra.mxu0 %v11167_v53  ;;  %8782 = vmatpush1.bf16.msra.mxu1 %v11169_v17  ;;  %v2891_v53 = vld [vmem:[%s12873_s30 + $0x1988] sm:$0xff] }
 0x48a   : > { %8464 = vmatprep.subr.bf16.mxu0 %v11176_v42  ;;  %8792 = vmatprep.subr.bf16.mxu1 %v11178_v43  ;;  %v2895_v17 = vld [vmem:[%s12873_s30 + $0x19a8] sm:$0xff]  ;;  %v11215_v42 = vcombine.low %v2882_v10, %v2886_v41  ;;  %v11217_v43 = vcombine.low %v2883_v24, %v2887_v25  ;;  %v2930_v41 = vld [vmem:[%s12873_s30 + $0x1ac0] sm:$0xff] }
 0x48b   : > { %v11226_v48 = vcombine.high %v2891_v53, %v2895_v17  ;;  %v2934_v24 = vld [vmem:[%s12873_s30 + $0x1ae0] sm:$0xff]  ;;  %v2931_v25 = vld [vmem:[%s12873_s30 + $0x1ac8] sm:$0xff] }
 0x48c   : > { %8456 = vmatmul.mubr.bf16.vlgmr.msra.gmra.mrb[0].mxu0 %v13792_v49  ;;  %8784 = vmatmul.mubr.bf16.vlgmr.msra.gmra.mrb[0].mxu1 %v13792_v49 }
 0x48d   : > { %8465 = vmatpush1.bf16.msra.mxu0 %v11175_v60  ;;  %8793 = vmatpush1.bf16.msra.mxu1 %v11177_v61  ;;  %v2903_v60 = vld [vmem:[%s12873_s30 + $0x19e8] sm:$0xff]  ;;  %v11223_v61 = vcombine.low %v2890_v36, %v2894_v39  ;;  %v2938_v39 = vld [vmem:[%s12873_s30 + $0x1b00] sm:$0xff] }
 0x48e   : > { %8466 = vmatprep.subr.bf16.mxu0 %v11184_v62  ;;  %8794 = vmatprep.subr.bf16.mxu1 %v11186_v63  ;;  %v11225_v62 = vcombine.low %v2891_v53, %v2895_v17  ;;  %v11232_v63 = vcombine.high %v2898_v7, %v2902_v54  ;;  %v11234_v0 = vcombine.high %v2899_v57, %v2903_v60  ;;  %v2942_v53 = vld [vmem:[%s12873_s30 + $0x1b20] sm:$0xff]  ;;  %v2939_v17 = vld [vmem:[%s12873_s30 + $0x1b08] sm:$0xff] }
 0x48f   : > { %8496 = vmatprep.mubr.bf16.mxu0 %v13798_v19  ;;  %8824 = vmatprep.mubr.bf16.mxu1 %v13798_v19 }
 0x491   : > { %8467 = vmatpush1.bf16.msra.mxu0 %v11183_v6  ;;  %8795 = vmatpush1.bf16.msra.mxu1 %v11185_v46  ;;  %v2911_v6 = vld [vmem:[%s12873_s30 + $0x1a28] sm:$0xff]  ;;  %v11231_v46 = vcombine.low %v2898_v7, %v2902_v54  ;;  %v2946_v54 = vld [vmem:[%s12873_s30 + $0x1b40] sm:$0xff] }
 0x492   : > { %8468 = vmatprep.subr.bf16.mxu0 %v11192_v8  ;;  %8796 = vmatprep.subr.bf16.mxu1 %v11194_v55  ;;  %v11233_v8 = vcombine.low %v2899_v57, %v2903_v60  ;;  %v11240_v55 = vcombine.high %v2906_v1, %v2910_v4  ;;  %v11242_v9 = vcombine.high %v2907_v13, %v2911_v6  ;;  %v2950_v57 = vld [vmem:[%s12873_s30 + $0x1b60] sm:$0xff]  ;;  %v2947_v60 = vld [vmem:[%s12873_s30 + $0x1b48] sm:$0xff] }
 0x495   : > { %8469 = vmatpush1.bf16.msra.mxu0 %v11191_v20  ;;  %8797 = vmatpush1.bf16.msra.mxu1 %v11193_v23  ;;  %v2919_v20 = vld [vmem:[%s12873_s30 + $0x1a68] sm:$0xff]  ;;  %v11239_v23 = vcombine.low %v2906_v1, %v2910_v4  ;;  %v2954_v4 = vld [vmem:[%s12873_s30 + $0x1b80] sm:$0xff] }
 0x496   : > { %8470 = vmatprep.subr.bf16.mxu0 %v11200_v26  ;;  %8798 = vmatprep.subr.bf16.mxu1 %v11202_v28  ;;  %v11241_v26 = vcombine.low %v2907_v13, %v2911_v6  ;;  %v11248_v28 = vcombine.high %v2914_v11, %v2918_v14  ;;  %v11250_v29 = vcombine.high %v2915_v16, %v2919_v20  ;;  %v2958_v13 = vld [vmem:[%s12873_s30 + $0x1ba0] sm:$0xff]  ;;  %v2955_v6 = vld [vmem:[%s12873_s30 + $0x1b88] sm:$0xff] }
 0x499   : > { %8471 = vmatpush1.bf16.msra.mxu0 %v11199_v21  ;;  %8799 = vmatpush1.bf16.msra.mxu1 %v11201_v38  ;;  %v2927_v21 = vld [vmem:[%s12873_s30 + $0x1aa8] sm:$0xff]  ;;  %v11247_v38 = vcombine.low %v2914_v11, %v2918_v14  ;;  %v2962_v14 = vld [vmem:[%s12873_s30 + $0x1bc0] sm:$0xff] }
 0x49a   : > { %8472 = vmatprep.subr.bf16.mxu0 %v11208_v40  ;;  %8800 = vmatprep.subr.bf16.mxu1 %v11210_v18  ;;  %v11249_v40 = vcombine.low %v2915_v16, %v2919_v20  ;;  %v11256_v18 = vcombine.high %v2922_v32, %v2926_v34  ;;  %v11258_v10 = vcombine.high %v2923_v15, %v2927_v21  ;;  %v2966_v16 = vld [vmem:[%s12873_s30 + $0x1be0] sm:$0xff] }
 0x49b   : > { %v2025_v20 = vcombine.high %v13776_v44, %v13776_v44  ;;  %v2971_v44 = vld [vmem:[%s12873_s30 + $0x1c08] sm:$0xff] }
 0x49d   : > { %8473 = vmatpush1.bf16.msra.mxu0 %v11207_v27  ;;  %8801 = vmatpush1.bf16.msra.mxu1 %v11209_v47  ;;  %v2935_v27 = vld [vmem:[%s12873_s30 + $0x1ae8] sm:$0xff]  ;;  %v11255_v47 = vcombine.low %v2922_v32, %v2926_v34  ;;  %v11296_v32 = vcombine.high %v2962_v14, %v2966_v16 }
 0x49e   : > { %8474 = vmatprep.subr.bf16.mxu0 %v11216_v31  ;;  %8802 = vmatprep.subr.bf16.mxu1 %v11218_v33  ;;  %v11257_v31 = vcombine.low %v2923_v15, %v2927_v21  ;;  %v11264_v33 = vcombine.high %v2930_v41, %v2934_v24  ;;  %v11266_v36 = vcombine.high %v2931_v25, %v2935_v27  ;;  %v2970_v15 = vld [vmem:[%s12873_s30 + $0x1c00] sm:$0xff] }
 0x49f   : > { %v2974_v21 = vld [vmem:[%s12873_s30 + $0x1c20] sm:$0xff] }
 0x4a1   : > { %8475 = vmatpush1.bf16.msra.mxu0 %v11215_v42  ;;  %8803 = vmatpush1.bf16.msra.mxu1 %v11217_v43  ;;  %v2943_v42 = vld [vmem:[%s12873_s30 + $0x1b28] sm:$0xff]  ;;  %v11263_v43 = vcombine.low %v2930_v41, %v2934_v24  ;;  %v11304_v41 = vcombine.high %v2970_v15, %v2974_v21 }
 0x4a2   : > { %8476 = vmatprep.subr.bf16.mxu0 %v11224_v45  ;;  %8804 = vmatprep.subr.bf16.mxu1 %v11226_v48  ;;  %v11265_v45 = vcombine.low %v2931_v25, %v2935_v27  ;;  %v11272_v48 = vcombine.high %v2938_v39, %v2942_v53  ;;  %v11274_v7 = vcombine.high %v2939_v17, %v2943_v42  ;;  %v2978_v25 = vld [vmem:[%s12873_s30 + $0x1c40] sm:$0xff] }
 0x4a3   : > { %v2982_v27 = vld [vmem:[%s12873_s30 + $0x1c60] sm:$0xff] }
 0x4a5   : > { %8477 = vmatpush1.bf16.msra.mxu0 %v11223_v61  ;;  %8805 = vmatpush1.bf16.msra.mxu1 %v11225_v62  ;;  %v2951_v61 = vld [vmem:[%s12873_s30 + $0x1b68] sm:$0xff]  ;;  %v11271_v62 = vcombine.low %v2938_v39, %v2942_v53  ;;  %v11303_v39 = vcombine.low %v2970_v15, %v2974_v21 }
 0x4a6   : > { %8478 = vmatprep.subr.bf16.mxu0 %v11232_v63  ;;  %8806 = vmatprep.subr.bf16.mxu1 %v11234_v0  ;;  %v11273_v63 = vcombine.low %v2939_v17, %v2943_v42  ;;  %v11280_v0 = vcombine.high %v2946_v54, %v2950_v57  ;;  %v11282_v1 = vcombine.high %v2947_v60, %v2951_v61 }
 0x4a7   : > { %v11312_v17 = vcombine.high %v2978_v25, %v2982_v27 }
 0x4a9   : > { %8479 = vmatpush1.bf16.msra.mxu0 %v11231_v46  ;;  %8807 = vmatpush1.bf16.msra.mxu1 %v11233_v8  ;;  %v2959_v46 = vld [vmem:[%s12873_s30 + $0x1ba8] sm:$0xff]  ;;  %v11279_v8 = vcombine.low %v2946_v54, %v2950_v57  ;;  %v11311_v54 = vcombine.low %v2978_v25, %v2982_v27 }
 0x4aa   : > { %8480 = vmatprep.subr.bf16.mxu0 %v11240_v55  ;;  %8808 = vmatprep.subr.bf16.mxu1 %v11242_v9  ;;  %v11281_v55 = vcombine.low %v2947_v60, %v2951_v61  ;;  %v11288_v9 = vcombine.high %v2954_v4, %v2958_v13  ;;  %v11290_v11 = vcombine.high %v2955_v6, %v2959_v46 }
 0x4ad   : > { %8481 = vmatpush1.bf16.msra.mxu0 %v11239_v23  ;;  %8809 = vmatpush1.bf16.msra.mxu1 %v11241_v26  ;;  %v2963_v23 = vld [vmem:[%s12873_s30 + $0x1bc8] sm:$0xff] }
 0x4ae   : > { %8482 = vmatprep.subr.bf16.mxu0 %v11248_v28  ;;  %8810 = vmatprep.subr.bf16.mxu1 %v11250_v29  ;;  %v2967_v26 = vld [vmem:[%s12873_s30 + $0x1be8] sm:$0xff]  ;;  %v11287_v28 = vcombine.low %v2954_v4, %v2958_v13  ;;  %v11289_v29 = vcombine.low %v2955_v6, %v2959_v46 }
 0x4af   : > { %v11298_v34 = vcombine.high %v2963_v23, %v2967_v26 }
 0x4b1   : > { %8483 = vmatpush1.bf16.msra.mxu0 %v11247_v38  ;;  %8811 = vmatpush1.bf16.msra.mxu1 %v11249_v40  ;;  %v13863_v38 = vrot.slane %v2025_v20, %v13311_v5  ;;  %v2975_v40 = vld [vmem:[%s12873_s30 + $0x1c28] sm:$0xff] }
 0x4b2   : > { %8484 = vmatprep.subr.bf16.mxu0 %v11256_v18  ;;  %8812 = vmatprep.subr.bf16.mxu1 %v11258_v10  ;;  %v11295_v18 = vcombine.low %v2962_v14, %v2966_v16  ;;  %v11297_v10 = vcombine.low %v2963_v23, %v2967_v26  ;;  %v11306_v24 = vcombine.high %v2971_v44, %v2975_v40  ;;  %v3010_v26 = vld [vmem:[%s12873_s30 + $0x1d40] sm:$0xff] }
 0x4b3   : > { %v11305_v53 = vcombine.low %v2971_v44, %v2975_v40  ;;  %v3018_v40 = vld [vmem:[%s12873_s30 + $0x1d80] sm:$0xff] }
 0x4b5   : > { %8485 = vmatpush1.bf16.msra.mxu0 %v11255_v47  ;;  %8813 = vmatpush1.bf16.msra.mxu1 %v11257_v31  ;;  %v2041_v47 = vcombine.high %v13863_v38, %v13863_v38  ;;  %v13873_v31 = vpack.c.bf16 %v13782_v50, %v13782_v50  ;;  %v2987_v50 = vld [vmem:[%s12873_s30 + $0x1c88] sm:$0xff] }
 0x4b6   : > { %8486 = vmatprep.subr.bf16.mxu0 %v11264_v33  ;;  %8814 = vmatprep.subr.bf16.mxu1 %v11266_v36  ;;  %v2979_v33 = vld [vmem:[%s12873_s30 + $0x1c48] sm:$0xff] }
 0x4b7   : > { %v2983_v36 = vld [vmem:[%s12873_s30 + $0x1c68] sm:$0xff] }
 0x4b8   : > { %v11314_v42 = vcombine.high %v2979_v33, %v2983_v36  ;;  %v11313_v57 = vcombine.low %v2979_v33, %v2983_v36  ;;  %v3026_v33 = vld [vmem:[%s12873_s30 + $0x1dc0] sm:$0xff] }
 0x4b9   : > { %8487 = vmatpush1.bf16.msra.mxu0 %v11263_v43  ;;  %8815 = vmatpush1.bf16.msra.mxu1 %v11265_v45  ;;  %v2986_v43 = vld [vmem:[%s12873_s30 + $0x1c80] sm:$0xff] }
 0x4ba   : > { %8488 = vmatprep.subr.bf16.mxu0 %v11272_v48  ;;  %8816 = vmatprep.subr.bf16.mxu1 %v11274_v7  ;;  %v2990_v45 = vld [vmem:[%s12873_s30 + $0x1ca0] sm:$0xff]  ;;  %v13879_v48 = vpack.c.bf16 %v2041_v47, %v2041_v47  ;;  %v2991_v7 = vld [vmem:[%s12873_s30 + $0x1ca8] sm:$0xff] }
 0x4bb   : > { %v11320_v60 = vcombine.high %v2986_v43, %v2990_v45  ;;  %v11322_v61 = vcombine.high %v2987_v50, %v2991_v7  ;;  %v11319_v4 = vcombine.low %v2986_v43, %v2990_v45  ;;  %v11321_v13 = vcombine.low %v2987_v50, %v2991_v7  ;;  %v3030_v36 = vld [vmem:[%s12873_s30 + $0x1de0] sm:$0xff] }
 0x4bc   : > { %v11360_v43 = vcombine.high %v3026_v33, %v3030_v36  ;;  %v3034_v50 = vld [vmem:[%s12873_s30 + $0x1e00] sm:$0xff] }
 0x4bd   : > { %8489 = vmatpush1.bf16.msra.mxu0 %v11271_v62  ;;  %8817 = vmatpush1.bf16.msra.mxu1 %v11273_v63  ;;  %v2994_v62 = vld [vmem:[%s12873_s30 + $0x1cc0] sm:$0xff] }
 0x4be   : > { %8490 = vmatprep.subr.bf16.mxu0 %v11280_v0  ;;  %8818 = vmatprep.subr.bf16.mxu1 %v11282_v1  ;;  %v2998_v63 = vld [vmem:[%s12873_s30 + $0x1ce0] sm:$0xff]  ;;  %v2995_v0 = vld [vmem:[%s12873_s30 + $0x1cc8] sm:$0xff] }
 0x4bf   : > { %v2999_v1 = vld [vmem:[%s12873_s30 + $0x1ce8] sm:$0xff]  ;;  %v11328_v6 = vcombine.high %v2994_v62, %v2998_v63  ;;  %v11327_v14 = vcombine.low %v2994_v62, %v2998_v63  ;;  %v3038_v7 = vld [vmem:[%s12873_s30 + $0x1e20] sm:$0xff] }
 0x4c0   : > { %v11330_v46 = vcombine.high %v2995_v0, %v2999_v1  ;;  %v11329_v16 = vcombine.low %v2995_v0, %v2999_v1  ;;  %v11368_v62 = vcombine.high %v3034_v50, %v3038_v7  ;;  %v3042_v0 = vld [vmem:[%s12873_s30 + $0x1e40] sm:$0xff] }
 0x4c1   : > { %8491 = vmatpush1.bf16.msra.mxu0 %v11279_v8  ;;  %8819 = vmatpush1.bf16.msra.mxu1 %v11281_v55  ;;  %v3002_v8 = vld [vmem:[%s12873_s30 + $0x1d00] sm:$0xff] }
 0x4c2   : > { %8492 = vmatprep.subr.bf16.mxu0 %v11288_v9  ;;  %8820 = vmatprep.subr.bf16.mxu1 %v11290_v11  ;;  %v3006_v55 = vld [vmem:[%s12873_s30 + $0x1d20] sm:$0xff]  ;;  %v3003_v9 = vld [vmem:[%s12873_s30 + $0x1d08] sm:$0xff] }
 0x4c3   : > { %v3007_v11 = vld [vmem:[%s12873_s30 + $0x1d28] sm:$0xff]  ;;  %v11336_v20 = vcombine.high %v3002_v8, %v3006_v55  ;;  %v3046_v1 = vld [vmem:[%s12873_s30 + $0x1e60] sm:$0xff] }
 0x4c4   : > { %v11338_v23 = vcombine.high %v3003_v9, %v3007_v11  ;;  %v11337_v15 = vcombine.low %v3003_v9, %v3007_v11  ;;  %v3050_v9 = vld [vmem:[%s12873_s30 + $0x1e80] sm:$0xff] }
 0x4c5   : > { %8493 = vmatpush1.bf16.msra.mxu0 %v11287_v28  ;;  %8821 = vmatpush1.bf16.msra.mxu1 %v11289_v29  ;;  %v3014_v28 = vld [vmem:[%s12873_s30 + $0x1d60] sm:$0xff]  ;;  %v3011_v29 = vld [vmem:[%s12873_s30 + $0x1d48] sm:$0xff] }
 0x4c6   : > { %8494 = vmatprep.subr.bf16.mxu0 %v11296_v32  ;;  %8822 = vmatprep.subr.bf16.mxu1 %v11298_v34  ;;  %v3015_v32 = vld [vmem:[%s12873_s30 + $0x1d68] sm:$0xff]  ;;  %v11335_v34 = vcombine.low %v3002_v8, %v3006_v55  ;;  %v11344_v21 = vcombine.high %v3010_v26, %v3014_v28  ;;  %v11376_v8 = vcombine.high %v3042_v0, %v3046_v1  ;;  %v3054_v11 = vld [vmem:[%s12873_s30 + $0x1ea0] sm:$0xff] }
 0x4c7   : > { %v11346_v44 = vcombine.high %v3011_v29, %v3015_v32  ;;  %v11345_v25 = vcombine.low %v3011_v29, %v3015_v32  ;;  %v3058_v29 = vld [vmem:[%s12873_s30 + $0x1ec0] sm:$0xff] }
 0x4c8   : > { %v3062_v32 = vld [vmem:[%s12873_s30 + $0x1ee0] sm:$0xff] }
 0x4c9   : > { %8495 = vmatpush1.bf16.msra.mxu0 %v11295_v18  ;;  %8823 = vmatpush1.bf16.msra.mxu1 %v11297_v10  ;;  %v3022_v18 = vld [vmem:[%s12873_s30 + $0x1da0] sm:$0xff]  ;;  %v3019_v10 = vld [vmem:[%s12873_s30 + $0x1d88] sm:$0xff] }
 0x4ca   : > { %8505 = vmatprep.subr.bf16.mxu0 %v11304_v41  ;;  %8833 = vmatprep.subr.bf16.mxu1 %v11306_v24  ;;  %v3023_v41 = vld [vmem:[%s12873_s30 + $0x1da8] sm:$0xff]  ;;  %v11343_v24 = vcombine.low %v3010_v26, %v3014_v28  ;;  %v11352_v27 = vcombine.high %v3018_v40, %v3022_v18  ;;  %v11384_v26 = vcombine.high %v3050_v9, %v3054_v11 }
 0x4cb   : > { %v11354_v47 = vcombine.high %v3019_v10, %v3023_v41 }
 0x4cc   : > { %8497 = vmatmul.mubr.bf16.vlgmr.msra.gmra.mrb[0].mxu0 %v13873_v31  ;;  %8825 = vmatmul.mubr.bf16.vlgmr.msra.gmra.mrb[0].mxu1 %v13873_v31 }
 0x4cd   : > { %8506 = vmatpush1.bf16.msra.mxu0 %v11303_v39  ;;  %8834 = vmatpush1.bf16.msra.mxu1 %v11305_v53  ;;  %v3027_v39 = vld [vmem:[%s12873_s30 + $0x1dc8] sm:$0xff] }
 0x4ce   : > { %8507 = vmatprep.subr.bf16.mxu0 %v11312_v17  ;;  %8835 = vmatprep.subr.bf16.mxu1 %v11314_v42  ;;  %v3031_v53 = vld [vmem:[%s12873_s30 + $0x1de8] sm:$0xff]  ;;  %v11351_v17 = vcombine.low %v3018_v40, %v3022_v18  ;;  %v11353_v42 = vcombine.low %v3019_v10, %v3023_v41  ;;  %v11392_v40 = vcombine.high %v3058_v29, %v3062_v32  ;;  %v3066_v10 = vld [vmem:[%s12873_s30 + $0x1f00] sm:$0xff] }
 0x4cf   : > { %8537 = vmatprep.mubr.bf16.mxu0 %v13879_v48  ;;  %8865 = vmatprep.mubr.bf16.mxu1 %v13879_v48  ;;  %v11362_v45 = vcombine.high %v3027_v39, %v3031_v53  ;;  %v3070_v41 = vld [vmem:[%s12873_s30 + $0x1f20] sm:$0xff] }
 0x4d1   : > { %8508 = vmatpush1.bf16.msra.mxu0 %v11311_v54  ;;  %8836 = vmatpush1.bf16.msra.mxu1 %v11313_v57  ;;  %v3035_v54 = vld [vmem:[%s12873_s30 + $0x1e08] sm:$0xff] }
 0x4d2   : > { %8509 = vmatprep.subr.bf16.mxu0 %v11320_v60  ;;  %8837 = vmatprep.subr.bf16.mxu1 %v11322_v61  ;;  %v3039_v57 = vld [vmem:[%s12873_s30 + $0x1e28] sm:$0xff]  ;;  %v11359_v60 = vcombine.low %v3026_v33, %v3030_v36  ;;  %v11361_v61 = vcombine.low %v3027_v39, %v3031_v53  ;;  %v11400_v33 = vcombine.high %v3066_v10, %v3070_v41  ;;  %v3074_v39 = vld [vmem:[%s12873_s30 + $0x1f40] sm:$0xff] }
 0x4d3   : > { %v11370_v63 = vcombine.high %v3035_v54, %v3039_v57  ;;  %v3078_v53 = vld [vmem:[%s12873_s30 + $0x1f60] sm:$0xff] }
 0x4d5   : > { %8510 = vmatpush1.bf16.msra.mxu0 %v11319_v4  ;;  %8838 = vmatpush1.bf16.msra.mxu1 %v11321_v13  ;;  %v3043_v4 = vld [vmem:[%s12873_s30 + $0x1e48] sm:$0xff] }
 0x4d6   : > { %8511 = vmatprep.subr.bf16.mxu0 %v11328_v6  ;;  %8839 = vmatprep.subr.bf16.mxu1 %v11330_v46  ;;  %v3047_v13 = vld [vmem:[%s12873_s30 + $0x1e68] sm:$0xff]  ;;  %v11367_v6 = vcombine.low %v3034_v50, %v3038_v7  ;;  %v11369_v46 = vcombine.low %v3035_v54, %v3039_v57  ;;  %v11408_v50 = vcombine.high %v3074_v39, %v3078_v53  ;;  %v3082_v54 = vld [vmem:[%s12873_s30 + $0x1f80] sm:$0xff] }
 0x4d7   : > { %v11378_v55 = vcombine.high %v3043_v4, %v3047_v13  ;;  %v3086_v57 = vld [vmem:[%s12873_s30 + $0x1fa0] sm:$0xff] }
 0x4d9   : > { %8512 = vmatpush1.bf16.msra.mxu0 %v11327_v14  ;;  %8840 = vmatpush1.bf16.msra.mxu1 %v11329_v16  ;;  %v3051_v14 = vld [vmem:[%s12873_s30 + $0x1e88] sm:$0xff] }
 0x4da   : > { %8513 = vmatprep.subr.bf16.mxu0 %v11336_v20  ;;  %8841 = vmatprep.subr.bf16.mxu1 %v11338_v23  ;;  %v3055_v16 = vld [vmem:[%s12873_s30 + $0x1ea8] sm:$0xff]  ;;  %v11375_v20 = vcombine.low %v3042_v0, %v3046_v1  ;;  %v11377_v23 = vcombine.low %v3043_v4, %v3047_v13  ;;  %v11416_v0 = vcombine.high %v3082_v54, %v3086_v57  ;;  %v3090_v4 = vld [vmem:[%s12873_s30 + $0x1fc0] sm:$0xff] }
 0x4db   : > { %v11386_v28 = vcombine.high %v3051_v14, %v3055_v16  ;;  %v3094_v13 = vld [vmem:[%s12873_s30 + $0x1fe0] sm:$0xff] }
 0x4dd   : > { %8514 = vmatpush1.bf16.msra.mxu0 %v11335_v34  ;;  %8842 = vmatpush1.bf16.msra.mxu1 %v11337_v15  ;;  %v3059_v34 = vld [vmem:[%s12873_s30 + $0x1ec8] sm:$0xff] }
 0x4de   : > { %8515 = vmatprep.subr.bf16.mxu0 %v11344_v21  ;;  %8843 = vmatprep.subr.bf16.mxu1 %v11346_v44  ;;  %v3063_v15 = vld [vmem:[%s12873_s30 + $0x1ee8] sm:$0xff]  ;;  %v11383_v21 = vcombine.low %v3050_v9, %v3054_v11  ;;  %v11385_v44 = vcombine.low %v3051_v14, %v3055_v16  ;;  %v11424_v9 = vcombine.high %v3090_v4, %v3094_v13  ;;  %v2076_v14 = vld [vmem:[%s12873_s30 + $0x10] sm:$0xff] }
 0x4df   : > { %v11394_v18 = vcombine.high %v3059_v34, %v3063_v15  ;;  %v2080_v16 = vld [vmem:[%s12873_s30 + $0x30] sm:$0xff] }
 0x4e1   : > { %8516 = vmatpush1.bf16.msra.mxu0 %v11343_v24  ;;  %8844 = vmatpush1.bf16.msra.mxu1 %v11345_v25  ;;  %v3067_v24 = vld [vmem:[%s12873_s30 + $0x1f08] sm:$0xff] }
 0x4e2   : > { %8517 = vmatprep.subr.bf16.mxu0 %v11352_v27  ;;  %8845 = vmatprep.subr.bf16.mxu1 %v11354_v47  ;;  %v3071_v25 = vld [vmem:[%s12873_s30 + $0x1f28] sm:$0xff]  ;;  %v11391_v27 = vcombine.low %v3058_v29, %v3062_v32  ;;  %v11393_v47 = vcombine.low %v3059_v34, %v3063_v15  ;;  %v10412_v29 = vcombine.high %v2076_v14, %v2080_v16  ;;  %v2084_v34 = vld [vmem:[%s12873_s30 + $0x50] sm:$0xff] }
 0x4e3   : > { %v11402_v36 = vcombine.high %v3067_v24, %v3071_v25  ;;  %v2088_v15 = vld [vmem:[%s12873_s30 + $0x70] sm:$0xff] }
 0x4e5   : > { %8518 = vmatpush1.bf16.msra.mxu0 %v11351_v17  ;;  %8846 = vmatpush1.bf16.msra.mxu1 %v11353_v42  ;;  %v3075_v17 = vld [vmem:[%s12873_s30 + $0x1f48] sm:$0xff] }
 0x4e6   : > { %8519 = vmatprep.subr.bf16.mxu0 %v11360_v43  ;;  %8847 = vmatprep.subr.bf16.mxu1 %v11362_v45  ;;  %v3079_v42 = vld [vmem:[%s12873_s30 + $0x1f68] sm:$0xff]  ;;  %v11399_v43 = vcombine.low %v3066_v10, %v3070_v41  ;;  %v11401_v45 = vcombine.low %v3067_v24, %v3071_v25  ;;  %v10420_v41 = vcombine.high %v2084_v34, %v2088_v15  ;;  %v2092_v25 = vld [vmem:[%s12873_s30 + $0x90] sm:$0xff] }
 0x4e7   : > { %v11410_v7 = vcombine.high %v3075_v17, %v3079_v42 }
 0x4e9   : > { %8520 = vmatpush1.bf16.msra.mxu0 %v11359_v60  ;;  %8848 = vmatpush1.bf16.msra.mxu1 %v11361_v61  ;;  %v3083_v60 = vld [vmem:[%s12873_s30 + $0x1f88] sm:$0xff] }
 0x4ea   : > { %8521 = vmatprep.subr.bf16.mxu0 %v11368_v62  ;;  %8849 = vmatprep.subr.bf16.mxu1 %v11370_v63  ;;  %v3087_v61 = vld [vmem:[%s12873_s30 + $0x1fa8] sm:$0xff]  ;;  %v11407_v62 = vcombine.low %v3074_v39, %v3078_v53  ;;  %v11409_v63 = vcombine.low %v3075_v17, %v3079_v42  ;;  %v2100_v17 = vld [vmem:[%s12873_s30 + $0xd0] sm:$0xff] }
 0x4eb   : > { %v11418_v1 = vcombine.high %v3083_v60, %v3087_v61  ;;  %v2104_v42 = vld [vmem:[%s12873_s30 + $0xf0] sm:$0xff] }
 0x4ed   : > { %8522 = vmatpush1.bf16.msra.mxu0 %v11367_v6  ;;  %8850 = vmatpush1.bf16.msra.mxu1 %v11369_v46  ;;  %v3091_v6 = vld [vmem:[%s12873_s30 + $0x1fc8] sm:$0xff] }
 0x4ee   : > { %8523 = vmatprep.subr.bf16.mxu0 %v11376_v8  ;;  %8851 = vmatprep.subr.bf16.mxu1 %v11378_v55  ;;  %v3095_v46 = vld [vmem:[%s12873_s30 + $0x1fe8] sm:$0xff]  ;;  %v11415_v8 = vcombine.low %v3082_v54, %v3086_v57  ;;  %v11417_v55 = vcombine.low %v3083_v60, %v3087_v61  ;;  %v10436_v54 = vcombine.high %v2100_v17, %v2104_v42  ;;  %v2108_v60 = vld [vmem:[%s12873_s30 + $0x110] sm:$0xff] }
 0x4ef   : > { %v11426_v11 = vcombine.high %v3091_v6, %v3095_v46  ;;  %v2112_v61 = vld [vmem:[%s12873_s30 + $0x130] sm:$0xff] }
 0x4f1   : > { %8524 = vmatpush1.bf16.msra.mxu0 %v11375_v20  ;;  %8852 = vmatpush1.bf16.msra.mxu1 %v11377_v23  ;;  %v2077_v20 = vld [vmem:[%s12873_s30 + $0x18] sm:$0xff] }
 0x4f2   : > { %8525 = vmatprep.subr.bf16.mxu0 %v11384_v26  ;;  %8853 = vmatprep.subr.bf16.mxu1 %v11386_v28  ;;  %v2081_v23 = vld [vmem:[%s12873_s30 + $0x38] sm:$0xff]  ;;  %v11423_v26 = vcombine.low %v3090_v4, %v3094_v13  ;;  %v11425_v28 = vcombine.low %v3091_v6, %v3095_v46  ;;  %v2116_v13 = vld [vmem:[%s12873_s30 + $0x150] sm:$0xff] }
 0x4f3   : > { %v10414_v32 = vcombine.high %v2077_v20, %v2081_v23  ;;  %v10413_v10 = vcombine.low %v2077_v20, %v2081_v23  ;;  %v2120_v6 = vld [vmem:[%s12873_s30 + $0x170] sm:$0xff]  ;;  %v2117_v46 = vld [vmem:[%s12873_s30 + $0x158] sm:$0xff] }
 0x4f4   : > { %v2128_v20 = vld [vmem:[%s12873_s30 + $0x1b0] sm:$0xff]  ;;  %v2125_v23 = vld [vmem:[%s12873_s30 + $0x198] sm:$0xff] }
 0x4f5   : > { %8526 = vmatpush1.bf16.msra.mxu0 %v11383_v21  ;;  %8854 = vmatpush1.bf16.msra.mxu1 %v11385_v44  ;;  %v13947_v21 = vpack.c.bf16 %v13863_v38, %v13863_v38  ;;  %v2085_v44 = vld [vmem:[%s12873_s30 + $0x58] sm:$0xff] }
 0x4f6   : > { %8527 = vmatprep.subr.bf16.mxu0 %v11392_v40  ;;  %8855 = vmatprep.subr.bf16.mxu1 %v11394_v18  ;;  %v2089_v40 = vld [vmem:[%s12873_s30 + $0x78] sm:$0xff]  ;;  %v10411_v18 = vcombine.low %v2076_v14, %v2080_v16  ;;  %v2124_v16 = vld [vmem:[%s12873_s30 + $0x190] sm:$0xff] }
 0x4f7   : > { %v10422_v24 = vcombine.high %v2085_v44, %v2089_v40  ;;  %v2093_v38 = vld [vmem:[%s12873_s30 + $0x98] sm:$0xff] }
 0x4f9   : > { %8528 = vmatpush1.bf16.msra.mxu0 %v11391_v27  ;;  %8856 = vmatpush1.bf16.msra.mxu1 %v11393_v47  ;;  %v2096_v27 = vld [vmem:[%s12873_s30 + $0xb0] sm:$0xff]  ;;  %v2097_v47 = vld [vmem:[%s12873_s30 + $0xb8] sm:$0xff] }
 0x4fa   : > { %8529 = vmatprep.subr.bf16.mxu0 %v11400_v33  ;;  %8857 = vmatprep.subr.bf16.mxu1 %v11402_v36  ;;  %v10419_v33 = vcombine.low %v2084_v34, %v2088_v15  ;;  %v10421_v36 = vcombine.low %v2085_v44, %v2089_v40  ;;  %v10428_v39 = vcombine.high %v2092_v25, %v2096_v27  ;;  %v2132_v15 = vld [vmem:[%s12873_s30 + $0x1d0] sm:$0xff]  ;;  %v2133_v40 = vld [vmem:[%s12873_s30 + $0x1d8] sm:$0xff] }
 0x4fb   : > { %v10430_v53 = vcombine.high %v2093_v38, %v2097_v47  ;;  %v2136_v44 = vld [vmem:[%s12873_s30 + $0x1f0] sm:$0xff] }
 0x4fd   : > { %8530 = vmatpush1.bf16.msra.mxu0 %v11399_v43  ;;  %8858 = vmatpush1.bf16.msra.mxu1 %v11401_v45  ;;  %v2101_v43 = vld [vmem:[%s12873_s30 + $0xd8] sm:$0xff] }
 0x4fe   : > { %8531 = vmatprep.subr.bf16.mxu0 %v11408_v50  ;;  %8859 = vmatprep.subr.bf16.mxu1 %v11410_v7  ;;  %v2105_v45 = vld [vmem:[%s12873_s30 + $0xf8] sm:$0xff]  ;;  %v10427_v50 = vcombine.low %v2092_v25, %v2096_v27  ;;  %v10429_v7 = vcombine.low %v2093_v38, %v2097_v47  ;;  %v2140_v27 = vld [vmem:[%s12873_s30 + $0x210] sm:$0xff] }
 0x4ff   : > { %v10438_v57 = vcombine.high %v2101_v43, %v2105_v45  ;;  %v2144_v38 = vld [vmem:[%s12873_s30 + $0x230] sm:$0xff]  ;;  %v2141_v47 = vld [vmem:[%s12873_s30 + $0x218] sm:$0xff] }
 0x501   : > { %8532 = vmatpush1.bf16.msra.mxu0 %v11407_v62  ;;  %8860 = vmatpush1.bf16.msra.mxu1 %v11409_v63  ;;  %v2109_v62 = vld [vmem:[%s12873_s30 + $0x118] sm:$0xff] }
 0x502   : > { %8533 = vmatprep.subr.bf16.mxu0 %v11416_v0  ;;  %8861 = vmatprep.subr.bf16.mxu1 %v11418_v1  ;;  %v2113_v63 = vld [vmem:[%s12873_s30 + $0x138] sm:$0xff]  ;;  %v10435_v0 = vcombine.low %v2100_v17, %v2104_v42  ;;  %v10444_v1 = vcombine.high %v2108_v60, %v2112_v61  ;;  %v2148_v42 = vld [vmem:[%s12873_s30 + $0x250] sm:$0xff] }
 0x503   : > { %v10446_v4 = vcombine.high %v2109_v62, %v2113_v63 }
 0x505   : > { %8534 = vmatpush1.bf16.msra.mxu0 %v11415_v8  ;;  %8862 = vmatpush1.bf16.msra.mxu1 %v11417_v55  ;;  %v2121_v8 = vld [vmem:[%s12873_s30 + $0x178] sm:$0xff]  ;;  %v10443_v55 = vcombine.low %v2108_v60, %v2112_v61  ;;  %v2156_v61 = vld [vmem:[%s12873_s30 + $0x290] sm:$0xff] }
 0x506   : > { %8535 = vmatprep.subr.bf16.mxu0 %v11424_v9  ;;  %8863 = vmatprep.subr.bf16.mxu1 %v11426_v11  ;;  %v10445_v9 = vcombine.low %v2109_v62, %v2113_v63  ;;  %v10452_v11 = vcombine.high %v2116_v13, %v2120_v6  ;;  %v10454_v14 = vcombine.high %v2117_v46, %v2121_v8  ;;  %v2160_v62 = vld [vmem:[%s12873_s30 + $0x2b0] sm:$0xff]  ;;  %v2157_v63 = vld [vmem:[%s12873_s30 + $0x298] sm:$0xff] }
 0x509   : > { %8536 = vmatpush1.bf16.msra.mxu0 %v11423_v26  ;;  %8864 = vmatpush1.bf16.msra.mxu1 %v11425_v28  ;;  %v2129_v26 = vld [vmem:[%s12873_s30 + $0x1b8] sm:$0xff]  ;;  %v10451_v28 = vcombine.low %v2116_v13, %v2120_v6  ;;  %v2164_v6 = vld [vmem:[%s12873_s30 + $0x2d0] sm:$0xff] }
 0x50a   : > { %8874 = vmatprep.subr.bf16.mxu0 %v10412_v29  ;;  %9202 = vmatprep.subr.bf16.mxu1 %v10414_v32  ;;  %v10453_v29 = vcombine.low %v2117_v46, %v2121_v8  ;;  %v10460_v32 = vcombine.high %v2124_v16, %v2128_v20  ;;  %v10462_v34 = vcombine.high %v2125_v23, %v2129_v26  ;;  %v2168_v46 = vld [vmem:[%s12873_s30 + $0x2f0] sm:$0xff]  ;;  %v2165_v8 = vld [vmem:[%s12873_s30 + $0x2d8] sm:$0xff] }
 0x50c   : > { %8538 = vmatmul.mubr.bf16.vlgmr.msra.gmra.mrb[0].mxu0 %v13947_v21  ;;  %8866 = vmatmul.mubr.bf16.vlgmr.msra.gmra.mrb[0].mxu1 %v13947_v21 }
 0x50d   : > { %8875 = vmatpush1.bf16.msra.mxu0 %v10411_v18  ;;  %9203 = vmatpush1.bf16.msra.mxu1 %v10413_v10  ;;  %v2137_v18 = vld [vmem:[%s12873_s30 + $0x1f8] sm:$0xff]  ;;  %v10459_v10 = vcombine.low %v2124_v16, %v2128_v20  ;;  %v2172_v20 = vld [vmem:[%s12873_s30 + $0x310] sm:$0xff] }
 0x50e   : > { %8876 = vmatprep.subr.bf16.mxu0 %v10420_v41  ;;  %9204 = vmatprep.subr.bf16.mxu1 %v10422_v24  ;;  %v10461_v41 = vcombine.low %v2125_v23, %v2129_v26  ;;  %v10468_v24 = vcombine.high %v2132_v15, %v2136_v44  ;;  %v10470_v25 = vcombine.high %v2133_v40, %v2137_v18  ;;  %v2176_v23 = vld [vmem:[%s12873_s30 + $0x330] sm:$0xff]  ;;  %v2173_v26 = vld [vmem:[%s12873_s30 + $0x318] sm:$0xff] }
 0x50f   : > { %8906 = vmatprep.mubr.bf16.mxu0 %v13332_v12  ;;  %9234 = vmatprep.mubr.bf16.mxu1 %v13332_v12  ;;  %v10437_v12 = vcombine.low %v2101_v43, %v2105_v45  ;;  %v2152_v43 = vld [vmem:[%s12873_s30 + $0x270] sm:$0xff]  ;;  %v2149_v45 = vld [vmem:[%s12873_s30 + $0x258] sm:$0xff] }
 0x511   : > { %8877 = vmatpush1.bf16.msra.mxu0 %v10419_v33  ;;  %9205 = vmatpush1.bf16.msra.mxu1 %v10421_v36  ;;  %v2145_v33 = vld [vmem:[%s12873_s30 + $0x238] sm:$0xff]  ;;  %v10467_v36 = vcombine.low %v2132_v15, %v2136_v44  ;;  %v2180_v44 = vld [vmem:[%s12873_s30 + $0x350] sm:$0xff] }
 0x512   : > { %8878 = vmatprep.subr.bf16.mxu0 %v10428_v39  ;;  %9206 = vmatprep.subr.bf16.mxu1 %v10430_v53  ;;  %v10469_v39 = vcombine.low %v2133_v40, %v2137_v18  ;;  %v10476_v53 = vcombine.high %v2140_v27, %v2144_v38  ;;  %v10478_v17 = vcombine.high %v2141_v47, %v2145_v33  ;;  %v2184_v40 = vld [vmem:[%s12873_s30 + $0x370] sm:$0xff]  ;;  %v2181_v18 = vld [vmem:[%s12873_s30 + $0x358] sm:$0xff] }
 0x515   : > { %8879 = vmatpush1.bf16.msra.mxu0 %v10427_v50  ;;  %9207 = vmatpush1.bf16.msra.mxu1 %v10429_v7  ;;  %v2153_v50 = vld [vmem:[%s12873_s30 + $0x278] sm:$0xff]  ;;  %v10475_v7 = vcombine.low %v2140_v27, %v2144_v38  ;;  %v2188_v38 = vld [vmem:[%s12873_s30 + $0x390] sm:$0xff] }
 0x516   : > { %8880 = vmatprep.subr.bf16.mxu0 %v10436_v54  ;;  %9208 = vmatprep.subr.bf16.mxu1 %v10438_v57  ;;  %v10477_v54 = vcombine.low %v2141_v47, %v2145_v33  ;;  %v10484_v57 = vcombine.high %v2148_v42, %v2152_v43  ;;  %v10486_v60 = vcombine.high %v2149_v45, %v2153_v50  ;;  %v2192_v47 = vld [vmem:[%s12873_s30 + $0x3b0] sm:$0xff]  ;;  %v2189_v33 = vld [vmem:[%s12873_s30 + $0x398] sm:$0xff] }
 0x519   : > { %8881 = vmatpush1.bf16.msra.mxu0 %v10435_v0  ;;  %9209 = vmatpush1.bf16.msra.mxu1 %v10437_v12  ;;  %v2161_v0 = vld [vmem:[%s12873_s30 + $0x2b8] sm:$0xff]  ;;  %v10483_v12 = vcombine.low %v2148_v42, %v2152_v43  ;;  %v2196_v43 = vld [vmem:[%s12873_s30 + $0x3d0] sm:$0xff] }
 0x51a   : > { %8882 = vmatprep.subr.bf16.mxu0 %v10444_v1  ;;  %9210 = vmatprep.subr.bf16.mxu1 %v10446_v4  ;;  %v10485_v1 = vcombine.low %v2149_v45, %v2153_v50  ;;  %v10492_v4 = vcombine.high %v2156_v61, %v2160_v62  ;;  %v10494_v13 = vcombine.high %v2157_v63, %v2161_v0  ;;  %v2200_v45 = vld [vmem:[%s12873_s30 + $0x3f0] sm:$0xff]  ;;  %v2197_v50 = vld [vmem:[%s12873_s30 + $0x3d8] sm:$0xff] }
 0x51d   : > { %8883 = vmatpush1.bf16.msra.mxu0 %v10443_v55  ;;  %9211 = vmatpush1.bf16.msra.mxu1 %v10445_v9  ;;  %v2169_v55 = vld [vmem:[%s12873_s30 + $0x2f8] sm:$0xff]  ;;  %v10491_v9 = vcombine.low %v2156_v61, %v2160_v62  ;;  %v2204_v62 = vld [vmem:[%s12873_s30 + $0x410] sm:$0xff] }
 0x51e   : > { %8884 = vmatprep.subr.bf16.mxu0 %v10452_v11  ;;  %9212 = vmatprep.subr.bf16.mxu1 %v10454_v14  ;;  %v10493_v11 = vcombine.low %v2157_v63, %v2161_v0  ;;  %v10500_v14 = vcombine.high %v2164_v6, %v2168_v46  ;;  %v10502_v16 = vcombine.high %v2165_v8, %v2169_v55  ;;  %v2208_v63 = vld [vmem:[%s12873_s30 + $0x430] sm:$0xff]  ;;  %v2205_v0 = vld [vmem:[%s12873_s30 + $0x418] sm:$0xff] }
 0x521   : > { %8885 = vmatpush1.bf16.msra.mxu0 %v10451_v28  ;;  %9213 = vmatpush1.bf16.msra.mxu1 %v10453_v29  ;;  %v2177_v28 = vld [vmem:[%s12873_s30 + $0x338] sm:$0xff]  ;;  %v10499_v29 = vcombine.low %v2164_v6, %v2168_v46  ;;  %v2212_v46 = vld [vmem:[%s12873_s30 + $0x450] sm:$0xff] }
 0x522   : > { %8886 = vmatprep.subr.bf16.mxu0 %v10460_v32  ;;  %9214 = vmatprep.subr.bf16.mxu1 %v10462_v34  ;;  %v10501_v32 = vcombine.low %v2165_v8, %v2169_v55  ;;  %v10508_v34 = vcombine.high %v2172_v20, %v2176_v23  ;;  %v10510_v15 = vcombine.high %v2173_v26, %v2177_v28  ;;  %v2216_v8 = vld [vmem:[%s12873_s30 + $0x470] sm:$0xff]  ;;  %v2213_v55 = vld [vmem:[%s12873_s30 + $0x458] sm:$0xff] }
 0x525   : > { %8887 = vmatpush1.bf16.msra.mxu0 %v10459_v10  ;;  %9215 = vmatpush1.bf16.msra.mxu1 %v10461_v41  ;;  %v2185_v10 = vld [vmem:[%s12873_s30 + $0x378] sm:$0xff]  ;;  %v10507_v41 = vcombine.low %v2172_v20, %v2176_v23  ;;  %v2220_v23 = vld [vmem:[%s12873_s30 + $0x490] sm:$0xff] }
 0x526   : > { %8888 = vmatprep.subr.bf16.mxu0 %v10468_v24  ;;  %9216 = vmatprep.subr.bf16.mxu1 %v10470_v25  ;;  %v10509_v24 = vcombine.low %v2173_v26, %v2177_v28  ;;  %v10516_v25 = vcombine.high %v2180_v44, %v2184_v40  ;;  %v10518_v27 = vcombine.high %v2181_v18, %v2185_v10  ;;  %v2224_v26 = vld [vmem:[%s12873_s30 + $0x4b0] sm:$0xff]  ;;  %v2221_v28 = vld [vmem:[%s12873_s30 + $0x498] sm:$0xff] }
 0x529   : > { %8889 = vmatpush1.bf16.msra.mxu0 %v10467_v36  ;;  %9217 = vmatpush1.bf16.msra.mxu1 %v10469_v39  ;;  %v2193_v36 = vld [vmem:[%s12873_s30 + $0x3b8] sm:$0xff]  ;;  %v10515_v39 = vcombine.low %v2180_v44, %v2184_v40  ;;  %v2228_v40 = vld [vmem:[%s12873_s30 + $0x4d0] sm:$0xff] }
 0x52a   : > { %8890 = vmatprep.subr.bf16.mxu0 %v10476_v53  ;;  %9218 = vmatprep.subr.bf16.mxu1 %v10478_v17  ;;  %v10517_v53 = vcombine.low %v2181_v18, %v2185_v10  ;;  %v10524_v17 = vcombine.high %v2188_v38, %v2192_v47  ;;  %v10526_v42 = vcombine.high %v2189_v33, %v2193_v36  ;;  %v2232_v18 = vld [vmem:[%s12873_s30 + $0x4f0] sm:$0xff]  ;;  %v2229_v10 = vld [vmem:[%s12873_s30 + $0x4d8] sm:$0xff] }
 0x52d   : > { %8891 = vmatpush1.bf16.msra.mxu0 %v10475_v7  ;;  %9219 = vmatpush1.bf16.msra.mxu1 %v10477_v54  ;;  %v2201_v7 = vld [vmem:[%s12873_s30 + $0x3f8] sm:$0xff]  ;;  %v10523_v54 = vcombine.low %v2188_v38, %v2192_v47  ;;  %v2236_v38 = vld [vmem:[%s12873_s30 + $0x510] sm:$0xff] }
 0x52e   : > { %8892 = vmatprep.subr.bf16.mxu0 %v10484_v57  ;;  %9220 = vmatprep.subr.bf16.mxu1 %v10486_v60  ;;  %v10525_v57 = vcombine.low %v2189_v33, %v2193_v36  ;;  %v10532_v60 = vcombine.high %v2196_v43, %v2200_v45  ;;  %v10534_v61 = vcombine.high %v2197_v50, %v2201_v7  ;;  %v2240_v47 = vld [vmem:[%s12873_s30 + $0x530] sm:$0xff]  ;;  %v2237_v33 = vld [vmem:[%s12873_s30 + $0x518] sm:$0xff] }
 0x52f   : > { %v2241_v36 = vld [vmem:[%s12873_s30 + $0x538] sm:$0xff] }
 0x531   : > { %8893 = vmatpush1.bf16.msra.mxu0 %v10483_v12  ;;  %9221 = vmatpush1.bf16.msra.mxu1 %v10485_v1  ;;  %v2209_v12 = vld [vmem:[%s12873_s30 + $0x438] sm:$0xff]  ;;  %v10531_v1 = vcombine.low %v2196_v43, %v2200_v45  ;;  %v2248_v43 = vld [vmem:[%s12873_s30 + $0x570] sm:$0xff] }
 0x532   : > { %8894 = vmatprep.subr.bf16.mxu0 %v10492_v4  ;;  %9222 = vmatprep.subr.bf16.mxu1 %v10494_v13  ;;  %v10533_v4 = vcombine.low %v2197_v50, %v2201_v7  ;;  %v10540_v13 = vcombine.high %v2204_v62, %v2208_v63  ;;  %v10542_v6 = vcombine.high %v2205_v0, %v2209_v12  ;;  %v2245_v45 = vld [vmem:[%s12873_s30 + $0x558] sm:$0xff] }
 0x533   : > { %v2249_v50 = vld [vmem:[%s12873_s30 + $0x578] sm:$0xff]  ;;  %v10571_v7 = vcombine.low %v2236_v38, %v2240_v47 }
 0x535   : > { %8895 = vmatpush1.bf16.msra.mxu0 %v10491_v9  ;;  %9223 = vmatpush1.bf16.msra.mxu1 %v10493_v11  ;;  %v2217_v9 = vld [vmem:[%s12873_s30 + $0x478] sm:$0xff]  ;;  %v10539_v11 = vcombine.low %v2204_v62, %v2208_v63  ;;  %v2256_v62 = vld [vmem:[%s12873_s30 + $0x5b0] sm:$0xff] }
 0x536   : > { %8896 = vmatprep.subr.bf16.mxu0 %v10500_v14  ;;  %9224 = vmatprep.subr.bf16.mxu1 %v10502_v16  ;;  %v10541_v14 = vcombine.low %v2205_v0, %v2209_v12  ;;  %v10548_v16 = vcombine.high %v2212_v46, %v2216_v8  ;;  %v10550_v20 = vcombine.high %v2213_v55, %v2217_v9  ;;  %v2253_v63 = vld [vmem:[%s12873_s30 + $0x598] sm:$0xff] }
 0x537   : > { %v2257_v0 = vld [vmem:[%s12873_s30 + $0x5b8] sm:$0xff] }
 0x539   : > { %8897 = vmatpush1.bf16.msra.mxu0 %v10499_v29  ;;  %9225 = vmatpush1.bf16.msra.mxu1 %v10501_v32  ;;  %v2225_v29 = vld [vmem:[%s12873_s30 + $0x4b8] sm:$0xff]  ;;  %v10547_v32 = vcombine.low %v2212_v46, %v2216_v8  ;;  %v2264_v46 = vld [vmem:[%s12873_s30 + $0x5f0] sm:$0xff] }
 0x53a   : > { %8898 = vmatprep.subr.bf16.mxu0 %v10508_v34  ;;  %9226 = vmatprep.subr.bf16.mxu1 %v10510_v15  ;;  %v10549_v34 = vcombine.low %v2213_v55, %v2217_v9  ;;  %v10556_v15 = vcombine.high %v2220_v23, %v2224_v26  ;;  %v10558_v44 = vcombine.high %v2221_v28, %v2225_v29  ;;  %v2261_v8 = vld [vmem:[%s12873_s30 + $0x5d8] sm:$0xff] }
 0x53b   : > { %v2265_v55 = vld [vmem:[%s12873_s30 + $0x5f8] sm:$0xff] }
 0x53d   : > { %8899 = vmatpush1.bf16.msra.mxu0 %v10507_v41  ;;  %9227 = vmatpush1.bf16.msra.mxu1 %v10509_v24  ;;  %v2233_v41 = vld [vmem:[%s12873_s30 + $0x4f8] sm:$0xff]  ;;  %v10557_v24 = vcombine.low %v2221_v28, %v2225_v29 }
 0x53e   : > { %8900 = vmatprep.subr.bf16.mxu0 %v10516_v25  ;;  %9228 = vmatprep.subr.bf16.mxu1 %v10518_v27  ;;  %v10564_v25 = vcombine.high %v2228_v40, %v2232_v18  ;;  %v10566_v27 = vcombine.high %v2229_v10, %v2233_v41  ;;  %v2273_v28 = vld [vmem:[%s12873_s30 + $0x638] sm:$0xff] }
 0x541   : > { %8901 = vmatpush1.bf16.msra.mxu0 %v10515_v39  ;;  %9229 = vmatpush1.bf16.msra.mxu1 %v10517_v53  ;;  %v10563_v39 = vcombine.low %v2228_v40, %v2232_v18  ;;  %v10572_v53 = vcombine.high %v2236_v38, %v2240_v47  ;;  %v2280_v40 = vld [vmem:[%s12873_s30 + $0x670] sm:$0xff]  ;;  %v2277_v18 = vld [vmem:[%s12873_s30 + $0x658] sm:$0xff] }
 0x542   : > { %8902 = vmatprep.subr.bf16.mxu0 %v10524_v17  ;;  %9230 = vmatprep.subr.bf16.mxu1 %v10526_v42  ;;  %v10574_v17 = vcombine.high %v2237_v33, %v2241_v36  ;;  %v2244_v42 = vld [vmem:[%s12873_s30 + $0x550] sm:$0xff]  ;;  %v2285_v47 = vld [vmem:[%s12873_s30 + $0x698] sm:$0xff] }
 0x543   : > { %v10579_v12 = vcombine.low %v2244_v42, %v2248_v43  ;;  %v2288_v38 = vld [vmem:[%s12873_s30 + $0x6b0] sm:$0xff] }
 0x545   : > { %8903 = vmatpush1.bf16.msra.mxu0 %v10523_v54  ;;  %9231 = vmatpush1.bf16.msra.mxu1 %v10525_v57  ;;  %v10573_v54 = vcombine.low %v2237_v33, %v2241_v36  ;;  %v10580_v57 = vcombine.high %v2244_v42, %v2248_v43  ;;  %v2289_v33 = vld [vmem:[%s12873_s30 + $0x6b8] sm:$0xff]  ;;  %v2296_v42 = vld [vmem:[%s12873_s30 + $0x6f0] sm:$0xff] }
 0x546   : > { %8904 = vmatprep.subr.bf16.mxu0 %v10532_v60  ;;  %9232 = vmatprep.subr.bf16.mxu1 %v10534_v61  ;;  %v10582_v60 = vcombine.high %v2245_v45, %v2249_v50  ;;  %v2252_v61 = vld [vmem:[%s12873_s30 + $0x590] sm:$0xff]  ;;  %v2293_v43 = vld [vmem:[%s12873_s30 + $0x6d8] sm:$0xff] }
 0x547   : > { %v10587_v9 = vcombine.low %v2252_v61, %v2256_v62 }
 0x549   : > { %8905 = vmatpush1.bf16.msra.mxu0 %v10531_v1  ;;  %9233 = vmatpush1.bf16.msra.mxu1 %v10533_v4  ;;  %v10581_v1 = vcombine.low %v2245_v45, %v2249_v50  ;;  %v10588_v4 = vcombine.high %v2252_v61, %v2256_v62  ;;  %v2297_v45 = vld [vmem:[%s12873_s30 + $0x6f8] sm:$0xff]  ;;  %v2304_v61 = vld [vmem:[%s12873_s30 + $0x730] sm:$0xff] }
 0x54a   : > { %8915 = vmatprep.subr.bf16.mxu0 %v10540_v13  ;;  %9243 = vmatprep.subr.bf16.mxu1 %v10542_v6  ;;  %v10590_v13 = vcombine.high %v2253_v63, %v2257_v0  ;;  %v2260_v6 = vld [vmem:[%s12873_s30 + $0x5d0] sm:$0xff]  ;;  %v2301_v62 = vld [vmem:[%s12873_s30 + $0x718] sm:$0xff] }
 0x54b   : > { %v10595_v29 = vcombine.low %v2260_v6, %v2264_v46 }
 0x54c   : > { %8907 = vmatmul.mubr.bf16.vlgmr.msra.gmra.mrb[4].mxu0 %v13381_v30  ;;  %9235 = vmatmul.mubr.bf16.vlgmr.msra.gmra.mrb[4].mxu1 %v13381_v30  ;;  %v10555_v30 = vcombine.low %v2220_v23, %v2224_v26  ;;  %v2272_v23 = vld [vmem:[%s12873_s30 + $0x630] sm:$0xff]  ;;  %v2269_v26 = vld [vmem:[%s12873_s30 + $0x618] sm:$0xff] }
 0x54d   : > { %8916 = vmatpush1.bf16.msra.mxu0 %v10539_v11  ;;  %9244 = vmatpush1.bf16.msra.mxu1 %v10541_v14  ;;  %v10589_v11 = vcombine.low %v2253_v63, %v2257_v0  ;;  %v10596_v14 = vcombine.high %v2260_v6, %v2264_v46  ;;  %v2305_v63 = vld [vmem:[%s12873_s30 + $0x738] sm:$0xff]  ;;  %v2312_v6 = vld [vmem:[%s12873_s30 + $0x770] sm:$0xff] }
 0x54e   : > { %8917 = vmatprep.subr.bf16.mxu0 %v10548_v16  ;;  %9245 = vmatprep.subr.bf16.mxu1 %v10550_v20  ;;  %v10598_v16 = vcombine.high %v2261_v8, %v2265_v55  ;;  %v2268_v20 = vld [vmem:[%s12873_s30 + $0x610] sm:$0xff]  ;;  %v2309_v46 = vld [vmem:[%s12873_s30 + $0x758] sm:$0xff] }
 0x54f   : > { %8947 = vmatprep.mubr.bf16.mxu0 %v13387_v56  ;;  %9275 = vmatprep.mubr.bf16.mxu1 %v13387_v56  ;;  %v10565_v56 = vcombine.low %v2229_v10, %v2233_v41  ;;  %v2281_v10 = vld [vmem:[%s12873_s30 + $0x678] sm:$0xff]  ;;  %v10603_v41 = vcombine.low %v2268_v20, %v2272_v23 }
 0x551   : > { %8918 = vmatpush1.bf16.msra.mxu0 %v10547_v32  ;;  %9246 = vmatpush1.bf16.msra.mxu1 %v10549_v34  ;;  %v10597_v32 = vcombine.low %v2261_v8, %v2265_v55  ;;  %v10604_v34 = vcombine.high %v2268_v20, %v2272_v23  ;;  %v2313_v8 = vld [vmem:[%s12873_s30 + $0x778] sm:$0xff]  ;;  %v2320_v20 = vld [vmem:[%s12873_s30 + $0x7b0] sm:$0xff] }
 0x552   : > { %8919 = vmatprep.subr.bf16.mxu0 %v10556_v15  ;;  %9247 = vmatprep.subr.bf16.mxu1 %v10558_v44  ;;  %v10606_v15 = vcombine.high %v2269_v26, %v2273_v28  ;;  %v2276_v44 = vld [vmem:[%s12873_s30 + $0x650] sm:$0xff]  ;;  %v2317_v23 = vld [vmem:[%s12873_s30 + $0x798] sm:$0xff] }
 0x553   : > { %v10611_v36 = vcombine.low %v2276_v44, %v2280_v40 }
 0x555   : > { %8920 = vmatpush1.bf16.msra.mxu0 %v10555_v30  ;;  %9248 = vmatpush1.bf16.msra.mxu1 %v10557_v24  ;;  %v10605_v30 = vcombine.low %v2269_v26, %v2273_v28  ;;  %v10612_v24 = vcombine.high %v2276_v44, %v2280_v40  ;;  %v2321_v26 = vld [vmem:[%s12873_s30 + $0x7b8] sm:$0xff]  ;;  %v2328_v44 = vld [vmem:[%s12873_s30 + $0x7f0] sm:$0xff] }
 0x556   : > { %8921 = vmatprep.subr.bf16.mxu0 %v10564_v25  ;;  %9249 = vmatprep.subr.bf16.mxu1 %v10566_v27  ;;  %v10614_v25 = vcombine.high %v2277_v18, %v2281_v10  ;;  %v2284_v27 = vld [vmem:[%s12873_s30 + $0x690] sm:$0xff]  ;;  %v2325_v40 = vld [vmem:[%s12873_s30 + $0x7d8] sm:$0xff] }
 0x557   : > { %v10619_v50 = vcombine.low %v2284_v27, %v2288_v38 }
 0x559   : > { %8922 = vmatpush1.bf16.msra.mxu0 %v10563_v39  ;;  %9250 = vmatpush1.bf16.msra.mxu1 %v10565_v56  ;;  %v10613_v39 = vcombine.low %v2277_v18, %v2281_v10  ;;  %v10620_v56 = vcombine.high %v2284_v27, %v2288_v38  ;;  %v2329_v18 = vld [vmem:[%s12873_s30 + $0x7f8] sm:$0xff]  ;;  %v2336_v27 = vld [vmem:[%s12873_s30 + $0x830] sm:$0xff] }
 0x55a   : > { %8923 = vmatprep.subr.bf16.mxu0 %v10572_v53  ;;  %9251 = vmatprep.subr.bf16.mxu1 %v10574_v17  ;;  %v10622_v53 = vcombine.high %v2285_v47, %v2289_v33  ;;  %v2292_v17 = vld [vmem:[%s12873_s30 + $0x6d0] sm:$0xff]  ;;  %v2333_v38 = vld [vmem:[%s12873_s30 + $0x818] sm:$0xff] }
 0x55b   : > { %v10627_v0 = vcombine.low %v2292_v17, %v2296_v42 }
 0x55d   : > { %8924 = vmatpush1.bf16.msra.mxu0 %v10571_v7  ;;  %9252 = vmatpush1.bf16.msra.mxu1 %v10573_v54  ;;  %v10621_v7 = vcombine.low %v2285_v47, %v2289_v33  ;;  %v10628_v54 = vcombine.high %v2292_v17, %v2296_v42  ;;  %v2337_v47 = vld [vmem:[%s12873_s30 + $0x838] sm:$0xff]  ;;  %v2344_v17 = vld [vmem:[%s12873_s30 + $0x870] sm:$0xff] }
 0x55e   : > { %8925 = vmatprep.subr.bf16.mxu0 %v10580_v57  ;;  %9253 = vmatprep.subr.bf16.mxu1 %v10582_v60  ;;  %v10630_v57 = vcombine.high %v2293_v43, %v2297_v45  ;;  %v2300_v60 = vld [vmem:[%s12873_s30 + $0x710] sm:$0xff]  ;;  %v2341_v42 = vld [vmem:[%s12873_s30 + $0x858] sm:$0xff] }
 0x55f   : > { %v10635_v55 = vcombine.low %v2300_v60, %v2304_v61 }
 0x561   : > { %8926 = vmatpush1.bf16.msra.mxu0 %v10579_v12  ;;  %9254 = vmatpush1.bf16.msra.mxu1 %v10581_v1  ;;  %v10629_v12 = vcombine.low %v2293_v43, %v2297_v45  ;;  %v10636_v1 = vcombine.high %v2300_v60, %v2304_v61  ;;  %v2345_v43 = vld [vmem:[%s12873_s30 + $0x878] sm:$0xff]  ;;  %v2352_v60 = vld [vmem:[%s12873_s30 + $0x8b0] sm:$0xff] }
 0x562   : > { %8927 = vmatprep.subr.bf16.mxu0 %v10588_v4  ;;  %9255 = vmatprep.subr.bf16.mxu1 %v10590_v13  ;;  %v10638_v4 = vcombine.high %v2301_v62, %v2305_v63  ;;  %v2308_v13 = vld [vmem:[%s12873_s30 + $0x750] sm:$0xff]  ;;  %v2349_v61 = vld [vmem:[%s12873_s30 + $0x898] sm:$0xff] }
 0x563   : > { %v10643_v28 = vcombine.low %v2308_v13, %v2312_v6 }
 0x565   : > { %8928 = vmatpush1.bf16.msra.mxu0 %v10587_v9  ;;  %9256 = vmatpush1.bf16.msra.mxu1 %v10589_v11  ;;  %v10637_v9 = vcombine.low %v2301_v62, %v2305_v63  ;;  %v10644_v11 = vcombine.high %v2308_v13, %v2312_v6  ;;  %v2353_v62 = vld [vmem:[%s12873_s30 + $0x8b8] sm:$0xff]  ;;  %v2360_v13 = vld [vmem:[%s12873_s30 + $0x8f0] sm:$0xff] }
 0x566   : > { %8929 = vmatprep.subr.bf16.mxu0 %v10596_v14  ;;  %9257 = vmatprep.subr.bf16.mxu1 %v10598_v16  ;;  %v10646_v14 = vcombine.high %v2309_v46, %v2313_v8  ;;  %v2316_v16 = vld [vmem:[%s12873_s30 + $0x790] sm:$0xff]  ;;  %v2357_v6 = vld [vmem:[%s12873_s30 + $0x8d8] sm:$0xff] }
 0x567   : > { %v10651_v10 = vcombine.low %v2316_v16, %v2320_v20 }
 0x569   : > { %8930 = vmatpush1.bf16.msra.mxu0 %v10595_v29  ;;  %9258 = vmatpush1.bf16.msra.mxu1 %v10597_v32  ;;  %v10645_v29 = vcombine.low %v2309_v46, %v2313_v8  ;;  %v10652_v32 = vcombine.high %v2316_v16, %v2320_v20  ;;  %v2361_v46 = vld [vmem:[%s12873_s30 + $0x8f8] sm:$0xff]  ;;  %v10685_v8 = vcombine.low %v2349_v61, %v2353_v62 }
 0x56a   : > { %8931 = vmatprep.subr.bf16.mxu0 %v10604_v34  ;;  %9259 = vmatprep.subr.bf16.mxu1 %v10606_v15  ;;  %v10654_v34 = vcombine.high %v2317_v23, %v2321_v26  ;;  %v2324_v15 = vld [vmem:[%s12873_s30 + $0x7d0] sm:$0xff]  ;;  %v2365_v16 = vld [vmem:[%s12873_s30 + $0x918] sm:$0xff] }
 0x56b   : > { %v10659_v33 = vcombine.low %v2324_v15, %v2328_v44  ;;  %v2369_v20 = vld [vmem:[%s12873_s30 + $0x938] sm:$0xff] }
 0x56d   : > { %8932 = vmatpush1.bf16.msra.mxu0 %v10603_v41  ;;  %9260 = vmatpush1.bf16.msra.mxu1 %v10605_v30  ;;  %v10653_v41 = vcombine.low %v2317_v23, %v2321_v26  ;;  %v10660_v30 = vcombine.high %v2324_v15, %v2328_v44  ;;  %v2377_v15 = vld [vmem:[%s12873_s30 + $0x978] sm:$0xff] }
 0x56e   : > { %8933 = vmatprep.subr.bf16.mxu0 %v10612_v24  ;;  %9261 = vmatprep.subr.bf16.mxu1 %v10614_v25  ;;  %v10662_v24 = vcombine.high %v2325_v40, %v2329_v18  ;;  %v2332_v25 = vld [vmem:[%s12873_s30 + $0x810] sm:$0xff] }
 0x56f   : > { %v10667_v45 = vcombine.low %v2332_v25, %v2336_v27 }
 0x571   : > { %8934 = vmatpush1.bf16.msra.mxu0 %v10611_v36  ;;  %9262 = vmatpush1.bf16.msra.mxu1 %v10613_v39  ;;  %v10661_v36 = vcombine.low %v2325_v40, %v2329_v18  ;;  %v10668_v39 = vcombine.high %v2332_v25, %v2336_v27  ;;  %v10701_v40 = vcombine.low %v2365_v16, %v2369_v20  ;;  %v2385_v25 = vld [vmem:[%s12873_s30 + $0x9b8] sm:$0xff] }
 0x572   : > { %8935 = vmatprep.subr.bf16.mxu0 %v10620_v56  ;;  %9263 = vmatprep.subr.bf16.mxu1 %v10622_v53  ;;  %v10670_v56 = vcombine.high %v2333_v38, %v2337_v47  ;;  %v2340_v53 = vld [vmem:[%s12873_s30 + $0x850] sm:$0xff] }
 0x573   : > { %v10675_v63 = vcombine.low %v2340_v53, %v2344_v17 }
 0x575   : > { %8936 = vmatpush1.bf16.msra.mxu0 %v10619_v50  ;;  %9264 = vmatpush1.bf16.msra.mxu1 %v10621_v7  ;;  %v10669_v50 = vcombine.low %v2333_v38, %v2337_v47  ;;  %v10676_v7 = vcombine.high %v2340_v53, %v2344_v17  ;;  %v2393_v53 = vld [vmem:[%s12873_s30 + $0x9f8] sm:$0xff] }
 0x576   : > { %8937 = vmatprep.subr.bf16.mxu0 %v10628_v54  ;;  %9265 = vmatprep.subr.bf16.mxu1 %v10630_v57  ;;  %v10678_v54 = vcombine.high %v2341_v42, %v2345_v43  ;;  %v2348_v57 = vld [vmem:[%s12873_s30 + $0x890] sm:$0xff] }
 0x579   : > { %8938 = vmatpush1.bf16.msra.mxu0 %v10627_v0  ;;  %9266 = vmatpush1.bf16.msra.mxu1 %v10629_v12  ;;  %v10677_v0 = vcombine.low %v2341_v42, %v2345_v43  ;;  %v10684_v12 = vcombine.high %v2348_v57, %v2352_v60 }
 0x57a   : > { %8939 = vmatprep.subr.bf16.mxu0 %v10636_v1  ;;  %9267 = vmatprep.subr.bf16.mxu1 %v10638_v4  ;;  %v10686_v1 = vcombine.high %v2349_v61, %v2353_v62  ;;  %v2356_v4 = vld [vmem:[%s12873_s30 + $0x8d0] sm:$0xff] }
 0x57b   : > { %v10691_v23 = vcombine.low %v2356_v4, %v2360_v13 }
 0x57d   : > { %8940 = vmatpush1.bf16.msra.mxu0 %v10635_v55  ;;  %9268 = vmatpush1.bf16.msra.mxu1 %v10637_v9  ;;  %v10692_v55 = vcombine.high %v2356_v4, %v2360_v13  ;;  %v10694_v9 = vcombine.high %v2357_v6, %v2361_v46  ;;  %v2409_v4 = vld [vmem:[%s12873_s30 + $0xa78] sm:$0xff] }
 0x57e   : > { %8941 = vmatprep.subr.bf16.mxu0 %v10644_v11  ;;  %9269 = vmatprep.subr.bf16.mxu1 %v10646_v14  ;;  %v2364_v11 = vld [vmem:[%s12873_s30 + $0x910] sm:$0xff] }
 0x57f   : > { %v2368_v14 = vld [vmem:[%s12873_s30 + $0x930] sm:$0xff] }
 0x580   : > { %v10700_v26 = vcombine.high %v2364_v11, %v2368_v14  ;;  %v10699_v44 = vcombine.low %v2364_v11, %v2368_v14  ;;  %v2417_v11 = vld [vmem:[%s12873_s30 + $0xab8] sm:$0xff] }
 0x581   : > { %8942 = vmatpush1.bf16.msra.mxu0 %v10643_v28  ;;  %9270 = vmatpush1.bf16.msra.mxu1 %v10645_v29  ;;  %v10702_v28 = vcombine.high %v2365_v16, %v2369_v20  ;;  %v2372_v29 = vld [vmem:[%s12873_s30 + $0x950] sm:$0xff] }
 0x582   : > { %8943 = vmatprep.subr.bf16.mxu0 %v10652_v32  ;;  %9271 = vmatprep.subr.bf16.mxu1 %v10654_v34  ;;  %v2376_v32 = vld [vmem:[%s12873_s30 + $0x970] sm:$0xff]  ;;  %v2373_v34 = vld [vmem:[%s12873_s30 + $0x958] sm:$0xff] }
 0x583   : > { %v10708_v18 = vcombine.high %v2372_v29, %v2376_v32  ;;  %v10707_v27 = vcombine.low %v2372_v29, %v2376_v32  ;;  %v10709_v38 = vcombine.low %v2373_v34, %v2377_v15  ;;  %v2425_v29 = vld [vmem:[%s12873_s30 + $0xaf8] sm:$0xff] }
 0x585   : > { %8944 = vmatpush1.bf16.msra.mxu0 %v10651_v10  ;;  %9272 = vmatpush1.bf16.msra.mxu1 %v10653_v41  ;;  %v10710_v10 = vcombine.high %v2373_v34, %v2377_v15  ;;  %v2380_v41 = vld [vmem:[%s12873_s30 + $0x990] sm:$0xff] }
 0x586   : > { %8945 = vmatprep.subr.bf16.mxu0 %v10660_v30  ;;  %9273 = vmatprep.subr.bf16.mxu1 %v10662_v24  ;;  %v2384_v30 = vld [vmem:[%s12873_s30 + $0x9b0] sm:$0xff]  ;;  %v2381_v24 = vld [vmem:[%s12873_s30 + $0x998] sm:$0xff] }
 0x587   : > { %v10716_v47 = vcombine.high %v2380_v41, %v2384_v30  ;;  %v10715_v17 = vcombine.low %v2380_v41, %v2384_v30  ;;  %v10717_v42 = vcombine.low %v2381_v24, %v2385_v25  ;;  %v2433_v41 = vld [vmem:[%s12873_s30 + $0xb38] sm:$0xff] }
 0x589   : > { %8946 = vmatpush1.bf16.msra.mxu0 %v10659_v33  ;;  %9274 = vmatpush1.bf16.msra.mxu1 %v10661_v36  ;;  %v10718_v33 = vcombine.high %v2381_v24, %v2385_v25  ;;  %v2388_v36 = vld [vmem:[%s12873_s30 + $0x9d0] sm:$0xff] }
 0x58a   : > { %8956 = vmatprep.subr.bf16.mxu0 %v10668_v39  ;;  %9284 = vmatprep.subr.bf16.mxu1 %v10670_v56  ;;  %v2392_v39 = vld [vmem:[%s12873_s30 + $0x9f0] sm:$0xff]  ;;  %v2389_v56 = vld [vmem:[%s12873_s30 + $0x9d8] sm:$0xff] }
 0x58b   : > { %v10724_v43 = vcombine.high %v2388_v36, %v2392_v39  ;;  %v10725_v61 = vcombine.low %v2389_v56, %v2393_v53 }
 0x58c   : > { %8948 = vmatmul.mubr.bf16.vlgmr.msra.gmra.mrb[4].mxu0 %v13464_v51  ;;  %9276 = vmatmul.mubr.bf16.vlgmr.msra.gmra.mrb[4].mxu1 %v13464_v51  ;;  %v10683_v51 = vcombine.low %v2348_v57, %v2352_v60  ;;  %v2401_v57 = vld [vmem:[%s12873_s30 + $0xa38] sm:$0xff]  ;;  %v10723_v60 = vcombine.low %v2388_v36, %v2392_v39 }
 0x58d   : > { %8957 = vmatpush1.bf16.msra.mxu0 %v10667_v45  ;;  %9285 = vmatpush1.bf16.msra.mxu1 %v10669_v50  ;;  %v10726_v45 = vcombine.high %v2389_v56, %v2393_v53  ;;  %v2396_v50 = vld [vmem:[%s12873_s30 + $0xa10] sm:$0xff]  ;;  %v2441_v36 = vld [vmem:[%s12873_s30 + $0xb78] sm:$0xff] }
 0x58e   : > { %8958 = vmatprep.subr.bf16.mxu0 %v10676_v7  ;;  %9286 = vmatprep.subr.bf16.mxu1 %v10678_v54  ;;  %v2400_v7 = vld [vmem:[%s12873_s30 + $0xa30] sm:$0xff]  ;;  %v2397_v54 = vld [vmem:[%s12873_s30 + $0xa18] sm:$0xff] }
 0x58f   : > { %8988 = vmatprep.mubr.bf16.mxu0 %v13470_v3  ;;  %9316 = vmatprep.mubr.bf16.mxu1 %v13470_v3  ;;  %v10693_v3 = vcombine.low %v2357_v6, %v2361_v46  ;;  %v10732_v62 = vcombine.high %v2396_v50, %v2400_v7  ;;  %v10731_v13 = vcombine.low %v2396_v50, %v2400_v7  ;;  %v2449_v50 = vld [vmem:[%s12873_s30 + $0xbb8] sm:$0xff] }
 0x590   : > { %v10733_v6 = vcombine.low %v2397_v54, %v2401_v57 }
 0x591   : > { %8959 = vmatpush1.bf16.msra.mxu0 %v10675_v63  ;;  %9287 = vmatpush1.bf16.msra.mxu1 %v10677_v0  ;;  %v10734_v63 = vcombine.high %v2397_v54, %v2401_v57  ;;  %v2404_v0 = vld [vmem:[%s12873_s30 + $0xa50] sm:$0xff] }
 0x592   : > { %8960 = vmatprep.subr.bf16.mxu0 %v10684_v12  ;;  %9288 = vmatprep.subr.bf16.mxu1 %v10686_v1  ;;  %v2408_v12 = vld [vmem:[%s12873_s30 + $0xa70] sm:$0xff]  ;;  %v2405_v1 = vld [vmem:[%s12873_s30 + $0xa58] sm:$0xff] }
 0x593   : > { %v10740_v46 = vcombine.high %v2404_v0, %v2408_v12  ;;  %v10739_v14 = vcombine.low %v2404_v0, %v2408_v12  ;;  %v10741_v16 = vcombine.low %v2405_v1, %v2409_v4  ;;  %v2457_v0 = vld [vmem:[%s12873_s30 + $0xbf8] sm:$0xff] }
 0x595   : > { %8961 = vmatpush1.bf16.msra.mxu0 %v10683_v51  ;;  %9289 = vmatpush1.bf16.msra.mxu1 %v10685_v8  ;;  %v10742_v51 = vcombine.high %v2405_v1, %v2409_v4  ;;  %v2412_v8 = vld [vmem:[%s12873_s30 + $0xa90] sm:$0xff] }
 0x596   : > { %8962 = vmatprep.subr.bf16.mxu0 %v10692_v55  ;;  %9290 = vmatprep.subr.bf16.mxu1 %v10694_v9  ;;  %v2416_v55 = vld [vmem:[%s12873_s30 + $0xab0] sm:$0xff]  ;;  %v2413_v9 = vld [vmem:[%s12873_s30 + $0xa98] sm:$0xff] }
 0x597   : > { %v10748_v20 = vcombine.high %v2412_v8, %v2416_v55  ;;  %v10747_v32 = vcombine.low %v2412_v8, %v2416_v55  ;;  %v10749_v34 = vcombine.low %v2413_v9, %v2417_v11  ;;  %v2465_v8 = vld [vmem:[%s12873_s30 + $0xc38] sm:$0xff] }
 0x599   : > { %8963 = vmatpush1.bf16.msra.mxu0 %v10691_v23  ;;  %9291 = vmatpush1.bf16.msra.mxu1 %v10693_v3  ;;  %v10750_v23 = vcombine.high %v2413_v9, %v2417_v11  ;;  %v2420_v3 = vld [vmem:[%s12873_s30 + $0xad0] sm:$0xff] }
 0x59a   : > { %8964 = vmatprep.subr.bf16.mxu0 %v10700_v26  ;;  %9292 = vmatprep.subr.bf16.mxu1 %v10702_v28  ;;  %v2424_v26 = vld [vmem:[%s12873_s30 + $0xaf0] sm:$0xff]  ;;  %v2421_v28 = vld [vmem:[%s12873_s30 + $0xad8] sm:$0xff] }
 0x59b   : > { %v10756_v15 = vcombine.high %v2420_v3, %v2424_v26  ;;  %v10755_v30 = vcombine.low %v2420_v3, %v2424_v26  ;;  %v10757_v24 = vcombine.low %v2421_v28, %v2425_v29  ;;  %v2473_v3 = vld [vmem:[%s12873_s30 + $0xc78] sm:$0xff] }
 0x59d   : > { %8965 = vmatpush1.bf16.msra.mxu0 %v10699_v44  ;;  %9293 = vmatpush1.bf16.msra.mxu1 %v10701_v40  ;;  %v10758_v44 = vcombine.high %v2421_v28, %v2425_v29  ;;  %v2428_v40 = vld [vmem:[%s12873_s30 + $0xb10] sm:$0xff] }
 0x59e   : > { %8966 = vmatprep.subr.bf16.mxu0 %v10708_v18  ;;  %9294 = vmatprep.subr.bf16.mxu1 %v10710_v10  ;;  %v2432_v18 = vld [vmem:[%s12873_s30 + $0xb30] sm:$0xff]  ;;  %v2429_v10 = vld [vmem:[%s12873_s30 + $0xb18] sm:$0xff] }
 0x59f   : > { %v10764_v25 = vcombine.high %v2428_v40, %v2432_v18  ;;  %v10763_v39 = vcombine.low %v2428_v40, %v2432_v18  ;;  %v10765_v56 = vcombine.low %v2429_v10, %v2433_v41  ;;  %v2481_v40 = vld [vmem:[%s12873_s30 + $0xcb8] sm:$0xff] }
 0x5a1   : > { %8967 = vmatpush1.bf16.msra.mxu0 %v10707_v27  ;;  %9295 = vmatpush1.bf16.msra.mxu1 %v10709_v38  ;;  %v10766_v27 = vcombine.high %v2429_v10, %v2433_v41  ;;  %v2436_v38 = vld [vmem:[%s12873_s30 + $0xb50] sm:$0xff] }
 0x5a2   : > { %8968 = vmatprep.subr.bf16.mxu0 %v10716_v47  ;;  %9296 = vmatprep.subr.bf16.mxu1 %v10718_v33  ;;  %v2440_v47 = vld [vmem:[%s12873_s30 + $0xb70] sm:$0xff]  ;;  %v2437_v33 = vld [vmem:[%s12873_s30 + $0xb58] sm:$0xff] }
 0x5a3   : > { %v10772_v53 = vcombine.high %v2436_v38, %v2440_v47  ;;  %v10771_v7 = vcombine.low %v2436_v38, %v2440_v47  ;;  %v10773_v54 = vcombine.low %v2437_v33, %v2441_v36  ;;  %v2489_v38 = vld [vmem:[%s12873_s30 + $0xcf8] sm:$0xff] }
 0x5a5   : > { %8969 = vmatpush1.bf16.msra.mxu0 %v10715_v17  ;;  %9297 = vmatpush1.bf16.msra.mxu1 %v10717_v42  ;;  %v10774_v17 = vcombine.high %v2437_v33, %v2441_v36  ;;  %v2444_v42 = vld [vmem:[%s12873_s30 + $0xb90] sm:$0xff] }
 0x5a6   : > { %8970 = vmatprep.subr.bf16.mxu0 %v10724_v43  ;;  %9298 = vmatprep.subr.bf16.mxu1 %v10726_v45  ;;  %v2448_v43 = vld [vmem:[%s12873_s30 + $0xbb0] sm:$0xff]  ;;  %v2445_v45 = vld [vmem:[%s12873_s30 + $0xb98] sm:$0xff] }
 0x5a7   : > { %v10780_v57 = vcombine.high %v2444_v42, %v2448_v43  ;;  %v10779_v12 = vcombine.low %v2444_v42, %v2448_v43  ;;  %v10781_v1 = vcombine.low %v2445_v45, %v2449_v50 }
 0x5a9   : > { %8971 = vmatpush1.bf16.msra.mxu0 %v10723_v60  ;;  %9299 = vmatpush1.bf16.msra.mxu1 %v10725_v61  ;;  %v10782_v60 = vcombine.high %v2445_v45, %v2449_v50  ;;  %v2452_v61 = vld [vmem:[%s12873_s30 + $0xbd0] sm:$0xff] }
 0x5aa   : > { %8972 = vmatprep.subr.bf16.mxu0 %v10732_v62  ;;  %9300 = vmatprep.subr.bf16.mxu1 %v10734_v63  ;;  %v2456_v62 = vld [vmem:[%s12873_s30 + $0xbf0] sm:$0xff]  ;;  %v2453_v63 = vld [vmem:[%s12873_s30 + $0xbd8] sm:$0xff] }
 0x5ab   : > { %v10788_v4 = vcombine.high %v2452_v61, %v2456_v62  ;;  %v10787_v55 = vcombine.low %v2452_v61, %v2456_v62  ;;  %v10789_v9 = vcombine.low %v2453_v63, %v2457_v0  ;;  %v2500_v50 = vld [vmem:[%s12873_s30 + $0xd50] sm:$0xff] }
 0x5ad   : > { %8973 = vmatpush1.bf16.msra.mxu0 %v10731_v13  ;;  %9301 = vmatpush1.bf16.msra.mxu1 %v10733_v6  ;;  %v10790_v13 = vcombine.high %v2453_v63, %v2457_v0  ;;  %v2460_v6 = vld [vmem:[%s12873_s30 + $0xc10] sm:$0xff] }
 0x5ae   : > { %8974 = vmatprep.subr.bf16.mxu0 %v10740_v46  ;;  %9302 = vmatprep.subr.bf16.mxu1 %v10742_v51  ;;  %v2464_v46 = vld [vmem:[%s12873_s30 + $0xc30] sm:$0xff]  ;;  %v2461_v51 = vld [vmem:[%s12873_s30 + $0xc18] sm:$0xff] }
 0x5af   : > { %v10796_v11 = vcombine.high %v2460_v6, %v2464_v46  ;;  %v10795_v26 = vcombine.low %v2460_v6, %v2464_v46  ;;  %v10797_v28 = vcombine.low %v2461_v51, %v2465_v8  ;;  %v2508_v0 = vld [vmem:[%s12873_s30 + $0xd90] sm:$0xff] }
 0x5b1   : > { %8975 = vmatpush1.bf16.msra.mxu0 %v10739_v14  ;;  %9303 = vmatpush1.bf16.msra.mxu1 %v10741_v16  ;;  %v10798_v14 = vcombine.high %v2461_v51, %v2465_v8  ;;  %v2468_v16 = vld [vmem:[%s12873_s30 + $0xc50] sm:$0xff] }
 0x5b2   : > { %8976 = vmatprep.subr.bf16.mxu0 %v10748_v20  ;;  %9304 = vmatprep.subr.bf16.mxu1 %v10750_v23  ;;  %v2472_v20 = vld [vmem:[%s12873_s30 + $0xc70] sm:$0xff]  ;;  %v2469_v23 = vld [vmem:[%s12873_s30 + $0xc58] sm:$0xff] }
 0x5b3   : > { %v10804_v29 = vcombine.high %v2468_v16, %v2472_v20  ;;  %v10803_v18 = vcombine.low %v2468_v16, %v2472_v20  ;;  %v10805_v10 = vcombine.low %v2469_v23, %v2473_v3  ;;  %v2517_v16 = vld [vmem:[%s12873_s30 + $0xdd8] sm:$0xff] }
 0x5b4   : > { %v2521_v20 = vld [vmem:[%s12873_s30 + $0xdf8] sm:$0xff] }
 0x5b5   : > { %8977 = vmatpush1.bf16.msra.mxu0 %v10747_v32  ;;  %9305 = vmatpush1.bf16.msra.mxu1 %v10749_v34  ;;  %v10806_v32 = vcombine.high %v2469_v23, %v2473_v3  ;;  %v2476_v34 = vld [vmem:[%s12873_s30 + $0xc90] sm:$0xff] }
 0x5b6   : > { %8978 = vmatprep.subr.bf16.mxu0 %v10756_v15  ;;  %9306 = vmatprep.subr.bf16.mxu1 %v10758_v44  ;;  %v2480_v15 = vld [vmem:[%s12873_s30 + $0xcb0] sm:$0xff]  ;;  %v2477_v44 = vld [vmem:[%s12873_s30 + $0xc98] sm:$0xff] }
 0x5b7   : > { %v10812_v41 = vcombine.high %v2476_v34, %v2480_v15  ;;  %v10813_v47 = vcombine.low %v2477_v44, %v2481_v40 }
 0x5b9   : > { %8979 = vmatpush1.bf16.msra.mxu0 %v10755_v30  ;;  %9307 = vmatpush1.bf16.msra.mxu1 %v10757_v24  ;;  %v10814_v30 = vcombine.high %v2477_v44, %v2481_v40  ;;  %v2484_v24 = vld [vmem:[%s12873_s30 + $0xcd0] sm:$0xff] }
 0x5ba   : > { %8980 = vmatprep.subr.bf16.mxu0 %v10764_v25  ;;  %9308 = vmatprep.subr.bf16.mxu1 %v10766_v27  ;;  %v2488_v25 = vld [vmem:[%s12873_s30 + $0xcf0] sm:$0xff]  ;;  %v2485_v27 = vld [vmem:[%s12873_s30 + $0xcd8] sm:$0xff] }
 0x5bb   : > { %v10820_v33 = vcombine.high %v2484_v24, %v2488_v25  ;;  %v10822_v36 = vcombine.high %v2485_v27, %v2489_v38  ;;  %v10819_v42 = vcombine.low %v2484_v24, %v2488_v25  ;;  %v2525_v25 = vld [vmem:[%s12873_s30 + $0xe18] sm:$0xff] }
 0x5bd   : > { %8981 = vmatpush1.bf16.msra.mxu0 %v10763_v39  ;;  %9309 = vmatpush1.bf16.msra.mxu1 %v10765_v56  ;;  %v2492_v39 = vld [vmem:[%s12873_s30 + $0xd10] sm:$0xff] }
 0x5be   : > { %8982 = vmatprep.subr.bf16.mxu0 %v10772_v53  ;;  %9310 = vmatprep.subr.bf16.mxu1 %v10774_v17  ;;  %v2496_v56 = vld [vmem:[%s12873_s30 + $0xd30] sm:$0xff]  ;;  %v2493_v53 = vld [vmem:[%s12873_s30 + $0xd18] sm:$0xff] }
 0x5bf   : > { %v2497_v17 = vld [vmem:[%s12873_s30 + $0xd38] sm:$0xff]  ;;  %v10828_v43 = vcombine.high %v2492_v39, %v2496_v56 }
 0x5c0   : > { %v10830_v45 = vcombine.high %v2493_v53, %v2497_v17  ;;  %v10829_v61 = vcombine.low %v2493_v53, %v2497_v17  ;;  %v2536_v53 = vld [vmem:[%s12873_s30 + $0xe70] sm:$0xff] }
 0x5c1   : > { %8983 = vmatpush1.bf16.msra.mxu0 %v10771_v7  ;;  %9311 = vmatpush1.bf16.msra.mxu1 %v10773_v54  ;;  %v2504_v7 = vld [vmem:[%s12873_s30 + $0xd70] sm:$0xff]  ;;  %v2501_v54 = vld [vmem:[%s12873_s30 + $0xd58] sm:$0xff] }
 0x5c2   : > { %8984 = vmatprep.subr.bf16.mxu0 %v10780_v57  ;;  %9312 = vmatprep.subr.bf16.mxu1 %v10782_v60  ;;  %v2505_v57 = vld [vmem:[%s12873_s30 + $0xd78] sm:$0xff]  ;;  %v10827_v60 = vcombine.low %v2492_v39, %v2496_v56  ;;  %v10836_v62 = vcombine.high %v2500_v50, %v2504_v7  ;;  %v2532_v56 = vld [vmem:[%s12873_s30 + $0xe50] sm:$0xff] }
 0x5c3   : > { %v10838_v63 = vcombine.high %v2501_v54, %v2505_v57  ;;  %v10837_v6 = vcombine.low %v2501_v54, %v2505_v57  ;;  %v2540_v54 = vld [vmem:[%s12873_s30 + $0xe90] sm:$0xff] }
 0x5c4   : > { %v2544_v57 = vld [vmem:[%s12873_s30 + $0xeb0] sm:$0xff] }
 0x5c5   : > { %8985 = vmatpush1.bf16.msra.mxu0 %v10779_v12  ;;  %9313 = vmatpush1.bf16.msra.mxu1 %v10781_v1  ;;  %v2512_v12 = vld [vmem:[%s12873_s30 + $0xdb0] sm:$0xff]  ;;  %v2509_v1 = vld [vmem:[%s12873_s30 + $0xd98] sm:$0xff] }
 0x5c6   : > { %8986 = vmatprep.subr.bf16.mxu0 %v10788_v4  ;;  %9314 = vmatprep.subr.bf16.mxu1 %v10790_v13  ;;  %v2513_v4 = vld [vmem:[%s12873_s30 + $0xdb8] sm:$0xff]  ;;  %v10835_v13 = vcombine.low %v2500_v50, %v2504_v7  ;;  %v10844_v46 = vcombine.high %v2508_v0, %v2512_v12  ;;  %v10868_v50 = vcombine.high %v2532_v56, %v2536_v53 }
 0x5c7   : > { %v10846_v8 = vcombine.high %v2509_v1, %v2513_v4 }
 0x5c9   : > { %8987 = vmatpush1.bf16.msra.mxu0 %v10787_v55  ;;  %9315 = vmatpush1.bf16.msra.mxu1 %v10789_v9  ;;  %v2516_v55 = vld [vmem:[%s12873_s30 + $0xdd0] sm:$0xff] }
 0x5ca   : > { %8997 = vmatprep.subr.bf16.mxu0 %v10796_v11  ;;  %9325 = vmatprep.subr.bf16.mxu1 %v10798_v14  ;;  %v2520_v9 = vld [vmem:[%s12873_s30 + $0xdf0] sm:$0xff] }
 0x5cb   : > { %v10852_v44 = vcombine.high %v2516_v55, %v2520_v9 }
 0x5cc   : > { %8989 = vmatmul.mubr.bf16.vlgmr.msra.gmra.mrb[4].mxu0 %v13545_v22  ;;  %9317 = vmatmul.mubr.bf16.vlgmr.msra.gmra.mrb[4].mxu1 %v13545_v22  ;;  %v10811_v22 = vcombine.low %v2476_v34, %v2480_v15  ;;  %v10845_v15 = vcombine.low %v2509_v1, %v2513_v4  ;;  %v2548_v1 = vld [vmem:[%s12873_s30 + $0xed0] sm:$0xff] }
 0x5cd   : > { %8998 = vmatpush1.bf16.msra.mxu0 %v10795_v26  ;;  %9326 = vmatpush1.bf16.msra.mxu1 %v10797_v28  ;;  %v10843_v28 = vcombine.low %v2508_v0, %v2512_v12  ;;  %v10876_v0 = vcombine.high %v2540_v54, %v2544_v57  ;;  %v2552_v4 = vld [vmem:[%s12873_s30 + $0xef0] sm:$0xff] }
 0x5ce   : > { %8999 = vmatprep.subr.bf16.mxu0 %v10804_v29  ;;  %9327 = vmatprep.subr.bf16.mxu1 %v10806_v32 }
 0x5cf   : > { %9029 = vmatprep.mubr.bf16.mxu0 %v13551_v35  ;;  %9357 = vmatprep.mubr.bf16.mxu1 %v13551_v35  ;;  %v10821_v35 = vcombine.low %v2485_v27, %v2489_v38  ;;  %v2529_v27 = vld [vmem:[%s12873_s30 + $0xe38] sm:$0xff]  ;;  %v1961_v38 = vld [vmem:[#allocation3] sm:$0xff] }
 0x5d0   : > { %v10862_v39 = vcombine.high %v2525_v25, %v2529_v27 }
 0x5d1   : > { %9000 = vmatpush1.bf16.msra.mxu0 %v10803_v18  ;;  %9328 = vmatpush1.bf16.msra.mxu1 %v10805_v10  ;;  %v10854_v10 = vcombine.high %v2517_v16, %v2521_v20 }
 0x5d2   : > { %9001 = vmatprep.subr.bf16.mxu0 %v10812_v41  ;;  %9329 = vmatprep.subr.bf16.mxu1 %v10814_v30  ;;  %v2524_v41 = vld [vmem:[%s12873_s30 + $0xe10] sm:$0xff] }
 0x5d3   : > { %v2528_v30 = vld [vmem:[%s12873_s30 + $0xe30] sm:$0xff] }
 0x5d5   : > { %9002 = vmatpush1.bf16.msra.mxu0 %v10811_v22  ;;  %9330 = vmatpush1.bf16.msra.mxu1 %v10813_v47  ;;  %v10851_v22 = vcombine.low %v2516_v55, %v2520_v9  ;;  %v2556_v9 = vld [vmem:[%s12873_s30 + $0xf10] sm:$0xff] }
 0x5d6   : > { %9003 = vmatprep.subr.bf16.mxu0 %v10820_v33  ;;  %9331 = vmatprep.subr.bf16.mxu1 %v10822_v36  ;;  %v10853_v33 = vcombine.low %v2517_v16, %v2521_v20  ;;  %v10860_v36 = vcombine.high %v2524_v41, %v2528_v30  ;;  %v2561_v16 = vld [vmem:[%s12873_s30 + $0xf38] sm:$0xff]  ;;  %v10883_v20 = vcombine.low %v2548_v1, %v2552_v4 }
 0x5d9   : > { %9004 = vmatpush1.bf16.msra.mxu0 %v10819_v42  ;;  %9332 = vmatpush1.bf16.msra.mxu1 %v10821_v35  ;;  %v2533_v42 = vld [vmem:[%s12873_s30 + $0xe58] sm:$0xff] }
 0x5da   : > { %9005 = vmatprep.subr.bf16.mxu0 %v10828_v43  ;;  %9333 = vmatprep.subr.bf16.mxu1 %v10830_v45  ;;  %v2537_v35 = vld [vmem:[%s12873_s30 + $0xe78] sm:$0xff]  ;;  %v10859_v43 = vcombine.low %v2524_v41, %v2528_v30  ;;  %v10861_v45 = vcombine.low %v2525_v25, %v2529_v27  ;;  %v2576_v41 = vld [vmem:[%s12873_s30 + $0xfb0] sm:$0xff] }
 0x5db   : > { %v10870_v7 = vcombine.high %v2533_v42, %v2537_v35  ;;  %v2573_v30 = vld [vmem:[%s12873_s30 + $0xf98] sm:$0xff] }
 0x5dd   : > { %9006 = vmatpush1.bf16.msra.mxu0 %v10827_v60  ;;  %9334 = vmatpush1.bf16.msra.mxu1 %v10829_v61  ;;  %v2541_v60 = vld [vmem:[%s12873_s30 + $0xe98] sm:$0xff] }
 0x5de   : > { %9007 = vmatprep.subr.bf16.mxu0 %v10836_v62  ;;  %9335 = vmatprep.subr.bf16.mxu1 %v10838_v63  ;;  %v2545_v61 = vld [vmem:[%s12873_s30 + $0xeb8] sm:$0xff]  ;;  %v10867_v62 = vcombine.low %v2532_v56, %v2536_v53  ;;  %v10869_v63 = vcombine.low %v2533_v42, %v2537_v35  ;;  %v2588_v35 = vld [vmem:[%s12873_s30 + $0x1010] sm:$0xff] }
 0x5df   : > { %v8539_v51 = vpop.f32.mrb[0].mxu0  ;;  %v8867_v11 = vpop.f32.mrb[0].mxu1  ;;  %v10878_v12 = vcombine.high %v2541_v60, %v2545_v61 }
 0x5e0   : > { %v8541_v14 = vpop.f32.mrb[1].mxu0  ;;  %v8869_v3 = vpop.f32.mrb[1].mxu1 }
 0x5e1   : > { %v9538_v23 = vcombine.low %v8539_v51, %v8541_v14  ;;  %v8543_v26 = vpop.f32.mrb[2].mxu0  ;;  %9008 = vmatpush1.bf16.msra.mxu0 %v10835_v13  ;;  %v9539_v29 = vcombine.low %v8867_v11, %v8869_v3  ;;  %v8871_v32 = vpop.f32.mrb[2].mxu1  ;;  %9336 = vmatpush1.bf16.msra.mxu1 %v10837_v6  ;;  %v2549_v13 = vld [vmem:[%s12873_s30 + $0xed8] sm:$0xff]  ;;  %v10877_v51 = vcombine.low %v2541_v60, %v2545_v61  ;;  %v2560_v11 = vld [vmem:[%s12873_s30 + $0xf30] sm:$0xff] }
 0x5e2   : > { %v8544_v34 = vpop.f32.mrb[3].mxu0  ;;  %9009 = vmatprep.subr.bf16.mxu0 %v10844_v46  ;;  %v8872_v18 = vpop.f32.mrb[3].mxu1  ;;  %9337 = vmatprep.subr.bf16.mxu1 %v10846_v8  ;;  %v2553_v6 = vld [vmem:[%s12873_s30 + $0xef8] sm:$0xff]  ;;  %v10875_v46 = vcombine.low %v2540_v54, %v2544_v57  ;;  %v10884_v8 = vcombine.high %v2548_v1, %v2552_v4  ;;  %v10892_v3 = vcombine.high %v2556_v9, %v2560_v11  ;;  %v2596_v61 = vld [vmem:[%s12873_s30 + $0x1050] sm:$0xff] }
 0x5e3   : > { %v9546_v40 = vrot.slane %v9538_v23, %v13311_v5  ;;  %v9553_v24 = vrot.slane %v9539_v29, %v13311_v5  ;;  %v10886_v55 = vcombine.high %v2549_v13, %v2553_v6  ;;  %v2557_v14 = vld [vmem:[%s12873_s30 + $0xf18] sm:$0xff]  ;;  %v10885_v23 = vcombine.low %v2549_v13, %v2553_v6  ;;  %v2568_v29 = vld [vmem:[%s12873_s30 + $0xf70] sm:$0xff] }
 0x5e4   : > { %v10894_v26 = vcombine.high %v2557_v14, %v2561_v16  ;;  %v2565_v32 = vld [vmem:[%s12873_s30 + $0xf58] sm:$0xff]  ;;  %v2604_v6 = vld [vmem:[%s12873_s30 + $0x1090] sm:$0xff] }
 0x5e5   : > { %9010 = vmatpush1.bf16.msra.mxu0 %v10843_v28  ;;  %v9554_v47 = vcombine.low %v9546_v40, %v9553_v24  ;;  %9338 = vmatpush1.bf16.msra.mxu1 %v10845_v15  ;;  %v2564_v28 = vld [vmem:[%s12873_s30 + $0xf50] sm:$0xff]  ;;  %v2569_v34 = vld [vmem:[%s12873_s30 + $0xf78] sm:$0xff]  ;;  %v10891_v15 = vcombine.low %v2556_v9, %v2560_v11 }
 0x5e6   : > { %9011 = vmatprep.subr.bf16.mxu0 %v10852_v44  ;;  %9339 = vmatprep.subr.bf16.mxu1 %v10854_v10  ;;  %v10893_v44 = vcombine.low %v2557_v14, %v2561_v16  ;;  %v10900_v40 = vcombine.high %v2564_v28, %v2568_v29  ;;  %v10902_v18 = vcombine.high %v2565_v32, %v2569_v34  ;;  %v2572_v10 = vld [vmem:[%s12873_s30 + $0xf90] sm:$0xff]  ;;  %v2577_v24 = vld [vmem:[%s12873_s30 + $0xfb8] sm:$0xff] }
 0x5e7   : > { %v9574_v17 = vadd.f32 %v9554_v47, %v1961_v38  ;;  %v10899_v25 = vcombine.low %v2564_v28, %v2568_v29  ;;  %v10901_v27 = vcombine.low %v2565_v32, %v2569_v34  ;;  %v10908_v38 = vcombine.high %v2572_v10, %v2576_v41  ;;  %v2580_v47 = vld [vmem:[%s12873_s30 + $0xfd0] sm:$0xff] }
 0x5e8   : > { %v10907_v56 = vcombine.low %v2572_v10, %v2576_v41  ;;  %v10909_v53 = vcombine.low %v2573_v30, %v2577_v24  ;;  %v2612_v16 = vld [vmem:[%s12873_s30 + $0x10d0] sm:$0xff] }
 0x5e9   : > { %9012 = vmatpush1.bf16.msra.mxu0 %v10851_v22  ;;  %9576 = vst [vmem:[#allocation3] sm:$0xff] %v9574_v17  ;;  %9340 = vmatpush1.bf16.msra.mxu1 %v10853_v33  ;;  %v10910_v22 = vcombine.high %v2573_v30, %v2577_v24  ;;  %v2584_v33 = vld [vmem:[%s12873_s30 + $0xff0] sm:$0xff]  ;;  %v2629_v24 = vld [vmem:[%s12873_s30 + $0x1158] sm:$0xff] }
 0x5ea   : > { %9013 = vmatprep.subr.bf16.mxu0 %v10860_v36  ;;  %9341 = vmatprep.subr.bf16.mxu1 %v10862_v39  ;;  %v2581_v36 = vld [vmem:[%s12873_s30 + $0xfd8] sm:$0xff]  ;;  %v10916_v17 = vcombine.high %v2580_v47, %v2584_v33  ;;  %v2620_v32 = vld [vmem:[%s12873_s30 + $0x1110] sm:$0xff] }
 0x5eb   : > { %v2585_v39 = vld [vmem:[%s12873_s30 + $0xff8] sm:$0xff]  ;;  %v2624_v34 = vld [vmem:[%s12873_s30 + $0x1130] sm:$0xff] }
 0x5ec   : > { %v10918_v42 = vcombine.high %v2581_v36, %v2585_v39  ;;  %v10917_v54 = vcombine.low %v2581_v36, %v2585_v39  ;;  %v2628_v41 = vld [vmem:[%s12873_s30 + $0x1150] sm:$0xff]  ;;  %v2637_v39 = vld [vmem:[%s12873_s30 + $0x1198] sm:$0xff] }
 0x5ed   : > { %9014 = vmatpush1.bf16.msra.mxu0 %v10859_v43  ;;  %9342 = vmatpush1.bf16.msra.mxu1 %v10861_v45  ;;  %v2592_v43 = vld [vmem:[%s12873_s30 + $0x1030] sm:$0xff]  ;;  %v2589_v45 = vld [vmem:[%s12873_s30 + $0x1018] sm:$0xff] }
 0x5ee   : > { %9015 = vmatprep.subr.bf16.mxu0 %v10868_v50  ;;  %9343 = vmatprep.subr.bf16.mxu1 %v10870_v7  ;;  %v2593_v50 = vld [vmem:[%s12873_s30 + $0x1038] sm:$0xff]  ;;  %v10915_v7 = vcombine.low %v2580_v47, %v2584_v33  ;;  %v10924_v57 = vcombine.high %v2588_v35, %v2592_v43  ;;  %v2632_v30 = vld [vmem:[%s12873_s30 + $0x1170] sm:$0xff] }
 0x5ef   : > { %v10926_v60 = vcombine.high %v2589_v45, %v2593_v50  ;;  %v10925_v1 = vcombine.low %v2589_v45, %v2593_v50  ;;  %v2636_v33 = vld [vmem:[%s12873_s30 + $0x1190] sm:$0xff]  ;;  %v2645_v50 = vld [vmem:[%s12873_s30 + $0x11d8] sm:$0xff] }
 0x5f0   : > { %v2640_v36 = vld [vmem:[%s12873_s30 + $0x11b0] sm:$0xff] }
 0x5f1   : > { %9016 = vmatpush1.bf16.msra.mxu0 %v10867_v62  ;;  %9344 = vmatpush1.bf16.msra.mxu1 %v10869_v63  ;;  %v2600_v62 = vld [vmem:[%s12873_s30 + $0x1070] sm:$0xff]  ;;  %v2597_v63 = vld [vmem:[%s12873_s30 + $0x1058] sm:$0xff] }
 0x5f2   : > { %9017 = vmatprep.subr.bf16.mxu0 %v10876_v0  ;;  %9345 = vmatprep.subr.bf16.mxu1 %v10878_v12  ;;  %v2601_v0 = vld [vmem:[%s12873_s30 + $0x1078] sm:$0xff]  ;;  %v10923_v12 = vcombine.low %v2588_v35, %v2592_v43  ;;  %v10932_v4 = vcombine.high %v2596_v61, %v2600_v62  ;;  %v2644_v43 = vld [vmem:[%s12873_s30 + $0x11d0] sm:$0xff] }
 0x5f3   : > { %v10934_v13 = vcombine.high %v2597_v63, %v2601_v0  ;;  %v10933_v9 = vcombine.low %v2597_v63, %v2601_v0  ;;  %v2648_v45 = vld [vmem:[%s12873_s30 + $0x11f0] sm:$0xff]  ;;  %v2653_v0 = vld [vmem:[%s12873_s30 + $0x1218] sm:$0xff] }
 0x5f4   : > { %v2656_v63 = vld [vmem:[%s12873_s30 + $0x1230] sm:$0xff] }
 0x5f5   : > { %9018 = vmatpush1.bf16.msra.mxu0 %v10875_v46  ;;  %9346 = vmatpush1.bf16.msra.mxu1 %v10877_v51  ;;  %v2608_v46 = vld [vmem:[%s12873_s30 + $0x10b0] sm:$0xff]  ;;  %v2605_v51 = vld [vmem:[%s12873_s30 + $0x1098] sm:$0xff] }
 0x5f6   : > { %9019 = vmatprep.subr.bf16.mxu0 %v10884_v8  ;;  %9347 = vmatprep.subr.bf16.mxu1 %v10886_v55  ;;  %v2609_v8 = vld [vmem:[%s12873_s30 + $0x10b8] sm:$0xff]  ;;  %v10931_v55 = vcombine.low %v2596_v61, %v2600_v62  ;;  %v10940_v11 = vcombine.high %v2604_v6, %v2608_v46  ;;  %v2652_v62 = vld [vmem:[%s12873_s30 + $0x1210] sm:$0xff] }
 0x5f7   : > { %v10942_v14 = vcombine.high %v2605_v51, %v2609_v8 }
 0x5f9   : > { %9020 = vmatpush1.bf16.msra.mxu0 %v10883_v20  ;;  %9348 = vmatpush1.bf16.msra.mxu1 %v10885_v23  ;;  %v2616_v20 = vld [vmem:[%s12873_s30 + $0x10f0] sm:$0xff]  ;;  %v2613_v23 = vld [vmem:[%s12873_s30 + $0x10d8] sm:$0xff] }
 0x5fa   : > { %9021 = vmatprep.subr.bf16.mxu0 %v10892_v3  ;;  %9349 = vmatprep.subr.bf16.mxu1 %v10894_v26  ;;  %v2617_v3 = vld [vmem:[%s12873_s30 + $0x10f8] sm:$0xff]  ;;  %v10941_v26 = vcombine.low %v2605_v51, %v2609_v8  ;;  %v10948_v28 = vcombine.high %v2612_v16, %v2616_v20  ;;  %v2664_v51 = vld [vmem:[%s12873_s30 + $0x1270] sm:$0xff] }
 0x5fb   : > { %v10950_v29 = vcombine.high %v2613_v23, %v2617_v3  ;;  %v2661_v8 = vld [vmem:[%s12873_s30 + $0x1258] sm:$0xff] }
 0x5fd   : > { %9022 = vmatpush1.bf16.msra.mxu0 %v10891_v15  ;;  %9350 = vmatpush1.bf16.msra.mxu1 %v10893_v44  ;;  %v2621_v15 = vld [vmem:[%s12873_s30 + $0x1118] sm:$0xff] }
 0x5fe   : > { %9023 = vmatprep.subr.bf16.mxu0 %v10900_v40  ;;  %9351 = vmatprep.subr.bf16.mxu1 %v10902_v18  ;;  %v2625_v44 = vld [vmem:[%s12873_s30 + $0x1138] sm:$0xff]  ;;  %v10947_v40 = vcombine.low %v2612_v16, %v2616_v20  ;;  %v10956_v18 = vcombine.high %v2620_v32, %v2624_v34  ;;  %v2668_v20 = vld [vmem:[%s12873_s30 + $0x1290] sm:$0xff] }
 0x5ff   : > { %v10958_v10 = vcombine.high %v2621_v15, %v2625_v44 }
 0x601   : > { %9024 = vmatpush1.bf16.msra.mxu0 %v10899_v25  ;;  %9352 = vmatpush1.bf16.msra.mxu1 %v10901_v27  ;;  %v2633_v25 = vld [vmem:[%s12873_s30 + $0x1178] sm:$0xff]  ;;  %v10955_v27 = vcombine.low %v2620_v32, %v2624_v34  ;;  %v2676_v34 = vld [vmem:[%s12873_s30 + $0x12d0] sm:$0xff] }
 0x602   : > { %9025 = vmatprep.subr.bf16.mxu0 %v10908_v38  ;;  %9353 = vmatprep.subr.bf16.mxu1 %v10910_v22  ;;  %v10957_v38 = vcombine.low %v2621_v15, %v2625_v44  ;;  %v10964_v22 = vcombine.high %v2628_v41, %v2632_v30  ;;  %v10966_v47 = vcombine.high %v2629_v24, %v2633_v25  ;;  %v2680_v15 = vld [vmem:[%s12873_s30 + $0x12f0] sm:$0xff]  ;;  %v2677_v44 = vld [vmem:[%s12873_s30 + $0x12d8] sm:$0xff] }
 0x605   : > { %9026 = vmatpush1.bf16.msra.mxu0 %v10907_v56  ;;  %9354 = vmatpush1.bf16.msra.mxu1 %v10909_v53  ;;  %v2641_v56 = vld [vmem:[%s12873_s30 + $0x11b8] sm:$0xff]  ;;  %v10963_v53 = vcombine.low %v2628_v41, %v2632_v30  ;;  %v2684_v30 = vld [vmem:[%s12873_s30 + $0x1310] sm:$0xff] }
 0x606   : > { %9027 = vmatprep.subr.bf16.mxu0 %v10916_v17  ;;  %9355 = vmatprep.subr.bf16.mxu1 %v10918_v42  ;;  %v10965_v17 = vcombine.low %v2629_v24, %v2633_v25  ;;  %v10972_v42 = vcombine.high %v2636_v33, %v2640_v36  ;;  %v10974_v35 = vcombine.high %v2637_v39, %v2641_v56  ;;  %v2688_v24 = vld [vmem:[%s12873_s30 + $0x1330] sm:$0xff]  ;;  %v2685_v25 = vld [vmem:[%s12873_s30 + $0x1318] sm:$0xff] }
 0x609   : > { %9028 = vmatpush1.bf16.msra.mxu0 %v10915_v7  ;;  %9356 = vmatpush1.bf16.msra.mxu1 %v10917_v54  ;;  %v2649_v7 = vld [vmem:[%s12873_s30 + $0x11f8] sm:$0xff]  ;;  %v10971_v54 = vcombine.low %v2636_v33, %v2640_v36  ;;  %v2692_v36 = vld [vmem:[%s12873_s30 + $0x1350] sm:$0xff] }
 0x60a   : > { %9038 = vmatprep.subr.bf16.mxu0 %v10924_v57  ;;  %9366 = vmatprep.subr.bf16.mxu1 %v10926_v60  ;;  %v10973_v57 = vcombine.low %v2637_v39, %v2641_v56  ;;  %v10980_v60 = vcombine.high %v2644_v43, %v2648_v45  ;;  %v10982_v61 = vcombine.high %v2645_v50, %v2649_v7  ;;  %v2696_v39 = vld [vmem:[%s12873_s30 + $0x1370] sm:$0xff]  ;;  %v2693_v56 = vld [vmem:[%s12873_s30 + $0x1358] sm:$0xff] }
 0x60c   : > { %9030 = vmatmul.mubr.bf16.vlgmr.msra.gmra.mrb[4].mxu0 %v13628_v52  ;;  %9358 = vmatmul.mubr.bf16.vlgmr.msra.gmra.mrb[4].mxu1 %v13628_v52  ;;  %v10939_v52 = vcombine.low %v2604_v6, %v2608_v46  ;;  %v2660_v46 = vld [vmem:[%s12873_s30 + $0x1250] sm:$0xff] }
 0x60d   : > { %9039 = vmatpush1.bf16.msra.mxu0 %v10923_v12  ;;  %9367 = vmatpush1.bf16.msra.mxu1 %v10925_v1  ;;  %v2657_v12 = vld [vmem:[%s12873_s30 + $0x1238] sm:$0xff]  ;;  %v10979_v1 = vcombine.low %v2644_v43, %v2648_v45  ;;  %v2700_v45 = vld [vmem:[%s12873_s30 + $0x1390] sm:$0xff] }
 0x60e   : > { %9040 = vmatprep.subr.bf16.mxu0 %v10932_v4  ;;  %9368 = vmatprep.subr.bf16.mxu1 %v10934_v13  ;;  %v10981_v4 = vcombine.low %v2645_v50, %v2649_v7  ;;  %v10988_v13 = vcombine.high %v2652_v62, %v2656_v63  ;;  %v10990_v6 = vcombine.high %v2653_v0, %v2657_v12  ;;  %v2704_v50 = vld [vmem:[%s12873_s30 + $0x13b0] sm:$0xff]  ;;  %v2701_v7 = vld [vmem:[%s12873_s30 + $0x1398] sm:$0xff] }
 0x60f   : > { %9070 = vmatprep.mubr.bf16.mxu0 %v13634_v2  ;;  %9398 = vmatprep.mubr.bf16.mxu1 %v13634_v2  ;;  %v10949_v2 = vcombine.low %v2613_v23, %v2617_v3  ;;  %v2672_v23 = vld [vmem:[%s12873_s30 + $0x12b0] sm:$0xff]  ;;  %v2669_v3 = vld [vmem:[%s12873_s30 + $0x1298] sm:$0xff] }
 0x611   : > { %9041 = vmatpush1.bf16.msra.mxu0 %v10931_v55  ;;  %9369 = vmatpush1.bf16.msra.mxu1 %v10933_v9  ;;  %v2665_v55 = vld [vmem:[%s12873_s30 + $0x1278] sm:$0xff]  ;;  %v10987_v9 = vcombine.low %v2652_v62, %v2656_v63  ;;  %v2708_v63 = vld [vmem:[%s12873_s30 + $0x13d0] sm:$0xff] }
 0x612   : > { %9042 = vmatprep.subr.bf16.mxu0 %v10940_v11  ;;  %9370 = vmatprep.subr.bf16.mxu1 %v10942_v14  ;;  %v10989_v11 = vcombine.low %v2653_v0, %v2657_v12  ;;  %v10996_v14 = vcombine.high %v2660_v46, %v2664_v51  ;;  %v10998_v16 = vcombine.high %v2661_v8, %v2665_v55  ;;  %v2712_v0 = vld [vmem:[%s12873_s30 + $0x13f0] sm:$0xff]  ;;  %v2709_v12 = vld [vmem:[%s12873_s30 + $0x13d8] sm:$0xff] }
 0x615   : > { %9043 = vmatpush1.bf16.msra.mxu0 %v10939_v52  ;;  %9371 = vmatpush1.bf16.msra.mxu1 %v10941_v26  ;;  %v2673_v52 = vld [vmem:[%s12873_s30 + $0x12b8] sm:$0xff]  ;;  %v10995_v26 = vcombine.low %v2660_v46, %v2664_v51  ;;  %v2716_v51 = vld [vmem:[%s12873_s30 + $0x1410] sm:$0xff] }
 0x616   : > { %9044 = vmatprep.subr.bf16.mxu0 %v10948_v28  ;;  %9372 = vmatprep.subr.bf16.mxu1 %v10950_v29  ;;  %v10997_v28 = vcombine.low %v2661_v8, %v2665_v55  ;;  %v11004_v29 = vcombine.high %v2668_v20, %v2672_v23  ;;  %v11006_v32 = vcombine.high %v2669_v3, %v2673_v52  ;;  %v2720_v8 = vld [vmem:[%s12873_s30 + $0x1430] sm:$0xff]  ;;  %v2717_v55 = vld [vmem:[%s12873_s30 + $0x1418] sm:$0xff] }
 0x619   : > { %9045 = vmatpush1.bf16.msra.mxu0 %v10947_v40  ;;  %9373 = vmatpush1.bf16.msra.mxu1 %v10949_v2  ;;  %v2681_v40 = vld [vmem:[%s12873_s30 + $0x12f8] sm:$0xff]  ;;  %v11003_v2 = vcombine.low %v2668_v20, %v2672_v23  ;;  %v2724_v23 = vld [vmem:[%s12873_s30 + $0x1450] sm:$0xff] }
 0x61a   : > { %9046 = vmatprep.subr.bf16.mxu0 %v10956_v18  ;;  %9374 = vmatprep.subr.bf16.mxu1 %v10958_v10  ;;  %v11005_v18 = vcombine.low %v2669_v3, %v2673_v52  ;;  %v11012_v10 = vcombine.high %v2676_v34, %v2680_v15  ;;  %v11014_v41 = vcombine.high %v2677_v44, %v2681_v40  ;;  %v2728_v3 = vld [vmem:[%s12873_s30 + $0x1470] sm:$0xff]  ;;  %v2725_v52 = vld [vmem:[%s12873_s30 + $0x1458] sm:$0xff] }
 0x61d   : > { %9047 = vmatpush1.bf16.msra.mxu0 %v10955_v27  ;;  %9375 = vmatpush1.bf16.msra.mxu1 %v10957_v38  ;;  %v2689_v27 = vld [vmem:[%s12873_s30 + $0x1338] sm:$0xff]  ;;  %v11011_v38 = vcombine.low %v2676_v34, %v2680_v15  ;;  %v2732_v15 = vld [vmem:[%s12873_s30 + $0x1490] sm:$0xff] }
 0x61e   : > { %9048 = vmatprep.subr.bf16.mxu0 %v10964_v22  ;;  %9376 = vmatprep.subr.bf16.mxu1 %v10966_v47  ;;  %v11013_v22 = vcombine.low %v2677_v44, %v2681_v40  ;;  %v11020_v47 = vcombine.high %v2684_v30, %v2688_v24  ;;  %v11022_v33 = vcombine.high %v2685_v25, %v2689_v27  ;;  %v2736_v44 = vld [vmem:[%s12873_s30 + $0x14b0] sm:$0xff]  ;;  %v2733_v40 = vld [vmem:[%s12873_s30 + $0x1498] sm:$0xff] }
 0x621   : > { %9049 = vmatpush1.bf16.msra.mxu0 %v10963_v53  ;;  %9377 = vmatpush1.bf16.msra.mxu1 %v10965_v17  ;;  %v2697_v53 = vld [vmem:[%s12873_s30 + $0x1378] sm:$0xff]  ;;  %v11019_v17 = vcombine.low %v2684_v30, %v2688_v24  ;;  %v2740_v24 = vld [vmem:[%s12873_s30 + $0x14d0] sm:$0xff] }
 0x622   : > { %9050 = vmatprep.subr.bf16.mxu0 %v10972_v42  ;;  %9378 = vmatprep.subr.bf16.mxu1 %v10974_v35  ;;  %v11021_v42 = vcombine.low %v2685_v25, %v2689_v27  ;;  %v11028_v35 = vcombine.high %v2692_v36, %v2696_v39  ;;  %v11030_v43 = vcombine.high %v2693_v56, %v2697_v53  ;;  %v2744_v25 = vld [vmem:[%s12873_s30 + $0x14f0] sm:$0xff]  ;;  %v2741_v27 = vld [vmem:[%s12873_s30 + $0x14d8] sm:$0xff] }
 0x625   : > { %9051 = vmatpush1.bf16.msra.mxu0 %v10971_v54  ;;  %9379 = vmatpush1.bf16.msra.mxu1 %v10973_v57  ;;  %v2705_v54 = vld [vmem:[%s12873_s30 + $0x13b8] sm:$0xff]  ;;  %v11027_v57 = vcombine.low %v2692_v36, %v2696_v39  ;;  %v2748_v36 = vld [vmem:[%s12873_s30 + $0x1510] sm:$0xff] }
 0x626   : > { %9052 = vmatprep.subr.bf16.mxu0 %v10980_v60  ;;  %9380 = vmatprep.subr.bf16.mxu1 %v10982_v61  ;;  %v11029_v60 = vcombine.low %v2693_v56, %v2697_v53  ;;  %v11036_v61 = vcombine.high %v2700_v45, %v2704_v50  ;;  %v11038_v62 = vcombine.high %v2701_v7, %v2705_v54  ;;  %v2752_v39 = vld [vmem:[%s12873_s30 + $0x1530] sm:$0xff]  ;;  %v2749_v56 = vld [vmem:[%s12873_s30 + $0x1518] sm:$0xff] }
 0x627   : > { %v2753_v53 = vld [vmem:[%s12873_s30 + $0x1538] sm:$0xff] }
 0x629   : > { %9053 = vmatpush1.bf16.msra.mxu0 %v10979_v1  ;;  %9381 = vmatpush1.bf16.msra.mxu1 %v10981_v4  ;;  %v2713_v1 = vld [vmem:[%s12873_s30 + $0x13f8] sm:$0xff]  ;;  %v11035_v4 = vcombine.low %v2700_v45, %v2704_v50  ;;  %v2760_v45 = vld [vmem:[%s12873_s30 + $0x1570] sm:$0xff] }
 0x62a   : > { %9054 = vmatprep.subr.bf16.mxu0 %v10988_v13  ;;  %9382 = vmatprep.subr.bf16.mxu1 %v10990_v6  ;;  %v11037_v13 = vcombine.low %v2701_v7, %v2705_v54  ;;  %v11044_v6 = vcombine.high %v2708_v63, %v2712_v0  ;;  %v11046_v46 = vcombine.high %v2709_v12, %v2713_v1  ;;  %v2757_v50 = vld [vmem:[%s12873_s30 + $0x1558] sm:$0xff] }
 0x62b   : > { %v2761_v7 = vld [vmem:[%s12873_s30 + $0x1578] sm:$0xff]  ;;  %v11083_v54 = vcombine.low %v2748_v36, %v2752_v39 }
 0x62d   : > { %9055 = vmatpush1.bf16.msra.mxu0 %v10987_v9  ;;  %9383 = vmatpush1.bf16.msra.mxu1 %v10989_v11  ;;  %v2721_v9 = vld [vmem:[%s12873_s30 + $0x1438] sm:$0xff]  ;;  %v11043_v11 = vcombine.low %v2708_v63, %v2712_v0  ;;  %v2768_v63 = vld [vmem:[%s12873_s30 + $0x15b0] sm:$0xff] }
 0x62e   : > { %9056 = vmatprep.subr.bf16.mxu0 %v10996_v14  ;;  %9384 = vmatprep.subr.bf16.mxu1 %v10998_v16  ;;  %v11045_v14 = vcombine.low %v2709_v12, %v2713_v1  ;;  %v11052_v16 = vcombine.high %v2716_v51, %v2720_v8  ;;  %v11054_v20 = vcombine.high %v2717_v55, %v2721_v9  ;;  %v2765_v0 = vld [vmem:[%s12873_s30 + $0x1598] sm:$0xff] }
 0x62f   : > { %v2769_v12 = vld [vmem:[%s12873_s30 + $0x15b8] sm:$0xff] }
 0x631   : > { %9057 = vmatpush1.bf16.msra.mxu0 %v10995_v26  ;;  %9385 = vmatpush1.bf16.msra.mxu1 %v10997_v28  ;;  %v2729_v26 = vld [vmem:[%s12873_s30 + $0x1478] sm:$0xff]  ;;  %v11051_v28 = vcombine.low %v2716_v51, %v2720_v8  ;;  %v2776_v51 = vld [vmem:[%s12873_s30 + $0x15f0] sm:$0xff] }
 0x632   : > { %9058 = vmatprep.subr.bf16.mxu0 %v11004_v29  ;;  %9386 = vmatprep.subr.bf16.mxu1 %v11006_v32  ;;  %v11053_v29 = vcombine.low %v2717_v55, %v2721_v9  ;;  %v11060_v32 = vcombine.high %v2724_v23, %v2728_v3  ;;  %v11062_v34 = vcombine.high %v2725_v52, %v2729_v26  ;;  %v2773_v8 = vld [vmem:[%s12873_s30 + $0x15d8] sm:$0xff] }
 0x633   : > { %v2777_v55 = vld [vmem:[%s12873_s30 + $0x15f8] sm:$0xff] }
 0x635   : > { %9059 = vmatpush1.bf16.msra.mxu0 %v11003_v2  ;;  %9387 = vmatpush1.bf16.msra.mxu1 %v11005_v18  ;;  %v2737_v2 = vld [vmem:[%s12873_s30 + $0x14b8] sm:$0xff]  ;;  %v11059_v18 = vcombine.low %v2724_v23, %v2728_v3  ;;  %v2784_v23 = vld [vmem:[%s12873_s30 + $0x1630] sm:$0xff] }
 0x636   : > { %9060 = vmatprep.subr.bf16.mxu0 %v11012_v10  ;;  %9388 = vmatprep.subr.bf16.mxu1 %v11014_v41  ;;  %v11061_v10 = vcombine.low %v2725_v52, %v2729_v26  ;;  %v11068_v41 = vcombine.high %v2732_v15, %v2736_v44  ;;  %v11070_v30 = vcombine.high %v2733_v40, %v2737_v2  ;;  %v2781_v3 = vld [vmem:[%s12873_s30 + $0x1618] sm:$0xff] }
 0x637   : > { %v2785_v52 = vld [vmem:[%s12873_s30 + $0x1638] sm:$0xff] }
 0x639   : > { %9061 = vmatpush1.bf16.msra.mxu0 %v11011_v38  ;;  %9389 = vmatpush1.bf16.msra.mxu1 %v11013_v22  ;;  %v2745_v38 = vld [vmem:[%s12873_s30 + $0x14f8] sm:$0xff]  ;;  %v11069_v22 = vcombine.low %v2733_v40, %v2737_v2 }
 0x63a   : > { %9062 = vmatprep.subr.bf16.mxu0 %v11020_v47  ;;  %9390 = vmatprep.subr.bf16.mxu1 %v11022_v33  ;;  %v11076_v47 = vcombine.high %v2740_v24, %v2744_v25  ;;  %v11078_v33 = vcombine.high %v2741_v27, %v2745_v38  ;;  %v2793_v40 = vld [vmem:[%s12873_s30 + $0x1678] sm:$0xff] }
 0x63d   : > { %9063 = vmatpush1.bf16.msra.mxu0 %v11019_v17  ;;  %9391 = vmatpush1.bf16.msra.mxu1 %v11021_v42  ;;  %v11075_v17 = vcombine.low %v2740_v24, %v2744_v25  ;;  %v11084_v42 = vcombine.high %v2748_v36, %v2752_v39  ;;  %v2800_v24 = vld [vmem:[%s12873_s30 + $0x16b0] sm:$0xff]  ;;  %v2797_v25 = vld [vmem:[%s12873_s30 + $0x1698] sm:$0xff] }
 0x63e   : > { %9064 = vmatprep.subr.bf16.mxu0 %v11028_v35  ;;  %9392 = vmatprep.subr.bf16.mxu1 %v11030_v43  ;;  %v11086_v35 = vcombine.high %v2749_v56, %v2753_v53  ;;  %v2756_v43 = vld [vmem:[%s12873_s30 + $0x1550] sm:$0xff]  ;;  %v2805_v39 = vld [vmem:[%s12873_s30 + $0x16d8] sm:$0xff] }
 0x63f   : > { %v11091_v1 = vcombine.low %v2756_v43, %v2760_v45  ;;  %v2808_v36 = vld [vmem:[%s12873_s30 + $0x16f0] sm:$0xff] }
 0x641   : > { %9065 = vmatpush1.bf16.msra.mxu0 %v11027_v57  ;;  %9393 = vmatpush1.bf16.msra.mxu1 %v11029_v60  ;;  %v11085_v57 = vcombine.low %v2749_v56, %v2753_v53  ;;  %v11092_v60 = vcombine.high %v2756_v43, %v2760_v45  ;;  %v2809_v56 = vld [vmem:[%s12873_s30 + $0x16f8] sm:$0xff]  ;;  %v2816_v43 = vld [vmem:[%s12873_s30 + $0x1730] sm:$0xff] }
 0x642   : > { %9066 = vmatprep.subr.bf16.mxu0 %v11036_v61  ;;  %9394 = vmatprep.subr.bf16.mxu1 %v11038_v62  ;;  %v11094_v61 = vcombine.high %v2757_v50, %v2761_v7  ;;  %v2764_v62 = vld [vmem:[%s12873_s30 + $0x1590] sm:$0xff]  ;;  %v2813_v45 = vld [vmem:[%s12873_s30 + $0x1718] sm:$0xff] }
 0x643   : > { %v11099_v9 = vcombine.low %v2764_v62, %v2768_v63 }
 0x645   : > { %9067 = vmatpush1.bf16.msra.mxu0 %v11035_v4  ;;  %9395 = vmatpush1.bf16.msra.mxu1 %v11037_v13  ;;  %v11093_v4 = vcombine.low %v2757_v50, %v2761_v7  ;;  %v11100_v13 = vcombine.high %v2764_v62, %v2768_v63  ;;  %v2817_v50 = vld [vmem:[%s12873_s30 + $0x1738] sm:$0xff]  ;;  %v2824_v62 = vld [vmem:[%s12873_s30 + $0x1770] sm:$0xff] }
 0x646   : > { %9068 = vmatprep.subr.bf16.mxu0 %v11044_v6  ;;  %9396 = vmatprep.subr.bf16.mxu1 %v11046_v46  ;;  %v11102_v6 = vcombine.high %v2765_v0, %v2769_v12  ;;  %v2772_v46 = vld [vmem:[%s12873_s30 + $0x15d0] sm:$0xff]  ;;  %v2821_v63 = vld [vmem:[%s12873_s30 + $0x1758] sm:$0xff] }
 0x647   : > { %v11107_v26 = vcombine.low %v2772_v46, %v2776_v51 }
 0x649   : > { %9069 = vmatpush1.bf16.msra.mxu0 %v11043_v11  ;;  %9397 = vmatpush1.bf16.msra.mxu1 %v11045_v14  ;;  %v11101_v11 = vcombine.low %v2765_v0, %v2769_v12  ;;  %v11108_v14 = vcombine.high %v2772_v46, %v2776_v51  ;;  %v2825_v0 = vld [vmem:[%s12873_s30 + $0x1778] sm:$0xff]  ;;  %v2832_v46 = vld [vmem:[%s12873_s30 + $0x17b0] sm:$0xff] }
 0x64a   : > { %9079 = vmatprep.subr.bf16.mxu0 %v11052_v16  ;;  %9407 = vmatprep.subr.bf16.mxu1 %v11054_v20  ;;  %v11110_v16 = vcombine.high %v2773_v8, %v2777_v55  ;;  %v2780_v20 = vld [vmem:[%s12873_s30 + $0x1610] sm:$0xff]  ;;  %v2829_v51 = vld [vmem:[%s12873_s30 + $0x1798] sm:$0xff] }
 0x64b   : > { %v11115_v2 = vcombine.low %v2780_v20, %v2784_v23 }
 0x64c   : > { %9071 = vmatmul.mubr.bf16.vlgmr.msra.gmra.mrb[4].mxu0 %v13709_v59  ;;  %9399 = vmatmul.mubr.bf16.vlgmr.msra.gmra.mrb[4].mxu1 %v13709_v59  ;;  %v11067_v59 = vcombine.low %v2732_v15, %v2736_v44  ;;  %v2792_v15 = vld [vmem:[%s12873_s30 + $0x1670] sm:$0xff]  ;;  %v2789_v44 = vld [vmem:[%s12873_s30 + $0x1658] sm:$0xff] }
 0x64d   : > { %9080 = vmatpush1.bf16.msra.mxu0 %v11051_v28  ;;  %9408 = vmatpush1.bf16.msra.mxu1 %v11053_v29  ;;  %v11109_v28 = vcombine.low %v2773_v8, %v2777_v55  ;;  %v11116_v29 = vcombine.high %v2780_v20, %v2784_v23  ;;  %v2833_v8 = vld [vmem:[%s12873_s30 + $0x17b8] sm:$0xff]  ;;  %v2840_v20 = vld [vmem:[%s12873_s30 + $0x17f0] sm:$0xff] }
 0x64e   : > { %9081 = vmatprep.subr.bf16.mxu0 %v11060_v32  ;;  %9409 = vmatprep.subr.bf16.mxu1 %v11062_v34  ;;  %v11118_v32 = vcombine.high %v2781_v3, %v2785_v52  ;;  %v2788_v34 = vld [vmem:[%s12873_s30 + $0x1650] sm:$0xff]  ;;  %v2837_v23 = vld [vmem:[%s12873_s30 + $0x17d8] sm:$0xff] }
 0x64f   : > { %9111 = vmatprep.mubr.bf16.mxu0 %v13715_v37  ;;  %9439 = vmatprep.mubr.bf16.mxu1 %v13715_v37  ;;  %v11077_v37 = vcombine.low %v2741_v27, %v2745_v38  ;;  %v2801_v27 = vld [vmem:[%s12873_s30 + $0x16b8] sm:$0xff]  ;;  %v11123_v38 = vcombine.low %v2788_v34, %v2792_v15 }
 0x651   : > { %9082 = vmatpush1.bf16.msra.mxu0 %v11059_v18  ;;  %9410 = vmatpush1.bf16.msra.mxu1 %v11061_v10  ;;  %v11117_v18 = vcombine.low %v2781_v3, %v2785_v52  ;;  %v11124_v10 = vcombine.high %v2788_v34, %v2792_v15  ;;  %v2841_v3 = vld [vmem:[%s12873_s30 + $0x17f8] sm:$0xff]  ;;  %v2848_v34 = vld [vmem:[%s12873_s30 + $0x1830] sm:$0xff] }
 0x652   : > { %9083 = vmatprep.subr.bf16.mxu0 %v11068_v41  ;;  %9411 = vmatprep.subr.bf16.mxu1 %v11070_v30  ;;  %v11126_v41 = vcombine.high %v2789_v44, %v2793_v40  ;;  %v2796_v30 = vld [vmem:[%s12873_s30 + $0x1690] sm:$0xff]  ;;  %v2845_v15 = vld [vmem:[%s12873_s30 + $0x1818] sm:$0xff] }
 0x653   : > { %v11131_v53 = vcombine.low %v2796_v30, %v2800_v24 }
 0x655   : > { %9084 = vmatpush1.bf16.msra.mxu0 %v11067_v59  ;;  %9412 = vmatpush1.bf16.msra.mxu1 %v11069_v22  ;;  %v11125_v59 = vcombine.low %v2789_v44, %v2793_v40  ;;  %v11132_v22 = vcombine.high %v2796_v30, %v2800_v24  ;;  %v2849_v44 = vld [vmem:[%s12873_s30 + $0x1838] sm:$0xff]  ;;  %v2856_v30 = vld [vmem:[%s12873_s30 + $0x1870] sm:$0xff] }
 0x656   : > { %9085 = vmatprep.subr.bf16.mxu0 %v11076_v47  ;;  %9413 = vmatprep.subr.bf16.mxu1 %v11078_v33  ;;  %v11134_v47 = vcombine.high %v2797_v25, %v2801_v27  ;;  %v2804_v33 = vld [vmem:[%s12873_s30 + $0x16d0] sm:$0xff]  ;;  %v2853_v24 = vld [vmem:[%s12873_s30 + $0x1858] sm:$0xff] }
 0x657   : > { %v11139_v7 = vcombine.low %v2804_v33, %v2808_v36 }
 0x659   : > { %9086 = vmatpush1.bf16.msra.mxu0 %v11075_v17  ;;  %9414 = vmatpush1.bf16.msra.mxu1 %v11077_v37  ;;  %v11133_v17 = vcombine.low %v2797_v25, %v2801_v27  ;;  %v11140_v37 = vcombine.high %v2804_v33, %v2808_v36  ;;  %v2857_v25 = vld [vmem:[%s12873_s30 + $0x1878] sm:$0xff]  ;;  %v2864_v33 = vld [vmem:[%s12873_s30 + $0x18b0] sm:$0xff] }
 0x65a   : > { %9087 = vmatprep.subr.bf16.mxu0 %v11084_v42  ;;  %9415 = vmatprep.subr.bf16.mxu1 %v11086_v35  ;;  %v11142_v42 = vcombine.high %v2805_v39, %v2809_v56  ;;  %v2812_v35 = vld [vmem:[%s12873_s30 + $0x1710] sm:$0xff]  ;;  %v2861_v36 = vld [vmem:[%s12873_s30 + $0x1898] sm:$0xff] }
 0x65b   : > { %v11147_v12 = vcombine.low %v2812_v35, %v2816_v43 }
 0x65d   : > { %9088 = vmatpush1.bf16.msra.mxu0 %v11083_v54  ;;  %9416 = vmatpush1.bf16.msra.mxu1 %v11085_v57  ;;  %v11141_v54 = vcombine.low %v2805_v39, %v2809_v56  ;;  %v11148_v57 = vcombine.high %v2812_v35, %v2816_v43  ;;  %v2865_v39 = vld [vmem:[%s12873_s30 + $0x18b8] sm:$0xff]  ;;  %v2872_v35 = vld [vmem:[%s12873_s30 + $0x18f0] sm:$0xff] }
 0x65e   : > { %9089 = vmatprep.subr.bf16.mxu0 %v11092_v60  ;;  %9417 = vmatprep.subr.bf16.mxu1 %v11094_v61  ;;  %v11150_v60 = vcombine.high %v2813_v45, %v2817_v50  ;;  %v2820_v61 = vld [vmem:[%s12873_s30 + $0x1750] sm:$0xff]  ;;  %v2869_v43 = vld [vmem:[%s12873_s30 + $0x18d8] sm:$0xff] }
 0x65f   : > { %v11155_v55 = vcombine.low %v2820_v61, %v2824_v62 }
 0x661   : > { %9090 = vmatpush1.bf16.msra.mxu0 %v11091_v1  ;;  %9418 = vmatpush1.bf16.msra.mxu1 %v11093_v4  ;;  %v11149_v1 = vcombine.low %v2813_v45, %v2817_v50  ;;  %v11156_v4 = vcombine.high %v2820_v61, %v2824_v62  ;;  %v2873_v45 = vld [vmem:[%s12873_s30 + $0x18f8] sm:$0xff]  ;;  %v11197_v50 = vcombine.low %v2861_v36, %v2865_v39 }
 0x662   : > { %9091 = vmatprep.subr.bf16.mxu0 %v11100_v13  ;;  %9419 = vmatprep.subr.bf16.mxu1 %v11102_v6  ;;  %v11158_v13 = vcombine.high %v2821_v63, %v2825_v0  ;;  %v2828_v6 = vld [vmem:[%s12873_s30 + $0x1790] sm:$0xff]  ;;  %v2877_v61 = vld [vmem:[%s12873_s30 + $0x1918] sm:$0xff] }
 0x663   : > { %v11163_v52 = vcombine.low %v2828_v6, %v2832_v46  ;;  %v2881_v62 = vld [vmem:[%s12873_s30 + $0x1938] sm:$0xff] }
 0x665   : > { %9092 = vmatpush1.bf16.msra.mxu0 %v11099_v9  ;;  %9420 = vmatpush1.bf16.msra.mxu1 %v11101_v11  ;;  %v11157_v9 = vcombine.low %v2821_v63, %v2825_v0  ;;  %v11164_v11 = vcombine.high %v2828_v6, %v2832_v46  ;;  %v2889_v6 = vld [vmem:[%s12873_s30 + $0x1978] sm:$0xff] }
 0x666   : > { %9093 = vmatprep.subr.bf16.mxu0 %v11108_v14  ;;  %9421 = vmatprep.subr.bf16.mxu1 %v11110_v16  ;;  %v11166_v14 = vcombine.high %v2829_v51, %v2833_v8  ;;  %v2836_v16 = vld [vmem:[%s12873_s30 + $0x17d0] sm:$0xff] }
 0x667   : > { %v11171_v40 = vcombine.low %v2836_v16, %v2840_v20 }
 0x669   : > { %9094 = vmatpush1.bf16.msra.mxu0 %v11107_v26  ;;  %9422 = vmatpush1.bf16.msra.mxu1 %v11109_v28  ;;  %v11165_v26 = vcombine.low %v2829_v51, %v2833_v8  ;;  %v11172_v28 = vcombine.high %v2836_v16, %v2840_v20  ;;  %v11213_v51 = vcombine.low %v2877_v61, %v2881_v62  ;;  %v2897_v16 = vld [vmem:[%s12873_s30 + $0x19b8] sm:$0xff] }
 0x66a   : > { %9095 = vmatprep.subr.bf16.mxu0 %v11116_v29  ;;  %9423 = vmatprep.subr.bf16.mxu1 %v11118_v32  ;;  %v11174_v29 = vcombine.high %v2837_v23, %v2841_v3  ;;  %v2844_v32 = vld [vmem:[%s12873_s30 + $0x1810] sm:$0xff] }
 0x66b   : > { %v11179_v27 = vcombine.low %v2844_v32, %v2848_v34 }
 0x66d   : > { %9096 = vmatpush1.bf16.msra.mxu0 %v11115_v2  ;;  %9424 = vmatpush1.bf16.msra.mxu1 %v11117_v18  ;;  %v11173_v2 = vcombine.low %v2837_v23, %v2841_v3  ;;  %v11180_v18 = vcombine.high %v2844_v32, %v2848_v34  ;;  %v2905_v32 = vld [vmem:[%s12873_s30 + $0x19f8] sm:$0xff] }
 0x66e   : > { %9097 = vmatprep.subr.bf16.mxu0 %v11124_v10  ;;  %9425 = vmatprep.subr.bf16.mxu1 %v11126_v41  ;;  %v11182_v10 = vcombine.high %v2845_v15, %v2849_v44  ;;  %v2852_v41 = vld [vmem:[%s12873_s30 + $0x1850] sm:$0xff] }
 0x66f   : > { %v11187_v56 = vcombine.low %v2852_v41, %v2856_v30 }
 0x671   : > { %9098 = vmatpush1.bf16.msra.mxu0 %v11123_v38  ;;  %9426 = vmatpush1.bf16.msra.mxu1 %v11125_v59  ;;  %v11181_v38 = vcombine.low %v2845_v15, %v2849_v44  ;;  %v11188_v59 = vcombine.high %v2852_v41, %v2856_v30  ;;  %v2913_v41 = vld [vmem:[%s12873_s30 + $0x1a38] sm:$0xff] }
 0x672   : > { %9099 = vmatprep.subr.bf16.mxu0 %v11132_v22  ;;  %9427 = vmatprep.subr.bf16.mxu1 %v11134_v47  ;;  %v11190_v22 = vcombine.high %v2853_v24, %v2857_v25  ;;  %v2860_v47 = vld [vmem:[%s12873_s30 + $0x1890] sm:$0xff] }
 0x675   : > { %9100 = vmatpush1.bf16.msra.mxu0 %v11131_v53  ;;  %9428 = vmatpush1.bf16.msra.mxu1 %v11133_v17  ;;  %v11189_v53 = vcombine.low %v2853_v24, %v2857_v25  ;;  %v11196_v17 = vcombine.high %v2860_v47, %v2864_v33 }
 0x676   : > { %9101 = vmatprep.subr.bf16.mxu0 %v11140_v37  ;;  %9429 = vmatprep.subr.bf16.mxu1 %v11142_v42  ;;  %v11198_v37 = vcombine.high %v2861_v36, %v2865_v39  ;;  %v2868_v42 = vld [vmem:[%s12873_s30 + $0x18d0] sm:$0xff] }
 0x677   : > { %v11203_v63 = vcombine.low %v2868_v42, %v2872_v35 }
 0x679   : > { %9102 = vmatpush1.bf16.msra.mxu0 %v11139_v7  ;;  %9430 = vmatpush1.bf16.msra.mxu1 %v11141_v54  ;;  %v11204_v7 = vcombine.high %v2868_v42, %v2872_v35  ;;  %v11206_v54 = vcombine.high %v2869_v43, %v2873_v45  ;;  %v2929_v42 = vld [vmem:[%s12873_s30 + $0x1ab8] sm:$0xff] }
 0x67a   : > { %9103 = vmatprep.subr.bf16.mxu0 %v11148_v57  ;;  %9431 = vmatprep.subr.bf16.mxu1 %v11150_v60  ;;  %v2876_v57 = vld [vmem:[%s12873_s30 + $0x1910] sm:$0xff] }
 0x67b   : > { %v2880_v60 = vld [vmem:[%s12873_s30 + $0x1930] sm:$0xff] }
 0x67c   : > { %v11212_v0 = vcombine.high %v2876_v57, %v2880_v60  ;;  %v11211_v46 = vcombine.low %v2876_v57, %v2880_v60  ;;  %v2937_v57 = vld [vmem:[%s12873_s30 + $0x1af8] sm:$0xff] }
 0x67d   : > { %9104 = vmatpush1.bf16.msra.mxu0 %v11147_v12  ;;  %9432 = vmatpush1.bf16.msra.mxu1 %v11149_v1  ;;  %v11214_v12 = vcombine.high %v2877_v61, %v2881_v62  ;;  %v2884_v1 = vld [vmem:[%s12873_s30 + $0x1950] sm:$0xff] }
 0x67e   : > { %9105 = vmatprep.subr.bf16.mxu0 %v11156_v4  ;;  %9433 = vmatprep.subr.bf16.mxu1 %v11158_v13  ;;  %v2888_v4 = vld [vmem:[%s12873_s30 + $0x1970] sm:$0xff]  ;;  %v2885_v13 = vld [vmem:[%s12873_s30 + $0x1958] sm:$0xff] }
 0x67f   : > { %v11220_v8 = vcombine.high %v2884_v1, %v2888_v4  ;;  %v11219_v20 = vcombine.low %v2884_v1, %v2888_v4  ;;  %v11221_v23 = vcombine.low %v2885_v13, %v2889_v6  ;;  %v2945_v1 = vld [vmem:[%s12873_s30 + $0x1b38] sm:$0xff] }
 0x681   : > { %9106 = vmatpush1.bf16.msra.mxu0 %v11155_v55  ;;  %9434 = vmatpush1.bf16.msra.mxu1 %v11157_v9  ;;  %v11222_v55 = vcombine.high %v2885_v13, %v2889_v6  ;;  %v2892_v9 = vld [vmem:[%s12873_s30 + $0x1990] sm:$0xff] }
 0x682   : > { %9107 = vmatprep.subr.bf16.mxu0 %v11164_v11  ;;  %9435 = vmatprep.subr.bf16.mxu1 %v11166_v14  ;;  %v2896_v11 = vld [vmem:[%s12873_s30 + $0x19b0] sm:$0xff]  ;;  %v2893_v14 = vld [vmem:[%s12873_s30 + $0x1998] sm:$0xff] }
 0x683   : > { %v11228_v3 = vcombine.high %v2892_v9, %v2896_v11  ;;  %v11227_v34 = vcombine.low %v2892_v9, %v2896_v11  ;;  %v11229_v15 = vcombine.low %v2893_v14, %v2897_v16  ;;  %v2953_v9 = vld [vmem:[%s12873_s30 + $0x1b78] sm:$0xff] }
 0x685   : > { %9108 = vmatpush1.bf16.msra.mxu0 %v11163_v52  ;;  %9436 = vmatpush1.bf16.msra.mxu1 %v11165_v26  ;;  %v11230_v52 = vcombine.high %v2893_v14, %v2897_v16  ;;  %v2900_v26 = vld [vmem:[%s12873_s30 + $0x19d0] sm:$0xff] }
 0x686   : > { %9109 = vmatprep.subr.bf16.mxu0 %v11172_v28  ;;  %9437 = vmatprep.subr.bf16.mxu1 %v11174_v29  ;;  %v2904_v28 = vld [vmem:[%s12873_s30 + $0x19f0] sm:$0xff]  ;;  %v2901_v29 = vld [vmem:[%s12873_s30 + $0x19d8] sm:$0xff] }
 0x687   : > { %v11236_v44 = vcombine.high %v2900_v26, %v2904_v28  ;;  %v11235_v30 = vcombine.low %v2900_v26, %v2904_v28  ;;  %v11237_v24 = vcombine.low %v2901_v29, %v2905_v32  ;;  %v2961_v26 = vld [vmem:[%s12873_s30 + $0x1bb8] sm:$0xff] }
 0x689   : > { %9110 = vmatpush1.bf16.msra.mxu0 %v11171_v40  ;;  %9438 = vmatpush1.bf16.msra.mxu1 %v11173_v2  ;;  %v11238_v40 = vcombine.high %v2901_v29, %v2905_v32  ;;  %v2908_v2 = vld [vmem:[%s12873_s30 + $0x1a10] sm:$0xff] }
 0x68a   : > { %9120 = vmatprep.subr.bf16.mxu0 %v11180_v18  ;;  %9448 = vmatprep.subr.bf16.mxu1 %v11182_v10  ;;  %v2912_v18 = vld [vmem:[%s12873_s30 + $0x1a30] sm:$0xff]  ;;  %v2909_v10 = vld [vmem:[%s12873_s30 + $0x1a18] sm:$0xff] }
 0x68b   : > { %v11244_v25 = vcombine.high %v2908_v2, %v2912_v18  ;;  %v11245_v36 = vcombine.low %v2909_v10, %v2913_v41 }
 0x68c   : > { %9112 = vmatmul.mubr.bf16.vlgmr.msra.gmra.mrb[4].mxu0 %v13792_v49  ;;  %9440 = vmatmul.mubr.bf16.vlgmr.msra.gmra.mrb[4].mxu1 %v13792_v49  ;;  %v11195_v49 = vcombine.low %v2860_v47, %v2864_v33  ;;  %v2921_v47 = vld [vmem:[%s12873_s30 + $0x1a78] sm:$0xff]  ;;  %v11243_v33 = vcombine.low %v2908_v2, %v2912_v18 }
 0x68d   : > { %9121 = vmatpush1.bf16.msra.mxu0 %v11179_v27  ;;  %9449 = vmatpush1.bf16.msra.mxu1 %v11181_v38  ;;  %v11246_v27 = vcombine.high %v2909_v10, %v2913_v41  ;;  %v2916_v38 = vld [vmem:[%s12873_s30 + $0x1a50] sm:$0xff]  ;;  %v2969_v2 = vld [vmem:[%s12873_s30 + $0x1bf8] sm:$0xff] }
 0x68e   : > { %9122 = vmatprep.subr.bf16.mxu0 %v11188_v59  ;;  %9450 = vmatprep.subr.bf16.mxu1 %v11190_v22  ;;  %v2920_v59 = vld [vmem:[%s12873_s30 + $0x1a70] sm:$0xff]  ;;  %v2917_v22 = vld [vmem:[%s12873_s30 + $0x1a58] sm:$0xff] }
 0x68f   : > { %9152 = vmatprep.mubr.bf16.mxu0 %v13798_v19  ;;  %9480 = vmatprep.mubr.bf16.mxu1 %v13798_v19  ;;  %v11205_v19 = vcombine.low %v2869_v43, %v2873_v45  ;;  %v11252_v39 = vcombine.high %v2916_v38, %v2920_v59  ;;  %v11251_v35 = vcombine.low %v2916_v38, %v2920_v59  ;;  %v2977_v38 = vld [vmem:[%s12873_s30 + $0x1c38] sm:$0xff] }
 0x690   : > { %v11253_v43 = vcombine.low %v2917_v22, %v2921_v47 }
 0x691   : > { %9123 = vmatpush1.bf16.msra.mxu0 %v11187_v56  ;;  %9451 = vmatpush1.bf16.msra.mxu1 %v11189_v53  ;;  %v11254_v56 = vcombine.high %v2917_v22, %v2921_v47  ;;  %v2924_v53 = vld [vmem:[%s12873_s30 + $0x1a90] sm:$0xff] }
 0x692   : > { %9124 = vmatprep.subr.bf16.mxu0 %v11196_v17  ;;  %9452 = vmatprep.subr.bf16.mxu1 %v11198_v37  ;;  %v2928_v17 = vld [vmem:[%s12873_s30 + $0x1ab0] sm:$0xff]  ;;  %v2925_v37 = vld [vmem:[%s12873_s30 + $0x1a98] sm:$0xff] }
 0x693   : > { %v11260_v45 = vcombine.high %v2924_v53, %v2928_v17  ;;  %v11259_v60 = vcombine.low %v2924_v53, %v2928_v17  ;;  %v11261_v61 = vcombine.low %v2925_v37, %v2929_v42  ;;  %v2985_v53 = vld [vmem:[%s12873_s30 + $0x1c78] sm:$0xff] }
 0x695   : > { %9125 = vmatpush1.bf16.msra.mxu0 %v11195_v49  ;;  %9453 = vmatpush1.bf16.msra.mxu1 %v11197_v50  ;;  %v11262_v49 = vcombine.high %v2925_v37, %v2929_v42  ;;  %v2932_v50 = vld [vmem:[%s12873_s30 + $0x1ad0] sm:$0xff] }
 0x696   : > { %9126 = vmatprep.subr.bf16.mxu0 %v11204_v7  ;;  %9454 = vmatprep.subr.bf16.mxu1 %v11206_v54  ;;  %v2936_v7 = vld [vmem:[%s12873_s30 + $0x1af0] sm:$0xff]  ;;  %v2933_v54 = vld [vmem:[%s12873_s30 + $0x1ad8] sm:$0xff] }
 0x697   : > { %v11268_v62 = vcombine.high %v2932_v50, %v2936_v7  ;;  %v11267_v4 = vcombine.low %v2932_v50, %v2936_v7  ;;  %v11269_v13 = vcombine.low %v2933_v54, %v2937_v57  ;;  %v2993_v50 = vld [vmem:[%s12873_s30 + $0x1cb8] sm:$0xff] }
 0x699   : > { %9127 = vmatpush1.bf16.msra.mxu0 %v11203_v63  ;;  %9455 = vmatpush1.bf16.msra.mxu1 %v11205_v19  ;;  %v11270_v63 = vcombine.high %v2933_v54, %v2937_v57  ;;  %v2940_v19 = vld [vmem:[%s12873_s30 + $0x1b10] sm:$0xff] }
 0x69a   : > { %9128 = vmatprep.subr.bf16.mxu0 %v11212_v0  ;;  %9456 = vmatprep.subr.bf16.mxu1 %v11214_v12  ;;  %v2944_v0 = vld [vmem:[%s12873_s30 + $0x1b30] sm:$0xff]  ;;  %v2941_v12 = vld [vmem:[%s12873_s30 + $0x1b18] sm:$0xff] }
 0x69b   : > { %v11276_v6 = vcombine.high %v2940_v19, %v2944_v0  ;;  %v11275_v11 = vcombine.low %v2940_v19, %v2944_v0  ;;  %v11277_v14 = vcombine.low %v2941_v12, %v2945_v1  ;;  %v3001_v19 = vld [vmem:[%s12873_s30 + $0x1cf8] sm:$0xff] }
 0x69d   : > { %9129 = vmatpush1.bf16.msra.mxu0 %v11211_v46  ;;  %9457 = vmatpush1.bf16.msra.mxu1 %v11213_v51  ;;  %v11278_v46 = vcombine.high %v2941_v12, %v2945_v1  ;;  %v2948_v51 = vld [vmem:[%s12873_s30 + $0x1b50] sm:$0xff] }
 0x69e   : > { %9130 = vmatprep.subr.bf16.mxu0 %v11220_v8  ;;  %9458 = vmatprep.subr.bf16.mxu1 %v11222_v55  ;;  %v2952_v8 = vld [vmem:[%s12873_s30 + $0x1b70] sm:$0xff]  ;;  %v2949_v55 = vld [vmem:[%s12873_s30 + $0x1b58] sm:$0xff] }
 0x69f   : > { %v11284_v16 = vcombine.high %v2948_v51, %v2952_v8  ;;  %v11283_v28 = vcombine.low %v2948_v51, %v2952_v8  ;;  %v11285_v29 = vcombine.low %v2949_v55, %v2953_v9 }
 0x6a1   : > { %9131 = vmatpush1.bf16.msra.mxu0 %v11219_v20  ;;  %9459 = vmatpush1.bf16.msra.mxu1 %v11221_v23  ;;  %v11286_v20 = vcombine.high %v2949_v55, %v2953_v9  ;;  %v2956_v23 = vld [vmem:[%s12873_s30 + $0x1b90] sm:$0xff] }
 0x6a2   : > { %9132 = vmatprep.subr.bf16.mxu0 %v11228_v3  ;;  %9460 = vmatprep.subr.bf16.mxu1 %v11230_v52  ;;  %v2960_v3 = vld [vmem:[%s12873_s30 + $0x1bb0] sm:$0xff]  ;;  %v2957_v52 = vld [vmem:[%s12873_s30 + $0x1b98] sm:$0xff] }
 0x6a3   : > { %v11292_v32 = vcombine.high %v2956_v23, %v2960_v3  ;;  %v11291_v18 = vcombine.low %v2956_v23, %v2960_v3  ;;  %v11293_v10 = vcombine.low %v2957_v52, %v2961_v26  ;;  %v3012_v9 = vld [vmem:[%s12873_s30 + $0x1d50] sm:$0xff] }
 0x6a5   : > { %9133 = vmatpush1.bf16.msra.mxu0 %v11227_v34  ;;  %9461 = vmatpush1.bf16.msra.mxu1 %v11229_v15  ;;  %v11294_v34 = vcombine.high %v2957_v52, %v2961_v26  ;;  %v2964_v15 = vld [vmem:[%s12873_s30 + $0x1bd0] sm:$0xff] }
 0x6a6   : > { %9134 = vmatprep.subr.bf16.mxu0 %v11236_v44  ;;  %9462 = vmatprep.subr.bf16.mxu1 %v11238_v40  ;;  %v2968_v44 = vld [vmem:[%s12873_s30 + $0x1bf0] sm:$0xff]  ;;  %v2965_v40 = vld [vmem:[%s12873_s30 + $0x1bd8] sm:$0xff] }
 0x6a7   : > { %v11300_v41 = vcombine.high %v2964_v15, %v2968_v44  ;;  %v11299_v59 = vcombine.low %v2964_v15, %v2968_v44  ;;  %v11301_v22 = vcombine.low %v2965_v40, %v2969_v2  ;;  %v3020_v26 = vld [vmem:[%s12873_s30 + $0x1d90] sm:$0xff] }
 0x6a9   : > { %9135 = vmatpush1.bf16.msra.mxu0 %v11235_v30  ;;  %9463 = vmatpush1.bf16.msra.mxu1 %v11237_v24  ;;  %v11302_v30 = vcombine.high %v2965_v40, %v2969_v2  ;;  %v2972_v24 = vld [vmem:[%s12873_s30 + $0x1c10] sm:$0xff] }
 0x6aa   : > { %9136 = vmatprep.subr.bf16.mxu0 %v11244_v25  ;;  %9464 = vmatprep.subr.bf16.mxu1 %v11246_v27  ;;  %v2976_v25 = vld [vmem:[%s12873_s30 + $0x1c30] sm:$0xff]  ;;  %v2973_v27 = vld [vmem:[%s12873_s30 + $0x1c18] sm:$0xff] }
 0x6ab   : > { %v11308_v47 = vcombine.high %v2972_v24, %v2976_v25  ;;  %v11307_v17 = vcombine.low %v2972_v24, %v2976_v25  ;;  %v11309_v37 = vcombine.low %v2973_v27, %v2977_v38  ;;  %v3028_v2 = vld [vmem:[%s12873_s30 + $0x1dd0] sm:$0xff] }
 0x6ad   : > { %9137 = vmatpush1.bf16.msra.mxu0 %v11243_v33  ;;  %9465 = vmatpush1.bf16.msra.mxu1 %v11245_v36  ;;  %v11310_v33 = vcombine.high %v2973_v27, %v2977_v38  ;;  %v2980_v36 = vld [vmem:[%s12873_s30 + $0x1c50] sm:$0xff] }
 0x6ae   : > { %9138 = vmatprep.subr.bf16.mxu0 %v11252_v39  ;;  %9466 = vmatprep.subr.bf16.mxu1 %v11254_v56  ;;  %v2984_v39 = vld [vmem:[%s12873_s30 + $0x1c70] sm:$0xff]  ;;  %v2981_v56 = vld [vmem:[%s12873_s30 + $0x1c58] sm:$0xff] }
 0x6af   : > { %v11316_v42 = vcombine.high %v2980_v36, %v2984_v39  ;;  %v11315_v7 = vcombine.low %v2980_v36, %v2984_v39  ;;  %v11317_v54 = vcombine.low %v2981_v56, %v2985_v53  ;;  %v3036_v38 = vld [vmem:[%s12873_s30 + $0x1e10] sm:$0xff] }
 0x6b1   : > { %9139 = vmatpush1.bf16.msra.mxu0 %v11251_v35  ;;  %9467 = vmatpush1.bf16.msra.mxu1 %v11253_v43  ;;  %v11318_v35 = vcombine.high %v2981_v56, %v2985_v53  ;;  %v2988_v43 = vld [vmem:[%s12873_s30 + $0x1c90] sm:$0xff] }
 0x6b2   : > { %9140 = vmatprep.subr.bf16.mxu0 %v11260_v45  ;;  %9468 = vmatprep.subr.bf16.mxu1 %v11262_v49  ;;  %v2992_v45 = vld [vmem:[%s12873_s30 + $0x1cb0] sm:$0xff]  ;;  %v2989_v49 = vld [vmem:[%s12873_s30 + $0x1c98] sm:$0xff] }
 0x6b3   : > { %v11324_v57 = vcombine.high %v2988_v43, %v2992_v45  ;;  %v11325_v0 = vcombine.low %v2989_v49, %v2993_v50  ;;  %v3044_v53 = vld [vmem:[%s12873_s30 + $0x1e50] sm:$0xff] }
 0x6b5   : > { %9141 = vmatpush1.bf16.msra.mxu0 %v11259_v60  ;;  %9469 = vmatpush1.bf16.msra.mxu1 %v11261_v61  ;;  %v11326_v60 = vcombine.high %v2989_v49, %v2993_v50  ;;  %v2996_v61 = vld [vmem:[%s12873_s30 + $0x1cd0] sm:$0xff] }
 0x6b6   : > { %9142 = vmatprep.subr.bf16.mxu0 %v11268_v62  ;;  %9470 = vmatprep.subr.bf16.mxu1 %v11270_v63  ;;  %v3000_v62 = vld [vmem:[%s12873_s30 + $0x1cf0] sm:$0xff]  ;;  %v2997_v63 = vld [vmem:[%s12873_s30 + $0x1cd8] sm:$0xff] }
 0x6b7   : > { %v11332_v12 = vcombine.high %v2996_v61, %v3000_v62  ;;  %v11334_v1 = vcombine.high %v2997_v63, %v3001_v19  ;;  %v11331_v51 = vcombine.low %v2996_v61, %v3000_v62  ;;  %v3052_v50 = vld [vmem:[%s12873_s30 + $0x1e90] sm:$0xff] }
 0x6b9   : > { %9143 = vmatpush1.bf16.msra.mxu0 %v11267_v4  ;;  %9471 = vmatpush1.bf16.msra.mxu1 %v11269_v13  ;;  %v3004_v4 = vld [vmem:[%s12873_s30 + $0x1d10] sm:$0xff] }
 0x6ba   : > { %9144 = vmatprep.subr.bf16.mxu0 %v11276_v6  ;;  %9472 = vmatprep.subr.bf16.mxu1 %v11278_v46  ;;  %v3008_v13 = vld [vmem:[%s12873_s30 + $0x1d30] sm:$0xff]  ;;  %v3005_v6 = vld [vmem:[%s12873_s30 + $0x1d18] sm:$0xff] }
 0x6bb   : > { %v3009_v46 = vld [vmem:[%s12873_s30 + $0x1d38] sm:$0xff]  ;;  %v11340_v8 = vcombine.high %v3004_v4, %v3008_v13 }
 0x6bc   : > { %v11342_v55 = vcombine.high %v3005_v6, %v3009_v46  ;;  %v11341_v23 = vcombine.low %v3005_v6, %v3009_v46  ;;  %v3068_v46 = vld [vmem:[%s12873_s30 + $0x1f10] sm:$0xff] }
 0x6bd   : > { %9145 = vmatpush1.bf16.msra.mxu0 %v11275_v11  ;;  %9473 = vmatpush1.bf16.msra.mxu1 %v11277_v14  ;;  %v3016_v11 = vld [vmem:[%s12873_s30 + $0x1d70] sm:$0xff]  ;;  %v3013_v14 = vld [vmem:[%s12873_s30 + $0x1d58] sm:$0xff] }
 0x6be   : > { %9146 = vmatprep.subr.bf16.mxu0 %v11284_v16  ;;  %9474 = vmatprep.subr.bf16.mxu1 %v11286_v20  ;;  %v3017_v16 = vld [vmem:[%s12873_s30 + $0x1d78] sm:$0xff]  ;;  %v11339_v20 = vcombine.low %v3004_v4, %v3008_v13  ;;  %v11348_v3 = vcombine.high %v3012_v9, %v3016_v11 }
 0x6bf   : > { %v11350_v52 = vcombine.high %v3013_v14, %v3017_v16  ;;  %v11349_v15 = vcombine.low %v3013_v14, %v3017_v16  ;;  %v3076_v16 = vld [vmem:[%s12873_s30 + $0x1f50] sm:$0xff] }
 0x6c1   : > { %9147 = vmatpush1.bf16.msra.mxu0 %v11283_v28  ;;  %9475 = vmatpush1.bf16.msra.mxu1 %v11285_v29  ;;  %v3024_v28 = vld [vmem:[%s12873_s30 + $0x1db0] sm:$0xff]  ;;  %v3021_v29 = vld [vmem:[%s12873_s30 + $0x1d98] sm:$0xff] }
 0x6c2   : > { %9148 = vmatprep.subr.bf16.mxu0 %v11292_v32  ;;  %9476 = vmatprep.subr.bf16.mxu1 %v11294_v34  ;;  %v3025_v32 = vld [vmem:[%s12873_s30 + $0x1db8] sm:$0xff]  ;;  %v11347_v34 = vcombine.low %v3012_v9, %v3016_v11  ;;  %v11356_v44 = vcombine.high %v3020_v26, %v3024_v28 }
 0x6c3   : > { %v11358_v40 = vcombine.high %v3021_v29, %v3025_v32  ;;  %v11357_v24 = vcombine.low %v3021_v29, %v3025_v32  ;;  %v3084_v32 = vld [vmem:[%s12873_s30 + $0x1f90] sm:$0xff] }
 0x6c5   : > { %9149 = vmatpush1.bf16.msra.mxu0 %v11291_v18  ;;  %9477 = vmatpush1.bf16.msra.mxu1 %v11293_v10  ;;  %v3032_v18 = vld [vmem:[%s12873_s30 + $0x1df0] sm:$0xff]  ;;  %v3029_v10 = vld [vmem:[%s12873_s30 + $0x1dd8] sm:$0xff] }
 0x6c6   : > { %9150 = vmatprep.subr.bf16.mxu0 %v11300_v41  ;;  %9478 = vmatprep.subr.bf16.mxu1 %v11302_v30  ;;  %v3033_v41 = vld [vmem:[%s12873_s30 + $0x1df8] sm:$0xff]  ;;  %v11355_v30 = vcombine.low %v3020_v26, %v3024_v28  ;;  %v11364_v25 = vcombine.high %v3028_v2, %v3032_v18 }
 0x6c7   : > { %v11366_v27 = vcombine.high %v3029_v10, %v3033_v41  ;;  %v11365_v36 = vcombine.low %v3029_v10, %v3033_v41  ;;  %v3092_v41 = vld [vmem:[%s12873_s30 + $0x1fd0] sm:$0xff] }
 0x6c9   : > { %9151 = vmatpush1.bf16.msra.mxu0 %v11299_v59  ;;  %9479 = vmatpush1.bf16.msra.mxu1 %v11301_v22  ;;  %v3040_v59 = vld [vmem:[%s12873_s30 + $0x1e30] sm:$0xff]  ;;  %v3037_v22 = vld [vmem:[%s12873_s30 + $0x1e18] sm:$0xff] }
 0x6ca   : > { %9161 = vmatprep.subr.bf16.mxu0 %v11308_v47  ;;  %9489 = vmatprep.subr.bf16.mxu1 %v11310_v33  ;;  %v3041_v47 = vld [vmem:[%s12873_s30 + $0x1e38] sm:$0xff]  ;;  %v11363_v33 = vcombine.low %v3028_v2, %v3032_v18  ;;  %v11372_v39 = vcombine.high %v3036_v38, %v3040_v59 }
 0x6cb   : > { %v11374_v56 = vcombine.high %v3037_v22, %v3041_v47 }
 0x6cc   : > { %9153 = vmatmul.mubr.bf16.vlgmr.msra.gmra.mrb[4].mxu0 %v13873_v31  ;;  %9481 = vmatmul.mubr.bf16.vlgmr.msra.gmra.mrb[4].mxu1 %v13873_v31  ;;  %v11323_v31 = vcombine.low %v2988_v43, %v2992_v45  ;;  %v11373_v43 = vcombine.low %v3037_v22, %v3041_v47 }
 0x6cd   : > { %9162 = vmatpush1.bf16.msra.mxu0 %v11307_v17  ;;  %9490 = vmatpush1.bf16.msra.mxu1 %v11309_v37  ;;  %v3048_v17 = vld [vmem:[%s12873_s30 + $0x1e70] sm:$0xff]  ;;  %v3045_v37 = vld [vmem:[%s12873_s30 + $0x1e58] sm:$0xff] }
 0x6ce   : > { %9163 = vmatprep.subr.bf16.mxu0 %v11316_v42  ;;  %9491 = vmatprep.subr.bf16.mxu1 %v11318_v35  ;;  %v3049_v42 = vld [vmem:[%s12873_s30 + $0x1e78] sm:$0xff]  ;;  %v11371_v35 = vcombine.low %v3036_v38, %v3040_v59  ;;  %v11380_v45 = vcombine.high %v3044_v53, %v3048_v17 }
 0x6cf   : > { %9193 = vmatprep.mubr.bf16.mxu0 %v13879_v48  ;;  %9521 = vmatprep.mubr.bf16.mxu1 %v13879_v48  ;;  %v11333_v48 = vcombine.low %v2997_v63, %v3001_v19  ;;  %v11382_v49 = vcombine.high %v3045_v37, %v3049_v42  ;;  %v11381_v61 = vcombine.low %v3045_v37, %v3049_v42  ;;  %v3060_v19 = vld [vmem:[%s12873_s30 + $0x1ed0] sm:$0xff] }
 0x6d1   : > { %9164 = vmatpush1.bf16.msra.mxu0 %v11315_v7  ;;  %9492 = vmatpush1.bf16.msra.mxu1 %v11317_v54  ;;  %v3056_v7 = vld [vmem:[%s12873_s30 + $0x1eb0] sm:$0xff]  ;;  %v3053_v54 = vld [vmem:[%s12873_s30 + $0x1e98] sm:$0xff] }
 0x6d2   : > { %9165 = vmatprep.subr.bf16.mxu0 %v11324_v57  ;;  %9493 = vmatprep.subr.bf16.mxu1 %v11326_v60  ;;  %v3057_v57 = vld [vmem:[%s12873_s30 + $0x1eb8] sm:$0xff]  ;;  %v11379_v60 = vcombine.low %v3044_v53, %v3048_v17  ;;  %v11388_v62 = vcombine.high %v3052_v50, %v3056_v7 }
 0x6d3   : > { %v11390_v63 = vcombine.high %v3053_v54, %v3057_v57  ;;  %v11389_v4 = vcombine.low %v3053_v54, %v3057_v57 }
 0x6d5   : > { %9166 = vmatpush1.bf16.msra.mxu0 %v11323_v31  ;;  %9494 = vmatpush1.bf16.msra.mxu1 %v11325_v0  ;;  %v3064_v31 = vld [vmem:[%s12873_s30 + $0x1ef0] sm:$0xff]  ;;  %v3061_v0 = vld [vmem:[%s12873_s30 + $0x1ed8] sm:$0xff] }
 0x6d6   : > { %9167 = vmatprep.subr.bf16.mxu0 %v11332_v12  ;;  %9495 = vmatprep.subr.bf16.mxu1 %v11334_v1  ;;  %v3065_v12 = vld [vmem:[%s12873_s30 + $0x1ef8] sm:$0xff]  ;;  %v11387_v1 = vcombine.low %v3052_v50, %v3056_v7  ;;  %v11396_v13 = vcombine.high %v3060_v19, %v3064_v31 }
 0x6d7   : > { %v11398_v6 = vcombine.high %v3061_v0, %v3065_v12  ;;  %v11397_v9 = vcombine.low %v3061_v0, %v3065_v12  ;;  %v1962_v7 = vld [vmem:[#allocation3 + $0x8] sm:$0xff] }
 0x6d9   : > { %9168 = vmatpush1.bf16.msra.mxu0 %v11331_v51  ;;  %9496 = vmatpush1.bf16.msra.mxu1 %v11333_v48  ;;  %v3072_v51 = vld [vmem:[%s12873_s30 + $0x1f30] sm:$0xff]  ;;  %v3069_v48 = vld [vmem:[%s12873_s30 + $0x1f18] sm:$0xff] }
 0x6da   : > { %9169 = vmatprep.subr.bf16.mxu0 %v11340_v8  ;;  %9497 = vmatprep.subr.bf16.mxu1 %v11342_v55  ;;  %v3073_v8 = vld [vmem:[%s12873_s30 + $0x1f38] sm:$0xff]  ;;  %v11395_v55 = vcombine.low %v3060_v19, %v3064_v31  ;;  %v11404_v11 = vcombine.high %v3068_v46, %v3072_v51  ;;  %v9706_v19 = vld [vmem:[#allocation13 + $0x180] sm:$0xff] (!%p11431_p11)  ;;  %v9707_v31 = vld [vmem:[#allocation13 + $0x188] sm:$0xff] (!%p11431_p11) }
 0x6db   : > { %v11406_v14 = vcombine.high %v3069_v48, %v3073_v8  ;;  %v11405_v26 = vcombine.low %v3069_v48, %v3073_v8  ;;  %v11951_v12 = vpack.c.bf16 (!%p11431_p11), %v9707_v31, %v9706_v19  ;;  %v9661_v48 = vld [vmem:[#allocation13 + $0x18] sm:$0xff] (!%p11431_p11)  ;;  %v9700_v19 = vld [vmem:[#allocation13 + $0x150] sm:$0xff] (!%p11431_p11) }
 0x6dd   : > { %9170 = vmatpush1.bf16.msra.mxu0 %v11339_v20  ;;  %9498 = vmatpush1.bf16.msra.mxu1 %v11341_v23  ;;  %v3080_v20 = vld [vmem:[%s12873_s30 + $0x1f70] sm:$0xff]  ;;  %v3077_v23 = vld [vmem:[%s12873_s30 + $0x1f58] sm:$0xff] }
 0x6de   : > { %9171 = vmatprep.subr.bf16.mxu0 %v11348_v3  ;;  %9499 = vmatprep.subr.bf16.mxu1 %v11350_v52  ;;  %v3081_v3 = vld [vmem:[%s12873_s30 + $0x1f78] sm:$0xff]  ;;  %v11403_v52 = vcombine.low %v3068_v46, %v3072_v51  ;;  %v11412_v28 = vcombine.high %v3076_v16, %v3080_v20  ;;  %v9677_v46 = vld [vmem:[#allocation13 + $0x98] sm:$0xff] (!%p11431_p11) }
 0x6df   : > { %v11414_v29 = vcombine.high %v3077_v23, %v3081_v3  ;;  %v11413_v2 = vcombine.low %v3077_v23, %v3081_v3  ;;  %v9660_v51 = vld [vmem:[#allocation13 + $0x10] sm:$0xff] (!%p11431_p11)  ;;  %v9678_v23 = vld [vmem:[#allocation13 + $0xa0] sm:$0xff] (!%p11431_p11)  ;;  %v9679_v3 = vld [vmem:[#allocation13 + $0xa8] sm:$0xff] (!%p11431_p11) }
 0x6e1   : > { %9172 = vmatpush1.bf16.msra.mxu0 %v11347_v34  ;;  %9500 = vmatpush1.bf16.msra.mxu1 %v11349_v15  ;;  %v3088_v34 = vld [vmem:[%s12873_s30 + $0x1fb0] sm:$0xff]  ;;  %v3085_v15 = vld [vmem:[%s12873_s30 + $0x1f98] sm:$0xff] }
 0x6e2   : > { %9173 = vmatprep.subr.bf16.mxu0 %v11356_v44  ;;  %9501 = vmatprep.subr.bf16.mxu1 %v11358_v40  ;;  %v3089_v44 = vld [vmem:[%s12873_s30 + $0x1fb8] sm:$0xff]  ;;  %v11411_v40 = vcombine.low %v3076_v16, %v3080_v20  ;;  %v11420_v18 = vcombine.high %v3084_v32, %v3088_v34  ;;  %v9693_v20 = vld [vmem:[#allocation13 + $0x118] sm:$0xff] (!%p11431_p11) }
 0x6e3   : > { %v11422_v10 = vcombine.high %v3085_v15, %v3089_v44  ;;  %v11421_v38 = vcombine.low %v3085_v15, %v3089_v44  ;;  %v9694_v15 = vld [vmem:[#allocation13 + $0x120] sm:$0xff] (!%p11431_p11)  ;;  %v9695_v44 = vld [vmem:[#allocation13 + $0x128] sm:$0xff] (!%p11431_p11) }
 0x6e5   : > { %9174 = vmatpush1.bf16.msra.mxu0 %v11355_v30  ;;  %9502 = vmatpush1.bf16.msra.mxu1 %v11357_v24  ;;  %v3096_v30 = vld [vmem:[%s12873_s30 + $0x1ff0] sm:$0xff]  ;;  %v3093_v24 = vld [vmem:[%s12873_s30 + $0x1fd8] sm:$0xff] }
 0x6e6   : > { %9175 = vmatprep.subr.bf16.mxu0 %v11364_v25  ;;  %9503 = vmatprep.subr.bf16.mxu1 %v11366_v27  ;;  %v3097_v25 = vld [vmem:[%s12873_s30 + $0x1ff8] sm:$0xff]  ;;  %v11419_v27 = vcombine.low %v3084_v32, %v3088_v34  ;;  %v11428_v59 = vcombine.high %v3092_v41, %v3096_v30  ;;  %v11427_v47 = vcombine.low %v3092_v41, %v3096_v30  ;;  %v9710_v32 = vld [vmem:[#allocation13 + $0x1a0] sm:$0xff] (!%p11431_p11)  ;;  %v9711_v34 = vld [vmem:[#allocation13 + $0x1a8] sm:$0xff] (!%p11431_p11) }
 0x6e7   : > { %v11430_v22 = vcombine.high %v3093_v24, %v3097_v25  ;;  %v9664_v41 = vld [vmem:[#allocation13 + $0x30] sm:$0xff] (!%p11431_p11)  ;;  %v11961_v30 = vpack.c.bf16 (!%p11431_p11), %v9695_v44, %v9694_v15  ;;  %v9721_v15 = vld [vmem:[#allocation13 + $0x1f8] sm:$0xff] (!%p11431_p11) }
 0x6e9   : > { %9176 = vmatpush1.bf16.msra.mxu0 %v11363_v33  ;;  %9504 = vmatpush1.bf16.msra.mxu1 %v11365_v36  ;;  %v11429_v33 = vcombine.low %v3093_v24, %v3097_v25  ;;  %v9665_v25 = vld [vmem:[#allocation13 + $0x38] sm:$0xff] (!%p11431_p11) }
 0x6ea   : > { %9177 = vmatprep.subr.bf16.mxu0 %v11372_v39  ;;  %9505 = vmatprep.subr.bf16.mxu1 %v11374_v56 }
 0x6ed   : > { %9178 = vmatpush1.bf16.msra.mxu0 %v11371_v35  ;;  %9506 = vmatpush1.bf16.msra.mxu1 %v11373_v43 }
 0x6ee   : > { %9179 = vmatprep.subr.bf16.mxu0 %v11380_v45  ;;  %9507 = vmatprep.subr.bf16.mxu1 %v11382_v49 }
 0x6f1   : > { %9180 = vmatpush1.bf16.msra.mxu0 %v11379_v60  ;;  %9508 = vmatpush1.bf16.msra.mxu1 %v11381_v61  ;;  %v9675_v60 = vld [vmem:[#allocation13 + $0x88] sm:$0xff] (!%p11431_p11)  ;;  %v9658_v61 = vld [vmem:[#allocation13] sm:$0xff] (!%p11431_p11) }
 0x6f2   : > { %9181 = vmatprep.subr.bf16.mxu0 %v11388_v62  ;;  %9509 = vmatprep.subr.bf16.mxu1 %v11390_v63  ;;  %v9659_v63 = vld [vmem:[#allocation13 + $0x8] sm:$0xff] (!%p11431_p11) }
 0x6f3   : > { %v11921_v0 = vpack.c.bf16 (!%p11431_p11), %v9659_v63, %v9658_v61  ;;  %v9669_v63 = vld [vmem:[#allocation13 + $0x58] sm:$0xff] (!%p11431_p11) }
 0x6f5   : > { %9182 = vmatpush1.bf16.msra.mxu0 %v11387_v1  ;;  %9510 = vmatpush1.bf16.msra.mxu1 %v11389_v4  ;;  %v9690_v1 = vld [vmem:[#allocation13 + $0x100] sm:$0xff] (!%p11431_p11)  ;;  %v9691_v4 = vld [vmem:[#allocation13 + $0x108] sm:$0xff] (!%p11431_p11) }
 0x6f6   : > { %9183 = vmatprep.subr.bf16.mxu0 %v11396_v13  ;;  %9511 = vmatprep.subr.bf16.mxu1 %v11398_v6  ;;  %v9676_v13 = vld [vmem:[#allocation13 + $0x90] sm:$0xff] (!%p11431_p11)  ;;  %v11953_v6 = vpack.c.bf16 (!%p11431_p11), %v9691_v4, %v9690_v1  ;;  %v9687_v1 = vld [vmem:[#allocation13 + $0xe8] sm:$0xff] (!%p11431_p11)  ;;  %v9588_v4 = vsub.s32 (!%p11431_p11), 0, %v13303_v58 }
 0x6f7   : > { %v11923_v8 = vpack.c.bf16 (!%p11431_p11), %v9677_v46, %v9676_v13  ;;  %v9592_v13 = vsub.s32 (!%p11431_p11), 1, %v13303_v58  ;;  %v9718_v46 = vld [vmem:[#allocation13 + $0x1e0] sm:$0xff] (!%p11431_p11) }
 0x6f9   : > { %9184 = vmatpush1.bf16.msra.mxu0 %v11395_v55  ;;  %9512 = vmatpush1.bf16.msra.mxu1 %v11397_v9  ;;  %v11925_v55 = vpack.c.bf16 (!%p11431_p11), %v9661_v48, %v9660_v51  ;;  %v9708_v9 = vld [vmem:[#allocation13 + $0x190] sm:$0xff] (!%p11431_p11)  ;;  %v9719_v51 = vld [vmem:[#allocation13 + $0x1e8] sm:$0xff] (!%p11431_p11)  ;;  %v9600_v48 = vsub.s32 (!%p11431_p11), 3, %v13303_v58 }
 0x6fa   : > { %9185 = vmatprep.subr.bf16.mxu0 %v11404_v11  ;;  %9513 = vmatprep.subr.bf16.mxu1 %v11406_v14  ;;  %v9709_v11 = vld [vmem:[#allocation13 + $0x198] sm:$0xff] (!%p11431_p11)  ;;  %v9692_v14 = vld [vmem:[#allocation13 + $0x110] sm:$0xff] (!%p11431_p11) }
 0x6fb   : > { %v11955_v16 = vpack.c.bf16 (!%p11431_p11), %v9709_v11, %v9708_v9 }
 0x6fd   : > { %9186 = vmatpush1.bf16.msra.mxu0 %v11403_v52  ;;  %9514 = vmatpush1.bf16.msra.mxu1 %v11405_v26  ;;  %v11957_v52 = vpack.c.bf16 (!%p11431_p11), %v9693_v20, %v9692_v14  ;;  %v11927_v26 = vpack.c.bf16 (!%p11431_p11), %v9679_v3, %v9678_v23  ;;  %v9671_v14 = vld [vmem:[#allocation13 + $0x68] sm:$0xff] (!%p11431_p11)  ;;  %v9584_v20 = vld [vmem:[#allocation12] sm:$0xff] (!%p11431_p11)  ;;  %v11975_v23 = vpack.c.bf16 (!%p11431_p11), %v9719_v51, %v9718_v46 }
 0x6fe   : > { %9187 = vmatprep.subr.bf16.mxu0 %v11412_v28  ;;  %9515 = vmatprep.subr.bf16.mxu1 %v11414_v29  ;;  %v9662_v28 = vld [vmem:[#allocation13 + $0x20] sm:$0xff] (!%p11431_p11)  ;;  %v9663_v29 = vld [vmem:[#allocation13 + $0x28] sm:$0xff] (!%p11431_p11)  ;;  %v9601_v44 = vrot.slane (!%p11431_p11), %v9584_v20, %v9600_v48 }
 0x6ff   : > { %v9703_v3 = vld [vmem:[#allocation13 + $0x168] sm:$0xff] (!%p11431_p11) }
 0x701   : > { %9188 = vmatpush1.bf16.msra.mxu0 %v11411_v40  ;;  %9516 = vmatpush1.bf16.msra.mxu1 %v11413_v2  ;;  %v11929_v40 = vpack.c.bf16 (!%p11431_p11), %v9663_v29, %v9662_v28  ;;  %v11959_v2 = vpack.c.bf16 (!%p11431_p11), %v9711_v34, %v9710_v32  ;;  %v9589_v28 = vrot.slane (!%p11431_p11), %v9584_v20, %v9588_v4  ;;  %v9720_v34 = vld [vmem:[#allocation13 + $0x1f0] sm:$0xff] (!%p11431_p11)  ;;  %v9754_v4 = vld [vmem:[#allocation13 + $0x300] sm:$0xff] (!%p11431_p11) }
 0x702   : > { %9189 = vmatprep.subr.bf16.mxu0 %v11420_v18  ;;  %9517 = vmatprep.subr.bf16.mxu1 %v11422_v10  ;;  %v9680_v18 = vld [vmem:[#allocation13 + $0xb0] sm:$0xff] (!%p11431_p11)  ;;  %v9681_v10 = vld [vmem:[#allocation13 + $0xb8] sm:$0xff] (!%p11431_p11)  ;;  %v9593_v29 = vrot.slane (!%p11431_p11), %v9584_v20, %v9592_v13  ;;  %v9755_v13 = vld [vmem:[#allocation13 + $0x308] sm:$0xff] (!%p11431_p11) }
 0x703   : > { %v11931_v24 = vpack.c.bf16 (!%p11431_p11), %v9681_v10, %v9680_v18  ;;  %v9672_v10 = vld [vmem:[#allocation13 + $0x70] sm:$0xff] (!%p11431_p11) }
 0x705   : > { %9190 = vmatpush1.bf16.msra.mxu0 %v11419_v27  ;;  %9518 = vmatpush1.bf16.msra.mxu1 %v11421_v38  ;;  %v9712_v27 = vld [vmem:[#allocation13 + $0x1b0] sm:$0xff] (!%p11431_p11)  ;;  %v9713_v38 = vld [vmem:[#allocation13 + $0x1b8] sm:$0xff] (!%p11431_p11) }
 0x706   : > { %9191 = vmatprep.subr.bf16.mxu0 %v11428_v59  ;;  %9519 = vmatprep.subr.bf16.mxu1 %v11430_v22  ;;  %v11963_v59 = vpack.c.bf16 (!%p11431_p11), %v9713_v38, %v9712_v27  ;;  %v9696_v22 = vld [vmem:[#allocation13 + $0x130] sm:$0xff] (!%p11431_p11) }
 0x709   : > { %9192 = vmatpush1.bf16.msra.mxu0 %v11427_v47  ;;  %9520 = vmatpush1.bf16.msra.mxu1 %v11429_v33  ;;  %v9697_v47 = vld [vmem:[#allocation13 + $0x138] sm:$0xff] (!%p11431_p11)  ;;  %v9682_v33 = vld [vmem:[#allocation13 + $0xc0] sm:$0xff] (!%p11431_p11) }
 0x70a   : > { %11952 = vmatprep.subr.bf16.mxu1 (!%p11431_p11), %v11951_v12  ;;  %v9686_v12 = vld [vmem:[#allocation13 + $0xe0] sm:$0xff] (!%p11431_p11) }
 0x70b   : > { %v11943_v11 = vpack.c.bf16 (!%p11431_p11), %v9687_v1, %v9686_v12  ;;  %v9740_v12 = vld [vmem:[#allocation13 + $0x290] sm:$0xff] (!%p11431_p11)  ;;  %v9741_v1 = vld [vmem:[#allocation13 + $0x298] sm:$0xff] (!%p11431_p11) }
 0x70c   : > { %9194 = vmatmul.mubr.bf16.vlgmr.msra.gmra.mrb[4].mxu0 %v13947_v21  ;;  %9522 = vmatmul.mubr.bf16.vlgmr.msra.gmra.mrb[4].mxu1 %v13947_v21  ;;  %v9674_v21 = vld [vmem:[#allocation13 + $0x80] sm:$0xff] (!%p11431_p11) }
 0x70d   : > { %v11919_v62 = vpack.c.bf16 (!%p11431_p11), %v9675_v60, %v9674_v21  ;;  %11954 = vmatpush3.bf16.msra.mxu1 (!%p11431_p11), %v11953_v6  ;;  %v9596_v6 = vsub.s32 (!%p11431_p11), 2, %v13303_v58 }
 0x70e   : > { %11956 = vmatprep.subr.bf16.mxu1 (!%p11431_p11), %v11955_v16  ;;  %v9702_v16 = vld [vmem:[#allocation13 + $0x160] sm:$0xff] (!%p11431_p11) }
 0x70f   : > { %11920 = vmatprep.subr.bf16.mxu0 (!%p11431_p11), %v11919_v62  ;;  %v9668_v62 = vld [vmem:[#allocation13 + $0x50] sm:$0xff] (!%p11431_p11)  ;;  %v9597_v32 = vrot.slane (!%p11431_p11), %v9584_v20, %v9596_v6  ;;  %v11977_v27 = vpack.c.bf16 (!%p11431_p11), %v9703_v3, %v9702_v16  ;;  %v9725_v16 = vld [vmem:[#allocation13 + $0x218] sm:$0xff] (!%p11431_p11)  ;;  %v9742_v3 = vld [vmem:[#allocation13 + $0x2a0] sm:$0xff] (!%p11431_p11) }
 0x710   : > { %11922 = vmatpush3.bf16.msra.mxu0 (!%p11431_p11), %v11921_v0  ;;  %v9701_v0 = vld [vmem:[#allocation13 + $0x158] sm:$0xff] (!%p11431_p11) }
 0x711   : > { %11924 = vmatprep.subr.bf16.mxu0 (!%p11431_p11), %v11923_v8  ;;  %11958 = vmatpush3.bf16.msra.mxu1 (!%p11431_p11), %v11957_v52  ;;  %v11941_v8 = vpack.c.bf16 (!%p11431_p11), %v9669_v63, %v9668_v62  ;;  %v11973_v9 = vpack.c.bf16 (!%p11431_p11), %v9701_v0, %v9700_v19  ;;  %v9688_v52 = vld [vmem:[#allocation13 + $0xf0] sm:$0xff] (!%p11431_p11)  ;;  %v9722_v63 = vld [vmem:[#allocation13 + $0x200] sm:$0xff] (!%p11431_p11)  ;;  %v9723_v19 = vld [vmem:[#allocation13 + $0x208] sm:$0xff] (!%p11431_p11) }
 0x712   : > { %11960 = vmatprep.subr.bf16.mxu1 (!%p11431_p11), %v11959_v2  ;;  %v9608_v2 = vsub.s32 (!%p11431_p11), 5, %v13303_v58 }
 0x714   : > { %11926 = vmatpush3.bf16.msra.mxu0 (!%p11431_p11), %v11925_v55  ;;  %v9670_v55 = vld [vmem:[#allocation13 + $0x60] sm:$0xff] (!%p11431_p11) }
 0x715   : > { %11928 = vmatprep.subr.bf16.mxu0 (!%p11431_p11), %v11927_v26  ;;  %11962 = vmatpush3.bf16.msra.mxu1 (!%p11431_p11), %v11961_v30  ;;  %v9689_v26 = vld [vmem:[#allocation13 + $0xf8] sm:$0xff] (!%p11431_p11)  ;;  %v11945_v18 = vpack.c.bf16 (!%p11431_p11), %v9671_v14, %v9670_v55  ;;  %v9618_v30 = vcombine.low (!%p11431_p11), %v9589_v28, %v9593_v29  ;;  %v9772_v55 = vld [vmem:[#allocation13 + $0x390] sm:$0xff] (!%p11431_p11) }
 0x716   : > { %11964 = vmatprep.subr.bf16.mxu1 (!%p11431_p11), %v11963_v59  ;;  %v11947_v38 = vpack.c.bf16 (!%p11431_p11), %v9689_v26, %v9688_v52  ;;  %v9704_v59 = vld [vmem:[#allocation13 + $0x170] sm:$0xff] (!%p11431_p11)  ;;  %v9743_v52 = vld [vmem:[#allocation13 + $0x2a8] sm:$0xff] (!%p11431_p11)  ;;  %v9757_v29 = vld [vmem:[#allocation13 + $0x318] sm:$0xff] (!%p11431_p11) }
 0x717   : > { %v9724_v14 = vld [vmem:[#allocation13 + $0x210] sm:$0xff] (!%p11431_p11) }
 0x718   : > { %11930 = vmatpush3.bf16.msra.mxu0 (!%p11431_p11), %v11929_v40  ;;  %v9604_v40 = vsub.s32 (!%p11431_p11), 4, %v13303_v58  ;;  %v9756_v28 = vld [vmem:[#allocation13 + $0x310] sm:$0xff] (!%p11431_p11) }
 0x719   : > { %11932 = vmatprep.subr.bf16.mxu0 (!%p11431_p11), %v11931_v24  ;;  %v9612_v24 = vsub.s32 (!%p11431_p11), 6, %v13303_v58 }
 0x7df   : > { %v9195_v36 = vpop.f32.mrb[4].mxu0  ;;  %v9523_v39 = vpop.f32.mrb[4].mxu1 }
 0x7e0   : > { %v9197_v56 = vpop.f32.mrb[5].mxu0  ;;  %v9525_v17 = vpop.f32.mrb[5].mxu1 }
 0x7e1   : > { %v9555_v53 = vcombine.low %v9195_v36, %v9197_v56  ;;  %v9199_v37 = vpop.f32.mrb[6].mxu0  ;;  %v9556_v42 = vcombine.low %v9523_v39, %v9525_v17  ;;  %v9527_v35 = vpop.f32.mrb[6].mxu1  ;;  %v9683_v36 = vld [vmem:[#allocation13 + $0xc8] sm:$0xff] (!%p11431_p11)  ;;  %v11933_v39 = vpack.c.bf16 (!%p11431_p11), %v9665_v25, %v9664_v41  ;;  %v9714_v56 = vld [vmem:[#allocation13 + $0x1c0] sm:$0xff] (!%p11431_p11)  ;;  %v11965_v17 = vpack.c.bf16 (!%p11431_p11), %v9697_v47, %v9696_v22  ;;  %v9673_v41 = vld [vmem:[#allocation13 + $0x78] sm:$0xff] (!%p11431_p11) }
 0x7e2   : > { %v9200_v43 = vpop.f32.mrb[7].mxu0  ;;  %v9528_v49 = vpop.f32.mrb[7].mxu1  ;;  %v11935_v37 = vpack.c.bf16 (!%p11431_p11), %v9683_v36, %v9682_v33  ;;  %v9667_v35 = vld [vmem:[#allocation13 + $0x48] sm:$0xff] (!%p11431_p11)  ;;  %v9616_v25 = vsub.s32 (!%p11431_p11), 7, %v13303_v58  ;;  %v9619_v22 = vcombine.low (!%p11431_p11), %v9597_v32, %v9601_v44  ;;  %v11979_v47 = vpack.c.bf16 (!%p11431_p11), %v9721_v15, %v9720_v34  ;;  %v9705_v33 = vld [vmem:[#allocation13 + $0x178] sm:$0xff] (!%p11431_p11)  ;;  %v9774_v15 = vld [vmem:[#allocation13 + $0x3a0] sm:$0xff] (!%p11431_p11) }
 0x7e3   : > { %v9563_v45 = vrot.slane %v9555_v53, %v13311_v5  ;;  %v9570_v50 = vrot.slane %v9556_v42, %v13311_v5  ;;  %9581 = sbr.rel (%p11431_p11) target bundleno = 2290 (0x8f2), region = 88  ;;  %v9715_v53 = vld [vmem:[#allocation13 + $0x1c8] sm:$0xff] (!%p11431_p11)  ;;  %v9666_v42 = vld [vmem:[#allocation13 + $0x40] sm:$0xff] (!%p11431_p11)  ;;  %11934 = vmatpush3.bf16.msra.mxu0 (!%p11431_p11), %v11933_v39  ;;  %11966 = vmatpush3.bf16.msra.mxu1 (!%p11431_p11), %v11965_v17  ;;  %v9626_v36 = vrot.slane (!%p11431_p11), %v9618_v30, %v13311_v5  ;;  %v9745_v30 = vld [vmem:[#allocation13 + $0x2b8] sm:$0xff] (!%p11431_p11) }
 0x7e4   : > { %v9698_v43 = vld [vmem:[#allocation13 + $0x140] sm:$0xff] (!%p11431_p11)  ;;  %v9699_v49 = vld [vmem:[#allocation13 + $0x148] sm:$0xff] (!%p11431_p11)  ;;  %v11937_v21 = vpack.c.bf16 (!%p11431_p11), %v9667_v35, %v9666_v42  ;;  %11936 = vmatprep.subr.bf16.mxu0 (!%p11431_p11), %v11935_v37  ;;  %v9633_v17 = vrot.slane (!%p11431_p11), %v9619_v22, %v13311_v5  ;;  %v9605_v35 = vrot.slane (!%p11431_p11), %v9584_v20, %v9604_v40  ;;  %v11989_v34 = vpack.c.bf16 (!%p11431_p11), %v9725_v16, %v9724_v14  ;;  %v9764_v14 = vld [vmem:[#allocation13 + $0x350] sm:$0xff] (!%p11431_p11) }
 0x7e5   : > { %v9571_v54 = vcombine.low %v9563_v45, %v9570_v50  ;;  %v11967_v45 = vpack.c.bf16 (!%p11431_p11), %v9715_v53, %v9714_v56  ;;  %v9684_v50 = vld [vmem:[#allocation13 + $0xd0] sm:$0xff] (!%p11431_p11)  ;;  %v11969_v60 = vpack.c.bf16 (!%p11431_p11), %v9699_v49, %v9698_v43  ;;  %v9738_v39 = vld [vmem:[#allocation13 + $0x280] sm:$0xff] (!%p11431_p11)  ;;  %v9739_v56 = vld [vmem:[#allocation13 + $0x288] sm:$0xff] (!%p11431_p11)  ;;  %v11949_v53 = vpack.c.bf16 (!%p11431_p11), %v9673_v41, %v9672_v10 }
 0x7e6   : > { %v9770_v37 = vld [vmem:[#allocation13 + $0x380] sm:$0xff] (!%p11431_p11)  ;;  %v9771_v42 = vld [vmem:[#allocation13 + $0x388] sm:$0xff] (!%p11431_p11)  ;;  %v9609_v43 = vrot.slane (!%p11431_p11), %v9584_v20, %v9608_v2  ;;  %v9617_v49 = vrot.slane (!%p11431_p11), %v9584_v20, %v9616_v25  ;;  %v11991_v40 = vpack.c.bf16 (!%p11431_p11), %v9743_v52, %v9742_v3  ;;  %v12021_v10 = vpack.c.bf16 (!%p11431_p11), %v9757_v29, %v9756_v28  ;;  %v9744_v41 = vld [vmem:[#allocation13 + $0x2b0] sm:$0xff] (!%p11431_p11) }
 0x7e7   : > { %v9575_v57 = vadd.f32 %v9571_v54, %v1962_v7  ;;  %v9685_v7 = vld [vmem:[#allocation13 + $0xd8] sm:$0xff] (!%p11431_p11)  ;;  %v9716_v54 = vld [vmem:[#allocation13 + $0x1d0] sm:$0xff] (!%p11431_p11)  ;;  %11968 = vmatprep.subr.bf16.mxu1 (!%p11431_p11), %v11967_v45  ;;  %11938 = vmatpush3.bf16.msra.mxu0 (!%p11431_p11), %v11937_v21  ;;  %v9582_v58 = vld [vmem:[#allocation3] sm:$0xff] (!%p11431_p11)  ;;  %v9613_v45 = vrot.slane (!%p11431_p11), %v9584_v20, %v9612_v24 }
 0x7e8   : > { %v11939_v61 = vpack.c.bf16 (!%p11431_p11), %v9685_v7, %v9684_v50  ;;  %11970 = vmatpush3.bf16.msra.mxu1 (!%p11431_p11), %v11969_v60  ;;  %v11981_v50 = vpack.c.bf16 (!%p11431_p11), %v9705_v33, %v9704_v59  ;;  %v9634_v7 = vcombine.low (!%p11431_p11), %v9626_v36, %v9633_v17  ;;  %v9635_v60 = vcombine.low (!%p11431_p11), %v9605_v35, %v9609_v43  ;;  %v9775_v44 = vld [vmem:[#allocation13 + $0x3a8] sm:$0xff] (!%p11431_p11)  ;;  %v9726_v2 = vld [vmem:[#allocation13 + $0x220] sm:$0xff] (!%p11431_p11)  ;;  %v9777_v33 = vld [vmem:[#allocation13 + $0x3b8] sm:$0xff] (!%p11431_p11) }
 0x7e9   : > { %9577 = vst [vmem:[#allocation3 + $0x8] sm:$0xff] %v9575_v57  ;;  %v9717_v57 = vld [vmem:[#allocation13 + $0x1d8] sm:$0xff] (!%p11431_p11)  ;;  %v12023_v25 = vpack.c.bf16 (!%p11431_p11), %v9775_v44, %v9774_v15  ;;  %v11995_v36 = vpack.c.bf16 (!%p11431_p11), %v9745_v30, %v9744_v41  ;;  %v9760_v35 = vld [vmem:[#allocation13 + $0x330] sm:$0xff] (!%p11431_p11)  ;;  %v9783_v3 = vld [vmem:[#allocation13 + $0x3e8] sm:$0xff] (!%p11431_p11) }
 0x7ea   : > { %v11971_v31 = vpack.c.bf16 %v9717_v57, %v9716_v54  ;;  %11940 = vmatprep.subr.bf16.mxu0 %v11939_v61  ;;  %v11983_v54 = vpack.c.bf16 %v9739_v56, %v9738_v39  ;;  %v12015_v57 = vpack.c.bf16 %v9771_v42, %v9770_v37  ;;  %v9654_v21 = vadd.f32 %v9634_v7, %v9582_v58  ;;  %v9728_v39 = vld [vmem:[#allocation13 + $0x230] sm:$0xff]  ;;  %v9729_v56 = vld [vmem:[#allocation13 + $0x238] sm:$0xff]  ;;  %v9746_v37 = vld [vmem:[#allocation13 + $0x2c0] sm:$0xff] }
 0x7eb   : > { %11942 = vmatpush3.bf16.msra.mxu0 %v11941_v8  ;;  %v9636_v61 = vcombine.low %v9613_v45, %v9617_v49  ;;  %v9643_v6 = vrot.slane %v9635_v60, %v13311_v5  ;;  %v11985_v8 = vpack.c.bf16 %v9723_v19, %v9722_v63  ;;  %v9747_v42 = vld [vmem:[#allocation13 + $0x2c8] sm:$0xff]  ;;  %v9761_v43 = vld [vmem:[#allocation13 + $0x338] sm:$0xff]  ;;  %v9778_v7 = vld [vmem:[#allocation13 + $0x3c0] sm:$0xff] }
 0x7ec   : > { %11972 = vmatprep.subr.bf16.mxu1 %v11971_v31  ;;  %11944 = vmatprep.subr.bf16.mxu0 %v11943_v11  ;;  %v9656_v62 = vmax.f32 %v9654_v21, 0.0  ;;  %v11987_v11 = vpack.c.bf16 %v9741_v1, %v9740_v12  ;;  %v9730_v21 = vld [vmem:[#allocation13 + $0x240] sm:$0xff]  ;;  %v9731_v60 = vld [vmem:[#allocation13 + $0x248] sm:$0xff]  ;;  %v12029_v63 = vpack.c.bf16 %v9761_v43, %v9760_v35  ;;  %v9748_v19 = vld [vmem:[#allocation13 + $0x2d0] sm:$0xff] }
 0x7ed   : > { %11974 = vmatpush3.bf16.msra.mxu1 %v11973_v9  ;;  %v9650_v46 = vrot.slane %v9636_v61, %v13311_v5  ;;  %v9773_v9 = vld [vmem:[#allocation13 + $0x398] sm:$0xff]  ;;  %v9762_v12 = vld [vmem:[#allocation13 + $0x340] sm:$0xff]  ;;  %v9763_v1 = vld [vmem:[#allocation13 + $0x348] sm:$0xff] }
 0x7ee   : > { %11976 = vmatprep.subr.bf16.mxu1 %v11975_v23  ;;  %v9802_v31 = vrot.slane %v9656_v62, %v13311_v5  ;;  %v9795_v0 = vcombine.high %v9656_v62, %v9656_v62  ;;  %v12017_v23 = vpack.c.bf16 %v9755_v13, %v9754_v4  ;;  %v12019_v26 = vpack.c.bf16 %v9773_v9, %v9772_v55  ;;  %v9750_v55 = vld [vmem:[#allocation13 + $0x2e0] sm:$0xff]  ;;  %v9751_v9 = vld [vmem:[#allocation13 + $0x2e8] sm:$0xff]  ;;  %v9765_v16 = vld [vmem:[#allocation13 + $0x358] sm:$0xff] }
 0x7ef   : > { %11946 = vmatpush3.bf16.msra.mxu0 %v11945_v18  ;;  %v9651_v32 = vcombine.low %v9643_v6, %v9650_v46  ;;  %v9727_v18 = vld [vmem:[#allocation13 + $0x228] sm:$0xff]  ;;  %v12001_v13 = vpack.c.bf16 %v9731_v60, %v9730_v21  ;;  %v9780_v6 = vld [vmem:[#allocation13 + $0x3d0] sm:$0xff]  ;;  %v9781_v46 = vld [vmem:[#allocation13 + $0x3d8] sm:$0xff]  ;;  %v12007_v52 = vpack.c.bf16 %v9751_v9, %v9750_v55  ;;  %v12037_v29 = vpack.c.bf16 %v9765_v16, %v9764_v14 }
 0x7f0   : > { %11948 = vmatprep.subr.bf16.mxu0 %v11947_v38  ;;  %v9810_v51 = vcombine.high %v9802_v31, %v9802_v31  ;;  %v9809_v48 = vrot.slane %v9795_v0, %v13311_v5  ;;  %v9583_v24 = vld [vmem:[#allocation3 + $0x8] sm:$0xff]  ;;  %v11993_v22 = vpack.c.bf16 %v9727_v18, %v9726_v2  ;;  %v9766_v44 = vld [vmem:[#allocation13 + $0x360] sm:$0xff] }
 0x7f1   : > { %11978 = vmatpush3.bf16.msra.mxu1 %v11977_v27  ;;  %v9758_v27 = vld [vmem:[#allocation13 + $0x320] sm:$0xff]  ;;  %v9759_v38 = vld [vmem:[#allocation13 + $0x328] sm:$0xff]  ;;  %v9655_v59 = vadd.f32 %v9651_v32, %v9583_v24  ;;  %v9752_v32 = vld [vmem:[#allocation13 + $0x2f0] sm:$0xff] }
 0x7f2   : > { %11980 = vmatprep.subr.bf16.mxu1 %v11979_v47  ;;  %9901 = vmatprep.mubr.f32.mxu0 %v9810_v51  ;;  %v9811_v20 = vcombine.high %v9809_v48, %v9809_v48  ;;  %v9776_v47 = vld [vmem:[#allocation13 + $0x3b0] sm:$0xff]  ;;  %v12025_v17 = vpack.c.bf16 %v9759_v38, %v9758_v27  ;;  %v9735_v28 = vld [vmem:[#allocation13 + $0x268] sm:$0xff]  ;;  %v9737_v24 = vld [vmem:[#allocation13 + $0x278] sm:$0xff] }
 0x7f3   : > { %11950 = vmatpush3.bf16.msra.mxu0 %v11949_v53  ;;  %v9657_v53 = vmax.f32 %v9655_v59, 0.0  ;;  %v12027_v58 = vpack.c.bf16 %v9777_v33, %v9776_v47  ;;  %v9784_v18 = vld [vmem:[#allocation13 + $0x3f0] sm:$0xff]  ;;  %v9769_v59 = vld [vmem:[#allocation13 + $0x378] sm:$0xff] }
 0x7f4   : > { %11984 = vmatprep.subr.bf16.mxu0 %v11983_v54  ;;  %9971 = vmatprep.mubr.f32.mxu1 %v9811_v20  ;;  %v9779_v54 = vld [vmem:[#allocation13 + $0x3c8] sm:$0xff]  ;;  %v9736_v30 = vld [vmem:[#allocation13 + $0x270] sm:$0xff] }
 0x7f5   : > { %11982 = vmatpush3.bf16.msra.mxu1 %v11981_v50  ;;  %v14509_v45 = vrot.slane %v9657_v53, %v13311_v5  ;;  %v9812_v49 = vcombine.high %v9657_v53, %v9657_v53  ;;  %v11997_v50 = vpack.c.bf16 %v9729_v56, %v9728_v39  ;;  %v12031_v0 = vpack.c.bf16 %v9779_v54, %v9778_v7  ;;  %v9768_v38 = vld [vmem:[#allocation13 + $0x370] sm:$0xff] }
 0x7f6   : > { %12016 = vmatprep.subr.bf16.mxu1 %v12015_v57  ;;  %9902 = vmatmul.mubr.f32.vlgmr.msra.gmra.mrb[0].mxu0 %v9802_v31  ;;  %v11999_v57 = vpack.c.bf16 %v9747_v42, %v9746_v37  ;;  %v9749_v31 = vld [vmem:[#allocation13 + $0x2d8] sm:$0xff]  ;;  %v12045_v47 = vpack.c.bf16 %v9769_v59, %v9768_v38 }
 0x7f7   : > { %11986 = vmatpush3.bf16.msra.mxu0 %v11985_v8  ;;  %v9827_v61 = vcombine.high %v14509_v45, %v14509_v45  ;;  %v14514_v62 = vrot.slane %v9812_v49, %v13311_v5  ;;  %v12003_v51 = vpack.c.bf16 %v9749_v31, %v9748_v19  ;;  %v9732_v5 = vld [vmem:[#allocation13 + $0x250] sm:$0xff]  ;;  %v12033_v8 = vpack.c.bf16 %v9763_v1, %v9762_v12 }
 0x7f8   : > { %9972 = vmatmul.mubr.f32.vlgmr.msra.gmra.mrb[0].mxu1 %v9809_v48  ;;  %11988 = vmatprep.subr.bf16.mxu0 %v11987_v11  ;;  %v9733_v48 = vld [vmem:[#allocation13 + $0x258] sm:$0xff]  ;;  %v12035_v11 = vpack.c.bf16 %v9781_v46, %v9780_v6 }
 0x7f9   : > { %12018 = vmatpush3.bf16.msra.mxu1 %v12017_v23  ;;  %10041 = vmatprep.mubr.f32.mxu0 %v9827_v61  ;;  %v9828_v4 = vcombine.high %v14514_v62, %v14514_v62  ;;  %v12005_v20 = vpack.c.bf16 %v9733_v48, %v9732_v5  ;;  %v9782_v23 = vld [vmem:[#allocation13 + $0x3e0] sm:$0xff] }
 0x7fa   : > { %12020 = vmatprep.subr.bf16.mxu1 %v12019_v26  ;;  %v9734_v26 = vld [vmem:[#allocation13 + $0x260] sm:$0xff]  ;;  %v12039_v15 = vpack.c.bf16 %v9783_v3, %v9782_v23 }
 0x7fb   : > { %11990 = vmatpush3.bf16.msra.mxu0 %v11989_v34  ;;  %10111 = vmatprep.mubr.f32.mxu1 %v9828_v4  ;;  %v9753_v34 = vld [vmem:[#allocation13 + $0x2f8] sm:$0xff]  ;;  %v12009_v2 = vpack.c.bf16 %v9735_v28, %v9734_v26 }
 0x7fc   : > { %11992 = vmatprep.subr.bf16.mxu0 %v11991_v40  ;;  %v9767_v40 = vld [vmem:[#allocation13 + $0x368] sm:$0xff]  ;;  %v12011_v41 = vpack.c.bf16 %v9753_v34, %v9752_v32 }
 0x7fd   : > { %12022 = vmatpush3.bf16.msra.mxu1 %v12021_v10  ;;  %v9785_v10 = vld [vmem:[#allocation13 + $0x3f8] sm:$0xff] }
 0x7fe   : > { %12024 = vmatprep.subr.bf16.mxu1 %v12023_v25  ;;  %v12041_v25 = vpack.c.bf16 %v9767_v40, %v9766_v44  ;;  %v12043_v27 = vpack.c.bf16 %v9785_v10, %v9784_v18 }
 0x7ff   : > { %11994 = vmatpush3.bf16.msra.mxu0 %v11993_v22  ;;  %v12013_v22 = vpack.c.bf16 %v9737_v24, %v9736_v30 }
 0x800   : > { %11996 = vmatprep.subr.bf16.mxu0 %v11995_v36  ;;  %v11432_v36 = vld [vmem:[#allocation15] ss:$0 sm:$0xff] }
 0x801   : > { %12026 = vmatpush3.bf16.msra.mxu1 %v12025_v17 }
 0x802   : > { %12028 = vmatprep.subr.bf16.mxu1 %v12027_v58 }
 0x803   : > { %11998 = vmatpush3.bf16.msra.mxu0 %v11997_v50 }
 0x804   : > { %12000 = vmatprep.subr.bf16.mxu0 %v11999_v57 }
 0x805   : > { %12030 = vmatpush3.bf16.msra.mxu1 %v12029_v63 }
 0x806   : > { %12032 = vmatprep.subr.bf16.mxu1 %v12031_v0 }
 0x807   : > { %12002 = vmatpush3.bf16.msra.mxu0 %v12001_v13 }
 0x808   : > { %12004 = vmatprep.subr.bf16.mxu0 %v12003_v51 }
 0x809   : > { %12034 = vmatpush3.bf16.msra.mxu1 %v12033_v8 }
 0x80a   : > { %12036 = vmatprep.subr.bf16.mxu1 %v12035_v11 }
 0x80b   : > { %12006 = vmatpush3.bf16.msra.mxu0 %v12005_v20 }
 0x80c   : > { %12008 = vmatprep.subr.bf16.mxu0 %v12007_v52 }
 0x80d   : > { %12038 = vmatpush3.bf16.msra.mxu1 %v12037_v29 }
 0x80e   : > { %12040 = vmatprep.subr.bf16.mxu1 %v12039_v15 }
 0x80f   : > { %12010 = vmatpush3.bf16.msra.mxu0 %v12009_v2 }
 0x810   : > { %12012 = vmatprep.subr.bf16.mxu0 %v12011_v41 }
 0x811   : > { %12042 = vmatpush3.bf16.msra.mxu1 %v12041_v25 }
 0x812   : > { %12044 = vmatprep.subr.bf16.mxu1 %v12043_v27 }
 0x813   : > { %12014 = vmatpush3.bf16.msra.mxu0 %v12013_v22 }
 0x815   : > { %12046 = vmatpush3.bf16.msra.mxu1 %v12045_v47 }
 0x816   : > { %10042 = vmatmul.mubr.f32.vlgmr.msra.gmra.mrb[2].mxu0 %v14509_v45 }
 0x818   : > { %10112 = vmatmul.mubr.f32.vlgmr.msra.gmra.mrb[2].mxu1 %v14514_v62 }
 0x8c9   : > { %v11649_v33 = vpop.f32.mrb[0].mxu0 }
 0x8ca   : > { %v11650_v39 = vpop.f32.mrb[1].mxu0 }
 0x8cb   : > { %v11651_v56 = vadd.f32 %v11650_v39, %v11649_v33  ;;  %v11684_v53 = vpop.f32.mrb[0].mxu1 }
 0x8cc   : > { %v11685_v17 = vpop.f32.mrb[1].mxu1 }
 0x8cd   : > { %v9904_v37 = vadd.f32 %v11651_v56, %v11432_v36  ;;  %v11686_v42 = vadd.f32 %v11685_v17, %v11684_v53 }
 0x8cf   : > { %v9974_v58 = vadd.f32 %v11686_v42, %v9904_v37 }
 0x8e9   : > { %v11719_v35 = vpop.f32.mrb[2].mxu0 }
 0x8ea   : > { %v11720_v43 = vpop.f32.mrb[3].mxu0 }
 0x8eb   : > { %v11721_v49 = vadd.f32 %v11720_v43, %v11719_v35  ;;  %v11754_v50 = vpop.f32.mrb[2].mxu1 }
 0x8ec   : > { %v11755_v7 = vpop.f32.mrb[3].mxu1 }
 0x8ed   : > { %v10044_v54 = vadd.f32 %v11721_v49, %v9974_v58  ;;  %v11756_v57 = vadd.f32 %v11755_v7, %v11754_v50 }
 0x8ef   : > { %v10114_v21 = vadd.f32 %v11756_v57, %v10044_v54 }
 0x8f1   : > { %10117 = vst [vmem:[#allocation16] sm:$0x3] %v10114_v21 }
 0x8f2 PF: > { %p12227_p5 = scmp.eq.s32.totalorder %s12644_s11, 3  ;;  %s12577_s30 = smov [#allocation16]  }
 0x8f3   : > { %s10125_s23 = sshll.u32 %s12577_s30, 4  ;;  %s10126_s23 = int_to_ptr.vmem [resolvable:$true] %s10125_s23 }
 0x8f4   : > { %s12479_s25 = scalar_lea.vmem %s10126_s23, 32  ;;  %p12486_p2 = scmp.lt.s32.totalorder %s10126_s23, %s10126_s23 }
 0x8f5   : > { %p12480_p8 = scmp.ne.s32.totalorder %s10126_s23, %s12479_s25  ;;  %p12487_p9 = scmp.lt.s32.totalorder %s12479_s25, %s12479_s25 }
 0x8f7   : > { %p12481_p7 = pnand %p12480_p8, %p12227_p5  ;;  %p12488_p3 = por %p12487_p9, %p12486_p2 }
 0x8f9   : > { %p12482_p13 = pneg %p12481_p7 }
 0x8fb   : > { %p12489_p1 = pnand %p12488_p3, %p12482_p13 }
 0x8fd   : > { %12492 = shalt.err (!%p12489_p1)
}
 0x8fe   : > { %s12493_s19 = scalar_lea.hbm %s14564_s8, 32 }
 0x8ff   : > { %p12494_p6 = scmp.ne.s32.totalorder %s14564_s8, %s12493_s19  ;;  %p12499_p12 = scmp.lt.u32.totalorder %s12493_s19, %s14564_s8 }
 0x901   : > { %p12495_p4 = pnand %p12494_p6, %p12227_p5 }
 0x903   : > { %p12496_p10 = pneg %p12495_p4 }
 0x905   : > { %p12501_p0 = pnand %p12499_p12, %p12496_p10 }
 0x907   : > { %12504 = shalt.err (!%p12501_p0)
}
 0x908   : > { %12188 = dma.vmem_to_hbm [thread:$0]  (%p12227_p5), %s10126_s23, 32, %s14564_s8, [#allocation6]  }
 0x909   : > { %12542 = dma.done.wait (%p12227_p5), [#allocation6], 32  }
 0x90a   : > { %12544 = vsyncadd (%p12227_p5), [#allocation6], 4294967264 }
 0x90b PF: > { %p22_p11 = scmp.ge.s32.totalorder %s12799_s17, 6   ;;  %s14583_s27 = smov %s12551_s28 }
 0x90c   : > { %s14584_s28 = smov %s12555_s29  ;;  %s14585_s29 = smov %s12811_s26 }
 0x90d   : > { %s14586_s30 = smov %s12799_s17  ;;  %24 = sbr.rel (!%p22_p11) target bundleno = 7 (0x7), region = 126 }
 0x914   :  { %10138 = vsyncpa [#allocation5], 1 }
 0x915   :  { %10140 = vsyncpa [#allocation5 + $0x1], 1 }
 0x916   :  { %10141 = vsyncpa [#allocation8], 1 }
 0x917   :  { %10142 = vsyncpa [#allocation11], 1 }
 0x918   :  { %10144 = vsyncpa [#allocation11 + $0x1], 1 }
 0x919   :  { %10145 = vsyncpa [#allocation14], 1 }
 0x91a   :  { %10146 = vsyncpa [#allocation6], 1 }
 0x91b   :  { %10148 = vsyncpa [#allocation6 + $0x1], 1 }

</bundles_post_ra>
